<compile_context>
chip_gen: v7x
topology: tpu7x:2x2x1
jax: 0.10.0
libtpu: 0.0.40
codegen_flags: <defaults>
</compile_context>

<pallas_src>
import functools

import jax
import jax.numpy as jnp
import numpy as np
from jax.experimental import pallas as pl
from jax.experimental.pallas import tpu as pltpu


def _round_up(x, m):
    return (x + m - 1) // m * m


# ---------------------------------------------------------------------------
# Host-side (one-time) construction of kernel-layout constants
# ---------------------------------------------------------------------------

def _shift_matrix(n, block, delta):
    """S[r, r+delta] = 1 when r+delta is in range and in the same block."""
    s = np.zeros((n, n), np.float32)
    for r in range(n):
        c = r + delta
        if 0 <= c < n and c // block == r // block:
            s[r, c] = 1.0
    return s


def _row_pool_select(n_out, parity):
    """(n_out, 2*n_out) selector of rows 2p + parity."""
    s = np.zeros((n_out, 2 * n_out), np.float32)
    s[np.arange(n_out), 2 * np.arange(n_out) + parity] = 1.0
    return s


def _col_pool_select(n_ch, w_in, lanes_out, parity):
    """(n_ch*w_in, lanes_out) selector: lane c*w_in + 2j + parity -> c*(w_in//2)+j."""
    s = np.zeros((n_ch * w_in, lanes_out), np.float32)
    w_out = w_in // 2
    for c in range(n_ch):
        for j in range(w_out):
            s[c * w_in + 2 * j + parity, c * w_out + j] = 1.0
    return s


def _conv_col_matrices(w, w_io):
    """Fold the column taps of a KxK pad-1 conv into (kh, Cin*W, Cout*W) band
    matrices so that conv(x) = sum_ki row_shift_ki(x) @ M[ki]."""
    w = np.asarray(w, np.float32)
    cout, cin, kh, kw = w.shape
    m = np.zeros((kh, cin * w_io, cout * w_io), np.float32)
    for ki in range(kh):
        for kj in range(kw):
            for wo in range(w_io):
                wi = wo + kj - 1                      # pad = 1
                if 0 <= wi < w_io:
                    for co in range(cout):
                        for ci in range(cin):
                            m[ki, ci * w_io + wi, co * w_io + wo] += w[co, ci, ki, kj]
    return m


def _bias_lanes(b, w_io, lanes):
    v = np.zeros((1, lanes), np.float32)
    b = np.asarray(b, np.float32)
    for c in range(b.shape[0]):
        v[0, c * w_io:(c + 1) * w_io] = b[c]
    return v


def init_params(key):
    """PyTorch-layout parameters (Conv2d: (Cout,Cin,kh,kw); Linear: (out,in))."""
    ks = jax.random.split(key, 12)

    def w(k, shape, scale=0.05):
        return (scale * jax.random.normal(k, shape)).astype(jnp.float32)

    return dict(
        conv1_w=w(ks[0], (3, 1, 2, 2)),    conv1_b=w(ks[1], (3,)),
        conv2_w=w(ks[2], (6, 3, 2, 2)),    conv2_b=w(ks[3], (6,)),
        conv3_w=w(ks[4], (12, 6, 3, 3)),   conv3_b=w(ks[5], (12,)),
        fc1_w=w(ks[6], (250, 8 * 8 * 12)), fc1_b=w(ks[7], (250,)),
        fc2_w=w(ks[8], (100, 250)),        fc2_b=w(ks[9], (100,)),
        fc3_w=w(ks[10], (10, 100)),        fc3_b=w(ks[11], (10,)),
    )


def prepare_params(params, batch_tile=8):
    """One-time repack (not in the hot path) into the kernels' lane-aligned
    layouts: conv weights as band matrices, row-shift / pooling 0/1 selection
    matrices, bf16 pre-transposed / permuted / zero-padded FC weights."""
    f32, bf16 = jnp.float32, jnp.bfloat16
    b = batch_tile

    conv = dict(
        s1=_shift_matrix(b * 64, 64, -1),                       # (B*64, B*64)
        m1=_conv_col_matrices(params["conv1_w"], 64),           # (2, 64, 192)
        b1=_bias_lanes(params["conv1_b"], 64, 192),
        cp1=np.stack([_col_pool_select(3, 64, 96, 0),
                      _col_pool_select(3, 64, 96, 1)]),         # (2, 192, 96)
        rp1=np.stack([_row_pool_select(b * 32, 0),
                      _row_pool_select(b * 32, 1)]),            # (2, B*32, B*64)
        sh2=_shift_matrix(b * 32, 32, -1),
        m2=_conv_col_matrices(params["conv2_w"], 32),           # (2, 96, 192)
        b2=_bias_lanes(params["conv2_b"], 32, 192),
        cp2=np.stack([_col_pool_select(6, 32, 96, 0),
                      _col_pool_select(6, 32, 96, 1)]),
        rp2=np.stack([_row_pool_select(b * 16, 0),
                      _row_pool_select(b * 16, 1)]),
        sh3=np.stack([_shift_matrix(b * 16, 16, -1),
                      _shift_matrix(b * 16, 16, +1)]),
        m3=_conv_col_matrices(params["conv3_w"], 16),           # (3, 96, 192)
        b3=_bias_lanes(params["conv3_b"], 16, 192),
        cp3=np.stack([_col_pool_select(12, 16, 128, 0),
                      _col_pool_select(12, 16, 128, 1)]),       # (2, 192, 128)
        rp3=np.stack([_row_pool_select(b * 8, 0),
                      _row_pool_select(b * 8, 1)]),             # (2, B*8, B*16)
    )
    conv = {k: jnp.asarray(v, f32) for k, v in conv.items()}

    # fc1: PyTorch flat index c*64 + h*8 + w  ->  feature index h*128 + c*8 + w
    # (kernel-1's lane-dense layout; feature lanes 96..127 are always zero).
    w1 = np.asarray(params["fc1_w"], np.float32).T.reshape(12, 8, 8, 250)
    w1 = np.transpose(w1, (1, 0, 2, 3)).reshape(8, 96, 250)
    w1 = np.pad(w1, ((0, 0), (0, 32), (0, 0))).reshape(1024, 250)
    fc = dict(
        w1=jnp.asarray(np.pad(w1, ((0, 0), (0, 6))), bf16),               # (1024, 256)
        b1=jnp.asarray(np.pad(np.asarray(params["fc1_b"], np.float32),
                              (0, 6)).reshape(1, 256), f32),
        w2=jnp.asarray(np.pad(np.asarray(params["fc2_w"], np.float32).T,
                              ((0, 6), (0, 28))), bf16),                  # (256, 128)
        b2=jnp.asarray(np.pad(np.asarray(params["fc2_b"], np.float32),
                              (0, 28)).reshape(1, 128), f32),
        w3=jnp.asarray(np.pad(np.asarray(params["fc3_w"], np.float32).T,
                              ((0, 28), (0, 118))), bf16),                # (128, 128)
        b3=jnp.asarray(np.pad(np.asarray(params["fc3_b"], np.float32),
                              (0, 118)).reshape(1, 128), f32),
    )
    return dict(conv=conv, fc=fc)


# ---------------------------------------------------------------------------
# Kernel 1: fused conv1/pool/conv2/pool/conv3/pool  ->  lane-dense features
# ---------------------------------------------------------------------------

def _features_kernel(x_ref, s1_ref, m1_ref, b1_ref, cp1_ref, rp1_ref,
                     sh2_ref, m2_ref, b2_ref, cp2_ref, rp2_ref,
                     sh3_ref, m3_ref, b3_ref, cp3_ref, rp3_ref, out_ref):
    mm = functools.partial(jnp.dot, preferred_element_type=jnp.float32)

    def pool(a, cp_ref, rp_ref):
        # 2x2 / stride-2 max pool via precomputed 0/1 even/odd selectors (MXU).
        t = jnp.maximum(mm(a, cp_ref[0]), mm(a, cp_ref[1]))
        return jnp.maximum(mm(rp_ref[0], t), mm(rp_ref[1], t))

    x = x_ref[...]                                  # (B*64, 64): rows b*64+h

    # stage 1: conv1 (1->3, 2x2, pad=1) + ReLU + pool  -> (B*32, 3*32)
    xd = mm(s1_ref[...], x)                         # within-sample row h-1
    a1 = jnp.maximum(mm(xd, m1_ref[0]) + mm(x, m1_ref[1]) + b1_ref[...], 0.0)
    p1 = pool(a1, cp1_ref, rp1_ref)

    # stage 2: conv2 (3->6, 2x2, pad=1) + ReLU + pool  -> (B*16, 6*16)
    p1d = mm(sh2_ref[...], p1)
    a2 = jnp.maximum(mm(p1d, m2_ref[0]) + mm(p1, m2_ref[1]) + b2_ref[...], 0.0)
    p2 = pool(a2, cp2_ref, rp2_ref)

    # stage 3: conv3 (6->12, 3x3, pad=1) + ReLU + pool -> (B*8, 128)
    p2d = mm(sh3_ref[0], p2)
    p2u = mm(sh3_ref[1], p2)
    a3 = jnp.maximum(mm(p2d, m3_ref[0]) + mm(p2, m3_ref[1])
                     + mm(p2u, m3_ref[2]) + b3_ref[...], 0.0)
    p3 = pool(a3, cp3_ref, rp3_ref)                 # lanes 96..127 are zero

    out_ref[...] = p3.astype(out_ref.dtype)         # single lane-dense store


_CONST_ORDER = ("s1", "m1", "b1", "cp1", "rp1", "sh2", "m2", "b2", "cp2",
                "rp2", "sh3", "m3", "b3", "cp3", "rp3")


def _const_spec(a):
    nd = a.ndim
    return pl.BlockSpec(a.shape, lambda i, nd=nd: (0,) * nd)


def conv_features(x2d, cparams, batch_tile):
    """x2d: (Np*64, 64) f32 (rows = sample*64 + h) -> (Np*8, 128) bf16 features."""
    n = x2d.shape[0] // 64
    b = batch_tile
    return pl.pallas_call(
        _features_kernel,
        out_shape=jax.ShapeDtypeStruct((n * 8, 128), jnp.bfloat16),
        grid=(n // b,),
        in_specs=[pl.BlockSpec((b * 64, 64), lambda i: (i, 0))]
                 + [_const_spec(cparams[k]) for k in _CONST_ORDER],
        out_specs=pl.BlockSpec((b * 8, 128), lambda i: (i, 0)),
        compiler_params=pltpu.CompilerParams(
            dimension_semantics=("parallel",),
            vmem_limit_bytes=32 * 1024 * 1024),
    )(x2d, *[cparams[k] for k in _CONST_ORDER])


# ---------------------------------------------------------------------------
# Kernel 2: fused fc1+ReLU+fc2+ReLU+fc3 on the MXU (bf16, f32 accumulation)
# ---------------------------------------------------------------------------

def _fc_kernel(x_ref, w1_ref, b1_ref, w2_ref, b2_ref, w3_ref, b3_ref, o_ref):
    h = jnp.dot(x_ref[...], w1_ref[...], preferred_element_type=jnp.float32)
    h = jnp.maximum(h + b1_ref[...], 0.0)
    h = jnp.dot(h.astype(jnp.bfloat16), w2_ref[...],
                preferred_element_type=jnp.float32)
    h = jnp.maximum(h + b2_ref[...], 0.0)
    o_ref[...] = (jnp.dot(h.astype(jnp.bfloat16), w3_ref[...],
                          preferred_element_type=jnp.float32) + b3_ref[...])


def fc_head(feat_flat, fp):
    """feat_flat: (M, 1024) bf16 permuted/padded features -> (Mp, 128) logits."""
    m = feat_flat.shape[0]
    if m <= 16:
        tile_m = m
    else:
        # >= 2 grid steps so v7x's two TensorCores both get work; cap at 512.
        tile_m = min(512, _round_up(pl.cdiv(m, 2), 16))
    mp = _round_up(m, tile_m)
    if mp != m:
        feat_flat = jnp.pad(feat_flat, ((0, mp - m), (0, 0)))

    order = ("w1", "b1", "w2", "b2", "w3", "b3")
    return pl.pallas_call(
        _fc_kernel,
        out_shape=jax.ShapeDtypeStruct((mp, 128), jnp.float32),
        grid=(mp // tile_m,),
        in_specs=[pl.BlockSpec((tile_m, 1024), lambda i: (i, 0))]
                 + [_const_spec(fp[k]) for k in order],
        out_specs=pl.BlockSpec((tile_m, 128), lambda i: (i, 0)),
        compiler_params=pltpu.CompilerParams(
            dimension_semantics=("parallel",),
            vmem_limit_bytes=32 * 1024 * 1024),
    )(feat_flat, *[fp[k] for k in order])


# ---------------------------------------------------------------------------
# Full forward
# ---------------------------------------------------------------------------

def net_forward(packed, x_nchw):
    """x_nchw: (N, 1, 64, 64) float32 -> logits (N, 10)."""
    n = x_nchw.shape[0]
    b = packed["conv"]["rp3"].shape[1] // 8          # batch tile (static)
    n_pad = _round_up(n, b)
    x2d = x_nchw.reshape(n * 64, 64)                 # no halo pre-pad needed
    if n_pad != n:
        x2d = jnp.pad(x2d, ((0, (n_pad - n) * 64), (0, 0)))
    feat = conv_features(x2d, packed["conv"], b)     # (Np*8, 128) bf16
    # Dropout(p=0.2) layers are identity at inference time.
    # TODO(synk): training-mode stochastic dropout mask not implemented.
    logits = fc_head(feat.reshape(n_pad, 8 * 128), packed["fc"])
    return logits[:n, :10]


# ---------------------------------------------------------------------------
# Pure-jnp reference (mirrors the PyTorch module, eval mode) + self-test
# ---------------------------------------------------------------------------

def _reference_forward(params, x_nchw):
    def conv(x, w, b):
        y = jax.lax.conv_general_dilated(
            x, w, window_strides=(1, 1), padding=((1, 1), (1, 1)),
            dimension_numbers=("NCHW", "OIHW", "NCHW"))
        return jax.nn.relu(y + b[None, :, None, None])

    def pool(x):
        n, c, h, w = x.shape
        x = x[:, :, :(h // 2) * 2, :(w // 2) * 2]
        return x.reshape(n, c, h // 2, 2, w // 2, 2).max(axis=(3, 5))

    x = pool(conv(x_nchw, params["conv1_w"], params["conv1_b"]))
    x = pool(conv(x, params["conv2_w"], params["conv2_b"]))
    x = pool(conv(x, params["conv3_w"], params["conv3_b"]))
    flat = x.reshape(x.shape[0], -1)                 # NCHW flatten order
    h = jax.nn.relu(flat @ params["fc1_w"].T + params["fc1_b"])
    h = jax.nn.relu(h @ params["fc2_w"].T + params["fc2_b"])
    return h @ params["fc3_w"].T + params["fc3_b"]


if __name__ == "__main__":
    key = jax.random.PRNGKey(0)
    k_params, k_x = jax.random.split(key)
    params = init_params(k_params)
    packed = prepare_params(params, batch_tile=8)
    x = jax.random.normal(k_x, (2, 1, 64, 64), dtype=jnp.float32)

    logits = jax.jit(net_forward)(packed, x)
    logits = jax.block_until_ready(logits)

    assert logits.shape == (2, 10), logits.shape
    assert logits.dtype == jnp.float32

    ref = _reference_forward(params, x)
    max_err = float(jnp.max(jnp.abs(logits - ref)))
    assert jnp.allclose(logits, ref, atol=2e-2, rtol=2e-2), max_err
    print("KERNEL_OK")
</pallas_src>

<mosaic_0001>
module attributes {stable_mosaic.version = 11 : i64} {
  func.func @_fc_kernel(%arg0: i32, %arg1: memref<8x1024xbf16, #tpu.memory_space<vmem>>, %arg2: memref<1024x256xbf16, #tpu.memory_space<vmem>>, %arg3: memref<1x256xf32, #tpu.memory_space<vmem>>, %arg4: memref<256x128xbf16, #tpu.memory_space<vmem>>, %arg5: memref<1x128xf32, #tpu.memory_space<vmem>>, %arg6: memref<128x128xbf16, #tpu.memory_space<vmem>>, %arg7: memref<1x128xf32, #tpu.memory_space<vmem>>, %arg8: memref<8x128xf32, #tpu.memory_space<vmem>>) attributes {dimension_semantics = [#tpu.dimension_semantics<parallel>], iteration_bounds = array<i64: 1>, scalar_prefetch = 0 : i64, scratch_operands = 0 : i64, tpu.core_type = #tpu.core_type<tc>, window_params = [{transform_indices = @transform_0, window_bounds = array<i64: 8, 1024>}, {pipeline_mode = #tpu.pipeline_mode<synchronous>, transform_indices = @transform_1, window_bounds = array<i64: 1024, 256>}, {pipeline_mode = #tpu.pipeline_mode<synchronous>, transform_indices = @transform_2, window_bounds = array<i64: 1, 256>}, {pipeline_mode = #tpu.pipeline_mode<synchronous>, transform_indices = @transform_3, window_bounds = array<i64: 256, 128>}, {pipeline_mode = #tpu.pipeline_mode<synchronous>, transform_indices = @transform_4, window_bounds = array<i64: 1, 128>}, {pipeline_mode = #tpu.pipeline_mode<synchronous>, transform_indices = @transform_5, window_bounds = array<i64: 128, 128>}, {pipeline_mode = #tpu.pipeline_mode<synchronous>, transform_indices = @transform_6, window_bounds = array<i64: 1, 128>}, {transform_indices = @transform_7, window_bounds = array<i64: 8, 128>}]} {
    %c0 = arith.constant 0 : index
    %c0_0 = arith.constant 0 : index
    %0 = vector.load %arg1[%c0, %c0_0] : memref<8x1024xbf16, #tpu.memory_space<vmem>>, vector<8x1024xbf16>
    %c0_1 = arith.constant 0 : index
    %c0_2 = arith.constant 0 : index
    %1 = vector.load %arg2[%c0_1, %c0_2] : memref<1024x256xbf16, #tpu.memory_space<vmem>>, vector<1024x256xbf16>
    %cst = arith.constant dense<0.000000e+00> : vector<8x256xf32>
    %2 = tpu.matmul %0, %1, %cst {dimension_numbers = #tpu.dot_dimension_numbers<[1], [0], [0], [1], [0, 0, 1, 1], [], []>} : vector<8x1024xbf16>, vector<1024x256xbf16>, vector<8x256xf32> -> vector<8x256xf32>
    %c0_3 = arith.constant 0 : index
    %c0_4 = arith.constant 0 : index
    %3 = vector.load %arg3[%c0_3, %c0_4] : memref<1x256xf32, #tpu.memory_space<vmem>>, vector<1x256xf32>
    %4 = vector.broadcast %3 : vector<1x256xf32> to vector<8x256xf32>
    %5 = arith.addf %2, %4 : vector<8x256xf32>
    %cst_5 = arith.constant 0.000000e+00 : f32
    %6 = vector.broadcast %cst_5 : f32 to vector<8x256xf32>
    %7 = arith.maximumf %5, %6 : vector<8x256xf32>
    %8 = arith.truncf %7 : vector<8x256xf32> to vector<8x256xbf16>
    %c0_6 = arith.constant 0 : index
    %c0_7 = arith.constant 0 : index
    %9 = vector.load %arg4[%c0_6, %c0_7] : memref<256x128xbf16, #tpu.memory_space<vmem>>, vector<256x128xbf16>
    %cst_8 = arith.constant dense<0.000000e+00> : vector<8x128xf32>
    %10 = tpu.matmul %8, %9, %cst_8 {dimension_numbers = #tpu.dot_dimension_numbers<[1], [0], [0], [1], [0, 0, 1, 1], [], []>} : vector<8x256xbf16>, vector<256x128xbf16>, vector<8x128xf32> -> vector<8x128xf32>
    %c0_9 = arith.constant 0 : index
    %c0_10 = arith.constant 0 : index
    %11 = vector.load %arg5[%c0_9, %c0_10] : memref<1x128xf32, #tpu.memory_space<vmem>>, vector<1x128xf32>
    %12 = vector.broadcast %11 : vector<1x128xf32> to vector<8x128xf32>
    %13 = arith.addf %10, %12 : vector<8x128xf32>
    %cst_11 = arith.constant 0.000000e+00 : f32
    %14 = vector.broadcast %cst_11 : f32 to vector<8x128xf32>
    %15 = arith.maximumf %13, %14 : vector<8x128xf32>
    %16 = arith.truncf %15 : vector<8x128xf32> to vector<8x128xbf16>
    %c0_12 = arith.constant 0 : index
    %c0_13 = arith.constant 0 : index
    %17 = vector.load %arg6[%c0_12, %c0_13] : memref<128x128xbf16, #tpu.memory_space<vmem>>, vector<128x128xbf16>
    %cst_14 = arith.constant dense<0.000000e+00> : vector<8x128xf32>
    %18 = tpu.matmul %16, %17, %cst_14 {dimension_numbers = #tpu.dot_dimension_numbers<[1], [0], [0], [1], [0, 0, 1, 1], [], []>} : vector<8x128xbf16>, vector<128x128xbf16>, vector<8x128xf32> -> vector<8x128xf32>
    %c0_15 = arith.constant 0 : index
    %c0_16 = arith.constant 0 : index
    %19 = vector.load %arg7[%c0_15, %c0_16] : memref<1x128xf32, #tpu.memory_space<vmem>>, vector<1x128xf32>
    %20 = vector.broadcast %19 : vector<1x128xf32> to vector<8x128xf32>
    %21 = arith.addf %18, %20 : vector<8x128xf32>
    %c0_17 = arith.constant 0 : index
    %c0_18 = arith.constant 0 : index
    %22 = vector.load %arg8[%c0_17, %c0_18] : memref<8x128xf32, #tpu.memory_space<vmem>>, vector<8x128xf32>
    tpu.vector_store %arg8[%c0_17, %c0_18], %21 {strides = array<i32>} : memref<8x128xf32, #tpu.memory_space<vmem>>, vector<8x128xf32>,
    return
  }
  func.func @transform_0(%arg0: i32) -> (i32, i32) {
    %c0_i32 = arith.constant 0 : i32
    %c0_i32_0 = arith.constant 0 : i32
    return %arg0, %c0_i32 : i32, i32
  }
  func.func @transform_1(%arg0: i32) -> (i32, i32) {
    %c0_i32 = arith.constant 0 : i32
    %c0_i32_0 = arith.constant 0 : i32
    %c0_i32_1 = arith.constant 0 : i32
    return %c0_i32, %c0_i32_0 : i32, i32
  }
  func.func @transform_2(%arg0: i32) -> (i32, i32) {
    %c0_i32 = arith.constant 0 : i32
    %c0_i32_0 = arith.constant 0 : i32
    %c0_i32_1 = arith.constant 0 : i32
    return %c0_i32, %c0_i32_0 : i32, i32
  }
  func.func @transform_3(%arg0: i32) -> (i32, i32) {
    %c0_i32 = arith.constant 0 : i32
    %c0_i32_0 = arith.constant 0 : i32
    %c0_i32_1 = arith.constant 0 : i32
    return %c0_i32, %c0_i32_0 : i32, i32
  }
  func.func @transform_4(%arg0: i32) -> (i32, i32) {
    %c0_i32 = arith.constant 0 : i32
    %c0_i32_0 = arith.constant 0 : i32
    %c0_i32_1 = arith.constant 0 : i32
    return %c0_i32, %c0_i32_0 : i32, i32
  }
  func.func @transform_5(%arg0: i32) -> (i32, i32) {
    %c0_i32 = arith.constant 0 : i32
    %c0_i32_0 = arith.constant 0 : i32
    %c0_i32_1 = arith.constant 0 : i32
    return %c0_i32, %c0_i32_0 : i32, i32
  }
  func.func @transform_6(%arg0: i32) -> (i32, i32) {
    %c0_i32 = arith.constant 0 : i32
    %c0_i32_0 = arith.constant 0 : i32
    %c0_i32_1 = arith.constant 0 : i32
    return %c0_i32, %c0_i32_0 : i32, i32
  }
  func.func @transform_7(%arg0: i32) -> (i32, i32) {
    %c0_i32 = arith.constant 0 : i32
    %c0_i32_0 = arith.constant 0 : i32
    return %arg0, %c0_i32 : i32, i32
  }
}

module attributes {stable_mosaic.version = 11 : i64} {
  func.func @_features_kernel(%arg0: i32, %arg1: memref<512x64xf32, #tpu.memory_space<vmem>>, %arg2: memref<512x512xf32, #tpu.memory_space<vmem>>, %arg3: memref<2x64x192xf32, #tpu.memory_space<vmem>>, %arg4: memref<1x192xf32, #tpu.memory_space<vmem>>, %arg5: memref<2x192x96xf32, #tpu.memory_space<vmem>>, %arg6: memref<2x256x512xf32, #tpu.memory_space<vmem>>, %arg7: memref<256x256xf32, #tpu.memory_space<vmem>>, %arg8: memref<2x96x192xf32, #tpu.memory_space<vmem>>, %arg9: memref<1x192xf32, #tpu.memory_space<vmem>>, %arg10: memref<2x192x96xf32, #tpu.memory_space<vmem>>, %arg11: memref<2x128x256xf32, #tpu.memory_space<vmem>>, %arg12: memref<2x128x128xf32, #tpu.memory_space<vmem>>, %arg13: memref<3x96x192xf32, #tpu.memory_space<vmem>>, %arg14: memref<1x192xf32, #tpu.memory_space<vmem>>, %arg15: memref<2x192x128xf32, #tpu.memory_space<vmem>>, %arg16: memref<2x64x128xf32, #tpu.memory_space<vmem>>, %arg17: memref<64x128xbf16, #tpu.memory_space<vmem>>) attributes {dimension_semantics = [#tpu.dimension_semantics<parallel>], iteration_bounds = array<i64: 1>, scalar_prefetch = 0 : i64, scratch_operands = 0 : i64, tpu.core_type = #tpu.core_type<tc>, window_params = [{transform_indices = @transform_0, window_bounds = array<i64: 512, 64>}, {pipeline_mode = #tpu.pipeline_mode<synchronous>, transform_indices = @transform_1, window_bounds = array<i64: 512, 512>}, {pipeline_mode = #tpu.pipeline_mode<synchronous>, transform_indices = @transform_2, window_bounds = array<i64: 2, 64, 192>}, {pipeline_mode = #tpu.pipeline_mode<synchronous>, transform_indices = @transform_3, window_bounds = array<i64: 1, 192>}, {pipeline_mode = #tpu.pipeline_mode<synchronous>, transform_indices = @transform_4, window_bounds = array<i64: 2, 192, 96>}, {pipeline_mode = #tpu.pipeline_mode<synchronous>, transform_indices = @transform_5, window_bounds = array<i64: 2, 256, 512>}, {pipeline_mode = #tpu.pipeline_mode<synchronous>, transform_indices = @transform_6, window_bounds = array<i64: 256, 256>}, {pipeline_mode = #tpu.pipeline_mode<synchronous>, transform_indices = @transform_7, window_bounds = array<i64: 2, 96, 192>}, {pipeline_mode = #tpu.pipeline_mode<synchronous>, transform_indices = @transform_8, window_bounds = array<i64: 1, 192>}, {pipeline_mode = #tpu.pipeline_mode<synchronous>, transform_indices = @transform_9, window_bounds = array<i64: 2, 192, 96>}, {pipeline_mode = #tpu.pipeline_mode<synchronous>, transform_indices = @transform_10, window_bounds = array<i64: 2, 128, 256>}, {pipeline_mode = #tpu.pipeline_mode<synchronous>, transform_indices = @transform_11, window_bounds = array<i64: 2, 128, 128>}, {pipeline_mode = #tpu.pipeline_mode<synchronous>, transform_indices = @transform_12, window_bounds = array<i64: 3, 96, 192>}, {pipeline_mode = #tpu.pipeline_mode<synchronous>, transform_indices = @transform_13, window_bounds = array<i64: 1, 192>}, {pipeline_mode = #tpu.pipeline_mode<synchronous>, transform_indices = @transform_14, window_bounds = array<i64: 2, 192, 128>}, {pipeline_mode = #tpu.pipeline_mode<synchronous>, transform_indices = @transform_15, window_bounds = array<i64: 2, 64, 128>}, {transform_indices = @transform_16, window_bounds = array<i64: 64, 128>}]} {
    %c0 = arith.constant 0 : index
    %c0_0 = arith.constant 0 : index
    %0 = vector.load %arg1[%c0, %c0_0] : memref<512x64xf32, #tpu.memory_space<vmem>>, vector<512x64xf32>
    %c0_1 = arith.constant 0 : index
    %c0_2 = arith.constant 0 : index
    %1 = vector.load %arg2[%c0_1, %c0_2] : memref<512x512xf32, #tpu.memory_space<vmem>>, vector<512x512xf32>
    %cst = arith.constant dense<0.000000e+00> : vector<512x64xf32>
    %2 = tpu.matmul %1, %0, %cst {dimension_numbers = #tpu.dot_dimension_numbers<[1], [0], [0], [1], [0, 0, 1, 1], [], []>} : vector<512x512xf32>, vector<512x64xf32>, vector<512x64xf32> -> vector<512x64xf32>
    %c0_3 = arith.constant 0 : index
    %c0_4 = arith.constant 0 : index
    %c0_5 = arith.constant 0 : index
    %3 = vector.load %arg3[%c0_3, %c0_4, %c0_5] : memref<2x64x192xf32, #tpu.memory_space<vmem>>, vector<1x64x192xf32>
    %4 = vector.shape_cast %3 : vector<1x64x192xf32> to vector<64x192xf32>
    %cst_6 = arith.constant dense<0.000000e+00> : vector<512x192xf32>
    %5 = tpu.matmul %2, %4, %cst_6 {dimension_numbers = #tpu.dot_dimension_numbers<[1], [0], [0], [1], [0, 0, 1, 1], [], []>} : vector<512x64xf32>, vector<64x192xf32>, vector<512x192xf32> -> vector<512x192xf32>
    %c1 = arith.constant 1 : index
    %c0_7 = arith.constant 0 : index
    %c0_8 = arith.constant 0 : index
    %6 = vector.load %arg3[%c1, %c0_7, %c0_8] : memref<2x64x192xf32, #tpu.memory_space<vmem>>, vector<1x64x192xf32>
    %7 = vector.shape_cast %6 : vector<1x64x192xf32> to vector<64x192xf32>
    %cst_9 = arith.constant dense<0.000000e+00> : vector<512x192xf32>
    %8 = tpu.matmul %0, %7, %cst_9 {dimension_numbers = #tpu.dot_dimension_numbers<[1], [0], [0], [1], [0, 0, 1, 1], [], []>} : vector<512x64xf32>, vector<64x192xf32>, vector<512x192xf32> -> vector<512x192xf32>
    %9 = arith.addf %5, %8 : vector<512x192xf32>
    %c0_10 = arith.constant 0 : index
    %c0_11 = arith.constant 0 : index
    %10 = vector.load %arg4[%c0_10, %c0_11] : memref<1x192xf32, #tpu.memory_space<vmem>>, vector<1x192xf32>
    %11 = vector.broadcast %10 : vector<1x192xf32> to vector<512x192xf32>
    %12 = arith.addf %9, %11 : vector<512x192xf32>
    %cst_12 = arith.constant 0.000000e+00 : f32
    %13 = vector.broadcast %cst_12 : f32 to vector<512x192xf32>
    %14 = arith.maximumf %12, %13 : vector<512x192xf32>
    %c0_13 = arith.constant 0 : index
    %c0_14 = arith.constant 0 : index
    %c0_15 = arith.constant 0 : index
    %15 = vector.load %arg5[%c0_13, %c0_14, %c0_15] : memref<2x192x96xf32, #tpu.memory_space<vmem>>, vector<1x192x96xf32>
    %16 = vector.shape_cast %15 : vector<1x192x96xf32> to vector<192x96xf32>
    %cst_16 = arith.constant dense<0.000000e+00> : vector<512x96xf32>
    %17 = tpu.matmul %14, %16, %cst_16 {dimension_numbers = #tpu.dot_dimension_numbers<[1], [0], [0], [1], [0, 0, 1, 1], [], []>} : vector<512x192xf32>, vector<192x96xf32>, vector<512x96xf32> -> vector<512x96xf32>
    %c1_17 = arith.constant 1 : index
    %c0_18 = arith.constant 0 : index
    %c0_19 = arith.constant 0 : index
    %18 = vector.load %arg5[%c1_17, %c0_18, %c0_19] : memref<2x192x96xf32, #tpu.memory_space<vmem>>, vector<1x192x96xf32>
    %19 = vector.shape_cast %18 : vector<1x192x96xf32> to vector<192x96xf32>
    %cst_20 = arith.constant dense<0.000000e+00> : vector<512x96xf32>
    %20 = tpu.matmul %14, %19, %cst_20 {dimension_numbers = #tpu.dot_dimension_numbers<[1], [0], [0], [1], [0, 0, 1, 1], [], []>} : vector<512x192xf32>, vector<192x96xf32>, vector<512x96xf32> -> vector<512x96xf32>
    %21 = arith.maximumf %17, %20 : vector<512x96xf32>
    %c0_21 = arith.constant 0 : index
    %c0_22 = arith.constant 0 : index
    %c0_23 = arith.constant 0 : index
    %22 = vector.load %arg6[%c0_21, %c0_22, %c0_23] : memref<2x256x512xf32, #tpu.memory_space<vmem>>, vector<1x256x512xf32>
    %23 = vector.shape_cast %22 : vector<1x256x512xf32> to vector<256x512xf32>
    %cst_24 = arith.constant dense<0.000000e+00> : vector<256x96xf32>
    %24 = tpu.matmul %23, %21, %cst_24 {dimension_numbers = #tpu.dot_dimension_numbers<[1], [0], [0], [1], [0, 0, 1, 1], [], []>} : vector<256x512xf32>, vector<512x96xf32>, vector<256x96xf32> -> vector<256x96xf32>
    %c1_25 = arith.constant 1 : index
    %c0_26 = arith.constant 0 : index
    %c0_27 = arith.constant 0 : index
    %25 = vector.load %arg6[%c1_25, %c0_26, %c0_27] : memref<2x256x512xf32, #tpu.memory_space<vmem>>, vector<1x256x512xf32>
    %26 = vector.shape_cast %25 : vector<1x256x512xf32> to vector<256x512xf32>
    %cst_28 = arith.constant dense<0.000000e+00> : vector<256x96xf32>
    %27 = tpu.matmul %26, %21, %cst_28 {dimension_numbers = #tpu.dot_dimension_numbers<[1], [0], [0], [1], [0, 0, 1, 1], [], []>} : vector<256x512xf32>, vector<512x96xf32>, vector<256x96xf32> -> vector<256x96xf32>
    %28 = arith.maximumf %24, %27 : vector<256x96xf32>
    %c0_29 = arith.constant 0 : index
    %c0_30 = arith.constant 0 : index
    %29 = vector.load %arg7[%c0_29, %c0_30] : memref<256x256xf32, #tpu.memory_space<vmem>>, vector<256x256xf32>
    %cst_31 = arith.constant dense<0.000000e+00> : vector<256x96xf32>
    %30 = tpu.matmul %29, %28, %cst_31 {dimension_numbers = #tpu.dot_dimension_numbers<[1], [0], [0], [1], [0, 0, 1, 1], [], []>} : vector<256x256xf32>, vector<256x96xf32>, vector<256x96xf32> -> vector<256x96xf32>
    %c0_32 = arith.constant 0 : index
    %c0_33 = arith.constant 0 : index
    %c0_34 = arith.constant 0 : index
    %31 = vector.load %arg8[%c0_32, %c0_33, %c0_34] : memref<2x96x192xf32, #tpu.memory_space<vmem>>, vector<1x96x192xf32>
    %32 = vector.shape_cast %31 : vector<1x96x192xf32> to vector<96x192xf32>
    %cst_35 = arith.constant dense<0.000000e+00> : vector<256x192xf32>
    %33 = tpu.matmul %30, %32, %cst_35 {dimension_numbers = #tpu.dot_dimension_numbers<[1], [0], [0], [1], [0, 0, 1, 1], [], []>} : vector<256x96xf32>, vector<96x192xf32>, vector<256x192xf32> -> vector<256x192xf32>
    %c1_36 = arith.constant 1 : index
    %c0_37 = arith.constant 0 : index
    %c0_38 = arith.constant 0 : index
    %34 = vector.load %arg8[%c1_36, %c0_37, %c0_38] : memref<2x96x192xf32, #tpu.memory_space<vmem>>, vector<1x96x192xf32>
    %35 = vector.shape_cast %34 : vector<1x96x192xf32> to vector<96x192xf32>
    %cst_39 = arith.constant dense<0.000000e+00> : vector<256x192xf32>
    %36 = tpu.matmul %28, %35, %cst_39 {dimension_numbers = #tpu.dot_dimension_numbers<[1], [0], [0], [1], [0, 0, 1, 1], [], []>} : vector<256x96xf32>, vector<96x192xf32>, vector<256x192xf32> -> vector<256x192xf32>
    %37 = arith.addf %33, %36 : vector<256x192xf32>
    %c0_40 = arith.constant 0 : index
    %c0_41 = arith.constant 0 : index
    %38 = vector.load %arg9[%c0_40, %c0_41] : memref<1x192xf32, #tpu.memory_space<vmem>>, vector<1x192xf32>
    %39 = vector.broadcast %38 : vector<1x192xf32> to vector<256x192xf32>
    %40 = arith.addf %37, %39 : vector<256x192xf32>
    %cst_42 = arith.constant 0.000000e+00 : f32
    %41 = vector.broadcast %cst_42 : f32 to vector<256x192xf32>
    %42 = arith.maximumf %40, %41 : vector<256x192xf32>
    %c0_43 = arith.constant 0 : index
    %c0_44 = arith.constant 0 : index
    %c0_45 = arith.constant 0 : index
    %43 = vector.load %arg10[%c0_43, %c0_44, %c0_45] : memref<2x192x96xf32, #tpu.memory_space<vmem>>, vector<1x192x96xf32>
    %44 = vector.shape_cast %43 : vector<1x192x96xf32> to vector<192x96xf32>
    %cst_46 = arith.constant dense<0.000000e+00> : vector<256x96xf32>
    %45 = tpu.matmul %42, %44, %cst_46 {dimension_numbers = #tpu.dot_dimension_numbers<[1], [0], [0], [1], [0, 0, 1, 1], [], []>} : vector<256x192xf32>, vector<192x96xf32>, vector<256x96xf32> -> vector<256x96xf32>
    %c1_47 = arith.constant 1 : index
    %c0_48 = arith.constant 0 : index
    %c0_49 = arith.constant 0 : index
    %46 = vector.load %arg10[%c1_47, %c0_48, %c0_49] : memref<2x192x96xf32, #tpu.memory_space<vmem>>, vector<1x192x96xf32>
    %47 = vector.shape_cast %46 : vector<1x192x96xf32> to vector<192x96xf32>
    %cst_50 = arith.constant dense<0.000000e+00> : vector<256x96xf32>
    %48 = tpu.matmul %42, %47, %cst_50 {dimension_numbers = #tpu.dot_dimension_numbers<[1], [0], [0], [1], [0, 0, 1, 1], [], []>} : vector<256x192xf32>, vector<192x96xf32>, vector<256x96xf32> -> vector<256x96xf32>
    %49 = arith.maximumf %45, %48 : vector<256x96xf32>
    %c0_51 = arith.constant 0 : index
    %c0_52 = arith.constant 0 : index
    %c0_53 = arith.constant 0 : index
    %50 = vector.load %arg11[%c0_51, %c0_52, %c0_53] : memref<2x128x256xf32, #tpu.memory_space<vmem>>, vector<1x128x256xf32>
    %51 = vector.shape_cast %50 : vector<1x128x256xf32> to vector<128x256xf32>
    %cst_54 = arith.constant dense<0.000000e+00> : vector<128x96xf32>
    %52 = tpu.matmul %51, %49, %cst_54 {dimension_numbers = #tpu.dot_dimension_numbers<[1], [0], [0], [1], [0, 0, 1, 1], [], []>} : vector<128x256xf32>, vector<256x96xf32>, vector<128x96xf32> -> vector<128x96xf32>
    %c1_55 = arith.constant 1 : index
    %c0_56 = arith.constant 0 : index
    %c0_57 = arith.constant 0 : index
    %53 = vector.load %arg11[%c1_55, %c0_56, %c0_57] : memref<2x128x256xf32, #tpu.memory_space<vmem>>, vector<1x128x256xf32>
    %54 = vector.shape_cast %53 : vector<1x128x256xf32> to vector<128x256xf32>
    %cst_58 = arith.constant dense<0.000000e+00> : vector<128x96xf32>
    %55 = tpu.matmul %54, %49, %cst_58 {dimension_numbers = #tpu.dot_dimension_numbers<[1], [0], [0], [1], [0, 0, 1, 1], [], []>} : vector<128x256xf32>, vector<256x96xf32>, vector<128x96xf32> -> vector<128x96xf32>
    %56 = arith.maximumf %52, %55 : vector<128x96xf32>
    %c0_59 = arith.constant 0 : index
    %c0_60 = arith.constant 0 : index
    %c0_61 = arith.constant 0 : index
    %57 = vector.load %arg12[%c0_59, %c0_60, %c0_61] : memref<2x128x128xf32, #tpu.memory_space<vmem>>, vector<1x128x128xf32>
    %58 = vector.shape_cast %57 : vector<1x128x128xf32> to vector<128x128xf32>
    %cst_62 = arith.constant dense<0.000000e+00> : vector<128x96xf32>
    %59 = tpu.matmul %58, %56, %cst_62 {dimension_numbers = #tpu.dot_dimension_numbers<[1], [0], [0], [1], [0, 0, 1, 1], [], []>} : vector<128x128xf32>, vector<128x96xf32>, vector<128x96xf32> -> vector<128x96xf32>
    %c1_63 = arith.constant 1 : index
    %c0_64 = arith.constant 0 : index
    %c0_65 = arith.constant 0 : index
    %60 = vector.load %arg12[%c1_63, %c0_64, %c0_65] : memref<2x128x128xf32, #tpu.memory_space<vmem>>, vector<1x128x128xf32>
    %61 = vector.shape_cast %60 : vector<1x128x128xf32> to vector<128x128xf32>
    %cst_66 = arith.constant dense<0.000000e+00> : vector<128x96xf32>
    %62 = tpu.matmul %61, %56, %cst_66 {dimension_numbers = #tpu.dot_dimension_numbers<[1], [0], [0], [1], [0, 0, 1, 1], [], []>} : vector<128x128xf32>, vector<128x96xf32>, vector<128x96xf32> -> vector<128x96xf32>
    %c0_67 = arith.constant 0 : index
    %c0_68 = arith.constant 0 : index
    %c0_69 = arith.constant 0 : index
    %63 = vector.load %arg13[%c0_67, %c0_68, %c0_69] : memref<3x96x192xf32, #tpu.memory_space<vmem>>, vector<1x96x192xf32>
    %64 = vector.shape_cast %63 : vector<1x96x192xf32> to vector<96x192xf32>
    %cst_70 = arith.constant dense<0.000000e+00> : vector<128x192xf32>
    %65 = tpu.matmul %59, %64, %cst_70 {dimension_numbers = #tpu.dot_dimension_numbers<[1], [0], [0], [1], [0, 0, 1, 1], [], []>} : vector<128x96xf32>, vector<96x192xf32>, vector<128x192xf32> -> vector<128x192xf32>
    %c1_71 = arith.constant 1 : index
    %c0_72 = arith.constant 0 : index
    %c0_73 = arith.constant 0 : index
    %66 = vector.load %arg13[%c1_71, %c0_72, %c0_73] : memref<3x96x192xf32, #tpu.memory_space<vmem>>, vector<1x96x192xf32>
    %67 = vector.shape_cast %66 : vector<1x96x192xf32> to vector<96x192xf32>
    %cst_74 = arith.constant dense<0.000000e+00> : vector<128x192xf32>
    %68 = tpu.matmul %56, %67, %cst_74 {dimension_numbers = #tpu.dot_dimension_numbers<[1], [0], [0], [1], [0, 0, 1, 1], [], []>} : vector<128x96xf32>, vector<96x192xf32>, vector<128x192xf32> -> vector<128x192xf32>
    %69 = arith.addf %65, %68 : vector<128x192xf32>
    %c2 = arith.constant 2 : index
    %c0_75 = arith.constant 0 : index
    %c0_76 = arith.constant 0 : index
    %70 = vector.load %arg13[%c2, %c0_75, %c0_76] : memref<3x96x192xf32, #tpu.memory_space<vmem>>, vector<1x96x192xf32>
    %71 = vector.shape_cast %70 : vector<1x96x192xf32> to vector<96x192xf32>
    %cst_77 = arith.constant dense<0.000000e+00> : vector<128x192xf32>
    %72 = tpu.matmul %62, %71, %cst_77 {dimension_numbers = #tpu.dot_dimension_numbers<[1], [0], [0], [1], [0, 0, 1, 1], [], []>} : vector<128x96xf32>, vector<96x192xf32>, vector<128x192xf32> -> vector<128x192xf32>
    %73 = arith.addf %69, %72 : vector<128x192xf32>
    %c0_78 = arith.constant 0 : index
    %c0_79 = arith.constant 0 : index
    %74 = vector.load %arg14[%c0_78, %c0_79] : memref<1x192xf32, #tpu.memory_space<vmem>>, vector<1x192xf32>
    %75 = vector.broadcast %74 : vector<1x192xf32> to vector<128x192xf32>
    %76 = arith.addf %73, %75 : vector<128x192xf32>
    %cst_80 = arith.constant 0.000000e+00 : f32
    %77 = vector.broadcast %cst_80 : f32 to vector<128x192xf32>
    %78 = arith.maximumf %76, %77 : vector<128x192xf32>
    %c0_81 = arith.constant 0 : index
    %c0_82 = arith.constant 0 : index
    %c0_83 = arith.constant 0 : index
    %79 = vector.load %arg15[%c0_81, %c0_82, %c0_83] : memref<2x192x128xf32, #tpu.memory_space<vmem>>, vector<1x192x128xf32>
    %80 = vector.shape_cast %79 : vector<1x192x128xf32> to vector<192x128xf32>
    %cst_84 = arith.constant dense<0.000000e+00> : vector<128x128xf32>
    %81 = tpu.matmul %78, %80, %cst_84 {dimension_numbers = #tpu.dot_dimension_numbers<[1], [0], [0], [1], [0, 0, 1, 1], [], []>} : vector<128x192xf32>, vector<192x128xf32>, vector<128x128xf32> -> vector<128x128xf32>
    %c1_85 = arith.constant 1 : index
    %c0_86 = arith.constant 0 : index
    %c0_87 = arith.constant 0 : index
    %82 = vector.load %arg15[%c1_85, %c0_86, %c0_87] : memref<2x192x128xf32, #tpu.memory_space<vmem>>, vector<1x192x128xf32>
    %83 = vector.shape_cast %82 : vector<1x192x128xf32> to vector<192x128xf32>
    %cst_88 = arith.constant dense<0.000000e+00> : vector<128x128xf32>
    %84 = tpu.matmul %78, %83, %cst_88 {dimension_numbers = #tpu.dot_dimension_numbers<[1], [0], [0], [1], [0, 0, 1, 1], [], []>} : vector<128x192xf32>, vector<192x128xf32>, vector<128x128xf32> -> vector<128x128xf32>
    %85 = arith.maximumf %81, %84 : vector<128x128xf32>
    %c0_89 = arith.constant 0 : index
    %c0_90 = arith.constant 0 : index
    %c0_91 = arith.constant 0 : index
    %86 = vector.load %arg16[%c0_89, %c0_90, %c0_91] : memref<2x64x128xf32, #tpu.memory_space<vmem>>, vector<1x64x128xf32>
    %87 = vector.shape_cast %86 : vector<1x64x128xf32> to vector<64x128xf32>
    %cst_92 = arith.constant dense<0.000000e+00> : vector<64x128xf32>
    %88 = tpu.matmul %87, %85, %cst_92 {dimension_numbers = #tpu.dot_dimension_numbers<[1], [0], [0], [1], [0, 0, 1, 1], [], []>} : vector<64x128xf32>, vector<128x128xf32>, vector<64x128xf32> -> vector<64x128xf32>
    %c1_93 = arith.constant 1 : index
    %c0_94 = arith.constant 0 : index
    %c0_95 = arith.constant 0 : index
    %89 = vector.load %arg16[%c1_93, %c0_94, %c0_95] : memref<2x64x128xf32, #tpu.memory_space<vmem>>, vector<1x64x128xf32>
    %90 = vector.shape_cast %89 : vector<1x64x128xf32> to vector<64x128xf32>
    %cst_96 = arith.constant dense<0.000000e+00> : vector<64x128xf32>
    %91 = tpu.matmul %90, %85, %cst_96 {dimension_numbers = #tpu.dot_dimension_numbers<[1], [0], [0], [1], [0, 0, 1, 1], [], []>} : vector<64x128xf32>, vector<128x128xf32>, vector<64x128xf32> -> vector<64x128xf32>
    %92 = arith.maximumf %88, %91 : vector<64x128xf32>
    %93 = arith.truncf %92 : vector<64x128xf32> to vector<64x128xbf16>
    %c0_97 = arith.constant 0 : index
    %c0_98 = arith.constant 0 : index
    %94 = vector.load %arg17[%c0_97, %c0_98] : memref<64x128xbf16, #tpu.memory_space<vmem>>, vector<64x128xbf16>
    tpu.vector_store %arg17[%c0_97, %c0_98], %93 {strides = array<i32>} : memref<64x128xbf16, #tpu.memory_space<vmem>>, vector<64x128xbf16>,
    return
  }
  func.func @transform_0(%arg0: i32) -> (i32, i32) {
    %c0_i32 = arith.constant 0 : i32
    %c0_i32_0 = arith.constant 0 : i32
    return %arg0, %c0_i32 : i32, i32
  }
  func.func @transform_1(%arg0: i32) -> (i32, i32) {
    %c0_i32 = arith.constant 0 : i32
    %c0_i32_0 = arith.constant 0 : i32
    %c0_i32_1 = arith.constant 0 : i32
    return %c0_i32, %c0_i32_0 : i32, i32
  }
  func.func @transform_2(%arg0: i32) -> (i32, i32, i32) {
    %c0_i32 = arith.constant 0 : i32
    %c0_i32_0 = arith.constant 0 : i32
    %c0_i32_1 = arith.constant 0 : i32
    %c0_i32_2 = arith.constant 0 : i32
    return %c0_i32, %c0_i32_0, %c0_i32_1 : i32, i32, i32
  }
  func.func @transform_3(%arg0: i32) -> (i32, i32) {
    %c0_i32 = arith.constant 0 : i32
    %c0_i32_0 = arith.constant 0 : i32
    %c0_i32_1 = arith.constant 0 : i32
    return %c0_i32, %c0_i32_0 : i32, i32
  }
  func.func @transform_4(%arg0: i32) -> (i32, i32, i32) {
    %c0_i32 = arith.constant 0 : i32
    %c0_i32_0 = arith.constant 0 : i32
    %c0_i32_1 = arith.constant 0 : i32
    %c0_i32_2 = arith.constant 0 : i32
    return %c0_i32, %c0_i32_0, %c0_i32_1 : i32, i32, i32
  }
  func.func @transform_5(%arg0: i32) -> (i32, i32, i32) {
    %c0_i32 = arith.constant 0 : i32
    %c0_i32_0 = arith.constant 0 : i32
    %c0_i32_1 = arith.constant 0 : i32
    %c0_i32_2 = arith.constant 0 : i32
    return %c0_i32, %c0_i32_0, %c0_i32_1 : i32, i32, i32
  }
  func.func @transform_6(%arg0: i32) -> (i32, i32) {
    %c0_i32 = arith.constant 0 : i32
    %c0_i32_0 = arith.constant 0 : i32
    %c0_i32_1 = arith.constant 0 : i32
    return %c0_i32, %c0_i32_0 : i32, i32
  }
  func.func @transform_7(%arg0: i32) -> (i32, i32, i32) {
    %c0_i32 = arith.constant 0 : i32
    %c0_i32_0 = arith.constant 0 : i32
    %c0_i32_1 = arith.constant 0 : i32
    %c0_i32_2 = arith.constant 0 : i32
    return %c0_i32, %c0_i32_0, %c0_i32_1 : i32, i32, i32
  }
  func.func @transform_8(%arg0: i32) -> (i32, i32) {
    %c0_i32 = arith.constant 0 : i32
    %c0_i32_0 = arith.constant 0 : i32
    %c0_i32_1 = arith.constant 0 : i32
    return %c0_i32, %c0_i32_0 : i32, i32
  }
  func.func @transform_9(%arg0: i32) -> (i32, i32, i32) {
    %c0_i32 = arith.constant 0 : i32
    %c0_i32_0 = arith.constant 0 : i32
    %c0_i32_1 = arith.constant 0 : i32
    %c0_i32_2 = arith.constant 0 : i32
    return %c0_i32, %c0_i32_0, %c0_i32_1 : i32, i32, i32
  }
  func.func @transform_10(%arg0: i32) -> (i32, i32, i32) {
    %c0_i32 = arith.constant 0 : i32
    %c0_i32_0 = arith.constant 0 : i32
    %c0_i32_1 = arith.constant 0 : i32
    %c0_i32_2 = arith.constant 0 : i32
    return %c0_i32, %c0_i32_0, %c0_i32_1 : i32, i32, i32
  }
  func.func @transform_11(%arg0: i32) -> (i32, i32, i32) {
    %c0_i32 = arith.constant 0 : i32
    %c0_i32_0 = arith.constant 0 : i32
    %c0_i32_1 = arith.constant 0 : i32
    %c0_i32_2 = arith.constant 0 : i32
    return %c0_i32, %c0_i32_0, %c0_i32_1 : i32, i32, i32
  }
  func.func @transform_12(%arg0: i32) -> (i32, i32, i32) {
    %c0_i32 = arith.constant 0 : i32
    %c0_i32_0 = arith.constant 0 : i32
    %c0_i32_1 = arith.constant 0 : i32
    %c0_i32_2 = arith.constant 0 : i32
    return %c0_i32, %c0_i32_0, %c0_i32_1 : i32, i32, i32
  }
  func.func @transform_13(%arg0: i32) -> (i32, i32) {
    %c0_i32 = arith.constant 0 : i32
    %c0_i32_0 = arith.constant 0 : i32
    %c0_i32_1 = arith.constant 0 : i32
    return %c0_i32, %c0_i32_0 : i32, i32
  }
  func.func @transform_14(%arg0: i32) -> (i32, i32, i32) {
    %c0_i32 = arith.constant 0 : i32
    %c0_i32_0 = arith.constant 0 : i32
    %c0_i32_1 = arith.constant 0 : i32
    %c0_i32_2 = arith.constant 0 : i32
    return %c0_i32, %c0_i32_0, %c0_i32_1 : i32, i32, i32
  }
  func.func @transform_15(%arg0: i32) -> (i32, i32, i32) {
    %c0_i32 = arith.constant 0 : i32
    %c0_i32_0 = arith.constant 0 : i32
    %c0_i32_1 = arith.constant 0 : i32
    %c0_i32_2 = arith.constant 0 : i32
    return %c0_i32, %c0_i32_0, %c0_i32_1 : i32, i32, i32
  }
  func.func @transform_16(%arg0: i32) -> (i32, i32) {
    %c0_i32 = arith.constant 0 : i32
    %c0_i32_0 = arith.constant 0 : i32
    return %arg0, %c0_i32 : i32, i32
  }
}

</mosaic_0001>

<bundles_post_ra>
// kernel: net_forward.3
= control target key start
LH: loop header
LB: loop body
LE: loop exit
PB: predicated region body
PF: predicated region fallthrough
CT: control target
= control target key end

     0   :  { %vm1752_vm0 = vmmov 0   ;;  %s2291_s1 = inlined_call_operand.vmem [shape: bf16[1024,256], index: 1, kind: input, shape index: {}]   ;;  %s2292_s0 = inlined_call_operand.vmem [shape: bf16[8,1024], index: 0, kind: input, shape index: {}]   ;;  %s2293_s3 = inlined_call_operand.vmem [shape: bf16[256,128], index: 3, kind: input, shape index: {}]   ;;  %s2294_s5 = inlined_call_operand.vmem [shape: bf16[128,128], index: 5, kind: input, shape index: {}]   ;;  %s2295_s2 = inlined_call_operand.vmem [shape: f32[1,256], index: 2, kind: input, shape index: {}]   ;;  %s2296_s4 = inlined_call_operand.vmem [shape: f32[1,128], index: 4, kind: input, shape index: {}]   ;;  %s2297_s6 = inlined_call_operand.vmem [shape: f32[1,128], index: 6, kind: input, shape index: {}]   ;;  %s2298_s7 = inlined_call_operand.vmem [shape: f32[8,128], index: 7, kind: output, shape index: {}]  }
   0x1   :  { %v1527_v0 = vld [vmem:[%s2291_s1 + $0x104] ss:$8 sps:$4 sm:$0xff]   ;;  %v1529_v1 = vld [vmem:[%s2291_s1 + $0x100] ss:$8 sps:$4 sm:$0xff]   ;;  %v1530_v2 = vld [vmem:[%s2291_s1 + $0x114] ss:$8 sps:$4 sm:$0xff]  }
   0x2   :  { %880 = vmatprep.subr.bf16.mxu0 %v1527_v0  ;;  %v1532_v3 = vld [vmem:[%s2291_s1 + $0x110] ss:$8 sps:$4 sm:$0xff]   ;;  %v1533_v4 = vld [vmem:[%s2291_s1 + $0x124] ss:$8 sps:$4 sm:$0xff]   ;;  %v1535_v5 = vld [vmem:[%s2291_s1 + $0x120] ss:$8 sps:$4 sm:$0xff]  }
   0x3   :  { %881 = vmatpush1.bf16.msra.mxu0 %v1529_v1  ;;  %v1536_v6 = vld [vmem:[%s2291_s1 + $0x134] ss:$8 sps:$4 sm:$0xff]   ;;  %v1538_v7 = vld [vmem:[%s2291_s1 + $0x130] ss:$8 sps:$4 sm:$0xff]   ;;  %v1539_v8 = vld [vmem:[%s2291_s1 + $0x144] ss:$8 sps:$4 sm:$0xff]  }
   0x4   :  { %882 = vmatprep.subr.bf16.mxu0 %v1530_v2  ;;  %v1541_v9 = vld [vmem:[%s2291_s1 + $0x140] ss:$8 sps:$4 sm:$0xff]   ;;  %v1542_v10 = vld [vmem:[%s2291_s1 + $0x154] ss:$8 sps:$4 sm:$0xff]   ;;  %v1544_v11 = vld [vmem:[%s2291_s1 + $0x150] ss:$8 sps:$4 sm:$0xff]  }
   0x5   :  { %v1545_v12 = vld [vmem:[%s2291_s1 + $0x164] ss:$8 sps:$4 sm:$0xff]   ;;  %v1547_v15 = vld [vmem:[%s2291_s1 + $0x160] ss:$8 sps:$4 sm:$0xff]   ;;  %v1548_v16 = vld [vmem:[%s2291_s1 + $0x174] ss:$8 sps:$4 sm:$0xff]  }
   0x6   :  { %v1835_v13 = vld [vmem:[%s2292_s0 + $0x8] sm:$0xff]  ;;  %v1550_v17 = vld [vmem:[%s2291_s1 + $0x170] ss:$8 sps:$4 sm:$0xff]   ;;  %v1554_v20 = vld [vmem:[%s2291_s1 + $0x194] ss:$8 sps:$4 sm:$0xff]  }
   0x7   :  { %883 = vmatpush1.bf16.msra.mxu0 %v1532_v3  ;;  %v1303_v14 = vcombine.high %v1835_v13, %v1835_v13  ;;  %v1551_v18 = vld [vmem:[%s2291_s1 + $0x184] ss:$8 sps:$4 sm:$0xff]   ;;  %v1553_v19 = vld [vmem:[%s2291_s1 + $0x180] ss:$8 sps:$4 sm:$0xff]   ;;  %v1556_v21 = vld [vmem:[%s2291_s1 + $0x190] ss:$8 sps:$4 sm:$0xff]   ;;  %v1302_v48 = vcombine.low %v1835_v13, %v1835_v13 }
   0x8   :  { %884 = vmatprep.subr.bf16.mxu0 %v1533_v4  ;;  %v1557_v22 = vld [vmem:[%s2291_s1 + $0x1a4] ss:$8 sps:$4 sm:$0xff]   ;;  %v1559_v23 = vld [vmem:[%s2291_s1 + $0x1a0] ss:$8 sps:$4 sm:$0xff]   ;;  %v1560_v24 = vld [vmem:[%s2291_s1 + $0x1b4] ss:$8 sps:$4 sm:$0xff]  }
   0x9   :  { %912 = vmatprep.mubr.bf16.mxu0 %v1303_v14  ;;  %v1622_v25 = vld [vmem:[%s2291_s1 + $0x4] ss:$8 sps:$4 sm:$0xff]   ;;  %v1624_v26 = vld [vmem:[%s2291_s1] ss:$8 sps:$4 sm:$0xff]   ;;  %v1562_v27 = vld [vmem:[%s2291_s1 + $0x1b0] ss:$8 sps:$4 sm:$0xff]  }
   0xa   :  { %v1563_v28 = vld [vmem:[%s2291_s1 + $0x1c4] ss:$8 sps:$4 sm:$0xff]   ;;  %839 = vmatprep.subr.bf16.mxu1 %v1622_v25  ;;  %v1628_v29 = vld [vmem:[%s2291_s1 + $0x14] ss:$8 sps:$4 sm:$0xff]   ;;  %v1630_v30 = vld [vmem:[%s2291_s1 + $0x10] ss:$8 sps:$4 sm:$0xff]  }
   0xb   :  { %885 = vmatpush1.bf16.msra.mxu0 %v1535_v5  ;;  %840 = vmatpush1.bf16.msra.mxu1 %v1624_v26  ;;  %v1565_v31 = vld [vmem:[%s2291_s1 + $0x1c0] ss:$8 sps:$4 sm:$0xff]   ;;  %v1566_v32 = vld [vmem:[%s2291_s1 + $0x1d4] ss:$8 sps:$4 sm:$0xff]   ;;  %v1636_v33 = vld [vmem:[%s2291_s1 + $0x24] ss:$8 sps:$4 sm:$0xff]  }
   0xc   :  { %886 = vmatprep.subr.bf16.mxu0 %v1536_v6  ;;  %841 = vmatprep.subr.bf16.mxu1 %v1628_v29  ;;  %v1638_v34 = vld [vmem:[%s2291_s1 + $0x20] ss:$8 sps:$4 sm:$0xff]   ;;  %v1642_v35 = vld [vmem:[%s2291_s1 + $0x34] ss:$8 sps:$4 sm:$0xff]   ;;  %v1568_v36 = vld [vmem:[%s2291_s1 + $0x1d0] ss:$8 sps:$4 sm:$0xff]  }
   0xd   :  { %v1569_v37 = vld [vmem:[%s2291_s1 + $0x1e4] ss:$8 sps:$4 sm:$0xff]   ;;  %v1644_v38 = vld [vmem:[%s2291_s1 + $0x30] ss:$8 sps:$4 sm:$0xff]   ;;  %v1571_v40 = vld [vmem:[%s2291_s1 + $0x1e0] ss:$8 sps:$4 sm:$0xff]  }
   0xe   :  { %v1648_v39 = vld [vmem:[%s2291_s1 + $0x44] ss:$8 sps:$4 sm:$0xff]   ;;  %v1572_v41 = vld [vmem:[%s2291_s1 + $0x1f4] ss:$8 sps:$4 sm:$0xff]   ;;  %v1650_v42 = vld [vmem:[%s2291_s1 + $0x40] ss:$8 sps:$4 sm:$0xff]  }
   0xf   :  { %887 = vmatpush1.bf16.msra.mxu0 %v1538_v7  ;;  %842 = vmatpush1.bf16.msra.mxu1 %v1630_v30  ;;  %v1654_v43 = vld [vmem:[%s2291_s1 + $0x54] ss:$8 sps:$4 sm:$0xff]   ;;  %v1574_v44 = vld [vmem:[%s2291_s1 + $0x1f0] ss:$8 sps:$4 sm:$0xff]   ;;  %v1579_v45 = vld [vmem:[%s2291_s1 + $0x204] ss:$8 sps:$4 sm:$0xff]  }
  0x10   :  { %888 = vmatprep.subr.bf16.mxu0 %v1539_v8  ;;  %843 = vmatprep.subr.bf16.mxu1 %v1636_v33  ;;  %v1935_v46 = vld [vmem:[%s2292_s0 + $0x10] sm:$0xff]  ;;  %v1660_v49 = vld [vmem:[%s2291_s1 + $0x64] ss:$8 sps:$4 sm:$0xff]   ;;  %v1577_v50 = vld [vmem:[%s2291_s1 + $0x200] ss:$8 sps:$4 sm:$0xff]  }
  0x11   :  { %v1656_v47 = vld [vmem:[%s2291_s1 + $0x50] ss:$8 sps:$4 sm:$0xff]   ;;  %v1305_v51 = vcombine.high %v1935_v46, %v1935_v46  ;;  %v1582_v52 = vld [vmem:[%s2291_s1 + $0x214] ss:$8 sps:$4 sm:$0xff]   ;;  %v1662_v53 = vld [vmem:[%s2291_s1 + $0x60] ss:$8 sps:$4 sm:$0xff]  }
  0x12   :  { %v1666_v54 = vld [vmem:[%s2291_s1 + $0x74] ss:$8 sps:$4 sm:$0xff]   ;;  %v1580_v55 = vld [vmem:[%s2291_s1 + $0x210] ss:$8 sps:$4 sm:$0xff]   ;;  %v1585_v56 = vld [vmem:[%s2291_s1 + $0x224] ss:$8 sps:$4 sm:$0xff]  }
  0x13   :  { %889 = vmatpush1.bf16.msra.mxu0 %v1541_v9  ;;  %844 = vmatpush1.bf16.msra.mxu1 %v1638_v34  ;;  %v1668_v57 = vld [vmem:[%s2291_s1 + $0x70] ss:$8 sps:$4 sm:$0xff]   ;;  %v1672_v58 = vld [vmem:[%s2291_s1 + $0x84] ss:$8 sps:$4 sm:$0xff]   ;;  %v1583_v59 = vld [vmem:[%s2291_s1 + $0x220] ss:$8 sps:$4 sm:$0xff]  }
  0x14   :  { %890 = vmatprep.subr.bf16.mxu0 %v1542_v10  ;;  %845 = vmatprep.subr.bf16.mxu1 %v1642_v35  ;;  %v1588_v60 = vld [vmem:[%s2291_s1 + $0x234] ss:$8 sps:$4 sm:$0xff]   ;;  %v1674_v61 = vld [vmem:[%s2291_s1 + $0x80] ss:$8 sps:$4 sm:$0xff]   ;;  %v1586_v63 = vld [vmem:[%s2291_s1 + $0x230] ss:$8 sps:$4 sm:$0xff]  }
  0x15   :  { %v1678_v62 = vld [vmem:[%s2291_s1 + $0x94] ss:$8 sps:$4 sm:$0xff]   ;;  %v1591_v0 = vld [vmem:[%s2291_s1 + $0x244] ss:$8 sps:$4 sm:$0xff]   ;;  %v1680_v1 = vld [vmem:[%s2291_s1 + $0x90] ss:$8 sps:$4 sm:$0xff]  }
  0x16   :  { %v1684_v2 = vld [vmem:[%s2291_s1 + $0xa4] ss:$8 sps:$4 sm:$0xff]   ;;  %v1589_v3 = vld [vmem:[%s2291_s1 + $0x240] ss:$8 sps:$4 sm:$0xff]   ;;  %v1594_v4 = vld [vmem:[%s2291_s1 + $0x254] ss:$8 sps:$4 sm:$0xff]  }
  0x17   :  { %891 = vmatpush1.bf16.msra.mxu0 %v1544_v11  ;;  %846 = vmatpush1.bf16.msra.mxu1 %v1644_v38  ;;  %v1686_v5 = vld [vmem:[%s2291_s1 + $0xa0] ss:$8 sps:$4 sm:$0xff]   ;;  %v1690_v6 = vld [vmem:[%s2291_s1 + $0xb4] ss:$8 sps:$4 sm:$0xff]   ;;  %v1592_v7 = vld [vmem:[%s2291_s1 + $0x250] ss:$8 sps:$4 sm:$0xff]  }
  0x18   :  { %892 = vmatprep.subr.bf16.mxu0 %v1545_v12  ;;  %847 = vmatprep.subr.bf16.mxu1 %v1648_v39  ;;  %v1597_v8 = vld [vmem:[%s2291_s1 + $0x264] ss:$8 sps:$4 sm:$0xff]   ;;  %v1692_v10 = vld [vmem:[%s2291_s1 + $0xb0] ss:$8 sps:$4 sm:$0xff]   ;;  %v1595_v13 = vld [vmem:[%s2291_s1 + $0x260] ss:$8 sps:$4 sm:$0xff]  }
  0x19   :  { %v27_v9 = vld [vmem:[%s2292_s0] sm:$0xff]  ;;  %v1600_v14 = vld [vmem:[%s2291_s1 + $0x274] ss:$8 sps:$4 sm:$0xff]   ;;  %v1604_v25 = vld [vmem:[%s2291_s1 + $0x290] ss:$8 sps:$4 sm:$0xff]  }
  0x1a   :  { %v1301_v11 = vcombine.high %v27_v9, %v27_v9  ;;  %v1696_v12 = vld [vmem:[%s2291_s1 + $0xc4] ss:$8 sps:$4 sm:$0xff]   ;;  %v1607_v29 = vld [vmem:[%s2291_s1 + $0x2a0] ss:$8 sps:$4 sm:$0xff]   ;;  %v1612_v30 = vld [vmem:[%s2291_s1 + $0x2b4] ss:$8 sps:$4 sm:$0xff]  }
  0x1b   :  { %893 = vmatpush1.bf16.msra.mxu0 %v1547_v15  ;;  %848 = vmatpush1.bf16.msra.mxu1 %v1650_v42  ;;  %v1698_v15 = vld [vmem:[%s2291_s1 + $0xc0] ss:$8 sps:$4 sm:$0xff]   ;;  %v1609_v26 = vld [vmem:[%s2291_s1 + $0x2a4] ss:$8 sps:$4 sm:$0xff]   ;;  %v1610_v34 = vld [vmem:[%s2291_s1 + $0x2b0] ss:$8 sps:$4 sm:$0xff]  }
  0x1c   :  { %894 = vmatprep.subr.bf16.mxu0 %v1548_v16  ;;  %849 = vmatprep.subr.bf16.mxu1 %v1654_v43  ;;  %v1702_v16 = vld [vmem:[%s2291_s1 + $0xd4] ss:$8 sps:$4 sm:$0xff]   ;;  %v1729_v33 = vld [vmem:[%s2293_s3 + $0x48] sm:$0xff]   ;;  %v1616_v42 = vld [vmem:[%s2291_s1 + $0x2d0] ss:$8 sps:$4 sm:$0xff]  }
  0x1d   :  { %871 = vmatprep.mubr.bf16.mxu1 %v1301_v11  ;;  %v1615_v35 = vld [vmem:[%s2291_s1 + $0x2c4] ss:$8 sps:$4 sm:$0xff]   ;;  %v1613_v38 = vld [vmem:[%s2291_s1 + $0x2c0] ss:$8 sps:$4 sm:$0xff]   ;;  %v1618_v39 = vld [vmem:[%s2291_s1 + $0x2d4] ss:$8 sps:$4 sm:$0xff]  }
  0x1e   :  { %v1621_v43 = vld [vmem:[%s2291_s1 + $0x2e4] ss:$8 sps:$4 sm:$0xff]   ;;  %v1701_v11 = vld [vmem:[%s2291_s1 + $0x3b4] ss:$8 sps:$4 sm:$0xff]  }
  0x1f   :  { %895 = vmatpush1.bf16.msra.mxu0 %v1550_v17  ;;  %850 = vmatpush1.bf16.msra.mxu1 %v1656_v47  ;;  %v1598_v17 = vld [vmem:[%s2291_s1 + $0x270] ss:$8 sps:$4 sm:$0xff]   ;;  %v1619_v47 = vld [vmem:[%s2291_s1 + $0x2e0] ss:$8 sps:$4 sm:$0xff]  }
  0x20   :  { %896 = vmatprep.subr.bf16.mxu0 %v1551_v18  ;;  %851 = vmatprep.subr.bf16.mxu1 %v1660_v49  ;;  %v1603_v18 = vld [vmem:[%s2291_s1 + $0x284] ss:$8 sps:$4 sm:$0xff]  }
  0x21   :  { %v1736_v49 = vld [vmem:[%s2293_s3 + $0x20] sm:$0xff]  }
  0x23   :  { %897 = vmatpush1.bf16.msra.mxu0 %v1553_v19  ;;  %852 = vmatpush1.bf16.msra.mxu1 %v1662_v53  ;;  %v1601_v19 = vld [vmem:[%s2291_s1 + $0x280] ss:$8 sps:$4 sm:$0xff]   ;;  %v1304_v53 = vcombine.low %v1935_v46, %v1935_v46  ;;  %v1647_v46 = vld [vmem:[%s2291_s1 + $0x324] ss:$8 sps:$4 sm:$0xff]  }
  0x24   :  { %898 = vmatprep.subr.bf16.mxu0 %v1554_v20  ;;  %853 = vmatprep.subr.bf16.mxu1 %v1666_v54  ;;  %v1704_v20 = vld [vmem:[%s2291_s1 + $0xd0] ss:$8 sps:$4 sm:$0xff]   ;;  %v1633_v54 = vld [vmem:[%s2291_s1 + $0x300] ss:$8 sps:$4 sm:$0xff]  }
  0x27   :  { %899 = vmatpush1.bf16.msra.mxu0 %v1556_v21  ;;  %854 = vmatpush1.bf16.msra.mxu1 %v1668_v57  ;;  %v1708_v21 = vld [vmem:[%s2291_s1 + $0xe4] ss:$8 sps:$4 sm:$0xff]   ;;  %v1639_v57 = vld [vmem:[%s2291_s1 + $0x310] ss:$8 sps:$4 sm:$0xff]  }
  0x28   :  { %900 = vmatprep.subr.bf16.mxu0 %v1557_v22  ;;  %855 = vmatprep.subr.bf16.mxu1 %v1672_v58  ;;  %v1606_v22 = vld [vmem:[%s2291_s1 + $0x294] ss:$8 sps:$4 sm:$0xff]   ;;  %v1645_v58 = vld [vmem:[%s2291_s1 + $0x320] ss:$8 sps:$4 sm:$0xff]  }
  0x2b   :  { %901 = vmatpush1.bf16.msra.mxu0 %v1559_v23  ;;  %856 = vmatpush1.bf16.msra.mxu1 %v1674_v61  ;;  %v1710_v23 = vld [vmem:[%s2291_s1 + $0xe0] ss:$8 sps:$4 sm:$0xff]   ;;  %v1659_v61 = vld [vmem:[%s2291_s1 + $0x344] ss:$8 sps:$4 sm:$0xff]  }
  0x2c   :  { %902 = vmatprep.subr.bf16.mxu0 %v1560_v24  ;;  %857 = vmatprep.subr.bf16.mxu1 %v1678_v62  ;;  %v1714_v24 = vld [vmem:[%s2291_s1 + $0xf4] ss:$8 sps:$4 sm:$0xff]   ;;  %v1657_v62 = vld [vmem:[%s2291_s1 + $0x340] ss:$8 sps:$4 sm:$0xff]  }
  0x2f   :  { %903 = vmatpush1.bf16.msra.mxu0 %v1562_v27  ;;  %858 = vmatpush1.bf16.msra.mxu1 %v1680_v1  ;;  %v1716_v27 = vld [vmem:[%s2291_s1 + $0xf0] ss:$8 sps:$4 sm:$0xff]   ;;  %v1671_v1 = vld [vmem:[%s2291_s1 + $0x364] ss:$8 sps:$4 sm:$0xff]  }
  0x30   :  { %904 = vmatprep.subr.bf16.mxu0 %v1563_v28  ;;  %859 = vmatprep.subr.bf16.mxu1 %v1684_v2  ;;  %v1727_v28 = vld [vmem:[%s2293_s3 + $0x40] sm:$0xff]  }
  0x31   :  { %v1669_v2 = vld [vmem:[%s2291_s1 + $0x360] ss:$8 sps:$4 sm:$0xff]  }
  0x33   :  { %905 = vmatpush1.bf16.msra.mxu0 %v1565_v31  ;;  %860 = vmatpush1.bf16.msra.mxu1 %v1686_v5  ;;  %v1300_v31 = vcombine.low %v27_v9, %v27_v9  ;;  %v1683_v5 = vld [vmem:[%s2291_s1 + $0x384] ss:$8 sps:$4 sm:$0xff]  }
  0x34   :  { %906 = vmatprep.subr.bf16.mxu0 %v1566_v32  ;;  %861 = vmatprep.subr.bf16.mxu1 %v1690_v6  ;;  %v1728_v32 = vld [vmem:[%s2293_s3] sm:$0xff]  }
  0x35   :  { %v1681_v6 = vld [vmem:[%s2291_s1 + $0x380] ss:$8 sps:$4 sm:$0xff]   ;;  %v1695_v9 = vld [vmem:[%s2291_s1 + $0x3a4] ss:$8 sps:$4 sm:$0xff]  }
  0x37   :  { %907 = vmatpush1.bf16.msra.mxu0 %v1568_v36  ;;  %862 = vmatpush1.bf16.msra.mxu1 %v1692_v10  ;;  %v1730_v36 = vld [vmem:[%s2293_s3 + $0x8] sm:$0xff]  }
  0x38   :  { %908 = vmatprep.subr.bf16.mxu0 %v1569_v37  ;;  %863 = vmatprep.subr.bf16.mxu1 %v1696_v12  ;;  %v1731_v37 = vld [vmem:[%s2293_s3 + $0x50] sm:$0xff]   ;;  %v1693_v10 = vld [vmem:[%s2291_s1 + $0x3a0] ss:$8 sps:$4 sm:$0xff]  }
  0x39   :  { %v1699_v12 = vld [vmem:[%s2291_s1 + $0x3b0] ss:$8 sps:$4 sm:$0xff]  }
  0x3b   :  { %909 = vmatpush1.bf16.msra.mxu0 %v1571_v40  ;;  %864 = vmatpush1.bf16.msra.mxu1 %v1698_v15  ;;  %v1732_v40 = vld [vmem:[%s2293_s3 + $0x10] sm:$0xff]  }
  0x3c   :  { %910 = vmatprep.subr.bf16.mxu0 %v1572_v41  ;;  %865 = vmatprep.subr.bf16.mxu1 %v1702_v16  ;;  %v1733_v41 = vld [vmem:[%s2293_s3 + $0x58] sm:$0xff]  }
  0x3d   :  { %v1713_v15 = vld [vmem:[%s2291_s1 + $0x3d4] ss:$8 sps:$4 sm:$0xff]   ;;  %v1711_v16 = vld [vmem:[%s2291_s1 + $0x3d0] ss:$8 sps:$4 sm:$0xff]  }
  0x3f   :  { %911 = vmatpush1.bf16.msra.mxu0 %v1574_v44  ;;  %866 = vmatpush1.bf16.msra.mxu1 %v1704_v20  ;;  %v1734_v44 = vld [vmem:[%s2293_s3 + $0x18] sm:$0xff]  }
  0x40   :  { %921 = vmatprep.subr.bf16.mxu0 %v1579_v45  ;;  %867 = vmatprep.subr.bf16.mxu1 %v1708_v21  ;;  %v1735_v45 = vld [vmem:[%s2293_s3 + $0x60] sm:$0xff]   ;;  %v1722_v20 = vld [vmem:[%s2291_s1 + $0x3f0] ss:$8 sps:$4 sm:$0xff]  }
  0x42   :  { %913 = vmatmul.mubr.bf16.vlgmr.msra.gmra.mrb[0].mxu0 %v1302_v48  ;;  %v1627_v48 = vld [vmem:[%s2291_s1 + $0x2f4] ss:$8 sps:$4 sm:$0xff]  }
  0x43   :  { %922 = vmatpush1.bf16.msra.mxu0 %v1577_v50  ;;  %953 = vmatprep.mubr.bf16.mxu0 %v1305_v51  ;;  %v1625_v50 = vld [vmem:[%s2291_s1 + $0x2f0] ss:$8 sps:$4 sm:$0xff]   ;;  %v1635_v51 = vld [vmem:[%s2291_s1 + $0x304] ss:$8 sps:$4 sm:$0xff]  }
  0x44   :  { %923 = vmatprep.subr.bf16.mxu0 %v1582_v52  ;;  %868 = vmatpush1.bf16.msra.mxu1 %v1710_v23  ;;  %v2136_v52 = vld [vmem:[%s2292_s0 + $0x18] sm:$0xff]  ;;  %v1738_v23 = vld [vmem:[%s2293_s3 + $0x28] sm:$0xff]  }
  0x45   :  { %869 = vmatprep.subr.bf16.mxu1 %v1714_v24  ;;  %v1306_v21 = vcombine.low %v2136_v52, %v2136_v52  ;;  %v1739_v24 = vld [vmem:[%s2293_s3 + $0x70] sm:$0xff]  }
  0x47   :  { %924 = vmatpush1.bf16.msra.mxu0 %v1580_v55  ;;  %v1307_v55 = vcombine.high %v2136_v52, %v2136_v52  ;;  %v1743_v52 = vld [vmem:[%s2294_s5] sm:$0xff]  }
  0x48   :  { %925 = vmatprep.subr.bf16.mxu0 %v1585_v56  ;;  %870 = vmatpush1.bf16.msra.mxu1 %v1716_v27  ;;  %v1641_v56 = vld [vmem:[%s2291_s1 + $0x314] ss:$8 sps:$4 sm:$0xff]  }
  0x49   :  { %1462 = vmatprep.subr.bf16.mxu1 %v1727_v28  ;;  %v1742_v27 = vld [vmem:[%s2293_s3 + $0x38] sm:$0xff]   ;;  %v1751_v28 = vmov 0.0  }
  0x4b   :  { %926 = vmatpush1.bf16.msra.mxu0 %v1583_v59  ;;  %872 = vmatmul.mubr.bf16.vlgmr.msra.gmra.mrb[0].mxu1 %v1300_v31  ;;  %v1653_v59 = vld [vmem:[%s2291_s1 + $0x334] ss:$8 sps:$4 sm:$0xff]  }
  0x4c   :  { %927 = vmatprep.subr.bf16.mxu0 %v1588_v60  ;;  %1463 = vmatpush3.bf16.msra.mxu1 %v1728_v32  ;;  %v1651_v60 = vld [vmem:[%s2291_s1 + $0x330] ss:$8 sps:$4 sm:$0xff]  }
  0x4d   :  { %1464 = vmatprep.subr.bf16.mxu1 %v1729_v33  ;;  %v161_v33 = vlaneseq }
  0x4f   :  { %928 = vmatpush1.bf16.msra.mxu0 %v1586_v63  ;;  %v1665_v63 = vld [vmem:[%s2291_s1 + $0x354] ss:$8 sps:$4 sm:$0xff]  }
  0x50   :  { %929 = vmatprep.subr.bf16.mxu0 %v1591_v0  ;;  %1465 = vmatpush3.bf16.msra.mxu1 %v1730_v36  ;;  %v1663_v0 = vld [vmem:[%s2291_s1 + $0x350] ss:$8 sps:$4 sm:$0xff]   ;;  %v159_v36 = vld [vmem:[%s2295_s2] sm:$0x3] }
  0x51   :  { %1466 = vmatprep.subr.bf16.mxu1 %v1731_v37 }
  0x53   :  { %930 = vmatpush1.bf16.msra.mxu0 %v1589_v3  ;;  %v1677_v3 = vld [vmem:[%s2291_s1 + $0x374] ss:$8 sps:$4 sm:$0xff]  }
  0x54   :  { %931 = vmatprep.subr.bf16.mxu0 %v1594_v4  ;;  %1467 = vmatpush3.bf16.msra.mxu1 %v1732_v40  ;;  %v1675_v4 = vld [vmem:[%s2291_s1 + $0x370] ss:$8 sps:$4 sm:$0xff]  }
  0x55   :  { %1468 = vmatprep.subr.bf16.mxu1 %v1733_v41 }
  0x57   :  { %932 = vmatpush1.bf16.msra.mxu0 %v1592_v7  ;;  %v1689_v7 = vld [vmem:[%s2291_s1 + $0x394] ss:$8 sps:$4 sm:$0xff]  }
  0x58   :  { %933 = vmatprep.subr.bf16.mxu0 %v1597_v8  ;;  %1469 = vmatpush3.bf16.msra.mxu1 %v1734_v44  ;;  %v1687_v8 = vld [vmem:[%s2291_s1 + $0x390] ss:$8 sps:$4 sm:$0xff]  }
  0x59   :  { %1470 = vmatprep.subr.bf16.mxu1 %v1735_v45 }
  0x5b   :  { %934 = vmatpush1.bf16.msra.mxu0 %v1595_v13  ;;  %v1707_v13 = vld [vmem:[%s2291_s1 + $0x3c4] ss:$8 sps:$4 sm:$0xff]  }
  0x5c   :  { %935 = vmatprep.subr.bf16.mxu0 %v1600_v14  ;;  %1471 = vmatpush3.bf16.msra.mxu1 %v1736_v49  ;;  %v1705_v14 = vld [vmem:[%s2291_s1 + $0x3c0] ss:$8 sps:$4 sm:$0xff]  }
  0x5f   :  { %936 = vmatpush1.bf16.msra.mxu0 %v1598_v17  ;;  %v1719_v17 = vld [vmem:[%s2291_s1 + $0x3e4] ss:$8 sps:$4 sm:$0xff]  }
  0x60   :  { %937 = vmatprep.subr.bf16.mxu0 %v1603_v18  ;;  %v1717_v18 = vld [vmem:[%s2291_s1 + $0x3e0] ss:$8 sps:$4 sm:$0xff]  }
  0x63   :  { %938 = vmatpush1.bf16.msra.mxu0 %v1601_v19  ;;  %v1724_v19 = vld [vmem:[%s2291_s1 + $0x3f4] ss:$8 sps:$4 sm:$0xff]  }
  0x64   :  { %939 = vmatprep.subr.bf16.mxu0 %v1606_v22  ;;  %v1737_v22 = vld [vmem:[%s2293_s3 + $0x68] sm:$0xff]  }
  0x65   :  { %1472 = vmatprep.subr.bf16.mxu1 %v1737_v22 }
  0x66   :  { %1473 = vmatpush3.bf16.msra.mxu1 %v1738_v23 }
  0x67   :  { %940 = vmatpush1.bf16.msra.mxu0 %v1604_v25  ;;  %v1740_v25 = vld [vmem:[%s2293_s3 + $0x30] sm:$0xff]   ;;  %1474 = vmatprep.subr.bf16.mxu1 %v1739_v24 }
  0x68   :  { %941 = vmatprep.subr.bf16.mxu0 %v1609_v26  ;;  %v1741_v26 = vld [vmem:[%s2293_s3 + $0x78] sm:$0xff]  }
  0x6a   :  { %1475 = vmatpush3.bf16.msra.mxu1 %v1740_v25 }
  0x6b   :  { %942 = vmatpush1.bf16.msra.mxu0 %v1607_v29  ;;  %1476 = vmatprep.subr.bf16.mxu1 %v1741_v26 }
  0x6c   :  { %943 = vmatprep.subr.bf16.mxu0 %v1612_v30 }
  0x6e   :  { %1477 = vmatpush3.bf16.msra.mxu1 %v1742_v27 }
  0x6f   :  { %944 = vmatpush1.bf16.msra.mxu0 %v1610_v34  ;;  %1493 = vmatprep.subr.bf16.mxu1 %v1751_v28  ;;  %v162_v34 = vshrl.u32 %v161_v33, 7 }
  0x70   :  { %945 = vmatprep.subr.bf16.mxu0 %v1615_v35 }
  0x71   :  { %v163_v35 = vsub.s32 0, %v162_v34  ;;  %v167_v37 = vsub.s32 1, %v162_v34 }
  0x73   :  { %946 = vmatpush1.bf16.msra.mxu0 %v1613_v38  ;;  %v164_v38 = vrot.slane %v159_v36, %v163_v35 }
  0x74   :  { %947 = vmatprep.subr.bf16.mxu0 %v1618_v39  ;;  %v168_v39 = vrot.slane %v159_v36, %v167_v37 }
  0x77   :  { %948 = vmatpush1.bf16.msra.mxu0 %v1616_v42 }
  0x78   :  { %949 = vmatprep.subr.bf16.mxu0 %v1621_v43 }
  0x7b   :  { %950 = vmatpush1.bf16.msra.mxu0 %v1619_v47 }
  0x7c   :  { %951 = vmatprep.subr.bf16.mxu0 %v1627_v48 }
  0x7f   :  { %952 = vmatpush1.bf16.msra.mxu0 %v1625_v50 }
  0x80   :  { %962 = vmatprep.subr.bf16.mxu0 %v1635_v51 }
  0x82   :  { %954 = vmatmul.mubr.bf16.vlgmr.msra.gmra.mrb[0].mxu0 %v1304_v53 }
  0x83   :  { %963 = vmatpush1.bf16.msra.mxu0 %v1633_v54  ;;  %994 = vmatprep.mubr.bf16.mxu0 %v1307_v55  ;;  %v1744_v54 = vld [vmem:[%s2294_s5 + $0x8] sm:$0xff]   ;;  %v1745_v55 = vld [vmem:[%s2294_s5 + $0x10] sm:$0xff]  }
  0x84   :  { %964 = vmatprep.subr.bf16.mxu0 %v1641_v56  ;;  %v1746_v56 = vld [vmem:[%s2294_s5 + $0x18] sm:$0xff]  }
  0x87   :  { %965 = vmatpush1.bf16.msra.mxu0 %v1639_v57  ;;  %v1747_v57 = vld [vmem:[%s2294_s5 + $0x20] sm:$0xff]  }
  0x88   :  { %966 = vmatprep.subr.bf16.mxu0 %v1647_v46  ;;  %v1748_v46 = vld [vmem:[%s2294_s5 + $0x28] sm:$0xff]  }
  0x8b   :  { %967 = vmatpush1.bf16.msra.mxu0 %v1645_v58  ;;  %v1749_v58 = vld [vmem:[%s2294_s5 + $0x30] sm:$0xff]  }
  0x8c   :  { %968 = vmatprep.subr.bf16.mxu0 %v1653_v59  ;;  %v1750_v59 = vld [vmem:[%s2294_s5 + $0x38] sm:$0xff]  }
  0x8f   :  { %969 = vmatpush1.bf16.msra.mxu0 %v1651_v60 }
  0x90   :  { %970 = vmatprep.subr.bf16.mxu0 %v1659_v61  ;;  %v1436_v61 = vld [vmem:[%s2296_s4] ss:$0 sm:$0xff] }
  0x93   :  { %971 = vmatpush1.bf16.msra.mxu0 %v1657_v62 }
  0x94   :  { %972 = vmatprep.subr.bf16.mxu0 %v1665_v63 }
  0x97   :  { %973 = vmatpush1.bf16.msra.mxu0 %v1663_v0 }
  0x98   :  { %974 = vmatprep.subr.bf16.mxu0 %v1671_v1 }
  0x9b   :  { %975 = vmatpush1.bf16.msra.mxu0 %v1669_v2 }
  0x9c   :  { %976 = vmatprep.subr.bf16.mxu0 %v1677_v3 }
  0x9f   :  { %977 = vmatpush1.bf16.msra.mxu0 %v1675_v4 }
  0xa0   :  { %978 = vmatprep.subr.bf16.mxu0 %v1683_v5  ;;  %v1453_v5 = vld [vmem:[%s2297_s6] ss:$0 sm:$0xff] }
  0xa3   :  { %979 = vmatpush1.bf16.msra.mxu0 %v1681_v6 }
  0xa4   :  { %980 = vmatprep.subr.bf16.mxu0 %v1689_v7 }
  0xa7   :  { %981 = vmatpush1.bf16.msra.mxu0 %v1687_v8 }
  0xa8   :  { %982 = vmatprep.subr.bf16.mxu0 %v1695_v9 }
  0xab   :  { %983 = vmatpush1.bf16.msra.mxu0 %v1693_v10 }
  0xac   :  { %984 = vmatprep.subr.bf16.mxu0 %v1701_v11 }
  0xaf   :  { %985 = vmatpush1.bf16.msra.mxu0 %v1699_v12 }
  0xb0   :  { %986 = vmatprep.subr.bf16.mxu0 %v1707_v13 }
  0xb3   :  { %987 = vmatpush1.bf16.msra.mxu0 %v1705_v14 }
  0xb4   :  { %988 = vmatprep.subr.bf16.mxu0 %v1713_v15 }
  0xb7   :  { %989 = vmatpush1.bf16.msra.mxu0 %v1711_v16 }
  0xb8   :  { %990 = vmatprep.subr.bf16.mxu0 %v1719_v17 }
  0xbb   :  { %991 = vmatpush1.bf16.msra.mxu0 %v1717_v18 }
  0xbc   :  { %992 = vmatprep.subr.bf16.mxu0 %v1724_v19 }
  0xbf   :  { %993 = vmatpush1.bf16.msra.mxu0 %v1722_v20 }
  0xc2   :  { %995 = vmatmul.mubr.bf16.vlgmr.msra.gmra.mrb[0].mxu0 %v1306_v21 }
 0x11e   :  { %v873_v29 = vpop.f32.mrb[0].mxu1 }
 0x11f   :  { %v875_v30 = vpop.f32.mrb[1].mxu1  ;;  %v874_v40 = vadd.f32 %v873_v29, %v164_v38 }
 0x120   :  { %v877_v31 = vpop.f32.mrb[2].mxu1  ;;  %v876_v41 = vadd.f32 %v875_v30, %v168_v39 }
 0x121   :  { %v878_v32 = vpop.f32.mrb[3].mxu1 }
 0x195   :  { %v996_v42 = vpop.f32.mrb[0].mxu0 }
 0x196   :  { %v1514_v43 = vadd.f32 %v996_v42, %v874_v40  ;;  %v998_v44 = vpop.f32.mrb[1].mxu0 }
 0x197   :  { %v1516_v45 = vadd.f32 %v998_v44, %v876_v41  ;;  %v1000_v47 = vpop.f32.mrb[2].mxu0 }
 0x198   :  { %v1003_v48 = vmax.f32 %v1514_v43, 0.0  ;;  %v1001_v49 = vpop.f32.mrb[3].mxu0 }
 0x199   :  { %v1004_v50 = vmax.f32 %v1516_v45, 0.0 }
 0x19a   :  { %v1005_v53 = vpack.c.bf16 %v1003_v48, %v1003_v48 }
 0x19b   :  { %v1006_v51 = vpack.c.bf16 %v1004_v50, %v1004_v50 }
 0x19d   :  { %1174 = vmatprep.mubr.bf16.mxu1 %v1006_v51 }
 0x19e   :  { %1175 = vmatmul.mubr.bf16.vlgmr.msra.gmra.mrb[4].mxu1 %v1005_v53 }
 0x19f   :  { %1494 = vmatpush3.bf16.msra.mxu1 %v1743_v52  ;;  %1509 = vmatprep.mubr.msk.bf16.mxu1 %vm1752_vm0, %v1751_v28 }
 0x1a0   :  { %1495 = vmatprep.subr.bf16.mxu1 %v1751_v28 }
 0x1a3   :  { %1496 = vmatpush3.bf16.msra.mxu1 %v1744_v54 }
 0x1a4   :  { %1497 = vmatprep.subr.bf16.mxu1 %v1751_v28 }
 0x1a7   :  { %1498 = vmatpush3.bf16.msra.mxu1 %v1745_v55 }
 0x1a8   :  { %1499 = vmatprep.subr.bf16.mxu1 %v1751_v28 }
 0x1ab   :  { %1500 = vmatpush3.bf16.msra.mxu1 %v1746_v56 }
 0x1ac   :  { %1501 = vmatprep.subr.bf16.mxu1 %v1751_v28 }
 0x1af   :  { %1502 = vmatpush3.bf16.msra.mxu1 %v1747_v57 }
 0x1b0   :  { %1503 = vmatprep.subr.bf16.mxu1 %v1751_v28 }
 0x1b3   :  { %1504 = vmatpush3.bf16.msra.mxu1 %v1748_v46 }
 0x1b4   :  { %1505 = vmatprep.subr.bf16.mxu1 %v1751_v28 }
 0x1b7   :  { %1506 = vmatpush3.bf16.msra.mxu1 %v1749_v58 }
 0x1b8   :  { %1507 = vmatprep.subr.bf16.mxu1 %v1751_v28 }
 0x1bb   :  { %1508 = vmatpush3.bf16.msra.mxu1 %v1750_v59 }
 0x271   :  { %v1478_v60 = vpop.f32.mrb[4].mxu1 }
 0x272   :  { %v1479_v62 = vpop.f32.mrb[5].mxu1 }
 0x273   :  { %v1480_v63 = vadd.f32 %v1479_v62, %v1478_v60  ;;  %v1481_v0 = vpop.f32.mrb[6].mxu1 }
 0x274   :  { %v1482_v1 = vpop.f32.mrb[7].mxu1 }
 0x275   :  { %v1177_v2 = vadd.f32 %v1480_v63, %v1436_v61 }
 0x277   :  { %v1182_v3 = vmax.f32 %v1177_v2, 0.0 }
 0x279   :  { %v1183_v4 = vpack.c.bf16 %v1182_v3, %v1182_v3 }
 0x27b   :  { %1510 = vmatmul.mubr.bf16.vlgmr.msra.gmra.mrb[8].mxu1 %v1183_v4 }
 0x34e   :  { %v1289_v6 = vpop.f32.mrb[8].mxu1 }
 0x34f   :  { %v1290_v7 = vadd.f32 %v1453_v5, %v1289_v6  ;;  %v1511_v8 = vpop.f32.mrb[9].mxu1 }
 0x350   :  { %v1292_v9 = vpop.f32.mrb[10].mxu1 }
 0x351   :  { %1295 = vst [vmem:[%s2298_s7] sm:$0xff] %v1290_v7  ;;  %v1512_v10 = vpop.f32.mrb[11].mxu1 }

// kernel: net_forward.2
= control target key start
LH: loop header
LB: loop body
LE: loop exit
PB: predicated region body
PF: predicated region fallthrough
CT: control target
= control target key end

     0   :  { %s15949_s0 = inlined_call_operand.vmem [shape: f32[512,64], index: 0, kind: input, shape index: {}]   ;;  %s15950_s1 = inlined_call_operand.hbm [shape: f32[512,512], index: 1, kind: input, shape index: {}]   ;;  %s15951_s2 = inlined_call_operand.hbm [shape: f32[2,64,192], index: 2, kind: input, shape index: {}]   ;;  %s15952_s3 = inlined_call_operand.vmem [shape: f32[1,192], index: 3, kind: input, shape index: {}]   ;;  %s15953_s4 = inlined_call_operand.hbm [shape: f32[2,192,96], index: 4, kind: input, shape index: {}]   ;;  %s15954_s5 = inlined_call_operand.hbm [shape: f32[2,256,512], index: 5, kind: input, shape index: {}]   ;;  %s15955_s6 = inlined_call_operand.hbm [shape: f32[256,256], index: 6, kind: input, shape index: {}]   ;;  %s15956_s7 = inlined_call_operand.hbm [shape: f32[2,96,192], index: 7, kind: input, shape index: {}]   ;;  %s15957_s8 = inlined_call_operand.vmem [shape: f32[1,192], index: 8, kind: input, shape index: {}]   ;;  %s15958_s9 = inlined_call_operand.hbm [shape: f32[2,192,96], index: 9, kind: input, shape index: {}]   ;;  %s15959_s10 = inlined_call_operand.hbm [shape: f32[2,128,256], index: 10, kind: input, shape index: {}]   ;;  %s15960_s11 = inlined_call_operand.hbm [shape: f32[2,128,128], index: 11, kind: input, shape index: {}]   ;;  %s15961_s12 = inlined_call_operand.vmem [shape: f32[3,96,192], index: 12, kind: input, shape index: {}]   ;;  %s15962_s13 = inlined_call_operand.vmem [shape: f32[1,192], index: 13, kind: input, shape index: {}]   ;;  %s15963_s14 = inlined_call_operand.hbm [shape: f32[2,192,128], index: 14, kind: input, shape index: {}]   ;;  %s15964_s15 = inlined_call_operand.hbm [shape: f32[2,64,128], index: 15, kind: input, shape index: {}]   ;;  %s15965_s16 = inlined_call_operand.vmem [shape: bf16[64,128], index: 16, kind: output, shape index: {}]  }
   0x1   :  { %16044 = sst [smem:[#allocation36_spill]] %s15949_s0 }
   0x2   :  { %16045 = sst [smem:[#allocation37_spill]] %s15965_s16 }
   0x3   :  { %21 = vsyncpa [#allocation3], 0 }
   0x4   :  { %22 = vsyncpa [#allocation5], 0 }
   0x5   :  { %23 = vsyncpa [#allocation8], 0 }
   0x6   :  { %24 = vsyncpa [#allocation11], 0 }
   0x7   :  { %25 = vsyncpa [#allocation14], 0 }
   0x8   :  { %26 = vsyncpa [#allocation17], 0  ;;  %s11863_s21 = smov [#allocation4]   ;;  %s11609_s25 = scalar_lea.hbm %s15951_s2, 4096 }
   0x9   :  { %s46_s22 = sshll.u32 %s11863_s21, 4  ;;  %p11610_p0 = scmp.ne.s32.totalorder %s15951_s2, %s11609_s25  ;;  %s47_s22 = int_to_ptr.vmem [resolvable:$true] %s46_s22 }
   0xa   :  { %p11613_p1 = scmp.lt.u32.totalorder %s11609_s25, %s15951_s2 }
   0xc   :  { %p11615_p2 = pnand %p11613_p1, %p11610_p0 }
   0xe   :  { %11618 = shalt.err (!%p11615_p2)
}
   0xf   :  { %s11619_s30 = scalar_lea.vmem %s47_s22, 4096  ;;  %p11624_p4 = scmp.lt.s32.totalorder %s47_s22, %s47_s22 }
  0x10   :  { %p11620_p3 = scmp.ne.s32.totalorder %s47_s22, %s11619_s30  ;;  %p11625_p5 = scmp.lt.s32.totalorder %s11619_s30, %s11619_s30 }
  0x12   :  { %p11626_p6 = por %p11625_p5, %p11624_p4 }
  0x14   :  { %p11627_p7 = pnand %p11626_p6, %p11620_p3 }
  0x16   :  { %11630 = shalt.err (!%p11627_p7)
}
  0x17   :  { %s11864_s0 = smov 256   ;;  %s11865_s17 = smov 16  }
  0x18   :  { %52 = dma.hbm_to_vmem [thread:$0]  %s15951_s2, 4096, %s47_s22, [#allocation5], %s11864_s0, %s11864_s0, %s11865_s17  }
  0x19   :  { %s11866_s20 = smov [#allocation7]   ;;  %s11867_s23 = smov [#allocation10]  }
  0x1a   :  { %s72_s21 = sshll.u32 %s11866_s20, 4  ;;  %s96_s24 = sshll.u32 %s11867_s23, 4  ;;  %s73_s21 = int_to_ptr.vmem [resolvable:$true] %s72_s21  ;;  %s97_s24 = int_to_ptr.vmem [resolvable:$true] %s96_s24 }
  0x1b   :  { %s11631_s27 = scalar_lea.hbm %s15954_s5, 32768 }
  0x1c   :  { %p11632_p8 = scmp.ne.s32.totalorder %s15954_s5, %s11631_s27  ;;  %p11635_p9 = scmp.lt.u32.totalorder %s11631_s27, %s15954_s5 }
  0x1e   :  { %p11637_p10 = pnand %p11635_p9, %p11632_p8 }
  0x20   :  { %11640 = shalt.err (!%p11637_p10)
}
  0x21   :  { %s11641_s2 = scalar_lea.vmem %s73_s21, 32768  ;;  %p11646_p12 = scmp.lt.s32.totalorder %s73_s21, %s73_s21 }
  0x22   :  { %p11642_p11 = scmp.ne.s32.totalorder %s73_s21, %s11641_s2  ;;  %p11647_p13 = scmp.lt.s32.totalorder %s11641_s2, %s11641_s2 }
  0x24   :  { %p11648_p0 = por %p11647_p13, %p11646_p12 }
  0x26   :  { %p11649_p1 = pnand %p11648_p0, %p11642_p11 }
  0x28   :  { %11652 = shalt.err (!%p11649_p1)
}
  0x29   :  { %s11868_s22 = smov 512   ;;  %s11869_s18 = smov 32  }
  0x2a   :  { %78 = dma.hbm_to_vmem [thread:$0]  %s15954_s5, 32768, %s73_s21, [#allocation8], %s11868_s22, %s11868_s22, %s11869_s18  }
  0x2b   :  { %s11653_s25 = scalar_lea.hbm %s15956_s7, 6144 }
  0x2c   :  { %p11654_p2 = scmp.ne.s32.totalorder %s15956_s7, %s11653_s25  ;;  %p11657_p3 = scmp.lt.u32.totalorder %s11653_s25, %s15956_s7 }
  0x2e   :  { %p11659_p4 = pnand %p11657_p3, %p11654_p2 }
  0x30   :  { %11662 = shalt.err (!%p11659_p4)
}
  0x31   :  { %s11663_s30 = scalar_lea.vmem %s97_s24, 6144  ;;  %p11668_p6 = scmp.lt.s32.totalorder %s97_s24, %s97_s24 }
  0x32   :  { %p11664_p5 = scmp.ne.s32.totalorder %s97_s24, %s11663_s30  ;;  %p11669_p7 = scmp.lt.s32.totalorder %s11663_s30, %s11663_s30 }
  0x34   :  { %p11670_p8 = por %p11669_p7, %p11668_p6 }
  0x36   :  { %p11671_p9 = pnand %p11670_p8, %p11664_p5 }
  0x38   :  { %11674 = shalt.err (!%p11671_p9)
}
  0x39   :  { %102 = dma.hbm_to_vmem [thread:$0]  %s15956_s7, 6144, %s97_s24, [#allocation11], %s11864_s0, %s11864_s0, %s11865_s17  }
  0x3a   :  { %s11870_s2 = smov [#allocation13]   ;;  %s11675_s23 = scalar_lea.hbm %s15959_s10, 8192 }
  0x3b   :  { %s122_s19 = sshll.u32 %s11870_s2, 4  ;;  %p11676_p10 = scmp.ne.s32.totalorder %s15959_s10, %s11675_s23  ;;  %s123_s19 = int_to_ptr.vmem [resolvable:$true] %s122_s19 }
  0x3c   :  { %p11679_p11 = scmp.lt.u32.totalorder %s11675_s23, %s15959_s10 }
  0x3e   :  { %p11681_p12 = pnand %p11679_p11, %p11676_p10 }
  0x40   :  { %11684 = shalt.err (!%p11681_p12)
}
  0x41   :  { %s11685_s29 = scalar_lea.vmem %s123_s19, 8192  ;;  %p11690_p0 = scmp.lt.s32.totalorder %s123_s19, %s123_s19 }
  0x42   :  { %p11686_p13 = scmp.ne.s32.totalorder %s123_s19, %s11685_s29  ;;  %p11691_p1 = scmp.lt.s32.totalorder %s11685_s29, %s11685_s29 }
  0x44   :  { %p11692_p2 = por %p11691_p1, %p11690_p0 }
  0x46   :  { %p11693_p3 = pnand %p11692_p2, %p11686_p13 }
  0x48   :  { %11696 = shalt.err (!%p11693_p3)
}
  0x49   :  { %128 = dma.hbm_to_vmem [thread:$0]  %s15959_s10, 8192, %s123_s19, [#allocation14], %s11864_s0, %s11864_s0, %s11865_s17  }
  0x4a   :  { %s11871_s30 = smov [#allocation16]   ;;  %s11872_s21 = smov [#allocation2]  }
  0x4b   :  { %s150_s5 = sshll.u32 %s11871_s30, 4  ;;  %s34_s2 = sshll.u32 %s11872_s21, 4  ;;  %s151_s5 = int_to_ptr.vmem [resolvable:$true] %s150_s5  ;;  %s12027_s2 = int_to_ptr.vmem [resolvable:$true] %s34_s2 }
  0x4c   :  { %s11697_s23 = scalar_lea.hbm %s15963_s14, 6144 }
  0x4d   :  { %p11698_p4 = scmp.ne.s32.totalorder %s15963_s14, %s11697_s23  ;;  %p11701_p5 = scmp.lt.u32.totalorder %s11697_s23, %s15963_s14 }
  0x4f   :  { %p11703_p6 = pnand %p11701_p5, %p11698_p4 }
  0x51   :  { %11706 = shalt.err (!%p11703_p6)
}
  0x52   :  { %s11707_s10 = scalar_lea.vmem %s151_s5, 6144  ;;  %p11712_p8 = scmp.lt.s32.totalorder %s151_s5, %s151_s5 }
  0x53   :  { %p11708_p7 = scmp.ne.s32.totalorder %s151_s5, %s11707_s10  ;;  %p11713_p9 = scmp.lt.s32.totalorder %s11707_s10, %s11707_s10 }
  0x55   :  { %p11714_p10 = por %p11713_p9, %p11712_p8 }
  0x57   :  { %p11715_p11 = pnand %p11714_p10, %p11708_p7 }
  0x59   :  { %11718 = shalt.err (!%p11715_p11)
}
  0x5a   :  { %s11873_s19 = smov 128   ;;  %s11874_s29 = smov 8  }
  0x5b   :  { %156 = dma.hbm_to_vmem [thread:$0]  %s15963_s14, 6144, %s151_s5, [#allocation17], %s11873_s19, %s11873_s19, %s11874_s29  }
  0x5c   :  { %s11719_s20 = scalar_lea.hbm %s15950_s1, 32768 }
  0x5d   :  { %p11720_p12 = scmp.ne.s32.totalorder %s15950_s1, %s11719_s20  ;;  %p11723_p13 = scmp.lt.u32.totalorder %s11719_s20, %s15950_s1 }
  0x5f   :  { %p11725_p0 = pnand %p11723_p13, %p11720_p12 }
  0x61   :  { %11728 = shalt.err (!%p11725_p0)
}
  0x62   :  { %s11729_s27 = scalar_lea.vmem %s12027_s2, 32768  ;;  %p11734_p2 = scmp.lt.s32.totalorder %s12027_s2, %s12027_s2 }
  0x63   :  { %p11730_p1 = scmp.ne.s32.totalorder %s12027_s2, %s11729_s27  ;;  %p11735_p3 = scmp.lt.s32.totalorder %s11729_s27, %s11729_s27 }
  0x65   :  { %p11736_p4 = por %p11735_p3, %p11734_p2 }
  0x67   :  { %p11737_p5 = pnand %p11736_p4, %p11730_p1 }
  0x69   :  { %11740 = shalt.err (!%p11737_p5)
}
  0x6a   :  { %40 = dma.hbm_to_vmem [thread:$0]  %s15950_s1, 32768, %s12027_s2, [#allocation3], %s11868_s22, %s11868_s22, %s11869_s18  }
  0x6b   :  { %s11875_s28 = smov [#allocation6]   ;;  %s11876_s7 = smov [#allocation9]  }
  0x6c   :  { %s60_s10 = sshll.u32 %s11875_s28, 4  ;;  %s84_s24 = sshll.u32 %s11876_s7, 4  ;;  %s61_s10 = int_to_ptr.vmem [resolvable:$true] %s60_s10  ;;  %s12064_s24 = int_to_ptr.vmem [resolvable:$true] %s84_s24 }
  0x6d   :  { %s11741_s20 = scalar_lea.hbm %s15953_s4, 6144 }
  0x6e   :  { %p11742_p6 = scmp.ne.s32.totalorder %s15953_s4, %s11741_s20  ;;  %p11745_p7 = scmp.lt.u32.totalorder %s11741_s20, %s15953_s4 }
  0x70   :  { %p11747_p8 = pnand %p11745_p7, %p11742_p6 }
  0x72   :  { %11750 = shalt.err (!%p11747_p8)
}
  0x73   :  { %s11751_s1 = scalar_lea.vmem %s61_s10, 6144  ;;  %p11756_p10 = scmp.lt.s32.totalorder %s61_s10, %s61_s10 }
  0x74   :  { %p11752_p9 = scmp.ne.s32.totalorder %s61_s10, %s11751_s1  ;;  %p11757_p11 = scmp.lt.s32.totalorder %s11751_s1, %s11751_s1 }
  0x76   :  { %p11758_p12 = por %p11757_p11, %p11756_p10 }
  0x78   :  { %p11759_p13 = pnand %p11758_p12, %p11752_p9 }
  0x7a   :  { %11762 = shalt.err (!%p11759_p13)
}
  0x7b   :  { %66 = dma.hbm_to_vmem [thread:$0]  %s15953_s4, 6144, %s61_s10, [#allocation5], %s11873_s19, %s11873_s19, %s11874_s29  }
  0x7c   :  { %s11763_s14 = scalar_lea.hbm %s15955_s6, 8192 }
  0x7d   :  { %p11764_p0 = scmp.ne.s32.totalorder %s15955_s6, %s11763_s14  ;;  %p11767_p1 = scmp.lt.u32.totalorder %s11763_s14, %s15955_s6 }
  0x7f   :  { %p11769_p2 = pnand %p11767_p1, %p11764_p0 }
  0x81   :  { %11772 = shalt.err (!%p11769_p2)
}
  0x82   :  { %s11773_s21 = scalar_lea.vmem %s12064_s24, 8192  ;;  %p11778_p4 = scmp.lt.s32.totalorder %s12064_s24, %s12064_s24 }
  0x83   :  { %p11774_p3 = scmp.ne.s32.totalorder %s12064_s24, %s11773_s21  ;;  %p11779_p5 = scmp.lt.s32.totalorder %s11773_s21, %s11773_s21 }
  0x85   :  { %p11780_p6 = por %p11779_p5, %p11778_p4 }
  0x87   :  { %p11781_p7 = pnand %p11780_p6, %p11774_p3 }
  0x89   :  { %11784 = shalt.err (!%p11781_p7)
}
  0x8a   :  { %90 = dma.hbm_to_vmem [thread:$0]  %s15955_s6, 8192, %s12064_s24, [#allocation8], %s11864_s0, %s11864_s0, %s11865_s17  }
  0x8b   :  { %s11877_s20 = smov [#allocation12]   ;;  %s11878_s23 = smov [#allocation15]  }
  0x8c   :  { %s110_s16 = sshll.u32 %s11877_s20, 4  ;;  %s134_s25 = sshll.u32 %s11878_s23, 4  ;;  %s111_s16 = int_to_ptr.vmem [resolvable:$true] %s110_s16  ;;  %s12101_s25 = int_to_ptr.vmem [resolvable:$true] %s134_s25 }
  0x8d   :  { %s11785_s22 = scalar_lea.hbm %s15958_s9, 6144 }
  0x8e   :  { %p11786_p8 = scmp.ne.s32.totalorder %s15958_s9, %s11785_s22  ;;  %p11789_p9 = scmp.lt.u32.totalorder %s11785_s22, %s15958_s9 }
  0x90   :  { %p11791_p10 = pnand %p11789_p9, %p11786_p8 }
  0x92   :  { %11794 = shalt.err (!%p11791_p10)
}
  0x93   :  { %s11795_s6 = scalar_lea.vmem %s111_s16, 6144  ;;  %p11800_p12 = scmp.lt.s32.totalorder %s111_s16, %s111_s16 }
  0x94   :  { %p11796_p11 = scmp.ne.s32.totalorder %s111_s16, %s11795_s6  ;;  %p11801_p13 = scmp.lt.s32.totalorder %s11795_s6, %s11795_s6 }
  0x96   :  { %p11802_p0 = por %p11801_p13, %p11800_p12 }
  0x98   :  { %p11803_p1 = pnand %p11802_p0, %p11796_p11 }
  0x9a   :  { %11806 = shalt.err (!%p11803_p1)
}
  0x9b   :  { %116 = dma.hbm_to_vmem [thread:$0]  %s15958_s9, 6144, %s111_s16, [#allocation11], %s11873_s19, %s11873_s19, %s11874_s29  }
  0x9c   :  { %s11807_s28 = scalar_lea.hbm %s15960_s11, 4096 }
  0x9d   :  { %p11808_p2 = scmp.ne.s32.totalorder %s15960_s11, %s11807_s28  ;;  %p11811_p3 = scmp.lt.u32.totalorder %s11807_s28, %s15960_s11 }
  0x9f   :  { %p11813_p4 = pnand %p11811_p3, %p11808_p2 }
  0xa1   :  { %11816 = shalt.err (!%p11813_p4)
}
  0xa2   :  { %s11817_s10 = scalar_lea.vmem %s12101_s25, 4096  ;;  %p11822_p6 = scmp.lt.s32.totalorder %s12101_s25, %s12101_s25 }
  0xa3   :  { %p11818_p5 = scmp.ne.s32.totalorder %s12101_s25, %s11817_s10  ;;  %p11823_p7 = scmp.lt.s32.totalorder %s11817_s10, %s11817_s10 }
  0xa5   :  { %p11824_p8 = por %p11823_p7, %p11822_p6 }
  0xa7   :  { %p11825_p9 = pnand %p11824_p8, %p11818_p5 }
  0xa9   :  { %11828 = shalt.err (!%p11825_p9)
}
  0xaa   :  { %140 = dma.hbm_to_vmem [thread:$0]  %s15960_s11, 4096, %s12101_s25, [#allocation14], %s11873_s19, %s11873_s19, %s11874_s29  }
  0xab   :  { %s11879_s16 = smov [#allocation18]   ;;  %s11829_s22 = scalar_lea.hbm %s15964_s15, 2048 }
  0xac   :  { %s162_s23 = sshll.u32 %s11879_s16, 4  ;;  %p11830_p10 = scmp.ne.s32.totalorder %s15964_s15, %s11829_s22  ;;  %s163_s23 = int_to_ptr.vmem [resolvable:$true] %s162_s23 }
  0xad   :  { %p11833_p11 = scmp.lt.u32.totalorder %s11829_s22, %s15964_s15 }
  0xaf   :  { %p11835_p12 = pnand %p11833_p11, %p11830_p10 }
  0xb1   :  { %11838 = shalt.err (!%p11835_p12)
}
  0xb2   :  { %s11839_s6 = scalar_lea.vmem %s163_s23, 2048  ;;  %p11844_p0 = scmp.lt.s32.totalorder %s163_s23, %s163_s23 }
  0xb3   :  { %p11840_p13 = scmp.ne.s32.totalorder %s163_s23, %s11839_s6  ;;  %p11845_p1 = scmp.lt.s32.totalorder %s11839_s6, %s11839_s6 }
  0xb5   :  { %p11846_p2 = por %p11845_p1, %p11844_p0 }
  0xb7   :  { %p11847_p3 = pnand %p11846_p2, %p11840_p13 }
  0xb9   :  { %11850 = shalt.err (!%p11847_p3)
}
  0xba   :  { %168 = dma.hbm_to_vmem [thread:$0]  %s15964_s15, 2048, %s163_s23, [#allocation17], %s11873_s19, %s11873_s19, %s11874_s29  }
  0xbb   :  { %11851 = dma.done.wait [#allocation3], 32768  }
  0xbc   :  { %11852 = vsyncadd [#allocation3], 4294934528 }
  0xbd   :  { %11853 = dma.done.wait [#allocation5], 10240  }
  0xbe   :  { %11854 = vsyncadd [#allocation5], 4294957056 }
  0xbf   :  { %11855 = dma.done.wait [#allocation8], 40960  }
  0xc0   :  { %11856 = vsyncadd [#allocation8], 4294926336 }
  0xc1   :  { %11857 = dma.done.wait [#allocation11], 12288  }
  0xc2   :  { %11858 = vsyncadd [#allocation11], 4294955008 }
  0xc3   :  { %11859 = dma.done.wait [#allocation14], 12288  }
  0xc4   :  { %11860 = vsyncadd [#allocation14], 4294955008 }
  0xc5   :  { %11861 = dma.done.wait [#allocation17], 8192  }
  0xc6   :  { %11862 = vsyncadd [#allocation17], 4294959104  ;;  %v15968_v0 = vmov 0.0|0.0   ;;  %s16046_s24 = sld [smem:[#allocation36_spill]]  ;;  %v267_v12 = vld [vmem:[#allocation2 + $0x8] sm:$0xff]  ;;  %v266_v50 = vld [vmem:[#allocation2] sm:$0xff] }
  0xc7   :  { %10166 = vmatprep.subr.bf16.mxu0 %v15968_v0  ;;  %586 = vmatprep.mubr.f32.mxu0 %v267_v12  ;;  %v271_v51 = vld [vmem:[#allocation2 + $0x28] sm:$0xff]  ;;  %v270_v52 = vld [vmem:[#allocation2 + $0x20] sm:$0xff]  ;;  %vm1325_vm0 = vcmask 523264   ;;  %vm5478_vm1 = vcmask 785408   ;;  %s16132_s0 = sld [smem:[#allocation37_spill]] }
  0xc8   :  { %v275_v53 = vld [vmem:[#allocation2 + $0x48] sm:$0xff]  ;;  %v274_v56 = vld [vmem:[#allocation2 + $0x40] sm:$0xff] }
  0xc9   :  { %v279_v58 = vld [vmem:[#allocation2 + $0x68] sm:$0xff]  ;;  %v278_v59 = vld [vmem:[#allocation2 + $0x60] sm:$0xff] }
  0xca   :  { %v283_v60 = vld [vmem:[#allocation2 + $0x88] sm:$0xff]  ;;  %v282_v61 = vld [vmem:[#allocation2 + $0x80] sm:$0xff] }
  0xcb   :  { %v287_v62 = vld [vmem:[#allocation2 + $0xa8] sm:$0xff]  ;;  %v286_v63 = vld [vmem:[#allocation2 + $0xa0] sm:$0xff] }
  0xcc   :  { %v12157_v1 = vld [vmem:[%s16046_s24] sm:$0xff]  ;;  %v12162_v2 = vld [vmem:[%s16046_s24 + $0x8] sm:$0xff]  ;;  %v12167_v3 = vld [vmem:[%s16046_s24 + $0x10] sm:$0xff] }
  0xcd   :  { %v10167_v4 = vpack.c.bf16 %v12162_v2, %v12157_v1  ;;  %v12174_v5 = vld [vmem:[%s16046_s24 + $0x18] sm:$0xff]  ;;  %v12182_v7 = vld [vmem:[%s16046_s24 + $0x20] sm:$0xff]  ;;  %v12187_v8 = vld [vmem:[%s16046_s24 + $0x28] sm:$0xff] }
  0xce   :  { %v10170_v6 = vpack.c.bf16 %v12174_v5, %v12167_v3  ;;  %v10173_v9 = vpack.c.bf16 %v12187_v8, %v12182_v7  ;;  %v12195_v10 = vld [vmem:[%s16046_s24 + $0x30] sm:$0xff]  ;;  %v12200_v11 = vld [vmem:[%s16046_s24 + $0x38] sm:$0xff]  ;;  %v12208_v14 = vld [vmem:[%s16046_s24 + $0x40] sm:$0xff] }
  0xcf   :  { %10168 = vmatpush1.bf16.msra.mxu0 %v10167_v4  ;;  %v10176_v13 = vpack.c.bf16 %v12200_v11, %v12195_v10  ;;  %v12213_v15 = vld [vmem:[%s16046_s24 + $0x48] sm:$0xff]  ;;  %v12221_v17 = vld [vmem:[%s16046_s24 + $0x50] sm:$0xff]  ;;  %v12226_v18 = vld [vmem:[%s16046_s24 + $0x58] sm:$0xff] }
  0xd0   :  { %10169 = vmatprep.subr.bf16.mxu0 %v15968_v0  ;;  %v10179_v16 = vpack.c.bf16 %v12213_v15, %v12208_v14  ;;  %v10182_v19 = vpack.c.bf16 %v12226_v18, %v12221_v17  ;;  %v12234_v20 = vld [vmem:[%s16046_s24 + $0x60] sm:$0xff]  ;;  %v12239_v21 = vld [vmem:[%s16046_s24 + $0x68] sm:$0xff]  ;;  %v12247_v23 = vld [vmem:[%s16046_s24 + $0x70] sm:$0xff] }
  0xd1   :  { %v10185_v22 = vpack.c.bf16 %v12239_v21, %v12234_v20  ;;  %v12252_v24 = vld [vmem:[%s16046_s24 + $0x78] sm:$0xff]  ;;  %v12260_v26 = vld [vmem:[%s16046_s24 + $0x80] sm:$0xff]  ;;  %v12265_v27 = vld [vmem:[%s16046_s24 + $0x88] sm:$0xff] }
  0xd2   :  { %v10188_v25 = vpack.c.bf16 %v12252_v24, %v12247_v23  ;;  %v10191_v28 = vpack.c.bf16 %v12265_v27, %v12260_v26  ;;  %v12273_v29 = vld [vmem:[%s16046_s24 + $0x90] sm:$0xff]  ;;  %v12278_v30 = vld [vmem:[%s16046_s24 + $0x98] sm:$0xff]  ;;  %v12286_v32 = vld [vmem:[%s16046_s24 + $0xa0] sm:$0xff] }
  0xd3   :  { %10171 = vmatpush1.bf16.msra.mxu0 %v10170_v6  ;;  %v10194_v31 = vpack.c.bf16 %v12278_v30, %v12273_v29  ;;  %v12291_v33 = vld [vmem:[%s16046_s24 + $0xa8] sm:$0xff]  ;;  %v12299_v35 = vld [vmem:[%s16046_s24 + $0xb0] sm:$0xff]  ;;  %v12304_v36 = vld [vmem:[%s16046_s24 + $0xb8] sm:$0xff] }
  0xd4   :  { %10172 = vmatprep.subr.bf16.mxu0 %v15968_v0  ;;  %v10197_v34 = vpack.c.bf16 %v12291_v33, %v12286_v32  ;;  %v10200_v37 = vpack.c.bf16 %v12304_v36, %v12299_v35  ;;  %v12312_v38 = vld [vmem:[%s16046_s24 + $0xc0] sm:$0xff]  ;;  %v12317_v39 = vld [vmem:[%s16046_s24 + $0xc8] sm:$0xff]  ;;  %v12325_v41 = vld [vmem:[%s16046_s24 + $0xd0] sm:$0xff] }
  0xd5   :  { %v10203_v40 = vpack.c.bf16 %v12317_v39, %v12312_v38  ;;  %v12330_v42 = vld [vmem:[%s16046_s24 + $0xd8] sm:$0xff]  ;;  %v12338_v44 = vld [vmem:[%s16046_s24 + $0xe0] sm:$0xff]  ;;  %v12343_v45 = vld [vmem:[%s16046_s24 + $0xe8] sm:$0xff] }
  0xd6   :  { %v10206_v43 = vpack.c.bf16 %v12330_v42, %v12325_v41  ;;  %v10209_v46 = vpack.c.bf16 %v12343_v45, %v12338_v44  ;;  %v12351_v47 = vld [vmem:[%s16046_s24 + $0xf0] sm:$0xff]  ;;  %v12356_v48 = vld [vmem:[%s16046_s24 + $0xf8] sm:$0xff]  ;;  %v12365_v54 = vld [vmem:[%s16046_s24 + $0x100] sm:$0xff] }
  0xd7   :  { %10174 = vmatpush1.bf16.msra.mxu0 %v10173_v9  ;;  %v10212_v49 = vpack.c.bf16 %v12356_v48, %v12351_v47  ;;  %v12370_v55 = vld [vmem:[%s16046_s24 + $0x108] sm:$0xff]  ;;  %v12378_v6 = vld [vmem:[%s16046_s24 + $0x110] sm:$0xff]  ;;  %v12383_v9 = vld [vmem:[%s16046_s24 + $0x118] sm:$0xff] }
  0xd8   :  { %10175 = vmatprep.subr.bf16.mxu0 %v15968_v0  ;;  %v10215_v57 = vpack.c.bf16 %v12370_v55, %v12365_v54  ;;  %v291_v4 = vld [vmem:[#allocation2 + $0xc8] sm:$0xff]  ;;  %v290_v12 = vld [vmem:[#allocation2 + $0xc0] sm:$0xff] }
  0xdb   :  { %10177 = vmatpush1.bf16.msra.mxu0 %v10176_v13  ;;  %v10218_v13 = vpack.c.bf16 %v12383_v9, %v12378_v6 }
  0xdc   :  { %10178 = vmatprep.subr.bf16.mxu0 %v15968_v0 }
  0xdf   :  { %10180 = vmatpush1.bf16.msra.mxu0 %v10179_v16  ;;  %v295_v16 = vld [vmem:[#allocation2 + $0xe8] sm:$0xff] }
  0xe0   :  { %10181 = vmatprep.subr.bf16.mxu0 %v15968_v0 }
  0xe3   :  { %10183 = vmatpush1.bf16.msra.mxu0 %v10182_v19  ;;  %v294_v19 = vld [vmem:[#allocation2 + $0xe0] sm:$0xff] }
  0xe4   :  { %10184 = vmatprep.subr.bf16.mxu0 %v15968_v0 }
  0xe7   :  { %10186 = vmatpush1.bf16.msra.mxu0 %v10185_v22  ;;  %v299_v22 = vld [vmem:[#allocation2 + $0x108] sm:$0xff] }
  0xe8   :  { %10187 = vmatprep.subr.bf16.mxu0 %v15968_v0 }
  0xeb   :  { %10189 = vmatpush1.bf16.msra.mxu0 %v10188_v25  ;;  %v298_v25 = vld [vmem:[#allocation2 + $0x100] sm:$0xff] }
  0xec   :  { %10190 = vmatprep.subr.bf16.mxu0 %v15968_v0 }
  0xef   :  { %10192 = vmatpush1.bf16.msra.mxu0 %v10191_v28  ;;  %v303_v28 = vld [vmem:[#allocation2 + $0x128] sm:$0xff] }
  0xf0   :  { %10193 = vmatprep.subr.bf16.mxu0 %v15968_v0 }
  0xf3   :  { %10195 = vmatpush1.bf16.msra.mxu0 %v10194_v31  ;;  %v302_v31 = vld [vmem:[#allocation2 + $0x120] sm:$0xff] }
  0xf4   :  { %10196 = vmatprep.subr.bf16.mxu0 %v15968_v0 }
  0xf7   :  { %10198 = vmatpush1.bf16.msra.mxu0 %v10197_v34  ;;  %v307_v34 = vld [vmem:[#allocation2 + $0x148] sm:$0xff] }
  0xf8   :  { %10199 = vmatprep.subr.bf16.mxu0 %v15968_v0 }
  0xfb   :  { %10201 = vmatpush1.bf16.msra.mxu0 %v10200_v37  ;;  %v12391_v37 = vld [vmem:[%s16046_s24 + $0x120] sm:$0xff] }
  0xfc   :  { %10202 = vmatprep.subr.bf16.mxu0 %v15968_v0 }
  0xff   :  { %10204 = vmatpush1.bf16.msra.mxu0 %v10203_v40  ;;  %v12396_v40 = vld [vmem:[%s16046_s24 + $0x128] sm:$0xff] }
 0x100   :  { %10205 = vmatprep.subr.bf16.mxu0 %v15968_v0 }
 0x103   :  { %10207 = vmatpush1.bf16.msra.mxu0 %v10206_v43  ;;  %v306_v43 = vld [vmem:[#allocation2 + $0x140] sm:$0xff] }
 0x104   :  { %10208 = vmatprep.subr.bf16.mxu0 %v15968_v0 }
 0x107   :  { %10210 = vmatpush1.bf16.msra.mxu0 %v10209_v46  ;;  %v10221_v46 = vpack.c.bf16 %v12396_v40, %v12391_v37 }
 0x108   :  { %10211 = vmatprep.subr.bf16.mxu0 %v15968_v0 }
 0x10b   :  { %10213 = vmatpush1.bf16.msra.mxu0 %v10212_v49  ;;  %v311_v49 = vld [vmem:[#allocation2 + $0x168] sm:$0xff] }
 0x10c   :  { %10214 = vmatprep.subr.bf16.mxu0 %v15968_v0 }
 0x10e   :  { %587 = vmatmul.mubr.f32.vlgmr.msra.gmra.mrb[0].mxu0 %v266_v50  ;;  %v310_v50 = vld [vmem:[#allocation2 + $0x160] sm:$0xff] }
 0x10f   :  { %591 = vmatprep.mubr.f32.mxu0 %v271_v51  ;;  %10216 = vmatpush1.bf16.msra.mxu0 %v10215_v57  ;;  %v315_v51 = vld [vmem:[#allocation2 + $0x188] sm:$0xff] }
 0x110   :  { %10217 = vmatprep.subr.bf16.mxu0 %v15968_v0  ;;  %v323_v57 = vld [vmem:[#allocation2 + $0x1c8] sm:$0xff] }
 0x112   :  { %592 = vmatmul.mubr.f32.gmra.mrb[2].mxu0 %v270_v52  ;;  %v314_v52 = vld [vmem:[#allocation2 + $0x180] sm:$0xff] }
 0x113   :  { %596 = vmatprep.mubr.f32.mxu0 %v275_v53  ;;  %10219 = vmatpush1.bf16.msra.mxu0 %v10218_v13  ;;  %v319_v53 = vld [vmem:[#allocation2 + $0x1a8] sm:$0xff] }
 0x114   :  { %10220 = vmatprep.subr.bf16.mxu0 %v15968_v0  ;;  %v335_v13 = vld [vmem:[#allocation2 + $0x228] sm:$0xff] }
 0x116   :  { %597 = vmatmul.mubr.f32.gmra.mrb[4].mxu0 %v274_v56  ;;  %v318_v56 = vld [vmem:[#allocation2 + $0x1a0] sm:$0xff] }
 0x117   :  { %601 = vmatprep.mubr.f32.mxu0 %v279_v58  ;;  %10222 = vmatpush1.bf16.msra.mxu0 %v10221_v46  ;;  %v12404_v58 = vld [vmem:[%s16046_s24 + $0x130] sm:$0xff]  ;;  %v12417_v46 = vld [vmem:[%s16046_s24 + $0x140] sm:$0xff] }
 0x118   :  { %10223 = vmatprep.subr.bf16.mxu0 %v15968_v0 }
 0x11a   :  { %602 = vmatmul.mubr.f32.gmra.mrb[6].mxu0 %v278_v59  ;;  %v12409_v59 = vld [vmem:[%s16046_s24 + $0x138] sm:$0xff] }
 0x11b   :  { %606 = vmatprep.mubr.f32.mxu0 %v283_v60  ;;  %v322_v60 = vld [vmem:[#allocation2 + $0x1c0] sm:$0xff] }
 0x11e   :  { %607 = vmatmul.mubr.f32.gmra.mrb[8].mxu0 %v282_v61  ;;  %v10224_v61 = vpack.c.bf16 %v12409_v59, %v12404_v58 }
 0x11f   :  { %611 = vmatprep.mubr.f32.mxu0 %v287_v62  ;;  %v327_v62 = vld [vmem:[#allocation2 + $0x1e8] sm:$0xff] }
 0x120   :  { %10225 = vmatpush1.bf16.msra.mxu0 %v10224_v61  ;;  %v1315_v61 = vld [vmem:[#allocation4 + $0xb0] sm:$0xff] }
 0x121   :  { %10226 = vmatprep.subr.bf16.mxu0 %v15968_v0 }
 0x122   :  { %612 = vmatmul.mubr.f32.gmra.mrb[10].mxu0 %v286_v63  ;;  %v326_v63 = vld [vmem:[#allocation2 + $0x1e0] sm:$0xff] }
 0x123   :  { %616 = vmatprep.mubr.f32.mxu0 %v291_v4  ;;  %v331_v4 = vld [vmem:[#allocation2 + $0x208] sm:$0xff] }
 0x126   :  { %617 = vmatmul.mubr.f32.gmra.mrb[12].mxu0 %v290_v12  ;;  %v330_v12 = vld [vmem:[#allocation2 + $0x200] sm:$0xff] }
 0x127   :  { %621 = vmatprep.mubr.f32.mxu0 %v295_v16  ;;  %v334_v16 = vld [vmem:[#allocation2 + $0x220] sm:$0xff] }
 0x12a   :  { %622 = vmatmul.mubr.f32.gmra.mrb[14].mxu0 %v294_v19  ;;  %v1310_v19 = vld [vmem:[#allocation4 + $0x88] sm:$0xff] }
 0x12b   :  { %626 = vmatprep.mubr.f32.mxu0 %v299_v22  ;;  %v1312_v22 = vld [vmem:[#allocation4 + $0x98] sm:$0xff] }
 0x12e   :  { %627 = vmatmul.mubr.f32.gmra.mrb[16].mxu0 %v298_v25  ;;  %v339_v25 = vld [vmem:[#allocation2 + $0x248] sm:$0xff] }
 0x12f   :  { %631 = vmatprep.mubr.f32.mxu0 %v303_v28  ;;  %v10262_v28 = vpack.c.bf16 %v1312_v22, %v1310_v19  ;;  %v1317_v19 = vld [vmem:[#allocation4 + $0xc0] sm:$0xff]  ;;  %v1319_v22 = vld [vmem:[#allocation4 + $0xd0] sm:$0xff] }
 0x131   :  { %10263 = vmatprep.subr.bf16.mxu1 %v10262_v28  ;;  %v346_v28 = vld [vmem:[#allocation2 + $0x280] sm:$0xff] }
 0x132   :  { %632 = vmatmul.mubr.f32.gmra.mrb[18].mxu0 %v302_v31  ;;  %v1309_v31 = vld [vmem:[#allocation4 + $0x80] sm:$0xff] }
 0x133   :  { %636 = vmatprep.mubr.f32.mxu0 %v307_v34  ;;  %v1311_v34 = vld [vmem:[#allocation4 + $0x90] sm:$0xff] }
 0x136   :  { %637 = vmatmul.mubr.f32.gmra.mrb[20].mxu0 %v306_v43  ;;  %v10264_v43 = vpack.c.bf16 %v1311_v34, %v1309_v31  ;;  %v1322_v31 = vld [vmem:[#allocation4 + $0xe8] sm:$0xff]  ;;  %v1324_v34 = vld [vmem:[#allocation4 + $0xf8] sm:$0xff] }
 0x137   :  { %641 = vmatprep.mubr.f32.mxu0 %v311_v49  ;;  %v12422_v49 = vld [vmem:[%s16046_s24 + $0x148] sm:$0xff] }
 0x138   :  { %10265 = vmatpush1.bf16.msra.mxu1 %v10264_v43  ;;  %v351_v43 = vld [vmem:[#allocation2 + $0x2a8] sm:$0xff] }
 0x13a   :  { %642 = vmatmul.mubr.f32.gmra.mrb[22].mxu0 %v310_v50  ;;  %v338_v50 = vld [vmem:[#allocation2 + $0x240] sm:$0xff] }
 0x13b   :  { %646 = vmatprep.mubr.f32.mxu0 %v315_v51  ;;  %v10227_v51 = vpack.c.bf16 %v12422_v49, %v12417_v46 }
 0x13d   :  { %10228 = vmatpush1.bf16.msra.mxu0 %v10227_v51  ;;  %v1321_v51 = vld [vmem:[#allocation4 + $0xe0] sm:$0xff] }
 0x13e   :  { %647 = vmatmul.mubr.f32.gmra.mrb[24].mxu0 %v314_v52  ;;  %v1314_v52 = vld [vmem:[#allocation4 + $0xa8] sm:$0xff]  ;;  %10229 = vmatprep.subr.bf16.mxu0 %v15968_v0 }
 0x13f   :  { %651 = vmatprep.mubr.f32.mxu0 %v319_v53  ;;  %v1316_v53 = vld [vmem:[#allocation4 + $0xb8] sm:$0xff] }
 0x142   :  { %652 = vmatmul.mubr.f32.gmra.mrb[26].mxu0 %v318_v56  ;;  %v343_v56 = vld [vmem:[#allocation2 + $0x268] sm:$0xff] }
 0x143   :  { %656 = vmatprep.mubr.f32.mxu0 %v323_v57  ;;  %v10266_v57 = vpack.c.bf16 %v1316_v53, %v1314_v52  ;;  %v1323_v52 = vld [vmem:[#allocation4 + $0xf0] sm:$0xff] }
 0x144   :  { %v10276_v53 = vpack.c.bf16 %v1323_v52, %v1321_v51  ;;  %v366_v51 = vld [vmem:[#allocation2 + $0x320] sm:$0xff]  ;;  %v371_v52 = vld [vmem:[#allocation2 + $0x348] sm:$0xff] }
 0x145   :  { %10267 = vmatprep.subr.bf16.mxu1 %v10266_v57  ;;  %v355_v57 = vld [vmem:[#allocation2 + $0x2c8] sm:$0xff] }
 0x146   :  { %657 = vmatmul.mubr.f32.gmra.mrb[28].mxu0 %v322_v60  ;;  %v1313_v60 = vld [vmem:[#allocation4 + $0xa0] sm:$0xff] }
 0x147   :  { %661 = vmatprep.mubr.f32.mxu0 %v327_v62  ;;  %v10268_v62 = vpack.c.bf16 %v1315_v61, %v1313_v60  ;;  %v15970_v60 = vmov 0.0   ;;  %v12431_v61 = vld [vmem:[%s16046_s24 + $0x150] sm:$0xff] }
 0x148   :  { %1582 = vmatprep.mubr.f32.mxu1 %v15970_v60 }
 0x149   :  { %10269 = vmatpush1.bf16.msra.mxu1 %v10268_v62  ;;  %v12436_v62 = vld [vmem:[%s16046_s24 + $0x158] sm:$0xff] }
 0x14a   :  { %662 = vmatmul.mubr.f32.gmra.mrb[30].mxu0 %v326_v63  ;;  %v342_v63 = vld [vmem:[#allocation2 + $0x260] sm:$0xff] }
 0x14b   :  { %666 = vmatprep.mubr.f32.mxu0 %v331_v4  ;;  %v1318_v4 = vld [vmem:[#allocation4 + $0xc8] sm:$0xff] }
 0x14e   :  { %667 = vmatmul.mubr.f32.gmra.mrb[32].mxu0 %v330_v12  ;;  %v1320_v12 = vld [vmem:[#allocation4 + $0xd8] sm:$0xff] }
 0x14f   :  { %671 = vmatprep.mubr.f32.mxu0 %v335_v13  ;;  %v347_v13 = vld [vmem:[#allocation2 + $0x288] sm:$0xff] }
 0x152   :  { %672 = vmatmul.mubr.f32.gmra.mrb[34].mxu0 %v334_v16  ;;  %v10270_v16 = vpack.c.bf16 %v1320_v12, %v1318_v4  ;;  %v354_v4 = vld [vmem:[#allocation2 + $0x2c0] sm:$0xff]  ;;  %v359_v12 = vld [vmem:[#allocation2 + $0x2e8] sm:$0xff] }
 0x153   :  { %676 = vmatprep.mubr.f32.mxu0 %v339_v25  ;;  %v10272_v25 = vpack.c.bf16 %v1319_v22, %v1317_v19  ;;  %v358_v19 = vld [vmem:[#allocation2 + $0x2e0] sm:$0xff]  ;;  %v363_v22 = vld [vmem:[#allocation2 + $0x308] sm:$0xff] }
 0x154   :  { %10271 = vmatprep.subr.bf16.mxu1 %v10270_v16  ;;  %v12452_v16 = vld [vmem:[%s16046_s24 + $0x168] sm:$0xff] }
 0x155   :  { %10273 = vmatpush1.bf16.msra.mxu1 %v10272_v25  ;;  %v12463_v25 = vld [vmem:[%s16046_s24 + $0x170] sm:$0xff] }
 0x156   :  { %677 = vmatmul.mubr.f32.gmra.mrb[36].mxu0 %v338_v50  ;;  %v10274_v50 = vpack.c.bf16 %v1324_v34, %v1322_v31  ;;  %v362_v31 = vld [vmem:[#allocation2 + $0x300] sm:$0xff]  ;;  %v367_v34 = vld [vmem:[#allocation2 + $0x328] sm:$0xff] }
 0x157   :  { %681 = vmatprep.mubr.f32.mxu0 %v343_v56  ;;  %v350_v56 = vld [vmem:[#allocation2 + $0x2a0] sm:$0xff] }
 0x158   :  { %10275 = vmatprep.subr.bf16.mxu1 %v10274_v50  ;;  %v12484_v50 = vld [vmem:[%s16046_s24 + $0x188] sm:$0xff] }
 0x159   :  { %10277 = vmatpush1.bf16.msra.mxu1 %v10276_v53  ;;  %v12495_v53 = vld [vmem:[%s16046_s24 + $0x190] sm:$0xff] }
 0x15a   :  { %682 = vmatmul.mubr.f32.gmra.mrb[38].mxu0 %v342_v63  ;;  %v10230_v63 = vpack.c.bf16 %v12436_v62, %v12431_v61 }
 0x15b   :  { %686 = vmatprep.mubr.f32.mxu0 %v347_v13  ;;  %v12447_v13 = vld [vmem:[%s16046_s24 + $0x160] sm:$0xff] }
 0x15c   :  { %9143 = vmatmul.mubr.msk.f32.vlgmr.msra.gmra.mrb[0].mxu1 %vm1325_vm0, %v12157_v1  ;;  %10231 = vmatpush1.bf16.msra.mxu0 %v10230_v63  ;;  %v10233_v1 = vpack.c.bf16 %v12452_v16, %v12447_v13  ;;  %v375_v63 = vld [vmem:[#allocation2 + $0x368] sm:$0xff] }
 0x15d   :  { %1588 = vmatprep.mubr.f32.mxu1 %v15970_v60  ;;  %10232 = vmatprep.subr.bf16.mxu0 %v15968_v0 }
 0x15e   :  { %687 = vmatmul.mubr.f32.gmra.mrb[40].mxu0 %v346_v28  ;;  %v12468_v28 = vld [vmem:[%s16046_s24 + $0x178] sm:$0xff] }
 0x15f   :  { %691 = vmatprep.mubr.f32.mxu0 %v351_v43  ;;  %v12479_v43 = vld [vmem:[%s16046_s24 + $0x180] sm:$0xff] }
 0x160   :  { %9144 = vmatmul.mubr.msk.f32.gmra.mrb[2].mxu1 %vm1325_vm0, %v12162_v2  ;;  %10234 = vmatpush1.bf16.msra.mxu0 %v10233_v1  ;;  %v10236_v2 = vpack.c.bf16 %v12468_v28, %v12463_v25  ;;  %v374_v1 = vld [vmem:[#allocation2 + $0x360] sm:$0xff] }
 0x161   :  { %1594 = vmatprep.mubr.f32.mxu1 %v15970_v60  ;;  %10235 = vmatprep.subr.bf16.mxu0 %v15968_v0 }
 0x162   :  { %692 = vmatmul.mubr.f32.gmra.mrb[42].mxu0 %v350_v56  ;;  %v12500_v56 = vld [vmem:[%s16046_s24 + $0x198] sm:$0xff] }
 0x163   :  { %696 = vmatprep.mubr.f32.mxu0 %v355_v57  ;;  %v370_v57 = vld [vmem:[#allocation2 + $0x340] sm:$0xff] }
 0x164   :  { %9145 = vmatmul.mubr.msk.f32.gmra.mrb[4].mxu1 %vm1325_vm0, %v12167_v3  ;;  %10237 = vmatpush1.bf16.msra.mxu0 %v10236_v2  ;;  %v10239_v3 = vpack.c.bf16 %v12484_v50, %v12479_v43  ;;  %v12532_v2 = vld [vmem:[%s16046_s24 + $0x1b8] sm:$0xff] }
 0x165   :  { %1600 = vmatprep.mubr.f32.mxu1 %v15970_v60  ;;  %10238 = vmatprep.subr.bf16.mxu0 %v15968_v0 }
 0x166   :  { %697 = vmatmul.mubr.f32.gmra.mrb[44].mxu0 %v354_v4  ;;  %v12511_v4 = vld [vmem:[%s16046_s24 + $0x1a0] sm:$0xff] }
 0x167   :  { %701 = vmatprep.mubr.f32.mxu0 %v359_v12  ;;  %v12516_v12 = vld [vmem:[%s16046_s24 + $0x1a8] sm:$0xff] }
 0x168   :  { %9146 = vmatmul.mubr.msk.f32.gmra.mrb[6].mxu1 %vm1325_vm0, %v12174_v5  ;;  %10240 = vmatpush1.bf16.msra.mxu0 %v10239_v3  ;;  %v10242_v5 = vpack.c.bf16 %v12500_v56, %v12495_v53  ;;  %v12543_v3 = vld [vmem:[%s16046_s24 + $0x1c0] sm:$0xff] }
 0x169   :  { %1606 = vmatprep.mubr.f32.mxu1 %v15970_v60  ;;  %10241 = vmatprep.subr.bf16.mxu0 %v15968_v0 }
 0x16a   :  { %702 = vmatmul.mubr.f32.gmra.mrb[46].mxu0 %v358_v19  ;;  %v379_v19 = vld [vmem:[#allocation2 + $0x388] sm:$0xff] }
 0x16b   :  { %706 = vmatprep.mubr.f32.mxu0 %v363_v22  ;;  %v12527_v22 = vld [vmem:[%s16046_s24 + $0x1b0] sm:$0xff] }
 0x16c   :  { %9147 = vmatmul.mubr.msk.f32.gmra.mrb[8].mxu1 %vm1325_vm0, %v12182_v7  ;;  %10243 = vmatpush1.bf16.msra.mxu0 %v10242_v5  ;;  %v10245_v7 = vpack.c.bf16 %v12516_v12, %v12511_v4  ;;  %v387_v5 = vld [vmem:[#allocation2 + $0x3c8] sm:$0xff] }
 0x16d   :  { %1612 = vmatprep.mubr.f32.mxu1 %v15970_v60  ;;  %10244 = vmatprep.subr.bf16.mxu0 %v15968_v0 }
 0x16e   :  { %707 = vmatmul.mubr.f32.gmra.mrb[48].mxu0 %v362_v31  ;;  %v378_v31 = vld [vmem:[#allocation2 + $0x380] sm:$0xff] }
 0x16f   :  { %711 = vmatprep.mubr.f32.mxu0 %v367_v34  ;;  %v383_v34 = vld [vmem:[#allocation2 + $0x3a8] sm:$0xff] }
 0x170   :  { %9148 = vmatmul.mubr.msk.f32.gmra.mrb[10].mxu1 %vm1325_vm0, %v12187_v8  ;;  %10246 = vmatpush1.bf16.msra.mxu0 %v10245_v7  ;;  %v10248_v8 = vpack.c.bf16 %v12532_v2, %v12527_v22  ;;  %v386_v7 = vld [vmem:[#allocation2 + $0x3c0] sm:$0xff] }
 0x171   :  { %1618 = vmatprep.mubr.f32.mxu1 %v15970_v60  ;;  %10247 = vmatprep.subr.bf16.mxu0 %v15968_v0 }
 0x172   :  { %712 = vmatmul.mubr.f32.gmra.mrb[50].mxu0 %v366_v51  ;;  %v12548_v51 = vld [vmem:[%s16046_s24 + $0x1c8] sm:$0xff] }
 0x173   :  { %716 = vmatprep.mubr.f32.mxu0 %v371_v52  ;;  %v382_v52 = vld [vmem:[#allocation2 + $0x3a0] sm:$0xff] }
 0x174   :  { %9149 = vmatmul.mubr.msk.f32.gmra.mrb[12].mxu1 %vm1325_vm0, %v12195_v10  ;;  %10249 = vmatpush1.bf16.msra.mxu0 %v10248_v8  ;;  %v10251_v10 = vpack.c.bf16 %v12548_v51, %v12543_v3  ;;  %v12580_v8 = vld [vmem:[%s16046_s24 + $0x1e8] sm:$0xff] }
 0x175   :  { %1624 = vmatprep.mubr.f32.mxu1 %v15970_v60  ;;  %10250 = vmatprep.subr.bf16.mxu0 %v15968_v0 }
 0x176   :  { %717 = vmatmul.mubr.f32.gmra.mrb[52].mxu0 %v370_v57  ;;  %v12559_v57 = vld [vmem:[%s16046_s24 + $0x1d0] sm:$0xff] }
 0x177   :  { %721 = vmatprep.mubr.f32.mxu0 %v375_v63  ;;  %v12564_v63 = vld [vmem:[%s16046_s24 + $0x1d8] sm:$0xff] }
 0x178   :  { %9150 = vmatmul.mubr.msk.f32.gmra.mrb[14].mxu1 %vm1325_vm0, %v12200_v11  ;;  %10252 = vmatpush1.bf16.msra.mxu0 %v10251_v10  ;;  %v10254_v11 = vpack.c.bf16 %v12564_v63, %v12559_v57  ;;  %v12591_v10 = vld [vmem:[%s16046_s24 + $0x1f0] sm:$0xff] }
 0x179   :  { %1630 = vmatprep.mubr.f32.mxu1 %v15970_v60  ;;  %10253 = vmatprep.subr.bf16.mxu0 %v15968_v0 }
 0x17a   :  { %722 = vmatmul.mubr.f32.gmra.mrb[54].mxu0 %v374_v1  ;;  %v391_v1 = vld [vmem:[#allocation2 + $0x3e8] sm:$0xff] }
 0x17b   :  { %726 = vmatprep.mubr.f32.mxu0 %v379_v19  ;;  %v12575_v19 = vld [vmem:[%s16046_s24 + $0x1e0] sm:$0xff] }
 0x17c   :  { %9151 = vmatmul.mubr.msk.f32.gmra.mrb[16].mxu1 %vm1325_vm0, %v12208_v14  ;;  %10255 = vmatpush1.bf16.msra.mxu0 %v10254_v11  ;;  %v10257_v14 = vpack.c.bf16 %v12580_v8, %v12575_v19  ;;  %v399_v11 = vld [vmem:[#allocation2 + $0x428] sm:$0xff] }
 0x17d   :  { %1636 = vmatprep.mubr.f32.mxu1 %v15970_v60  ;;  %10256 = vmatprep.subr.bf16.mxu0 %v15968_v0 }
 0x17e   :  { %727 = vmatmul.mubr.f32.gmra.mrb[56].mxu0 %v378_v31  ;;  %v390_v31 = vld [vmem:[#allocation2 + $0x3e0] sm:$0xff] }
 0x17f   :  { %731 = vmatprep.mubr.f32.mxu0 %v383_v34  ;;  %v395_v34 = vld [vmem:[#allocation2 + $0x408] sm:$0xff] }
 0x180   :  { %9152 = vmatmul.mubr.msk.f32.gmra.mrb[18].mxu1 %vm1325_vm0, %v12213_v15  ;;  %10258 = vmatpush1.bf16.msra.mxu0 %v10257_v14  ;;  %v407_v14 = vld [vmem:[#allocation2 + $0x468] sm:$0xff] }
 0x181   :  { %1642 = vmatprep.mubr.f32.mxu1 %v15970_v60  ;;  %10259 = vmatprep.subr.bf16.mxu0 %v15968_v0 }
 0x182   :  { %732 = vmatmul.mubr.f32.gmra.mrb[58].mxu0 %v382_v52  ;;  %v12596_v52 = vld [vmem:[%s16046_s24 + $0x1f8] sm:$0xff] }
 0x183   :  { %736 = vmatprep.mubr.f32.mxu0 %v387_v5  ;;  %v10260_v15 = vpack.c.bf16 %v12596_v52, %v12591_v10  ;;  %v394_v5 = vld [vmem:[#allocation2 + $0x400] sm:$0xff] }
 0x184   :  { %9153 = vmatmul.mubr.msk.f32.gmra.mrb[20].mxu1 %vm1325_vm0, %v12221_v17  ;;  %v402_v17 = vld [vmem:[#allocation2 + $0x440] sm:$0xff] }
 0x185   :  { %10261 = vmatpush1.bf16.msra.mxu0 %v10260_v15  ;;  %1648 = vmatprep.mubr.f32.mxu1 %v15970_v60  ;;  %v419_v15 = vld [vmem:[#allocation2 + $0x4c8] sm:$0xff] }
 0x186   :  { %737 = vmatmul.mubr.f32.gmra.mrb[60].mxu0 %v386_v7  ;;  %10330 = vmatprep.subr.bf16.mxu0 %v15968_v0  ;;  %v398_v7 = vld [vmem:[#allocation2 + $0x420] sm:$0xff] }
 0x187   :  { %741 = vmatprep.mubr.f32.mxu0 %v391_v1  ;;  %v403_v1 = vld [vmem:[#allocation2 + $0x448] sm:$0xff] }
 0x188   :  { %9154 = vmatmul.mubr.msk.f32.gmra.mrb[22].mxu1 %vm1325_vm0, %v12226_v18  ;;  %v406_v18 = vld [vmem:[#allocation2 + $0x460] sm:$0xff] }
 0x189   :  { %1654 = vmatprep.mubr.f32.mxu1 %v15970_v60 }
 0x18a   :  { %742 = vmatmul.mubr.f32.gmra.mrb[62].mxu0 %v390_v31  ;;  %v411_v31 = vld [vmem:[#allocation2 + $0x488] sm:$0xff] }
 0x18b   :  { %746 = vmatprep.mubr.f32.mxu0 %v395_v34  ;;  %v415_v34 = vld [vmem:[#allocation2 + $0x4a8] sm:$0xff] }
 0x18c   :  { %9155 = vmatmul.mubr.msk.f32.gmra.mrb[24].mxu1 %vm1325_vm0, %v12234_v20  ;;  %v410_v20 = vld [vmem:[#allocation2 + $0x480] sm:$0xff] }
 0x18d   :  { %1660 = vmatprep.mubr.f32.mxu1 %v15970_v60 }
 0x18e   :  { %747 = vmatmul.mubr.f32.gmra.mrb[64].mxu0 %v394_v5  ;;  %v423_v5 = vld [vmem:[#allocation2 + $0x4e8] sm:$0xff] }
 0x18f   :  { %751 = vmatprep.mubr.f32.mxu0 %v399_v11  ;;  %v427_v11 = vld [vmem:[#allocation2 + $0x508] sm:$0xff] }
 0x190   :  { %9156 = vmatmul.mubr.msk.f32.gmra.mrb[26].mxu1 %vm1325_vm0, %v12239_v21  ;;  %v414_v21 = vld [vmem:[#allocation2 + $0x4a0] sm:$0xff] }
 0x191   :  { %1666 = vmatprep.mubr.f32.mxu1 %v15970_v60 }
 0x192   :  { %752 = vmatmul.mubr.f32.gmra.mrb[66].mxu0 %v398_v7  ;;  %v431_v7 = vld [vmem:[#allocation2 + $0x528] sm:$0xff] }
 0x193   :  { %756 = vmatprep.mubr.f32.mxu0 %v403_v1  ;;  %v435_v1 = vld [vmem:[#allocation2 + $0x548] sm:$0xff] }
 0x194   :  { %9157 = vmatmul.mubr.msk.f32.gmra.mrb[28].mxu1 %vm1325_vm0, %v12247_v23  ;;  %v418_v23 = vld [vmem:[#allocation2 + $0x4c0] sm:$0xff] }
 0x195   :  { %1672 = vmatprep.mubr.f32.mxu1 %v15970_v60 }
 0x196   :  { %757 = vmatmul.mubr.f32.gmra.mrb[68].mxu0 %v402_v17  ;;  %v439_v17 = vld [vmem:[#allocation2 + $0x568] sm:$0xff] }
 0x197   :  { %761 = vmatprep.mubr.f32.mxu0 %v407_v14  ;;  %v443_v14 = vld [vmem:[#allocation2 + $0x588] sm:$0xff] }
 0x198   :  { %9158 = vmatmul.mubr.msk.f32.gmra.mrb[30].mxu1 %vm1325_vm0, %v12252_v24  ;;  %v422_v24 = vld [vmem:[#allocation2 + $0x4e0] sm:$0xff] }
 0x199   :  { %1678 = vmatprep.mubr.f32.mxu1 %v15970_v60 }
 0x19a   :  { %762 = vmatmul.mubr.f32.gmra.mrb[70].mxu0 %v406_v18  ;;  %v447_v18 = vld [vmem:[#allocation2 + $0x5a8] sm:$0xff] }
 0x19b   :  { %766 = vmatprep.mubr.f32.mxu0 %v411_v31  ;;  %v451_v31 = vld [vmem:[#allocation2 + $0x5c8] sm:$0xff] }
 0x19c   :  { %9159 = vmatmul.mubr.msk.f32.gmra.mrb[32].mxu1 %vm1325_vm0, %v12260_v26  ;;  %v426_v26 = vld [vmem:[#allocation2 + $0x500] sm:$0xff] }
 0x19d   :  { %1684 = vmatprep.mubr.f32.mxu1 %v15970_v60 }
 0x19e   :  { %767 = vmatmul.mubr.f32.gmra.mrb[72].mxu0 %v410_v20  ;;  %v455_v20 = vld [vmem:[#allocation2 + $0x5e8] sm:$0xff] }
 0x19f   :  { %771 = vmatprep.mubr.f32.mxu0 %v415_v34  ;;  %v459_v34 = vld [vmem:[#allocation2 + $0x608] sm:$0xff] }
 0x1a0   :  { %9160 = vmatmul.mubr.msk.f32.gmra.mrb[34].mxu1 %vm1325_vm0, %v12265_v27  ;;  %v430_v27 = vld [vmem:[#allocation2 + $0x520] sm:$0xff] }
 0x1a1   :  { %1690 = vmatprep.mubr.f32.mxu1 %v15970_v60 }
 0x1a2   :  { %772 = vmatmul.mubr.f32.gmra.mrb[74].mxu0 %v414_v21  ;;  %v463_v21 = vld [vmem:[#allocation2 + $0x628] sm:$0xff] }
 0x1a3   :  { %776 = vmatprep.mubr.f32.mxu0 %v419_v15  ;;  %v467_v15 = vld [vmem:[#allocation2 + $0x648] sm:$0xff] }
 0x1a4   :  { %9161 = vmatmul.mubr.msk.f32.gmra.mrb[36].mxu1 %vm1325_vm0, %v12273_v29  ;;  %v434_v29 = vld [vmem:[#allocation2 + $0x540] sm:$0xff] }
 0x1a5   :  { %1696 = vmatprep.mubr.f32.mxu1 %v15970_v60 }
 0x1a6   :  { %777 = vmatmul.mubr.f32.gmra.mrb[76].mxu0 %v418_v23  ;;  %v471_v23 = vld [vmem:[#allocation2 + $0x668] sm:$0xff] }
 0x1a7   :  { %781 = vmatprep.mubr.f32.mxu0 %v423_v5  ;;  %v475_v5 = vld [vmem:[#allocation2 + $0x688] sm:$0xff] }
 0x1a8   :  { %9162 = vmatmul.mubr.msk.f32.gmra.mrb[38].mxu1 %vm1325_vm0, %v12278_v30  ;;  %v438_v30 = vld [vmem:[#allocation2 + $0x560] sm:$0xff] }
 0x1a9   :  { %1702 = vmatprep.mubr.f32.mxu1 %v15970_v60 }
 0x1aa   :  { %782 = vmatmul.mubr.f32.gmra.mrb[78].mxu0 %v422_v24  ;;  %v479_v24 = vld [vmem:[#allocation2 + $0x6a8] sm:$0xff] }
 0x1ab   :  { %786 = vmatprep.mubr.f32.mxu0 %v427_v11  ;;  %v483_v11 = vld [vmem:[#allocation2 + $0x6c8] sm:$0xff] }
 0x1ac   :  { %9163 = vmatmul.mubr.msk.f32.gmra.mrb[40].mxu1 %vm1325_vm0, %v12286_v32  ;;  %v442_v32 = vld [vmem:[#allocation2 + $0x580] sm:$0xff] }
 0x1ad   :  { %1708 = vmatprep.mubr.f32.mxu1 %v15970_v60 }
 0x1ae   :  { %787 = vmatmul.mubr.f32.gmra.mrb[80].mxu0 %v426_v26  ;;  %v487_v26 = vld [vmem:[#allocation2 + $0x6e8] sm:$0xff] }
 0x1af   :  { %791 = vmatprep.mubr.f32.mxu0 %v431_v7  ;;  %v1293_v7 = vld [vmem:[#allocation4 + $0x8] sm:$0xff] }
 0x1b0   :  { %9164 = vmatmul.mubr.msk.f32.gmra.mrb[42].mxu1 %vm1325_vm0, %v12291_v33  ;;  %v446_v33 = vld [vmem:[#allocation2 + $0x5a0] sm:$0xff] }
 0x1b1   :  { %1714 = vmatprep.mubr.f32.mxu1 %v15970_v60 }
 0x1b2   :  { %792 = vmatmul.mubr.f32.gmra.mrb[82].mxu0 %v430_v27  ;;  %v1292_v27 = vld [vmem:[#allocation4] sm:$0xff] }
 0x1b3   :  { %796 = vmatprep.mubr.f32.mxu0 %v435_v1  ;;  %v486_v1 = vld [vmem:[#allocation2 + $0x6e0] sm:$0xff] }
 0x1b4   :  { %9165 = vmatmul.mubr.msk.f32.gmra.mrb[44].mxu1 %vm1325_vm0, %v12299_v35  ;;  %v450_v35 = vld [vmem:[#allocation2 + $0x5c0] sm:$0xff] }
 0x1b5   :  { %1720 = vmatprep.mubr.f32.mxu1 %v15970_v60 }
 0x1b6   :  { %797 = vmatmul.mubr.f32.gmra.mrb[84].mxu0 %v434_v29 }
 0x1b7   :  { %801 = vmatprep.mubr.f32.mxu0 %v439_v17  ;;  %v1294_v17 = vld [vmem:[#allocation4 + $0x10] sm:$0xff] }
 0x1b8   :  { %9166 = vmatmul.mubr.msk.f32.gmra.mrb[46].mxu1 %vm1325_vm0, %v12304_v36  ;;  %v454_v36 = vld [vmem:[#allocation2 + $0x5e0] sm:$0xff] }
 0x1b9   :  { %1726 = vmatprep.mubr.f32.mxu1 %v15970_v60 }
 0x1ba   :  { %802 = vmatmul.mubr.f32.gmra.mrb[86].mxu0 %v438_v30  ;;  %v491_v30 = vld [vmem:[#allocation2 + $0x708] sm:$0xff] }
 0x1bb   :  { %806 = vmatprep.mubr.f32.mxu0 %v443_v14  ;;  %v490_v14 = vld [vmem:[#allocation2 + $0x700] sm:$0xff] }
 0x1bc   :  { %9167 = vmatmul.mubr.msk.f32.gmra.mrb[48].mxu1 %vm1325_vm0, %v12312_v38  ;;  %v458_v38 = vld [vmem:[#allocation2 + $0x600] sm:$0xff] }
 0x1bd   :  { %1732 = vmatprep.mubr.f32.mxu1 %v15970_v60 }
 0x1be   :  { %807 = vmatmul.mubr.f32.gmra.mrb[88].mxu0 %v442_v32  ;;  %v494_v32 = vld [vmem:[#allocation2 + $0x720] sm:$0xff] }
 0x1bf   :  { %811 = vmatprep.mubr.f32.mxu0 %v447_v18  ;;  %v499_v18 = vld [vmem:[#allocation2 + $0x748] sm:$0xff] }
 0x1c0   :  { %9168 = vmatmul.mubr.msk.f32.gmra.mrb[50].mxu1 %vm1325_vm0, %v12317_v39  ;;  %v462_v39 = vld [vmem:[#allocation2 + $0x620] sm:$0xff] }
 0x1c1   :  { %1738 = vmatprep.mubr.f32.mxu1 %v15970_v60 }
 0x1c2   :  { %812 = vmatmul.mubr.f32.gmra.mrb[90].mxu0 %v446_v33  ;;  %v498_v33 = vld [vmem:[#allocation2 + $0x740] sm:$0xff] }
 0x1c3   :  { %816 = vmatprep.mubr.f32.mxu0 %v451_v31  ;;  %v503_v31 = vld [vmem:[#allocation2 + $0x768] sm:$0xff] }
 0x1c4   :  { %9169 = vmatmul.mubr.msk.f32.gmra.mrb[52].mxu1 %vm1325_vm0, %v12325_v41  ;;  %v466_v41 = vld [vmem:[#allocation2 + $0x640] sm:$0xff] }
 0x1c5   :  { %1744 = vmatprep.mubr.f32.mxu1 %v15970_v60 }
 0x1c6   :  { %817 = vmatmul.mubr.f32.gmra.mrb[92].mxu0 %v450_v35  ;;  %v507_v35 = vld [vmem:[#allocation2 + $0x788] sm:$0xff] }
 0x1c7   :  { %821 = vmatprep.mubr.f32.mxu0 %v455_v20  ;;  %v511_v20 = vld [vmem:[#allocation2 + $0x7a8] sm:$0xff] }
 0x1c8   :  { %9170 = vmatmul.mubr.msk.f32.gmra.mrb[54].mxu1 %vm1325_vm0, %v12330_v42  ;;  %v470_v42 = vld [vmem:[#allocation2 + $0x660] sm:$0xff] }
 0x1c9   :  { %1750 = vmatprep.mubr.f32.mxu1 %v15970_v60 }
 0x1ca   :  { %822 = vmatmul.mubr.f32.gmra.mrb[94].mxu0 %v454_v36  ;;  %v515_v36 = vld [vmem:[#allocation2 + $0x7c8] sm:$0xff] }
 0x1cb   :  { %826 = vmatprep.mubr.f32.mxu0 %v459_v34  ;;  %v519_v34 = vld [vmem:[#allocation2 + $0x7e8] sm:$0xff] }
 0x1cc   :  { %9171 = vmatmul.mubr.msk.f32.gmra.mrb[56].mxu1 %vm1325_vm0, %v12338_v44  ;;  %v474_v44 = vld [vmem:[#allocation2 + $0x680] sm:$0xff] }
 0x1cd   :  { %1756 = vmatprep.mubr.f32.mxu1 %v15970_v60 }
 0x1ce   :  { %827 = vmatmul.mubr.f32.gmra.mrb[96].mxu0 %v458_v38  ;;  %v269_v38 = vld [vmem:[#allocation2 + $0x18] sm:$0xff] }
 0x1cf   :  { %831 = vmatprep.mubr.f32.mxu0 %v463_v21  ;;  %v273_v21 = vld [vmem:[#allocation2 + $0x38] sm:$0xff] }
 0x1d0   :  { %9172 = vmatmul.mubr.msk.f32.gmra.mrb[58].mxu1 %vm1325_vm0, %v12343_v45  ;;  %v478_v45 = vld [vmem:[#allocation2 + $0x6a0] sm:$0xff] }
 0x1d1   :  { %1762 = vmatprep.mubr.f32.mxu1 %v15970_v60 }
 0x1d2   :  { %832 = vmatmul.mubr.f32.gmra.mrb[98].mxu0 %v462_v39  ;;  %v277_v39 = vld [vmem:[#allocation2 + $0x58] sm:$0xff] }
 0x1d3   :  { %836 = vmatprep.mubr.f32.mxu0 %v467_v15  ;;  %v281_v15 = vld [vmem:[#allocation2 + $0x78] sm:$0xff] }
 0x1d4   :  { %9173 = vmatmul.mubr.msk.f32.gmra.mrb[60].mxu1 %vm1325_vm0, %v12351_v47  ;;  %v482_v47 = vld [vmem:[#allocation2 + $0x6c0] sm:$0xff] }
 0x1d5   :  { %1768 = vmatprep.mubr.f32.mxu1 %v15970_v60 }
 0x1d6   :  { %837 = vmatmul.mubr.f32.gmra.mrb[100].mxu0 %v466_v41  ;;  %v285_v41 = vld [vmem:[#allocation2 + $0x98] sm:$0xff] }
 0x1d7   :  { %841 = vmatprep.mubr.f32.mxu0 %v471_v23  ;;  %v289_v23 = vld [vmem:[#allocation2 + $0xb8] sm:$0xff] }
 0x1d8   :  { %9174 = vmatmul.mubr.msk.f32.gmra.mrb[62].mxu1 %vm1325_vm0, %v12356_v48  ;;  %v1295_v48 = vld [vmem:[#allocation4 + $0x18] sm:$0xff] }
 0x1d9   :  { %1774 = vmatprep.mubr.f32.mxu1 %v15970_v60  ;;  %v10278_v29 = vpack.c.bf16 %v1295_v48, %v1293_v7  ;;  %v305_v7 = vld [vmem:[#allocation2 + $0x138] sm:$0xff] }
 0x1da   :  { %842 = vmatmul.mubr.f32.gmra.mrb[102].mxu0 %v470_v42  ;;  %v293_v42 = vld [vmem:[#allocation2 + $0xd8] sm:$0xff] }
 0x1db   :  { %846 = vmatprep.mubr.f32.mxu0 %v475_v5  ;;  %10279 = vmatprep.subr.bf16.mxu1 %v10278_v29  ;;  %v297_v5 = vld [vmem:[#allocation2 + $0xf8] sm:$0xff] }
 0x1dc   :  { %9175 = vmatmul.mubr.msk.f32.gmra.mrb[64].mxu1 %vm1325_vm0, %v12365_v54  ;;  %v10280_v54 = vpack.c.bf16 %v1294_v17, %v1292_v27  ;;  %v309_v48 = vld [vmem:[#allocation2 + $0x158] sm:$0xff]  ;;  %v308_v27 = vld [vmem:[#allocation2 + $0x150] sm:$0xff] }
 0x1dd   :  { %1780 = vmatprep.mubr.f32.mxu1 %v15970_v60  ;;  %v317_v29 = vld [vmem:[#allocation2 + $0x198] sm:$0xff] }
 0x1de   :  { %847 = vmatmul.mubr.f32.gmra.mrb[104].mxu0 %v474_v44  ;;  %10281 = vmatpush1.bf16.msra.mxu1 %v10280_v54  ;;  %v1299_v44 = vld [vmem:[#allocation4 + $0x38] sm:$0xff] }
 0x1df   :  { %851 = vmatprep.mubr.f32.mxu0 %v479_v24  ;;  %v1296_v24 = vld [vmem:[#allocation4 + $0x20] sm:$0xff]  ;;  %v321_v17 = vld [vmem:[#allocation2 + $0x1b8] sm:$0xff] }
 0x1e0   :  { %9176 = vmatmul.mubr.msk.f32.gmra.mrb[66].mxu1 %vm1325_vm0, %v12370_v55  ;;  %v495_v55 = vld [vmem:[#allocation2 + $0x728] sm:$0xff]  ;;  %v329_v54 = vld [vmem:[#allocation2 + $0x1f8] sm:$0xff] }
 0x1e1   :  { %1786 = vmatprep.mubr.f32.mxu1 %v15970_v60 }
 0x1e2   :  { %852 = vmatmul.mubr.f32.gmra.mrb[106].mxu0 %v478_v45  ;;  %v296_v45 = vld [vmem:[#allocation2 + $0xf0] sm:$0xff] }
 0x1e3   :  { %856 = vmatprep.mubr.f32.mxu0 %v483_v11  ;;  %v1298_v11 = vld [vmem:[#allocation4 + $0x30] sm:$0xff] }
 0x1e4   :  { %9177 = vmatmul.mubr.msk.f32.gmra.mrb[68].mxu1 %vm1325_vm0, %v12378_v6  ;;  %v502_v6 = vld [vmem:[#allocation2 + $0x760] sm:$0xff] }
 0x1e5   :  { %1792 = vmatprep.mubr.f32.mxu1 %v15970_v60 }
 0x1e6   :  { %857 = vmatmul.mubr.f32.gmra.mrb[108].mxu0 %v482_v47  ;;  %v301_v47 = vld [vmem:[#allocation2 + $0x118] sm:$0xff] }
 0x1e7   :  { %861 = vmatprep.mubr.f32.mxu0 %v487_v26  ;;  %v10284_v26 = vpack.c.bf16 %v1298_v11, %v1296_v24  ;;  %v388_v24 = vld [vmem:[#allocation2 + $0x3d0] sm:$0xff]  ;;  %v397_v11 = vld [vmem:[#allocation2 + $0x418] sm:$0xff] }
 0x1e8   :  { %9178 = vmatmul.mubr.msk.f32.gmra.mrb[70].mxu1 %vm1325_vm0, %v12383_v9  ;;  %v506_v9 = vld [vmem:[#allocation2 + $0x780] sm:$0xff] }
 0x1e9   :  { %1798 = vmatprep.mubr.f32.mxu1 %v15970_v60 }
 0x1ea   :  { %862 = vmatmul.mubr.f32.gmra.mrb[110].mxu0 %v486_v1  ;;  %v313_v1 = vld [vmem:[#allocation2 + $0x178] sm:$0xff] }
 0x1eb   :  { %866 = vmatprep.mubr.f32.mxu0 %v491_v30  ;;  %v325_v30 = vld [vmem:[#allocation2 + $0x1d8] sm:$0xff] }
 0x1ec   :  { %9179 = vmatmul.mubr.msk.f32.gmra.mrb[72].mxu1 %vm1325_vm0, %v12391_v37  ;;  %v510_v37 = vld [vmem:[#allocation2 + $0x7a0] sm:$0xff] }
 0x1ed   :  { %1804 = vmatprep.mubr.f32.mxu1 %v15970_v60 }
 0x1ee   :  { %867 = vmatmul.mubr.f32.gmra.mrb[112].mxu0 %v490_v14  ;;  %v333_v14 = vld [vmem:[#allocation2 + $0x218] sm:$0xff] }
 0x1ef   :  { %871 = vmatprep.mubr.f32.mxu0 %v495_v55  ;;  %v337_v55 = vld [vmem:[#allocation2 + $0x238] sm:$0xff] }
 0x1f0   :  { %9180 = vmatmul.mubr.msk.f32.gmra.mrb[74].mxu1 %vm1325_vm0, %v12396_v40  ;;  %v514_v40 = vld [vmem:[#allocation2 + $0x7c0] sm:$0xff] }
 0x1f1   :  { %1810 = vmatprep.mubr.f32.mxu1 %v15970_v60 }
 0x1f2   :  { %872 = vmatmul.mubr.f32.gmra.mrb[114].mxu0 %v494_v32  ;;  %v341_v32 = vld [vmem:[#allocation2 + $0x258] sm:$0xff] }
 0x1f3   :  { %876 = vmatprep.mubr.f32.mxu0 %v499_v18  ;;  %v345_v18 = vld [vmem:[#allocation2 + $0x278] sm:$0xff] }
 0x1f4   :  { %9181 = vmatmul.mubr.msk.f32.gmra.mrb[76].mxu1 %vm1325_vm0, %v12404_v58  ;;  %v518_v58 = vld [vmem:[#allocation2 + $0x7e0] sm:$0xff] }
 0x1f5   :  { %1816 = vmatprep.mubr.f32.mxu1 %v15970_v60 }
 0x1f6   :  { %877 = vmatmul.mubr.f32.gmra.mrb[116].mxu0 %v498_v33  ;;  %v1301_v33 = vld [vmem:[#allocation4 + $0x48] sm:$0xff] }
 0x1f7   :  { %881 = vmatprep.mubr.f32.mxu0 %v503_v31  ;;  %v349_v31 = vld [vmem:[#allocation2 + $0x298] sm:$0xff] }
 0x1f8   :  { %9182 = vmatmul.mubr.msk.f32.gmra.mrb[78].mxu1 %vm1325_vm0, %v12409_v59  ;;  %v268_v59 = vld [vmem:[#allocation2 + $0x10] sm:$0xff] }
 0x1f9   :  { %1822 = vmatprep.mubr.f32.mxu1 %v15970_v60 }
 0x1fa   :  { %882 = vmatmul.mubr.f32.gmra.mrb[118].mxu0 %v502_v6 }
 0x1fb   :  { %886 = vmatprep.mubr.f32.mxu0 %v507_v35  ;;  %v1300_v35 = vld [vmem:[#allocation4 + $0x40] sm:$0xff] }
 0x1fc   :  { %9183 = vmatmul.mubr.msk.f32.gmra.mrb[80].mxu1 %vm1325_vm0, %v12417_v46  ;;  %v272_v46 = vld [vmem:[#allocation2 + $0x30] sm:$0xff] }
 0x1fd   :  { %1828 = vmatprep.mubr.f32.mxu1 %v15970_v60 }
 0x1fe   :  { %887 = vmatmul.mubr.f32.gmra.mrb[120].mxu0 %v506_v9  ;;  %v1302_v9 = vld [vmem:[#allocation4 + $0x50] sm:$0xff] }
 0x1ff   :  { %891 = vmatprep.mubr.f32.mxu0 %v511_v20  ;;  %v10288_v20 = vpack.c.bf16 %v1302_v9, %v1300_v35  ;;  %v457_v35 = vld [vmem:[#allocation2 + $0x5f8] sm:$0xff]  ;;  %v456_v9 = vld [vmem:[#allocation2 + $0x5f0] sm:$0xff] }
 0x200   :  { %9184 = vmatmul.mubr.msk.f32.gmra.mrb[82].mxu1 %vm1325_vm0, %v12422_v49  ;;  %v276_v49 = vld [vmem:[#allocation2 + $0x50] sm:$0xff] }
 0x201   :  { %1834 = vmatprep.mubr.f32.mxu1 %v15970_v60 }
 0x202   :  { %892 = vmatmul.mubr.f32.gmra.mrb[122].mxu0 %v510_v37  ;;  %v1305_v37 = vld [vmem:[#allocation4 + $0x68] sm:$0xff] }
 0x203   :  { %896 = vmatprep.mubr.f32.mxu0 %v515_v36  ;;  %v1307_v36 = vld [vmem:[#allocation4 + $0x78] sm:$0xff] }
 0x204   :  { %9185 = vmatmul.mubr.msk.f32.gmra.mrb[84].mxu1 %vm1325_vm0, %v12431_v61  ;;  %v280_v61 = vld [vmem:[#allocation2 + $0x70] sm:$0xff] }
 0x205   :  { %1840 = vmatprep.mubr.f32.mxu1 %v15970_v60 }
 0x206   :  { %897 = vmatmul.mubr.f32.gmra.mrb[124].mxu0 %v514_v40  ;;  %v353_v40 = vld [vmem:[#allocation2 + $0x2b8] sm:$0xff] }
 0x207   :  { %901 = vmatprep.mubr.f32.mxu0 %v519_v34  ;;  %v1304_v34 = vld [vmem:[#allocation4 + $0x60] sm:$0xff] }
 0x208   :  { %9186 = vmatmul.mubr.msk.f32.gmra.mrb[86].mxu1 %vm1325_vm0, %v12436_v62  ;;  %v284_v62 = vld [vmem:[#allocation2 + $0x90] sm:$0xff] }
 0x209   :  { %1846 = vmatprep.mubr.f32.mxu1 %v15970_v60 }
 0x20a   :  { %902 = vmatmul.mubr.f32.gmra.mrb[126].mxu0 %v518_v58  ;;  %v1306_v58 = vld [vmem:[#allocation4 + $0x70] sm:$0xff] }
 0x20b   :  { %971 = vmatprep.mubr.f32.mxu0 %v269_v38  ;;  %v10292_v38 = vpack.c.bf16 %v1306_v58, %v1304_v34  ;;  %v473_v34 = vld [vmem:[#allocation2 + $0x678] sm:$0xff]  ;;  %v472_v58 = vld [vmem:[#allocation2 + $0x670] sm:$0xff] }
 0x20c   :  { %9187 = vmatmul.mubr.msk.f32.gmra.mrb[88].mxu1 %vm1325_vm0, %v12447_v13  ;;  %v288_v13 = vld [vmem:[#allocation2 + $0xb0] sm:$0xff] }
 0x20d   :  { %1852 = vmatprep.mubr.f32.mxu1 %v15970_v60 }
 0x20e   :  { %972 = vmatmul.mubr.f32.vlgmr.msra.gmra.mrb[0].mxu0 %v268_v59  ;;  %v352_v59 = vld [vmem:[#allocation2 + $0x2b0] sm:$0xff] }
 0x20f   :  { %976 = vmatprep.mubr.f32.mxu0 %v273_v21  ;;  %v357_v21 = vld [vmem:[#allocation2 + $0x2d8] sm:$0xff] }
 0x210   :  { %9188 = vmatmul.mubr.msk.f32.gmra.mrb[90].mxu1 %vm1325_vm0, %v12452_v16  ;;  %v292_v16 = vld [vmem:[#allocation2 + $0xd0] sm:$0xff] }
 0x211   :  { %1858 = vmatprep.mubr.f32.mxu1 %v15970_v60 }
 0x212   :  { %977 = vmatmul.mubr.f32.gmra.mrb[2].mxu0 %v272_v46  ;;  %v361_v46 = vld [vmem:[#allocation2 + $0x2f8] sm:$0xff] }
 0x213   :  { %981 = vmatprep.mubr.f32.mxu0 %v277_v39  ;;  %v360_v39 = vld [vmem:[#allocation2 + $0x2f0] sm:$0xff] }
 0x214   :  { %9189 = vmatmul.mubr.msk.f32.gmra.mrb[92].mxu1 %vm1325_vm0, %v12463_v25  ;;  %v1297_v25 = vld [vmem:[#allocation4 + $0x28] sm:$0xff] }
 0x215   :  { %1864 = vmatprep.mubr.f32.mxu1 %v15970_v60 }
 0x216   :  { %982 = vmatmul.mubr.f32.gmra.mrb[4].mxu0 %v276_v49  ;;  %v365_v49 = vld [vmem:[#allocation2 + $0x318] sm:$0xff] }
 0x217   :  { %986 = vmatprep.mubr.f32.mxu0 %v281_v15  ;;  %v364_v15 = vld [vmem:[#allocation2 + $0x310] sm:$0xff] }
 0x218   :  { %9190 = vmatmul.mubr.msk.f32.gmra.mrb[94].mxu1 %vm1325_vm0, %v12468_v28  ;;  %v10282_v28 = vpack.c.bf16 %v1299_v44, %v1297_v25  ;;  %v384_v25 = vld [vmem:[#allocation2 + $0x3b0] sm:$0xff]  ;;  %v389_v44 = vld [vmem:[#allocation2 + $0x3d8] sm:$0xff] }
 0x219   :  { %1870 = vmatprep.mubr.f32.mxu1 %v15970_v60 }
 0x21a   :  { %987 = vmatmul.mubr.f32.gmra.mrb[6].mxu0 %v280_v61  ;;  %10283 = vmatprep.subr.bf16.mxu1 %v10282_v28  ;;  %v369_v61 = vld [vmem:[#allocation2 + $0x338] sm:$0xff]  ;;  %v392_v28 = vld [vmem:[#allocation2 + $0x3f0] sm:$0xff] }
 0x21b   :  { %991 = vmatprep.mubr.f32.mxu0 %v285_v41  ;;  %10285 = vmatpush1.bf16.msra.mxu1 %v10284_v26  ;;  %v373_v41 = vld [vmem:[#allocation2 + $0x358] sm:$0xff] }
 0x21c   :  { %9191 = vmatmul.mubr.msk.f32.gmra.mrb[96].mxu1 %vm1325_vm0, %v12479_v43  ;;  %v300_v43 = vld [vmem:[#allocation2 + $0x110] sm:$0xff]  ;;  %v401_v26 = vld [vmem:[#allocation2 + $0x438] sm:$0xff] }
 0x21d   :  { %1876 = vmatprep.mubr.f32.mxu1 %v15970_v60 }
 0x21e   :  { %992 = vmatmul.mubr.f32.gmra.mrb[8].mxu0 %v284_v62  ;;  %v372_v62 = vld [vmem:[#allocation2 + $0x350] sm:$0xff] }
 0x21f   :  { %996 = vmatprep.mubr.f32.mxu0 %v289_v23  ;;  %v377_v23 = vld [vmem:[#allocation2 + $0x378] sm:$0xff] }
 0x220   :  { %9192 = vmatmul.mubr.msk.f32.gmra.mrb[98].mxu1 %vm1325_vm0, %v12484_v50  ;;  %v304_v50 = vld [vmem:[#allocation2 + $0x130] sm:$0xff] }
 0x221   :  { %1882 = vmatprep.mubr.f32.mxu1 %v15970_v60 }
 0x222   :  { %997 = vmatmul.mubr.f32.gmra.mrb[10].mxu0 %v288_v13  ;;  %v376_v13 = vld [vmem:[#allocation2 + $0x370] sm:$0xff] }
 0x223   :  { %1001 = vmatprep.mubr.f32.mxu0 %v293_v42  ;;  %v381_v42 = vld [vmem:[#allocation2 + $0x398] sm:$0xff] }
 0x224   :  { %9193 = vmatmul.mubr.msk.f32.gmra.mrb[100].mxu1 %vm1325_vm0, %v12495_v53  ;;  %v312_v53 = vld [vmem:[#allocation2 + $0x170] sm:$0xff] }
 0x225   :  { %1888 = vmatprep.mubr.f32.mxu1 %v15970_v60 }
 0x226   :  { %1002 = vmatmul.mubr.f32.gmra.mrb[12].mxu0 %v292_v16  ;;  %v380_v16 = vld [vmem:[#allocation2 + $0x390] sm:$0xff] }
 0x227   :  { %1006 = vmatprep.mubr.f32.mxu0 %v297_v5  ;;  %v385_v5 = vld [vmem:[#allocation2 + $0x3b8] sm:$0xff] }
 0x228   :  { %9194 = vmatmul.mubr.msk.f32.gmra.mrb[102].mxu1 %vm1325_vm0, %v12500_v56  ;;  %v316_v56 = vld [vmem:[#allocation2 + $0x190] sm:$0xff] }
 0x229   :  { %1894 = vmatprep.mubr.f32.mxu1 %v15970_v60 }
 0x22a   :  { %1007 = vmatmul.mubr.f32.gmra.mrb[14].mxu0 %v296_v45  ;;  %v393_v45 = vld [vmem:[#allocation2 + $0x3f8] sm:$0xff] }
 0x22b   :  { %1011 = vmatprep.mubr.f32.mxu0 %v301_v47  ;;  %v396_v47 = vld [vmem:[#allocation2 + $0x410] sm:$0xff] }
 0x22c   :  { %9195 = vmatmul.mubr.msk.f32.gmra.mrb[104].mxu1 %vm1325_vm0, %v12511_v4  ;;  %v320_v4 = vld [vmem:[#allocation2 + $0x1b0] sm:$0xff] }
 0x22d   :  { %1900 = vmatprep.mubr.f32.mxu1 %v15970_v60 }
 0x22e   :  { %1012 = vmatmul.mubr.f32.gmra.mrb[16].mxu0 %v300_v43  ;;  %v400_v43 = vld [vmem:[#allocation2 + $0x430] sm:$0xff] }
 0x22f   :  { %1016 = vmatprep.mubr.f32.mxu0 %v305_v7  ;;  %v405_v7 = vld [vmem:[#allocation2 + $0x458] sm:$0xff] }
 0x230   :  { %9196 = vmatmul.mubr.msk.f32.gmra.mrb[106].mxu1 %vm1325_vm0, %v12516_v12  ;;  %v324_v12 = vld [vmem:[#allocation2 + $0x1d0] sm:$0xff] }
 0x231   :  { %1906 = vmatprep.mubr.f32.mxu1 %v15970_v60 }
 0x232   :  { %1017 = vmatmul.mubr.f32.gmra.mrb[18].mxu0 %v304_v50  ;;  %v404_v50 = vld [vmem:[#allocation2 + $0x450] sm:$0xff] }
 0x233   :  { %1021 = vmatprep.mubr.f32.mxu0 %v309_v48  ;;  %v409_v48 = vld [vmem:[#allocation2 + $0x478] sm:$0xff] }
 0x234   :  { %9197 = vmatmul.mubr.msk.f32.gmra.mrb[108].mxu1 %vm1325_vm0, %v12527_v22  ;;  %v328_v22 = vld [vmem:[#allocation2 + $0x1f0] sm:$0xff] }
 0x235   :  { %1912 = vmatprep.mubr.f32.mxu1 %v15970_v60 }
 0x236   :  { %1022 = vmatmul.mubr.f32.gmra.mrb[20].mxu0 %v308_v27  ;;  %v408_v27 = vld [vmem:[#allocation2 + $0x470] sm:$0xff] }
 0x237   :  { %1026 = vmatprep.mubr.f32.mxu0 %v313_v1  ;;  %v413_v1 = vld [vmem:[#allocation2 + $0x498] sm:$0xff] }
 0x238   :  { %9198 = vmatmul.mubr.msk.f32.gmra.mrb[110].mxu1 %vm1325_vm0, %v12532_v2  ;;  %v332_v2 = vld [vmem:[#allocation2 + $0x210] sm:$0xff] }
 0x239   :  { %1918 = vmatprep.mubr.f32.mxu1 %v15970_v60 }
 0x23a   :  { %1027 = vmatmul.mubr.f32.gmra.mrb[22].mxu0 %v312_v53  ;;  %v412_v53 = vld [vmem:[#allocation2 + $0x490] sm:$0xff] }
 0x23b   :  { %1031 = vmatprep.mubr.f32.mxu0 %v317_v29  ;;  %v417_v29 = vld [vmem:[#allocation2 + $0x4b8] sm:$0xff] }
 0x23c   :  { %9199 = vmatmul.mubr.msk.f32.gmra.mrb[112].mxu1 %vm1325_vm0, %v12543_v3  ;;  %v336_v3 = vld [vmem:[#allocation2 + $0x230] sm:$0xff] }
 0x23d   :  { %1924 = vmatprep.mubr.f32.mxu1 %v15970_v60 }
 0x23e   :  { %1032 = vmatmul.mubr.f32.gmra.mrb[24].mxu0 %v316_v56  ;;  %v416_v56 = vld [vmem:[#allocation2 + $0x4b0] sm:$0xff] }
 0x23f   :  { %1036 = vmatprep.mubr.f32.mxu0 %v321_v17  ;;  %v421_v17 = vld [vmem:[#allocation2 + $0x4d8] sm:$0xff] }
 0x240   :  { %9200 = vmatmul.mubr.msk.f32.gmra.mrb[114].mxu1 %vm1325_vm0, %v12548_v51  ;;  %v340_v51 = vld [vmem:[#allocation2 + $0x250] sm:$0xff] }
 0x241   :  { %1930 = vmatprep.mubr.f32.mxu1 %v15970_v60 }
 0x242   :  { %1037 = vmatmul.mubr.f32.gmra.mrb[26].mxu0 %v320_v4  ;;  %v420_v4 = vld [vmem:[#allocation2 + $0x4d0] sm:$0xff] }
 0x243   :  { %1041 = vmatprep.mubr.f32.mxu0 %v325_v30  ;;  %v425_v30 = vld [vmem:[#allocation2 + $0x4f8] sm:$0xff] }
 0x244   :  { %9201 = vmatmul.mubr.msk.f32.gmra.mrb[116].mxu1 %vm1325_vm0, %v12559_v57  ;;  %v344_v57 = vld [vmem:[#allocation2 + $0x270] sm:$0xff] }
 0x245   :  { %1936 = vmatprep.mubr.f32.mxu1 %v15970_v60 }
 0x246   :  { %1042 = vmatmul.mubr.f32.gmra.mrb[28].mxu0 %v324_v12  ;;  %v424_v12 = vld [vmem:[#allocation2 + $0x4f0] sm:$0xff] }
 0x247   :  { %1046 = vmatprep.mubr.f32.mxu0 %v329_v54  ;;  %v429_v54 = vld [vmem:[#allocation2 + $0x518] sm:$0xff] }
 0x248   :  { %9202 = vmatmul.mubr.msk.f32.gmra.mrb[118].mxu1 %vm1325_vm0, %v12564_v63  ;;  %v1303_v63 = vld [vmem:[#allocation4 + $0x58] sm:$0xff] }
 0x249   :  { %1942 = vmatprep.mubr.f32.mxu1 %v15970_v60  ;;  %v10286_v6 = vpack.c.bf16 %v1303_v63, %v1301_v33  ;;  %v449_v33 = vld [vmem:[#allocation2 + $0x5b8] sm:$0xff]  ;;  %v448_v63 = vld [vmem:[#allocation2 + $0x5b0] sm:$0xff] }
 0x24a   :  { %1047 = vmatmul.mubr.f32.gmra.mrb[30].mxu0 %v328_v22  ;;  %v428_v22 = vld [vmem:[#allocation2 + $0x510] sm:$0xff] }
 0x24b   :  { %1051 = vmatprep.mubr.f32.mxu0 %v333_v14  ;;  %10287 = vmatprep.subr.bf16.mxu1 %v10286_v6  ;;  %v433_v14 = vld [vmem:[#allocation2 + $0x538] sm:$0xff]  ;;  %v452_v6 = vld [vmem:[#allocation2 + $0x5d0] sm:$0xff] }
 0x24c   :  { %9203 = vmatmul.mubr.msk.f32.gmra.mrb[120].mxu1 %vm1325_vm0, %v12575_v19  ;;  %v348_v19 = vld [vmem:[#allocation2 + $0x290] sm:$0xff] }
 0x24d   :  { %1948 = vmatprep.mubr.f32.mxu1 %v15970_v60  ;;  %10289 = vmatpush1.bf16.msra.mxu1 %v10288_v20  ;;  %v461_v20 = vld [vmem:[#allocation2 + $0x618] sm:$0xff] }
 0x24e   :  { %1052 = vmatmul.mubr.f32.gmra.mrb[32].mxu0 %v332_v2  ;;  %v432_v2 = vld [vmem:[#allocation2 + $0x530] sm:$0xff] }
 0x24f   :  { %1056 = vmatprep.mubr.f32.mxu0 %v337_v55  ;;  %v437_v55 = vld [vmem:[#allocation2 + $0x558] sm:$0xff] }
 0x250   :  { %9204 = vmatmul.mubr.msk.f32.gmra.mrb[122].mxu1 %vm1325_vm0, %v12580_v8  ;;  %v10290_v8 = vpack.c.bf16 %v1307_v36, %v1305_v37  ;;  %v465_v37 = vld [vmem:[#allocation2 + $0x638] sm:$0xff]  ;;  %v464_v36 = vld [vmem:[#allocation2 + $0x630] sm:$0xff] }
 0x251   :  { %1954 = vmatprep.mubr.f32.mxu1 %v15970_v60 }
 0x252   :  { %1057 = vmatmul.mubr.f32.gmra.mrb[34].mxu0 %v336_v3  ;;  %10291 = vmatprep.subr.bf16.mxu1 %v10290_v8  ;;  %v436_v3 = vld [vmem:[#allocation2 + $0x550] sm:$0xff] }
 0x253   :  { %1061 = vmatprep.mubr.f32.mxu0 %v341_v32  ;;  %10293 = vmatpush1.bf16.msra.mxu1 %v10292_v38  ;;  %v441_v32 = vld [vmem:[#allocation2 + $0x578] sm:$0xff]  ;;  %v468_v8 = vld [vmem:[#allocation2 + $0x650] sm:$0xff] }
 0x254   :  { %9205 = vmatmul.mubr.msk.f32.gmra.mrb[124].mxu1 %vm1325_vm0, %v12591_v10  ;;  %10294 = vmatprep.subr.bf16.mxu1 %v15968_v0  ;;  %v356_v10 = vld [vmem:[#allocation2 + $0x2d0] sm:$0xff]  ;;  %v477_v38 = vld [vmem:[#allocation2 + $0x698] sm:$0xff] }
 0x255   :  { %1960 = vmatprep.mubr.f32.mxu1 %v15970_v60 }
 0x256   :  { %1062 = vmatmul.mubr.f32.gmra.mrb[36].mxu0 %v340_v51  ;;  %v440_v51 = vld [vmem:[#allocation2 + $0x570] sm:$0xff] }
 0x257   :  { %1066 = vmatprep.mubr.f32.mxu0 %v345_v18  ;;  %v445_v18 = vld [vmem:[#allocation2 + $0x598] sm:$0xff] }
 0x258   :  { %9206 = vmatmul.mubr.msk.f32.gmra.mrb[126].mxu1 %vm1325_vm0, %v12596_v52  ;;  %v368_v52 = vld [vmem:[#allocation2 + $0x330] sm:$0xff] }
 0x259   :  { %2223 = vmatprep.mubr.f32.mxu1 %v15970_v60 }
 0x25a   :  { %1067 = vmatmul.mubr.f32.gmra.mrb[38].mxu0 %v344_v57  ;;  %v444_v57 = vld [vmem:[#allocation2 + $0x590] sm:$0xff] }
 0x25b   :  { %1071 = vmatprep.mubr.f32.mxu0 %v349_v31  ;;  %v453_v31 = vld [vmem:[#allocation2 + $0x5d8] sm:$0xff] }
 0x25e   :  { %1072 = vmatmul.mubr.f32.gmra.mrb[40].mxu0 %v348_v19  ;;  %v460_v19 = vld [vmem:[#allocation2 + $0x610] sm:$0xff] }
 0x25f   :  { %1076 = vmatprep.mubr.f32.mxu0 %v353_v40  ;;  %v469_v40 = vld [vmem:[#allocation2 + $0x658] sm:$0xff] }
 0x262   :  { %1077 = vmatmul.mubr.f32.gmra.mrb[42].mxu0 %v352_v59  ;;  %v476_v59 = vld [vmem:[#allocation2 + $0x690] sm:$0xff] }
 0x263   :  { %1081 = vmatprep.mubr.f32.mxu0 %v357_v21  ;;  %v481_v21 = vld [vmem:[#allocation2 + $0x6b8] sm:$0xff] }
 0x266   :  { %1082 = vmatmul.mubr.f32.gmra.mrb[44].mxu0 %v356_v10  ;;  %v480_v10 = vld [vmem:[#allocation2 + $0x6b0] sm:$0xff] }
 0x267   :  { %1086 = vmatprep.mubr.f32.mxu0 %v361_v46  ;;  %v485_v46 = vld [vmem:[#allocation2 + $0x6d8] sm:$0xff] }
 0x26a   :  { %1087 = vmatmul.mubr.f32.gmra.mrb[46].mxu0 %v360_v39 }
 0x26b   :  { %1091 = vmatprep.mubr.f32.mxu0 %v365_v49 }
 0x26e   :  { %1092 = vmatmul.mubr.f32.gmra.mrb[48].mxu0 %v364_v15  ;;  %v484_v15 = vld [vmem:[#allocation2 + $0x6d0] sm:$0xff] }
 0x26f   :  { %1096 = vmatprep.mubr.f32.mxu0 %v369_v61  ;;  %v489_v61 = vld [vmem:[#allocation2 + $0x6f8] sm:$0xff] }
 0x272   :  { %1097 = vmatmul.mubr.f32.gmra.mrb[50].mxu0 %v368_v52 }
 0x273   :  { %1101 = vmatprep.mubr.f32.mxu0 %v373_v41 }
 0x276   :  { %1102 = vmatmul.mubr.f32.gmra.mrb[52].mxu0 %v372_v62  ;;  %v2876_v62 = vld [vmem:[#allocation6] sm:$0xff] }
 0x277   :  { %1106 = vmatprep.mubr.f32.mxu0 %v377_v23  ;;  %v2877_v23 = vld [vmem:[#allocation6 + $0x8] sm:$0xff] }
 0x27a   :  { %1107 = vmatmul.mubr.f32.gmra.mrb[54].mxu0 %v376_v13  ;;  %v3478_v13 = vld [vmem:[#allocation6 + $0xc0] sm:$0xff] }
 0x27b   :  { %1111 = vmatprep.mubr.f32.mxu0 %v381_v42  ;;  %v488_v42 = vld [vmem:[#allocation2 + $0x6f0] sm:$0xff] }
 0x27e   :  { %1112 = vmatmul.mubr.f32.gmra.mrb[56].mxu0 %v380_v16  ;;  %v10295_v16 = vpack.c.bf16 %v2877_v23, %v2876_v62 }
 0x27f   :  { %1116 = vmatprep.mubr.f32.mxu0 %v385_v5  ;;  %v3479_v5 = vld [vmem:[#allocation6 + $0xc8] sm:$0xff] }
 0x282   :  { %1117 = vmatmul.mubr.f32.gmra.mrb[58].mxu0 %v384_v25  ;;  %v493_v25 = vld [vmem:[#allocation2 + $0x718] sm:$0xff] }
 0x283   :  { %1121 = vmatprep.mubr.f32.mxu0 %v389_v44  ;;  %v10331_v44 = vpack.c.bf16 %v3479_v5, %v3478_v13  ;;  %v3486_v13 = vld [vmem:[#allocation6 + $0x100] sm:$0xff] }
 0x285   :  { %10332 = vmatpush1.bf16.msra.mxu0 %v10331_v44  ;;  %v3488_v44 = vld [vmem:[#allocation6 + $0x110] sm:$0xff] }
 0x286   :  { %1122 = vmatmul.mubr.f32.gmra.mrb[60].mxu0 %v388_v24  ;;  %10333 = vmatprep.subr.bf16.mxu0 %v15968_v0 }
 0x287   :  { %1126 = vmatprep.mubr.f32.mxu0 %v393_v45 }
 0x28a   :  { %1127 = vmatmul.mubr.f32.gmra.mrb[62].mxu0 %v392_v28  ;;  %v492_v28 = vld [vmem:[#allocation2 + $0x710] sm:$0xff] }
 0x28b   :  { %1131 = vmatprep.mubr.f32.mxu0 %v397_v11  ;;  %v497_v11 = vld [vmem:[#allocation2 + $0x738] sm:$0xff] }
 0x28e   :  { %1132 = vmatmul.mubr.f32.gmra.mrb[64].mxu0 %v396_v47 }
 0x28f   :  { %1136 = vmatprep.mubr.f32.mxu0 %v401_v26 }
 0x292   :  { %1137 = vmatmul.mubr.f32.gmra.mrb[66].mxu0 %v400_v43  ;;  %v496_v43 = vld [vmem:[#allocation2 + $0x730] sm:$0xff] }
 0x293   :  { %1141 = vmatprep.mubr.f32.mxu0 %v405_v7  ;;  %v501_v7 = vld [vmem:[#allocation2 + $0x758] sm:$0xff] }
 0x296   :  { %1142 = vmatmul.mubr.f32.gmra.mrb[68].mxu0 %v404_v50 }
 0x297   :  { %1146 = vmatprep.mubr.f32.mxu0 %v409_v48 }
 0x29a   :  { %1147 = vmatmul.mubr.f32.gmra.mrb[70].mxu0 %v408_v27  ;;  %v500_v27 = vld [vmem:[#allocation2 + $0x750] sm:$0xff] }
 0x29b   :  { %1151 = vmatprep.mubr.f32.mxu0 %v413_v1  ;;  %v505_v1 = vld [vmem:[#allocation2 + $0x778] sm:$0xff] }
 0x29e   :  { %1152 = vmatmul.mubr.f32.gmra.mrb[72].mxu0 %v412_v53 }
 0x29f   :  { %1156 = vmatprep.mubr.f32.mxu0 %v417_v29 }
 0x2a2   :  { %1157 = vmatmul.mubr.f32.gmra.mrb[74].mxu0 %v416_v56  ;;  %v504_v56 = vld [vmem:[#allocation2 + $0x770] sm:$0xff] }
 0x2a3   :  { %1161 = vmatprep.mubr.f32.mxu0 %v421_v17  ;;  %v509_v17 = vld [vmem:[#allocation2 + $0x798] sm:$0xff] }
 0x2a6   :  { %1162 = vmatmul.mubr.f32.gmra.mrb[76].mxu0 %v420_v4 }
 0x2a7   :  { %1166 = vmatprep.mubr.f32.mxu0 %v425_v30 }
 0x2aa   :  { %1167 = vmatmul.mubr.f32.gmra.mrb[78].mxu0 %v424_v12  ;;  %v508_v12 = vld [vmem:[#allocation2 + $0x790] sm:$0xff] }
 0x2ab   :  { %1171 = vmatprep.mubr.f32.mxu0 %v429_v54  ;;  %v513_v54 = vld [vmem:[#allocation2 + $0x7b8] sm:$0xff] }
 0x2ae   :  { %1172 = vmatmul.mubr.f32.gmra.mrb[80].mxu0 %v428_v22 }
 0x2af   :  { %1176 = vmatprep.mubr.f32.mxu0 %v433_v14  ;;  %v2878_v14 = vld [vmem:[#allocation6 + $0x10] sm:$0xff] }
 0x2b2   :  { %1177 = vmatmul.mubr.f32.gmra.mrb[82].mxu0 %v432_v2  ;;  %v2879_v2 = vld [vmem:[#allocation6 + $0x18] sm:$0xff] }
 0x2b3   :  { %1181 = vmatprep.mubr.f32.mxu0 %v437_v55  ;;  %v3480_v55 = vld [vmem:[#allocation6 + $0xd0] sm:$0xff] }
 0x2b6   :  { %1182 = vmatmul.mubr.f32.gmra.mrb[84].mxu0 %v436_v3 }
 0x2b7   :  { %1186 = vmatprep.mubr.f32.mxu0 %v441_v32  ;;  %v10298_v32 = vpack.c.bf16 %v2879_v2, %v2878_v14  ;;  %v3496_v2 = vld [vmem:[#allocation6 + $0x150] sm:$0xff] }
 0x2ba   :  { %1187 = vmatmul.mubr.f32.gmra.mrb[86].mxu0 %v440_v51  ;;  %v3481_v51 = vld [vmem:[#allocation6 + $0xd8] sm:$0xff] }
 0x2bb   :  { %1191 = vmatprep.mubr.f32.mxu0 %v445_v18  ;;  %v512_v18 = vld [vmem:[#allocation2 + $0x7b0] sm:$0xff] }
 0x2be   :  { %1192 = vmatmul.mubr.f32.gmra.mrb[88].mxu0 %v444_v57  ;;  %v10334_v57 = vpack.c.bf16 %v3481_v51, %v3480_v55  ;;  %v3497_v55 = vld [vmem:[#allocation6 + $0x158] sm:$0xff] }
 0x2bf   :  { %1196 = vmatprep.mubr.f32.mxu0 %v449_v33  ;;  %v517_v33 = vld [vmem:[#allocation2 + $0x7d8] sm:$0xff] }
 0x2c0   :  { %10335 = vmatpush1.bf16.msra.mxu0 %v10334_v57  ;;  %v3499_v57 = vld [vmem:[#allocation6 + $0x168] sm:$0xff] }
 0x2c1   :  { %10336 = vmatprep.subr.bf16.mxu0 %v15968_v0 }
 0x2c2   :  { %1197 = vmatmul.mubr.f32.gmra.mrb[90].mxu0 %v448_v63 }
 0x2c3   :  { %1201 = vmatprep.mubr.f32.mxu0 %v453_v31 }
 0x2c6   :  { %1202 = vmatmul.mubr.f32.gmra.mrb[92].mxu0 %v452_v6  ;;  %v516_v6 = vld [vmem:[#allocation2 + $0x7d0] sm:$0xff] }
 0x2c7   :  { %1206 = vmatprep.mubr.f32.mxu0 %v457_v35  ;;  %v521_v35 = vld [vmem:[#allocation2 + $0x7f8] sm:$0xff] }
 0x2ca   :  { %1207 = vmatmul.mubr.f32.gmra.mrb[94].mxu0 %v456_v9 }
 0x2cb   :  { %1211 = vmatprep.mubr.f32.mxu0 %v461_v20 }
 0x2ce   :  { %1212 = vmatmul.mubr.f32.gmra.mrb[96].mxu0 %v460_v19  ;;  %v520_v19 = vld [vmem:[#allocation2 + $0x7f0] sm:$0xff] }
 0x2cf   :  { %1216 = vmatprep.mubr.f32.mxu0 %v465_v37 }
 0x2d2   :  { %1217 = vmatmul.mubr.f32.gmra.mrb[98].mxu0 %v464_v36 }
 0x2d3   :  { %1221 = vmatprep.mubr.f32.mxu0 %v469_v40 }
 0x2d6   :  { %1222 = vmatmul.mubr.f32.gmra.mrb[100].mxu0 %v468_v8 }
 0x2d7   :  { %1226 = vmatprep.mubr.f32.mxu0 %v473_v34 }
 0x2da   :  { %1227 = vmatmul.mubr.f32.gmra.mrb[102].mxu0 %v472_v58 }
 0x2db   :  { %1231 = vmatprep.mubr.f32.mxu0 %v477_v38  ;;  %v2880_v38 = vld [vmem:[#allocation6 + $0x20] sm:$0xff] }
 0x2de   :  { %1232 = vmatmul.mubr.f32.gmra.mrb[104].mxu0 %v476_v59  ;;  %v2881_v59 = vld [vmem:[#allocation6 + $0x28] sm:$0xff] }
 0x2df   :  { %1236 = vmatprep.mubr.f32.mxu0 %v481_v21  ;;  %v3482_v21 = vld [vmem:[#allocation6 + $0xe0] sm:$0xff] }
 0x2e1   :  { %v973_v39 = vpop.f32.mrb[0].mxu0 }
 0x2e2   :  { %v975_v49 = vpop.f32.mrb[1].mxu0  ;;  %1237 = vmatmul.mubr.f32.gmra.mrb[106].mxu0 %v480_v10  ;;  %9207 = vmatmul.mubr.msk.f32.vlgmr.msra.gmra.mrb[0].mxu1 %vm1325_vm0, %v973_v39  ;;  %v10301_v10 = vpack.c.bf16 %v2881_v59, %v2880_v38  ;;  %v2886_v59 = vld [vmem:[#allocation6 + $0x50] sm:$0xff] }
 0x2e3   :  { %1241 = vmatprep.mubr.f32.mxu0 %v485_v46  ;;  %2229 = vmatprep.mubr.f32.mxu1 %v15970_v60  ;;  %v3483_v46 = vld [vmem:[#allocation6 + $0xe8] sm:$0xff] }
 0x2e4   :  { %10296 = vmatpush1.bf16.msra.mxu1 %v10295_v16  ;;  %v10337_v39 = vpack.c.bf16 %v3483_v46, %v3482_v21  ;;  %v2887_v21 = vld [vmem:[#allocation6 + $0x58] sm:$0xff] }
 0x2e5   :  { %v978_v52 = vpop.f32.mrb[2].mxu0  ;;  %10297 = vmatprep.subr.bf16.mxu1 %v15968_v0  ;;  %v10310_v46 = vpack.c.bf16 %v2887_v21, %v2886_v59 }
 0x2e6   :  { %v980_v41 = vpop.f32.mrb[3].mxu0  ;;  %1242 = vmatmul.mubr.f32.gmra.mrb[108].mxu0 %v484_v15  ;;  %9208 = vmatmul.mubr.msk.f32.gmra.mrb[2].mxu1 %vm1325_vm0, %v978_v52  ;;  %v3485_v52 = vld [vmem:[#allocation6 + $0xf8] sm:$0xff] }
 0x2e7   :  { %1246 = vmatprep.mubr.f32.mxu0 %v489_v61  ;;  %2235 = vmatprep.mubr.f32.mxu1 %v15970_v60  ;;  %v3484_v61 = vld [vmem:[#allocation6 + $0xf0] sm:$0xff] }
 0x2e8   :  { %10299 = vmatpush1.bf16.msra.mxu1 %v10298_v32  ;;  %10338 = vmatpush1.bf16.msra.mxu0 %v10337_v39  ;;  %v10340_v41 = vpack.c.bf16 %v3485_v52, %v3484_v61 }
 0x2e9   :  { %v983_v24 = vpop.f32.mrb[4].mxu0  ;;  %10300 = vmatprep.subr.bf16.mxu1 %v15968_v0  ;;  %10339 = vmatprep.subr.bf16.mxu0 %v15968_v0 }
 0x2ea   :  { %v985_v45 = vpop.f32.mrb[5].mxu0  ;;  %1247 = vmatmul.mubr.f32.gmra.mrb[110].mxu0 %v488_v42  ;;  %9209 = vmatmul.mubr.msk.f32.gmra.mrb[4].mxu1 %vm1325_vm0, %v983_v24  ;;  %v3487_v42 = vld [vmem:[#allocation6 + $0x108] sm:$0xff]  ;;  %v3489_v24 = vld [vmem:[#allocation6 + $0x118] sm:$0xff] }
 0x2eb   :  { %1251 = vmatprep.mubr.f32.mxu0 %v493_v25  ;;  %2241 = vmatprep.mubr.f32.mxu1 %v15970_v60  ;;  %v10343_v16 = vpack.c.bf16 %v3487_v42, %v3486_v13  ;;  %v10346_v45 = vpack.c.bf16 %v3489_v24, %v3488_v44 }
 0x2ec   :  { %10302 = vmatpush1.bf16.msra.mxu1 %v10301_v10  ;;  %10341 = vmatpush1.bf16.msra.mxu0 %v10340_v41 }
 0x2ed   :  { %v988_v47 = vpop.f32.mrb[6].mxu0  ;;  %10303 = vmatprep.subr.bf16.mxu1 %v15968_v0  ;;  %10342 = vmatprep.subr.bf16.mxu0 %v15968_v0 }
 0x2ee   :  { %v990_v26 = vpop.f32.mrb[7].mxu0  ;;  %1252 = vmatmul.mubr.f32.gmra.mrb[112].mxu0 %v492_v28  ;;  %9210 = vmatmul.mubr.msk.f32.gmra.mrb[6].mxu1 %vm1325_vm0, %v988_v47  ;;  %v3490_v47 = vld [vmem:[#allocation6 + $0x120] sm:$0xff] }
 0x2ef   :  { %1256 = vmatprep.mubr.f32.mxu0 %v497_v11  ;;  %2247 = vmatprep.mubr.f32.mxu1 %v15970_v60  ;;  %v3491_v26 = vld [vmem:[#allocation6 + $0x128] sm:$0xff] }
 0x2f0   :  { %10344 = vmatpush1.bf16.msra.mxu0 %v10343_v16 }
 0x2f1   :  { %v993_v50 = vpop.f32.mrb[8].mxu0  ;;  %10345 = vmatprep.subr.bf16.mxu0 %v15968_v0 }
 0x2f2   :  { %v995_v48 = vpop.f32.mrb[9].mxu0  ;;  %1257 = vmatmul.mubr.f32.gmra.mrb[114].mxu0 %v496_v43  ;;  %9211 = vmatmul.mubr.msk.f32.gmra.mrb[8].mxu1 %vm1325_vm0, %v993_v50  ;;  %v10349_v43 = vpack.c.bf16 %v3491_v26, %v3490_v47 }
 0x2f3   :  { %1261 = vmatprep.mubr.f32.mxu0 %v501_v7  ;;  %2253 = vmatprep.mubr.f32.mxu1 %v15970_v60  ;;  %v2882_v48 = vld [vmem:[#allocation6 + $0x30] sm:$0xff] }
 0x2f4   :  { %10347 = vmatpush1.bf16.msra.mxu0 %v10346_v45 }
 0x2f5   :  { %v998_v53 = vpop.f32.mrb[10].mxu0  ;;  %10348 = vmatprep.subr.bf16.mxu0 %v15968_v0 }
 0x2f6   :  { %v1000_v29 = vpop.f32.mrb[11].mxu0  ;;  %1262 = vmatmul.mubr.f32.gmra.mrb[116].mxu0 %v500_v27  ;;  %9212 = vmatmul.mubr.msk.f32.gmra.mrb[10].mxu1 %vm1325_vm0, %v998_v53  ;;  %v2883_v27 = vld [vmem:[#allocation6 + $0x38] sm:$0xff] }
 0x2f7   :  { %1266 = vmatprep.mubr.f32.mxu0 %v505_v1  ;;  %2259 = vmatprep.mubr.f32.mxu1 %v15970_v60  ;;  %v3492_v1 = vld [vmem:[#allocation6 + $0x130] sm:$0xff]  ;;  %v10304_v53 = vpack.c.bf16 %v2883_v27, %v2882_v48  ;;  %v3493_v29 = vld [vmem:[#allocation6 + $0x138] sm:$0xff] }
 0x2f8   :  { %10350 = vmatpush1.bf16.msra.mxu0 %v10349_v43 }
 0x2f9   :  { %v1003_v4 = vpop.f32.mrb[12].mxu0  ;;  %10351 = vmatprep.subr.bf16.mxu0 %v15968_v0  ;;  %10305 = vmatpush1.bf16.msra.mxu1 %v10304_v53  ;;  %v2898_v53 = vld [vmem:[#allocation6 + $0xb0] sm:$0xff] }
 0x2fa   :  { %v1005_v30 = vpop.f32.mrb[13].mxu0  ;;  %1267 = vmatmul.mubr.f32.gmra.mrb[118].mxu0 %v504_v56  ;;  %9213 = vmatmul.mubr.msk.f32.gmra.mrb[12].mxu1 %vm1325_vm0, %v1003_v4  ;;  %v10352_v56 = vpack.c.bf16 %v3493_v29, %v3492_v1  ;;  %v2899_v29 = vld [vmem:[#allocation6 + $0xb8] sm:$0xff] }
 0x2fb   :  { %1271 = vmatprep.mubr.f32.mxu0 %v509_v17  ;;  %2265 = vmatprep.mubr.f32.mxu1 %v15970_v60  ;;  %v3494_v30 = vld [vmem:[#allocation6 + $0x140] sm:$0xff] }
 0x2fc   :  { %10353 = vmatpush1.bf16.msra.mxu0 %v10352_v56  ;;  %10306 = vmatprep.subr.bf16.mxu1 %v15968_v0 }
 0x2fd   :  { %v1008_v22 = vpop.f32.mrb[14].mxu0  ;;  %10354 = vmatprep.subr.bf16.mxu0 %v15968_v0 }
 0x2fe   :  { %v1010_v3 = vpop.f32.mrb[15].mxu0  ;;  %1272 = vmatmul.mubr.f32.gmra.mrb[120].mxu0 %v508_v12  ;;  %9214 = vmatmul.mubr.msk.f32.gmra.mrb[14].mxu1 %vm1325_vm0, %v1008_v22  ;;  %v3495_v12 = vld [vmem:[#allocation6 + $0x148] sm:$0xff] }
 0x2ff   :  { %1276 = vmatprep.mubr.f32.mxu0 %v513_v54  ;;  %2271 = vmatprep.mubr.f32.mxu1 %v15970_v60  ;;  %v10355_v54 = vpack.c.bf16 %v3495_v12, %v3494_v30  ;;  %v10358_v3 = vpack.c.bf16 %v3497_v55, %v3496_v2 }
 0x301   :  { %v1013_v63 = vpop.f32.mrb[16].mxu0  ;;  %10356 = vmatpush1.bf16.msra.mxu0 %v10355_v54 }
 0x302   :  { %v1015_v31 = vpop.f32.mrb[17].mxu0  ;;  %1277 = vmatmul.mubr.f32.gmra.mrb[122].mxu0 %v512_v18  ;;  %9215 = vmatmul.mubr.msk.f32.gmra.mrb[16].mxu1 %vm1325_vm0, %v1013_v63  ;;  %v3498_v18 = vld [vmem:[#allocation6 + $0x160] sm:$0xff] }
 0x303   :  { %1281 = vmatprep.mubr.f32.mxu0 %v517_v33  ;;  %2277 = vmatprep.mubr.f32.mxu1 %v15970_v60  ;;  %v10361_v33 = vpack.c.bf16 %v3499_v57, %v3498_v18 }
 0x304   :  { %10357 = vmatprep.subr.bf16.mxu0 %v15968_v0 }
 0x305   :  { %v1018_v9 = vpop.f32.mrb[18].mxu0  ;;  %10359 = vmatpush1.bf16.msra.mxu0 %v10358_v3 }
 0x306   :  { %v1020_v20 = vpop.f32.mrb[19].mxu0  ;;  %1282 = vmatmul.mubr.f32.gmra.mrb[124].mxu0 %v516_v6  ;;  %9216 = vmatmul.mubr.msk.f32.gmra.mrb[18].mxu1 %vm1325_vm0, %v1018_v9  ;;  %v3500_v6 = vld [vmem:[#allocation6 + $0x170] sm:$0xff] }
 0x307   :  { %1286 = vmatprep.mubr.f32.mxu0 %v521_v35  ;;  %2283 = vmatprep.mubr.f32.mxu1 %v15970_v60  ;;  %v3501_v35 = vld [vmem:[#allocation6 + $0x178] sm:$0xff] }
 0x308   :  { %10360 = vmatprep.subr.bf16.mxu0 %v15968_v0  ;;  %v10364_v9 = vpack.c.bf16 %v3501_v35, %v3500_v6 }
 0x309   :  { %v1023_v37 = vpop.f32.mrb[20].mxu0  ;;  %10362 = vmatpush1.bf16.msra.mxu0 %v10361_v33 }
 0x30a   :  { %v1025_v36 = vpop.f32.mrb[21].mxu0  ;;  %1287 = vmatmul.mubr.f32.gmra.mrb[126].mxu0 %v520_v19  ;;  %9217 = vmatmul.mubr.msk.f32.gmra.mrb[20].mxu1 %vm1325_vm0, %v1023_v37 }
 0x30b   :  { %2289 = vmatprep.mubr.f32.mxu1 %v15970_v60  ;;  %10363 = vmatprep.subr.bf16.mxu0 %v15968_v0  ;;  %v2884_v36 = vld [vmem:[#allocation6 + $0x40] sm:$0xff] }
 0x30d   :  { %v1028_v40 = vpop.f32.mrb[22].mxu0  ;;  %10365 = vmatpush1.bf16.msra.mxu0 %v10364_v9 }
 0x30e   :  { %v1030_v8 = vpop.f32.mrb[23].mxu0  ;;  %9218 = vmatmul.mubr.msk.f32.gmra.mrb[22].mxu1 %vm1325_vm0, %v1028_v40  ;;  %10462 = vmatprep.subr.bf16.mxu0 %v15968_v0  ;;  %v2885_v40 = vld [vmem:[#allocation6 + $0x48] sm:$0xff] }
 0x30f   :  { %2295 = vmatprep.mubr.f32.mxu1 %v15970_v60 }
 0x311   :  { %v1033_v34 = vpop.f32.mrb[24].mxu0 }
 0x312   :  { %v1035_v58 = vpop.f32.mrb[25].mxu0  ;;  %9219 = vmatmul.mubr.msk.f32.gmra.mrb[24].mxu1 %vm1325_vm0, %v1033_v34  ;;  %v10307_v34 = vpack.c.bf16 %v2885_v40, %v2884_v36 }
 0x313   :  { %2301 = vmatprep.mubr.f32.mxu1 %v15970_v60 }
 0x314   :  { %10308 = vmatpush1.bf16.msra.mxu1 %v10307_v34 }
 0x315   :  { %v1038_v49 = vpop.f32.mrb[26].mxu0  ;;  %10309 = vmatprep.subr.bf16.mxu1 %v15968_v0 }
 0x316   :  { %v1040_v15 = vpop.f32.mrb[27].mxu0  ;;  %9220 = vmatmul.mubr.msk.f32.gmra.mrb[26].mxu1 %vm1325_vm0, %v1038_v49  ;;  %v2888_v49 = vld [vmem:[#allocation6 + $0x60] sm:$0xff] }
 0x317   :  { %2307 = vmatprep.mubr.f32.mxu1 %v15970_v60  ;;  %v2889_v15 = vld [vmem:[#allocation6 + $0x68] sm:$0xff] }
 0x318   :  { %10311 = vmatpush1.bf16.msra.mxu1 %v10310_v46  ;;  %v10313_v52 = vpack.c.bf16 %v2889_v15, %v2888_v49 }
 0x319   :  { %v1043_v62 = vpop.f32.mrb[28].mxu0  ;;  %10312 = vmatprep.subr.bf16.mxu1 %v15968_v0 }
 0x31a   :  { %v1045_v23 = vpop.f32.mrb[29].mxu0  ;;  %9221 = vmatmul.mubr.msk.f32.gmra.mrb[28].mxu1 %vm1325_vm0, %v1043_v62  ;;  %v2890_v62 = vld [vmem:[#allocation6 + $0x70] sm:$0xff] }
 0x31b   :  { %2313 = vmatprep.mubr.f32.mxu1 %v15970_v60  ;;  %v2891_v23 = vld [vmem:[#allocation6 + $0x78] sm:$0xff] }
 0x31c   :  { %10314 = vmatpush1.bf16.msra.mxu1 %v10313_v52  ;;  %v10316_v42 = vpack.c.bf16 %v2891_v23, %v2890_v62 }
 0x31d   :  { %v1048_v5 = vpop.f32.mrb[30].mxu0  ;;  %10315 = vmatprep.subr.bf16.mxu1 %v15968_v0 }
 0x31e   :  { %v1050_v25 = vpop.f32.mrb[31].mxu0  ;;  %9222 = vmatmul.mubr.msk.f32.gmra.mrb[30].mxu1 %vm1325_vm0, %v1048_v5  ;;  %v2892_v5 = vld [vmem:[#allocation6 + $0x80] sm:$0xff] }
 0x31f   :  { %2319 = vmatprep.mubr.f32.mxu1 %v15970_v60  ;;  %v2893_v25 = vld [vmem:[#allocation6 + $0x88] sm:$0xff] }
 0x320   :  { %10317 = vmatpush1.bf16.msra.mxu1 %v10316_v42  ;;  %v10319_v24 = vpack.c.bf16 %v2893_v25, %v2892_v5  ;;  %v2608_v25 = vld [vmem:[%s15952_s3] sm:$0x3] }
 0x321   :  { %v1053_v28 = vpop.f32.mrb[32].mxu0  ;;  %10318 = vmatprep.subr.bf16.mxu1 %v15968_v0 }
 0x322   :  { %v1055_v11 = vpop.f32.mrb[33].mxu0  ;;  %9223 = vmatmul.mubr.msk.f32.gmra.mrb[32].mxu1 %vm1325_vm0, %v1053_v28  ;;  %v2894_v28 = vld [vmem:[#allocation6 + $0x90] sm:$0xff] }
 0x323   :  { %2325 = vmatprep.mubr.f32.mxu1 %v15970_v60  ;;  %v2895_v11 = vld [vmem:[#allocation6 + $0x98] sm:$0xff] }
 0x324   :  { %10320 = vmatpush1.bf16.msra.mxu1 %v10319_v24  ;;  %v10322_v26 = vpack.c.bf16 %v2895_v11, %v2894_v28 }
 0x325   :  { %v1058_v7 = vpop.f32.mrb[34].mxu0  ;;  %10321 = vmatprep.subr.bf16.mxu1 %v15968_v0 }
 0x326   :  { %v1060_v50 = vpop.f32.mrb[35].mxu0  ;;  %9224 = vmatmul.mubr.msk.f32.gmra.mrb[34].mxu1 %vm1325_vm0, %v1058_v7  ;;  %v2896_v7 = vld [vmem:[#allocation6 + $0xa0] sm:$0xff] }
 0x327   :  { %2331 = vmatprep.mubr.f32.mxu1 %v15970_v60  ;;  %v2897_v50 = vld [vmem:[#allocation6 + $0xa8] sm:$0xff] }
 0x328   :  { %10323 = vmatpush1.bf16.msra.mxu1 %v10322_v26  ;;  %v10325_v27 = vpack.c.bf16 %v2897_v50, %v2896_v7 }
 0x329   :  { %v1063_v17 = vpop.f32.mrb[36].mxu0  ;;  %10324 = vmatprep.subr.bf16.mxu1 %v15968_v0 }
 0x32a   :  { %v1065_v4 = vpop.f32.mrb[37].mxu0  ;;  %9225 = vmatmul.mubr.msk.f32.gmra.mrb[36].mxu1 %vm1325_vm0, %v1063_v17  ;;  %v10328_v17 = vpack.c.bf16 %v2899_v29, %v2898_v53 }
 0x32b   :  { %2337 = vmatprep.mubr.f32.mxu1 %v15970_v60 }
 0x32c   :  { %10326 = vmatpush1.bf16.msra.mxu1 %v10325_v27 }
 0x32d   :  { %v1068_v22 = vpop.f32.mrb[38].mxu0  ;;  %10327 = vmatprep.subr.bf16.mxu1 %v15968_v0 }
 0x32e   :  { %v1070_v14 = vpop.f32.mrb[39].mxu0  ;;  %9226 = vmatmul.mubr.msk.f32.gmra.mrb[38].mxu1 %vm1325_vm0, %v1068_v22 }
 0x32f   :  { %2343 = vmatprep.mubr.f32.mxu1 %v15970_v60 }
 0x330   :  { %10329 = vmatpush1.bf16.msra.mxu1 %v10328_v17 }
 0x331   :  { %v1073_v32 = vpop.f32.mrb[40].mxu0  ;;  %10366 = vmatprep.subr.bf16.mxu1 %v15968_v0 }
 0x332   :  { %v1075_v51 = vpop.f32.mrb[41].mxu0  ;;  %9227 = vmatmul.mubr.msk.f32.gmra.mrb[40].mxu1 %vm1325_vm0, %v1073_v32 }
 0x333   :  { %2349 = vmatprep.mubr.f32.mxu1 %v15970_v60 }
 0x335   :  { %v1078_v63 = vpop.f32.mrb[42].mxu0 }
 0x336   :  { %v1080_v31 = vpop.f32.mrb[43].mxu0  ;;  %9228 = vmatmul.mubr.msk.f32.gmra.mrb[42].mxu1 %vm1325_vm0, %v1078_v63 }
 0x337   :  { %2355 = vmatprep.mubr.f32.mxu1 %v15970_v60 }
 0x339   :  { %v1083_v20 = vpop.f32.mrb[44].mxu0 }
 0x33a   :  { %v1085_v19 = vpop.f32.mrb[45].mxu0  ;;  %9229 = vmatmul.mubr.msk.f32.gmra.mrb[44].mxu1 %vm1325_vm0, %v1083_v20 }
 0x33b   :  { %2361 = vmatprep.mubr.f32.mxu1 %v15970_v60 }
 0x33d   :  { %v1088_v37 = vpop.f32.mrb[46].mxu0 }
 0x33e   :  { %v1090_v8 = vpop.f32.mrb[47].mxu0  ;;  %9230 = vmatmul.mubr.msk.f32.gmra.mrb[46].mxu1 %vm1325_vm0, %v1088_v37 }
 0x33f   :  { %2367 = vmatprep.mubr.f32.mxu1 %v15970_v60 }
 0x341   :  { %v1093_v58 = vpop.f32.mrb[48].mxu0 }
 0x342   :  { %v1095_v38 = vpop.f32.mrb[49].mxu0  ;;  %9231 = vmatmul.mubr.msk.f32.gmra.mrb[48].mxu1 %vm1325_vm0, %v1093_v58 }
 0x343   :  { %2373 = vmatprep.mubr.f32.mxu1 %v15970_v60 }
 0x345   :  { %v1098_v10 = vpop.f32.mrb[50].mxu0 }
 0x346   :  { %v1100_v39 = vpop.f32.mrb[51].mxu0  ;;  %9232 = vmatmul.mubr.msk.f32.gmra.mrb[50].mxu1 %vm1325_vm0, %v1098_v10 }
 0x347   :  { %2379 = vmatprep.mubr.f32.mxu1 %v15970_v60 }
 0x349   :  { %v1103_v61 = vpop.f32.mrb[52].mxu0 }
 0x34a   :  { %v1105_v41 = vpop.f32.mrb[53].mxu0  ;;  %9233 = vmatmul.mubr.msk.f32.gmra.mrb[52].mxu1 %vm1325_vm0, %v1103_v61 }
 0x34b   :  { %2385 = vmatprep.mubr.f32.mxu1 %v15970_v60  ;;  %v2610_v41 = vlaneseq }
 0x34d   :  { %v1108_v13 = vpop.f32.mrb[54].mxu0 }
 0x34e   :  { %v1110_v16 = vpop.f32.mrb[55].mxu0  ;;  %9234 = vmatmul.mubr.msk.f32.gmra.mrb[54].mxu1 %vm1325_vm0, %v1108_v13  ;;  %v2611_v13 = vshrl.u32 %v2610_v41, 7 }
 0x34f   :  { %2391 = vmatprep.mubr.f32.mxu1 %v15970_v60 }
 0x350   :  { %v12891_v5 = vsub.s32 0, %v2611_v13 }
 0x351   :  { %v1113_v44 = vpop.f32.mrb[56].mxu0 }
 0x352   :  { %v1115_v45 = vpop.f32.mrb[57].mxu0  ;;  %9235 = vmatmul.mubr.msk.f32.gmra.mrb[56].mxu1 %vm1325_vm0, %v1113_v44  ;;  %16047 = vst [vmem:[#allocation25_spill] sm:$0xff] %v12891_v5  ;;  %v12897_v44 = vsub.s32 1, %v2611_v13  ;;  %v12901_v28 = vrot.slane %v2608_v25, %v12891_v5 }
 0x353   :  { %2397 = vmatprep.mubr.f32.mxu1 %v15970_v60 }
 0x354   :  { %16048 = vst [vmem:[#allocation26_spill] sm:$0xff] %v12897_v44  ;;  %v12905_v11 = vrot.slane %v2608_v25, %v12897_v44 }
 0x355   :  { %v1118_v47 = vpop.f32.mrb[58].mxu0 }
 0x356   :  { %v1120_v43 = vpop.f32.mrb[59].mxu0  ;;  %9236 = vmatmul.mubr.msk.f32.gmra.mrb[58].mxu1 %vm1325_vm0, %v1118_v47 }
 0x357   :  { %2403 = vmatprep.mubr.f32.mxu1 %v15970_v60 }
 0x359   :  { %v1123_v48 = vpop.f32.mrb[60].mxu0 }
 0x35a   :  { %v1125_v1 = vpop.f32.mrb[61].mxu0  ;;  %9237 = vmatmul.mubr.msk.f32.gmra.mrb[60].mxu1 %vm1325_vm0, %v1123_v48 }
 0x35b   :  { %2409 = vmatprep.mubr.f32.mxu1 %v15970_v60 }
 0x35d   :  { %v1128_v56 = vpop.f32.mrb[62].mxu0 }
 0x35e   :  { %v1130_v4 = vpop.f32.mrb[63].mxu0  ;;  %9238 = vmatmul.mubr.msk.f32.gmra.mrb[62].mxu1 %vm1325_vm0, %v1128_v56 }
 0x35f   :  { %2415 = vmatprep.mubr.f32.mxu1 %v15970_v60 }
 0x361   :  { %v1133_v30 = vpop.f32.mrb[64].mxu0 }
 0x362   :  { %v1135_v12 = vpop.f32.mrb[65].mxu0  ;;  %9239 = vmatmul.mubr.msk.f32.gmra.mrb[64].mxu1 %vm1325_vm0, %v1133_v30 }
 0x363   :  { %2421 = vmatprep.mubr.f32.mxu1 %v15970_v60 }
 0x365   :  { %v1138_v54 = vpop.f32.mrb[66].mxu0 }
 0x366   :  { %v1140_v22 = vpop.f32.mrb[67].mxu0  ;;  %9240 = vmatmul.mubr.msk.f32.gmra.mrb[66].mxu1 %vm1325_vm0, %v1138_v54 }
 0x367   :  { %2427 = vmatprep.mubr.f32.mxu1 %v15970_v60 }
 0x369   :  { %v1143_v14 = vpop.f32.mrb[68].mxu0 }
 0x36a   :  { %v1145_v2 = vpop.f32.mrb[69].mxu0  ;;  %9241 = vmatmul.mubr.msk.f32.gmra.mrb[68].mxu1 %vm1325_vm0, %v1143_v14 }
 0x36b   :  { %2433 = vmatprep.mubr.f32.mxu1 %v15970_v60 }
 0x36d   :  { %v1148_v55 = vpop.f32.mrb[70].mxu0 }
 0x36e   :  { %v1150_v3 = vpop.f32.mrb[71].mxu0  ;;  %9242 = vmatmul.mubr.msk.f32.gmra.mrb[70].mxu1 %vm1325_vm0, %v1148_v55 }
 0x36f   :  { %2439 = vmatprep.mubr.f32.mxu1 %v15970_v60 }
 0x371   :  { %v1153_v32 = vpop.f32.mrb[72].mxu0 }
 0x372   :  { %v1155_v51 = vpop.f32.mrb[73].mxu0  ;;  %9243 = vmatmul.mubr.msk.f32.gmra.mrb[72].mxu1 %vm1325_vm0, %v1153_v32 }
 0x373   :  { %2445 = vmatprep.mubr.f32.mxu1 %v15970_v60 }
 0x375   :  { %v1158_v18 = vpop.f32.mrb[74].mxu0 }
 0x376   :  { %v1160_v57 = vpop.f32.mrb[75].mxu0  ;;  %9244 = vmatmul.mubr.msk.f32.gmra.mrb[74].mxu1 %vm1325_vm0, %v1158_v18 }
 0x377   :  { %2451 = vmatprep.mubr.f32.mxu1 %v15970_v60 }
 0x379   :  { %v1163_v33 = vpop.f32.mrb[76].mxu0 }
 0x37a   :  { %v1165_v63 = vpop.f32.mrb[77].mxu0  ;;  %9245 = vmatmul.mubr.msk.f32.gmra.mrb[76].mxu1 %vm1325_vm0, %v1163_v33 }
 0x37b   :  { %2457 = vmatprep.mubr.f32.mxu1 %v15970_v60 }
 0x37d   :  { %v1168_v31 = vpop.f32.mrb[78].mxu0 }
 0x37e   :  { %v1170_v6 = vpop.f32.mrb[79].mxu0  ;;  %9246 = vmatmul.mubr.msk.f32.gmra.mrb[78].mxu1 %vm1325_vm0, %v1168_v31 }
 0x37f   :  { %2463 = vmatprep.mubr.f32.mxu1 %v15970_v60 }
 0x381   :  { %v1173_v35 = vpop.f32.mrb[80].mxu0 }
 0x382   :  { %v1175_v9 = vpop.f32.mrb[81].mxu0  ;;  %9247 = vmatmul.mubr.msk.f32.gmra.mrb[80].mxu1 %vm1325_vm0, %v1173_v35 }
 0x383   :  { %2469 = vmatprep.mubr.f32.mxu1 %v15970_v60 }
 0x385   :  { %v1178_v20 = vpop.f32.mrb[82].mxu0 }
 0x386   :  { %v1180_v19 = vpop.f32.mrb[83].mxu0  ;;  %9248 = vmatmul.mubr.msk.f32.gmra.mrb[82].mxu1 %vm1325_vm0, %v1178_v20 }
 0x387   :  { %2475 = vmatprep.mubr.f32.mxu1 %v15970_v60 }
 0x389   :  { %v1183_v37 = vpop.f32.mrb[84].mxu0 }
 0x38a   :  { %v1185_v36 = vpop.f32.mrb[85].mxu0  ;;  %9249 = vmatmul.mubr.msk.f32.gmra.mrb[84].mxu1 %vm1325_vm0, %v1183_v37 }
 0x38b   :  { %2481 = vmatprep.mubr.f32.mxu1 %v15970_v60 }
 0x38d   :  { %v1188_v40 = vpop.f32.mrb[86].mxu0 }
 0x38e   :  { %v1190_v8 = vpop.f32.mrb[87].mxu0  ;;  %9250 = vmatmul.mubr.msk.f32.gmra.mrb[86].mxu1 %vm1325_vm0, %v1188_v40 }
 0x38f   :  { %2487 = vmatprep.mubr.f32.mxu1 %v15970_v60 }
 0x391   :  { %v1193_v34 = vpop.f32.mrb[88].mxu0 }
 0x392   :  { %v1195_v58 = vpop.f32.mrb[89].mxu0  ;;  %9251 = vmatmul.mubr.msk.f32.gmra.mrb[88].mxu1 %vm1325_vm0, %v1193_v34 }
 0x393   :  { %2493 = vmatprep.mubr.f32.mxu1 %v15970_v60 }
 0x395   :  { %v1198_v38 = vpop.f32.mrb[90].mxu0 }
 0x396   :  { %v1200_v59 = vpop.f32.mrb[91].mxu0  ;;  %9252 = vmatmul.mubr.msk.f32.gmra.mrb[90].mxu1 %vm1325_vm0, %v1198_v38 }
 0x397   :  { %2499 = vmatprep.mubr.f32.mxu1 %v15970_v60 }
 0x399   :  { %v1203_v21 = vpop.f32.mrb[92].mxu0 }
 0x39a   :  { %v1205_v10 = vpop.f32.mrb[93].mxu0  ;;  %9253 = vmatmul.mubr.msk.f32.gmra.mrb[92].mxu1 %vm1325_vm0, %v1203_v21 }
 0x39b   :  { %2505 = vmatprep.mubr.f32.mxu1 %v15970_v60 }
 0x39d   :  { %v1208_v46 = vpop.f32.mrb[94].mxu0 }
 0x39e   :  { %v1210_v39 = vpop.f32.mrb[95].mxu0  ;;  %9254 = vmatmul.mubr.msk.f32.gmra.mrb[94].mxu1 %vm1325_vm0, %v1208_v46 }
 0x39f   :  { %2511 = vmatprep.mubr.f32.mxu1 %v15970_v60 }
 0x3a1   :  { %v1213_v49 = vpop.f32.mrb[96].mxu0 }
 0x3a2   :  { %v1215_v15 = vpop.f32.mrb[97].mxu0  ;;  %9255 = vmatmul.mubr.msk.f32.gmra.mrb[96].mxu1 %vm1325_vm0, %v1213_v49 }
 0x3a3   :  { %2517 = vmatprep.mubr.f32.mxu1 %v15970_v60 }
 0x3a5   :  { %v1218_v61 = vpop.f32.mrb[98].mxu0 }
 0x3a6   :  { %v1220_v52 = vpop.f32.mrb[99].mxu0  ;;  %9256 = vmatmul.mubr.msk.f32.gmra.mrb[98].mxu1 %vm1325_vm0, %v1218_v61 }
 0x3a7   :  { %2523 = vmatprep.mubr.f32.mxu1 %v15970_v60 }
 0x3a9   :  { %v1223_v62 = vpop.f32.mrb[100].mxu0 }
 0x3aa   :  { %v1225_v23 = vpop.f32.mrb[101].mxu0  ;;  %9257 = vmatmul.mubr.msk.f32.gmra.mrb[100].mxu1 %vm1325_vm0, %v1223_v62 }
 0x3ab   :  { %2529 = vmatprep.mubr.f32.mxu1 %v15970_v60 }
 0x3ad   :  { %v1228_v42 = vpop.f32.mrb[102].mxu0 }
 0x3ae   :  { %v1230_v16 = vpop.f32.mrb[103].mxu0  ;;  %9258 = vmatmul.mubr.msk.f32.gmra.mrb[102].mxu1 %vm1325_vm0, %v1228_v42 }
 0x3af   :  { %2535 = vmatprep.mubr.f32.mxu1 %v15970_v60 }
 0x3b1   :  { %v1233_v24 = vpop.f32.mrb[104].mxu0 }
 0x3b2   :  { %v1235_v45 = vpop.f32.mrb[105].mxu0  ;;  %9259 = vmatmul.mubr.msk.f32.gmra.mrb[104].mxu1 %vm1325_vm0, %v1233_v24 }
 0x3b3   :  { %2541 = vmatprep.mubr.f32.mxu1 %v15970_v60 }
 0x3b5   :  { %v1238_v47 = vpop.f32.mrb[106].mxu0  ;;  %v2225_v26 = vpop.f32.mrb[0].mxu1 }
 0x3b6   :  { %v12908_v43 = vadd.f32 %v12901_v28, %v2225_v26  ;;  %v1240_v7 = vpop.f32.mrb[107].mxu0  ;;  %v2227_v50 = vpop.f32.mrb[1].mxu1  ;;  %9260 = vmatmul.mubr.msk.f32.gmra.mrb[106].mxu1 %vm1325_vm0, %v1238_v47 }
 0x3b7   :  { %v12912_v48 = vadd.f32 %v12905_v11, %v2227_v50  ;;  %2547 = vmatprep.mubr.f32.mxu1 %v15970_v60 }
 0x3b8   :  { %v2748_v29 = vmax.f32 %v12908_v43, 0.0 }
 0x3b9   :  { %v2749_v27 = vmax.f32 %v12912_v48, 0.0  ;;  %v1243_v1 = vpop.f32.mrb[108].mxu0  ;;  %v2231_v53 = vpop.f32.mrb[2].mxu1 }
 0x3ba   :  { %v1245_v56 = vpop.f32.mrb[109].mxu0  ;;  %v2233_v17 = vpop.f32.mrb[3].mxu1  ;;  %9261 = vmatmul.mubr.msk.f32.gmra.mrb[108].mxu1 %vm1325_vm0, %v1243_v1  ;;  %v12919_v4 = vadd.f32 %v12901_v28, %v2231_v53 }
 0x3bb   :  { %v12922_v30 = vadd.f32 %v12905_v11, %v2233_v17  ;;  %9335 = vmatprep.mubr.msk.f32.mxu0 %vm1325_vm0, %v2749_v27  ;;  %2553 = vmatprep.mubr.f32.mxu1 %v15970_v60 }
 0x3bc   :  { %3567 = vmatmul.mubr.f32.vlgmr.msra.gmra.mrb[128].mxu0 %v2748_v29  ;;  %v2750_v55 = vmax.f32 %v12919_v4, 0.0 }
 0x3bd   :  { %v2751_v12 = vmax.f32 %v12922_v30, 0.0  ;;  %v1248_v54 = vpop.f32.mrb[110].mxu0  ;;  %v2237_v22 = vpop.f32.mrb[4].mxu1 }
 0x3be   :  { %v1250_v14 = vpop.f32.mrb[111].mxu0  ;;  %v2239_v2 = vpop.f32.mrb[5].mxu1  ;;  %9262 = vmatmul.mubr.msk.f32.gmra.mrb[110].mxu1 %vm1325_vm0, %v1248_v54  ;;  %v12934_v3 = vadd.f32 %v12901_v28, %v2237_v22 }
 0x3bf   :  { %v12937_v32 = vadd.f32 %v12905_v11, %v2239_v2  ;;  %9336 = vmatprep.mubr.msk.f32.mxu0 %vm1325_vm0, %v2751_v12  ;;  %2559 = vmatprep.mubr.f32.mxu1 %v15970_v60 }
 0x3c0   :  { %3572 = vmatmul.mubr.f32.gmra.mrb[130].mxu0 %v2750_v55  ;;  %v2752_v31 = vmax.f32 %v12934_v3, 0.0 }
 0x3c1   :  { %v2753_v51 = vmax.f32 %v12937_v32, 0.0  ;;  %v1253_v18 = vpop.f32.mrb[112].mxu0  ;;  %v2243_v57 = vpop.f32.mrb[6].mxu1 }
 0x3c2   :  { %v1255_v33 = vpop.f32.mrb[113].mxu0  ;;  %v2245_v63 = vpop.f32.mrb[7].mxu1  ;;  %9263 = vmatmul.mubr.msk.f32.gmra.mrb[112].mxu1 %vm1325_vm0, %v1253_v18  ;;  %v12949_v6 = vadd.f32 %v12901_v28, %v2243_v57 }
 0x3c3   :  { %v12952_v35 = vadd.f32 %v12905_v11, %v2245_v63  ;;  %9337 = vmatprep.mubr.msk.f32.mxu0 %vm1325_vm0, %v2753_v51  ;;  %2565 = vmatprep.mubr.f32.mxu1 %v15970_v60 }
 0x3c4   :  { %3577 = vmatmul.mubr.f32.gmra.mrb[132].mxu0 %v2752_v31  ;;  %v2754_v40 = vmax.f32 %v12949_v6, 0.0 }
 0x3c5   :  { %v2755_v9 = vmax.f32 %v12952_v35, 0.0  ;;  %v1258_v20 = vpop.f32.mrb[114].mxu0  ;;  %v2249_v19 = vpop.f32.mrb[8].mxu1 }
 0x3c6   :  { %v1260_v37 = vpop.f32.mrb[115].mxu0  ;;  %v2251_v36 = vpop.f32.mrb[9].mxu1  ;;  %9264 = vmatmul.mubr.msk.f32.gmra.mrb[114].mxu1 %vm1325_vm0, %v1258_v20  ;;  %v12964_v8 = vadd.f32 %v12901_v28, %v2249_v19 }
 0x3c7   :  { %v12967_v34 = vadd.f32 %v12905_v11, %v2251_v36  ;;  %9338 = vmatprep.mubr.msk.f32.mxu0 %vm1325_vm0, %v2755_v9  ;;  %2571 = vmatprep.mubr.f32.mxu1 %v15970_v60 }
 0x3c8   :  { %3582 = vmatmul.mubr.f32.gmra.mrb[134].mxu0 %v2754_v40  ;;  %v2756_v46 = vmax.f32 %v12964_v8, 0.0 }
 0x3c9   :  { %v2757_v58 = vmax.f32 %v12967_v34, 0.0  ;;  %v1263_v38 = vpop.f32.mrb[116].mxu0  ;;  %v2255_v59 = vpop.f32.mrb[10].mxu1 }
 0x3ca   :  { %v1265_v21 = vpop.f32.mrb[117].mxu0  ;;  %v2257_v10 = vpop.f32.mrb[11].mxu1  ;;  %9265 = vmatmul.mubr.msk.f32.gmra.mrb[116].mxu1 %vm1325_vm0, %v1263_v38  ;;  %v12979_v39 = vadd.f32 %v12901_v28, %v2255_v59 }
 0x3cb   :  { %v12982_v49 = vadd.f32 %v12905_v11, %v2257_v10  ;;  %9339 = vmatprep.mubr.msk.f32.mxu0 %vm1325_vm0, %v2757_v58  ;;  %2577 = vmatprep.mubr.f32.mxu1 %v15970_v60 }
 0x3cc   :  { %3587 = vmatmul.mubr.f32.gmra.mrb[136].mxu0 %v2756_v46  ;;  %v2758_v23 = vmax.f32 %v12979_v39, 0.0 }
 0x3cd   :  { %v2759_v15 = vmax.f32 %v12982_v49, 0.0  ;;  %v1268_v61 = vpop.f32.mrb[118].mxu0  ;;  %v2261_v52 = vpop.f32.mrb[12].mxu1 }
 0x3ce   :  { %v1270_v41 = vpop.f32.mrb[119].mxu0  ;;  %v2263_v62 = vpop.f32.mrb[13].mxu1  ;;  %9266 = vmatmul.mubr.msk.f32.gmra.mrb[118].mxu1 %vm1325_vm0, %v1268_v61  ;;  %v12994_v13 = vadd.f32 %v12901_v28, %v2261_v52 }
 0x3cf   :  { %v12997_v42 = vadd.f32 %v12905_v11, %v2263_v62  ;;  %9340 = vmatprep.mubr.msk.f32.mxu0 %vm1325_vm0, %v2759_v15  ;;  %2583 = vmatprep.mubr.f32.mxu1 %v15970_v60 }
 0x3d0   :  { %3592 = vmatmul.mubr.f32.gmra.mrb[138].mxu0 %v2758_v23  ;;  %v2760_v26 = vmax.f32 %v12994_v13, 0.0 }
 0x3d1   :  { %v2761_v16 = vmax.f32 %v12997_v42, 0.0  ;;  %v1273_v25 = vpop.f32.mrb[120].mxu0  ;;  %v2267_v24 = vpop.f32.mrb[14].mxu1 }
 0x3d2   :  { %v1275_v45 = vpop.f32.mrb[121].mxu0  ;;  %v2269_v47 = vpop.f32.mrb[15].mxu1  ;;  %9267 = vmatmul.mubr.msk.f32.gmra.mrb[120].mxu1 %vm1325_vm0, %v1273_v25  ;;  %v13009_v7 = vadd.f32 %v12901_v28, %v2267_v24 }
 0x3d3   :  { %v13012_v50 = vadd.f32 %v12905_v11, %v2269_v47  ;;  %9341 = vmatprep.mubr.msk.f32.mxu0 %vm1325_vm0, %v2761_v16  ;;  %2589 = vmatprep.mubr.f32.mxu1 %v15970_v60 }
 0x3d4   :  { %3597 = vmatmul.mubr.f32.gmra.mrb[140].mxu0 %v2760_v26  ;;  %v2762_v22 = vmax.f32 %v13009_v7, 0.0 }
 0x3d5   :  { %v2763_v1 = vmax.f32 %v13012_v50, 0.0  ;;  %v1278_v53 = vpop.f32.mrb[122].mxu0  ;;  %v2273_v56 = vpop.f32.mrb[16].mxu1 }
 0x3d6   :  { %v1280_v17 = vpop.f32.mrb[123].mxu0  ;;  %v2275_v54 = vpop.f32.mrb[17].mxu1  ;;  %9268 = vmatmul.mubr.msk.f32.gmra.mrb[122].mxu1 %vm1325_vm0, %v1278_v53  ;;  %v13024_v14 = vadd.f32 %v12901_v28, %v2273_v56 }
 0x3d7   :  { %v13027_v2 = vadd.f32 %v12905_v11, %v2275_v54  ;;  %9342 = vmatprep.mubr.msk.f32.mxu0 %vm1325_vm0, %v2763_v1  ;;  %2595 = vmatprep.mubr.f32.mxu1 %v15970_v60 }
 0x3d8   :  { %3602 = vmatmul.mubr.f32.gmra.mrb[142].mxu0 %v2762_v22  ;;  %v2764_v19 = vmax.f32 %v13024_v14, 0.0 }
 0x3d9   :  { %v2765_v18 = vmax.f32 %v13027_v2, 0.0  ;;  %v1283_v57 = vpop.f32.mrb[124].mxu0  ;;  %v2279_v33 = vpop.f32.mrb[18].mxu1 }
 0x3da   :  { %v1285_v63 = vpop.f32.mrb[125].mxu0  ;;  %v2281_v20 = vpop.f32.mrb[19].mxu1  ;;  %9269 = vmatmul.mubr.msk.f32.gmra.mrb[124].mxu1 %vm1325_vm0, %v1283_v57  ;;  %v13039_v37 = vadd.f32 %v12901_v28, %v2279_v33 }
 0x3db   :  { %v13042_v36 = vadd.f32 %v12905_v11, %v2281_v20  ;;  %9343 = vmatprep.mubr.msk.f32.mxu0 %vm1325_vm0, %v2765_v18  ;;  %2601 = vmatprep.mubr.f32.mxu1 %v15970_v60 }
 0x3dc   :  { %3607 = vmatmul.mubr.f32.gmra.mrb[144].mxu0 %v2764_v19  ;;  %v2766_v52 = vmax.f32 %v13039_v37, 0.0 }
 0x3dd   :  { %v2767_v38 = vmax.f32 %v13042_v36, 0.0  ;;  %v1288_v59 = vpop.f32.mrb[126].mxu0  ;;  %v2285_v21 = vpop.f32.mrb[20].mxu1 }
 0x3de   :  { %v1290_v10 = vpop.f32.mrb[127].mxu0  ;;  %v2287_v61 = vpop.f32.mrb[21].mxu1  ;;  %9270 = vmatmul.mubr.msk.f32.gmra.mrb[126].mxu1 %vm1325_vm0, %v1288_v59  ;;  %v13054_v41 = vadd.f32 %v12901_v28, %v2285_v21 }
 0x3df   :  { %v13057_v62 = vadd.f32 %v12905_v11, %v2287_v61  ;;  %9271 = vmatprep.mubr.msk.f32.mxu1 %vm1325_vm0, %v2749_v27  ;;  %9344 = vmatprep.mubr.msk.f32.mxu0 %vm1325_vm0, %v2767_v38 }
 0x3e0   :  { %3612 = vmatmul.mubr.f32.gmra.mrb[146].mxu0 %v2766_v52  ;;  %v2768_v47 = vmax.f32 %v13054_v41, 0.0 }
 0x3e1   :  { %v2769_v25 = vmax.f32 %v13057_v62, 0.0  ;;  %v2291_v24 = vpop.f32.mrb[22].mxu1 }
 0x3e2   :  { %v2293_v45 = vpop.f32.mrb[23].mxu1  ;;  %3157 = vmatmul.mubr.f32.vlgmr.msra.gmra.mrb[128].mxu1 %v2748_v29  ;;  %v13072_v48 = vadd.f32 %v12901_v28, %v2291_v24 }
 0x3e3   :  { %v13075_v27 = vadd.f32 %v12905_v11, %v2293_v45  ;;  %9272 = vmatprep.mubr.msk.f32.mxu1 %vm1325_vm0, %v2751_v12  ;;  %9345 = vmatprep.mubr.msk.f32.mxu0 %vm1325_vm0, %v2769_v25 }
 0x3e4   :  { %3617 = vmatmul.mubr.f32.gmra.mrb[148].mxu0 %v2768_v47  ;;  %v2770_v56 = vmax.f32 %v13072_v48, 0.0 }
 0x3e5   :  { %v2771_v43 = vmax.f32 %v13075_v27, 0.0  ;;  %v2297_v29 = vpop.f32.mrb[24].mxu1 }
 0x3e6   :  { %v2299_v53 = vpop.f32.mrb[25].mxu1  ;;  %3162 = vmatmul.mubr.f32.gmra.mrb[130].mxu1 %v2750_v55  ;;  %v13090_v30 = vadd.f32 %v12901_v28, %v2297_v29 }
 0x3e7   :  { %v13093_v12 = vadd.f32 %v12905_v11, %v2299_v53  ;;  %9273 = vmatprep.mubr.msk.f32.mxu1 %vm1325_vm0, %v2753_v51  ;;  %9346 = vmatprep.mubr.msk.f32.mxu0 %vm1325_vm0, %v2771_v43 }
 0x3e8   :  { %3622 = vmatmul.mubr.f32.gmra.mrb[150].mxu0 %v2770_v56  ;;  %v2772_v54 = vmax.f32 %v13090_v30, 0.0 }
 0x3e9   :  { %v2773_v4 = vmax.f32 %v13093_v12, 0.0  ;;  %v2303_v55 = vpop.f32.mrb[26].mxu1 }
 0x3ea   :  { %v2305_v17 = vpop.f32.mrb[27].mxu1  ;;  %3167 = vmatmul.mubr.f32.gmra.mrb[132].mxu1 %v2752_v31  ;;  %v13108_v32 = vadd.f32 %v12901_v28, %v2303_v55 }
 0x3eb   :  { %v13111_v51 = vadd.f32 %v12905_v11, %v2305_v17  ;;  %9274 = vmatprep.mubr.msk.f32.mxu1 %vm1325_vm0, %v2755_v9  ;;  %9347 = vmatprep.mubr.msk.f32.mxu0 %vm1325_vm0, %v2773_v4 }
 0x3ec   :  { %3627 = vmatmul.mubr.f32.gmra.mrb[152].mxu0 %v2772_v54  ;;  %v2774_v33 = vmax.f32 %v13108_v32, 0.0 }
 0x3ed   :  { %v2775_v3 = vmax.f32 %v13111_v51, 0.0  ;;  %v2309_v31 = vpop.f32.mrb[28].mxu1 }
 0x3ee   :  { %v2311_v57 = vpop.f32.mrb[29].mxu1  ;;  %3172 = vmatmul.mubr.f32.gmra.mrb[134].mxu1 %v2754_v40  ;;  %v13126_v35 = vadd.f32 %v12901_v28, %v2309_v31 }
 0x3ef   :  { %v13129_v9 = vadd.f32 %v12905_v11, %v2311_v57  ;;  %9275 = vmatprep.mubr.msk.f32.mxu1 %vm1325_vm0, %v2757_v58  ;;  %9348 = vmatprep.mubr.msk.f32.mxu0 %vm1325_vm0, %v2775_v3 }
 0x3f0   :  { %3632 = vmatmul.mubr.f32.gmra.mrb[154].mxu0 %v2774_v33  ;;  %v2776_v20 = vmax.f32 %v13126_v35, 0.0 }
 0x3f1   :  { %v2777_v6 = vmax.f32 %v13129_v9, 0.0  ;;  %v2315_v40 = vpop.f32.mrb[30].mxu1 }
 0x3f2   :  { %v2317_v63 = vpop.f32.mrb[31].mxu1  ;;  %3177 = vmatmul.mubr.f32.gmra.mrb[136].mxu1 %v2756_v46  ;;  %v13144_v34 = vadd.f32 %v12901_v28, %v2315_v40 }
 0x3f3   :  { %v13147_v58 = vadd.f32 %v12905_v11, %v2317_v63  ;;  %9276 = vmatprep.mubr.msk.f32.mxu1 %vm1325_vm0, %v2759_v15  ;;  %9349 = vmatprep.mubr.msk.f32.mxu0 %vm1325_vm0, %v2777_v6 }
 0x3f4   :  { %3637 = vmatmul.mubr.f32.gmra.mrb[156].mxu0 %v2776_v20  ;;  %v2778_v21 = vmax.f32 %v13144_v34, 0.0 }
 0x3f5   :  { %v2779_v8 = vmax.f32 %v13147_v58, 0.0  ;;  %v2321_v46 = vpop.f32.mrb[32].mxu1 }
 0x3f6   :  { %v2323_v59 = vpop.f32.mrb[33].mxu1  ;;  %3182 = vmatmul.mubr.f32.gmra.mrb[138].mxu1 %v2758_v23  ;;  %v13162_v49 = vadd.f32 %v12901_v28, %v2321_v46 }
 0x3f7   :  { %v13165_v15 = vadd.f32 %v12905_v11, %v2323_v59  ;;  %9277 = vmatprep.mubr.msk.f32.mxu1 %vm1325_vm0, %v2761_v16  ;;  %9350 = vmatprep.mubr.msk.f32.mxu0 %vm1325_vm0, %v2779_v8 }
 0x3f8   :  { %3642 = vmatmul.mubr.f32.gmra.mrb[158].mxu0 %v2778_v21  ;;  %v2780_v61 = vmax.f32 %v13162_v49, 0.0 }
 0x3f9   :  { %v2781_v39 = vmax.f32 %v13165_v15, 0.0  ;;  %v2327_v23 = vpop.f32.mrb[34].mxu1 }
 0x3fa   :  { %v2329_v10 = vpop.f32.mrb[35].mxu1  ;;  %3187 = vmatmul.mubr.f32.gmra.mrb[140].mxu1 %v2760_v26  ;;  %v13180_v42 = vadd.f32 %v12901_v28, %v2327_v23 }
 0x3fb   :  { %v13183_v16 = vadd.f32 %v12905_v11, %v2329_v10  ;;  %9278 = vmatprep.mubr.msk.f32.mxu1 %vm1325_vm0, %v2763_v1  ;;  %9351 = vmatprep.mubr.msk.f32.mxu0 %vm1325_vm0, %v2781_v39 }
 0x3fc   :  { %3647 = vmatmul.mubr.f32.gmra.mrb[160].mxu0 %v2780_v61  ;;  %v2782_v45 = vmax.f32 %v13180_v42, 0.0 }
 0x3fd   :  { %v2783_v13 = vmax.f32 %v13183_v16, 0.0  ;;  %v2333_v26 = vpop.f32.mrb[36].mxu1 }
 0x3fe   :  { %v2335_v24 = vpop.f32.mrb[37].mxu1  ;;  %3192 = vmatmul.mubr.f32.gmra.mrb[142].mxu1 %v2762_v22  ;;  %v13198_v50 = vadd.f32 %v12901_v28, %v2333_v26 }
 0x3ff   :  { %v13201_v1 = vadd.f32 %v12905_v11, %v2335_v24  ;;  %9279 = vmatprep.mubr.msk.f32.mxu1 %vm1325_vm0, %v2765_v18  ;;  %9352 = vmatprep.mubr.msk.f32.mxu0 %vm1325_vm0, %v2783_v13 }
 0x400   :  { %3652 = vmatmul.mubr.f32.gmra.mrb[162].mxu0 %v2782_v45  ;;  %v2784_v53 = vmax.f32 %v13198_v50, 0.0 }
 0x401   :  { %v2785_v7 = vmax.f32 %v13201_v1, 0.0  ;;  %v2339_v22 = vpop.f32.mrb[38].mxu1 }
 0x402   :  { %v2341_v29 = vpop.f32.mrb[39].mxu1  ;;  %3197 = vmatmul.mubr.f32.gmra.mrb[144].mxu1 %v2764_v19  ;;  %v13216_v2 = vadd.f32 %v12901_v28, %v2339_v22 }
 0x403   :  { %v13219_v18 = vadd.f32 %v12905_v11, %v2341_v29  ;;  %9280 = vmatprep.mubr.msk.f32.mxu1 %vm1325_vm0, %v2767_v38  ;;  %9353 = vmatprep.mubr.msk.f32.mxu0 %vm1325_vm0, %v2785_v7 }
 0x404   :  { %3657 = vmatmul.mubr.f32.gmra.mrb[164].mxu0 %v2784_v53  ;;  %v2786_v17 = vmax.f32 %v13216_v2, 0.0 }
 0x405   :  { %v2787_v14 = vmax.f32 %v13219_v18, 0.0  ;;  %v2345_v19 = vpop.f32.mrb[40].mxu1 }
 0x406   :  { %v2347_v55 = vpop.f32.mrb[41].mxu1  ;;  %3202 = vmatmul.mubr.f32.gmra.mrb[146].mxu1 %v2766_v52  ;;  %v13234_v36 = vadd.f32 %v12901_v28, %v2345_v19 }
 0x407   :  { %v13237_v38 = vadd.f32 %v12905_v11, %v2347_v55  ;;  %9281 = vmatprep.mubr.msk.f32.mxu1 %vm1325_vm0, %v2769_v25  ;;  %9354 = vmatprep.mubr.msk.f32.mxu0 %vm1325_vm0, %v2787_v14 }
 0x408   :  { %3662 = vmatmul.mubr.f32.gmra.mrb[166].mxu0 %v2786_v17  ;;  %v2788_v57 = vmax.f32 %v13234_v36, 0.0 }
 0x409   :  { %v2789_v37 = vmax.f32 %v13237_v38, 0.0  ;;  %v2351_v52 = vpop.f32.mrb[42].mxu1 }
 0x40a   :  { %v2353_v31 = vpop.f32.mrb[43].mxu1  ;;  %3207 = vmatmul.mubr.f32.gmra.mrb[148].mxu1 %v2768_v47  ;;  %v13252_v62 = vadd.f32 %v12901_v28, %v2351_v52 }
 0x40b   :  { %v13255_v25 = vadd.f32 %v12905_v11, %v2353_v31  ;;  %9282 = vmatprep.mubr.msk.f32.mxu1 %vm1325_vm0, %v2771_v43  ;;  %9355 = vmatprep.mubr.msk.f32.mxu0 %vm1325_vm0, %v2789_v37 }
 0x40c   :  { %3667 = vmatmul.mubr.f32.gmra.mrb[168].mxu0 %v2788_v57  ;;  %v2790_v63 = vmax.f32 %v13252_v62, 0.0 }
 0x40d   :  { %v2791_v41 = vmax.f32 %v13255_v25, 0.0  ;;  %v2357_v47 = vpop.f32.mrb[44].mxu1 }
 0x40e   :  { %v2359_v40 = vpop.f32.mrb[45].mxu1  ;;  %3212 = vmatmul.mubr.f32.gmra.mrb[150].mxu1 %v2770_v56  ;;  %v13270_v27 = vadd.f32 %v12901_v28, %v2357_v47 }
 0x40f   :  { %v13273_v43 = vadd.f32 %v12905_v11, %v2359_v40  ;;  %9283 = vmatprep.mubr.msk.f32.mxu1 %vm1325_vm0, %v2773_v4  ;;  %9356 = vmatprep.mubr.msk.f32.mxu0 %vm1325_vm0, %v2791_v41 }
 0x410   :  { %3672 = vmatmul.mubr.f32.gmra.mrb[170].mxu0 %v2790_v63  ;;  %v2792_v59 = vmax.f32 %v13270_v27, 0.0 }
 0x411   :  { %v2793_v48 = vmax.f32 %v13273_v43, 0.0  ;;  %v2363_v56 = vpop.f32.mrb[46].mxu1 }
 0x412   :  { %v2365_v46 = vpop.f32.mrb[47].mxu1  ;;  %3217 = vmatmul.mubr.f32.gmra.mrb[152].mxu1 %v2772_v54  ;;  %v13288_v12 = vadd.f32 %v12901_v28, %v2363_v56 }
 0x413   :  { %v13291_v4 = vadd.f32 %v12905_v11, %v2365_v46  ;;  %9284 = vmatprep.mubr.msk.f32.mxu1 %vm1325_vm0, %v2775_v3  ;;  %9357 = vmatprep.mubr.msk.f32.mxu0 %vm1325_vm0, %v2793_v48 }
 0x414   :  { %3677 = vmatmul.mubr.f32.gmra.mrb[172].mxu0 %v2792_v59  ;;  %v2794_v10 = vmax.f32 %v13288_v12, 0.0 }
 0x415   :  { %v2795_v30 = vmax.f32 %v13291_v4, 0.0  ;;  %v2369_v54 = vpop.f32.mrb[48].mxu1 }
 0x416   :  { %v2371_v23 = vpop.f32.mrb[49].mxu1  ;;  %3222 = vmatmul.mubr.f32.gmra.mrb[154].mxu1 %v2774_v33  ;;  %v13306_v51 = vadd.f32 %v12901_v28, %v2369_v54 }
 0x417   :  { %v13309_v3 = vadd.f32 %v12905_v11, %v2371_v23  ;;  %9285 = vmatprep.mubr.msk.f32.mxu1 %vm1325_vm0, %v2777_v6  ;;  %9358 = vmatprep.mubr.msk.f32.mxu0 %vm1325_vm0, %v2795_v30 }
 0x418   :  { %3682 = vmatmul.mubr.f32.gmra.mrb[174].mxu0 %v2794_v10  ;;  %v2796_v24 = vmax.f32 %v13306_v51, 0.0 }
 0x419   :  { %v2797_v32 = vmax.f32 %v13309_v3, 0.0  ;;  %v2375_v33 = vpop.f32.mrb[50].mxu1 }
 0x41a   :  { %v2377_v26 = vpop.f32.mrb[51].mxu1  ;;  %3227 = vmatmul.mubr.f32.gmra.mrb[156].mxu1 %v2776_v20  ;;  %v13324_v9 = vadd.f32 %v12901_v28, %v2375_v33 }
 0x41b   :  { %v13327_v6 = vadd.f32 %v12905_v11, %v2377_v26  ;;  %9286 = vmatprep.mubr.msk.f32.mxu1 %vm1325_vm0, %v2779_v8  ;;  %9359 = vmatprep.mubr.msk.f32.mxu0 %vm1325_vm0, %v2797_v32 }
 0x41c   :  { %3687 = vmatmul.mubr.f32.gmra.mrb[176].mxu0 %v2796_v24  ;;  %v2798_v29 = vmax.f32 %v13324_v9, 0.0 }
 0x41d   :  { %v2799_v35 = vmax.f32 %v13327_v6, 0.0  ;;  %v2381_v20 = vpop.f32.mrb[52].mxu1 }
 0x41e   :  { %v2383_v22 = vpop.f32.mrb[53].mxu1  ;;  %3232 = vmatmul.mubr.f32.gmra.mrb[158].mxu1 %v2778_v21  ;;  %v13342_v58 = vadd.f32 %v12901_v28, %v2381_v20 }
 0x41f   :  { %v13345_v8 = vadd.f32 %v12905_v11, %v2383_v22  ;;  %9287 = vmatprep.mubr.msk.f32.mxu1 %vm1325_vm0, %v2781_v39  ;;  %9360 = vmatprep.mubr.msk.f32.mxu0 %vm1325_vm0, %v2799_v35 }
 0x420   :  { %3692 = vmatmul.mubr.f32.gmra.mrb[178].mxu0 %v2798_v29  ;;  %v2800_v55 = vmax.f32 %v13342_v58, 0.0 }
 0x421   :  { %v2801_v34 = vmax.f32 %v13345_v8, 0.0  ;;  %v2387_v21 = vpop.f32.mrb[54].mxu1 }
 0x422   :  { %v2389_v19 = vpop.f32.mrb[55].mxu1  ;;  %3237 = vmatmul.mubr.f32.gmra.mrb[160].mxu1 %v2780_v61  ;;  %v13360_v15 = vadd.f32 %v12901_v28, %v2387_v21 }
 0x423   :  { %v13363_v39 = vadd.f32 %v12905_v11, %v2389_v19  ;;  %9288 = vmatprep.mubr.msk.f32.mxu1 %vm1325_vm0, %v2783_v13  ;;  %9361 = vmatprep.mubr.msk.f32.mxu0 %vm1325_vm0, %v2801_v34 }
 0x424   :  { %3697 = vmatmul.mubr.f32.gmra.mrb[180].mxu0 %v2800_v55  ;;  %v2802_v31 = vmax.f32 %v13360_v15, 0.0 }
 0x425   :  { %v2803_v49 = vmax.f32 %v13363_v39, 0.0  ;;  %v2393_v61 = vpop.f32.mrb[56].mxu1 }
 0x426   :  { %v2395_v52 = vpop.f32.mrb[57].mxu1  ;;  %3242 = vmatmul.mubr.f32.gmra.mrb[162].mxu1 %v2782_v45  ;;  %v13378_v16 = vadd.f32 %v12901_v28, %v2393_v61 }
 0x427   :  { %v13381_v13 = vadd.f32 %v12905_v11, %v2395_v52  ;;  %9289 = vmatprep.mubr.msk.f32.mxu1 %vm1325_vm0, %v2785_v7  ;;  %9362 = vmatprep.mubr.msk.f32.mxu0 %vm1325_vm0, %v2803_v49 }
 0x428   :  { %3702 = vmatmul.mubr.f32.gmra.mrb[182].mxu0 %v2802_v31  ;;  %v2804_v40 = vmax.f32 %v13378_v16, 0.0 }
 0x429   :  { %v2805_v42 = vmax.f32 %v13381_v13, 0.0  ;;  %v2399_v45 = vpop.f32.mrb[58].mxu1 }
 0x42a   :  { %v2401_v47 = vpop.f32.mrb[59].mxu1  ;;  %3247 = vmatmul.mubr.f32.gmra.mrb[164].mxu1 %v2784_v53  ;;  %v13396_v1 = vadd.f32 %v12901_v28, %v2399_v45 }
 0x42b   :  { %v13399_v7 = vadd.f32 %v12905_v11, %v2401_v47  ;;  %9290 = vmatprep.mubr.msk.f32.mxu1 %vm1325_vm0, %v2787_v14  ;;  %9363 = vmatprep.mubr.msk.f32.mxu0 %vm1325_vm0, %v2805_v42 }
 0x42c   :  { %3707 = vmatmul.mubr.f32.gmra.mrb[184].mxu0 %v2804_v40  ;;  %v2806_v46 = vmax.f32 %v13396_v1, 0.0 }
 0x42d   :  { %v2807_v50 = vmax.f32 %v13399_v7, 0.0  ;;  %v2405_v53 = vpop.f32.mrb[60].mxu1 }
 0x42e   :  { %v2407_v56 = vpop.f32.mrb[61].mxu1  ;;  %3252 = vmatmul.mubr.f32.gmra.mrb[166].mxu1 %v2786_v17  ;;  %v13414_v18 = vadd.f32 %v12901_v28, %v2405_v53 }
 0x42f   :  { %v13417_v14 = vadd.f32 %v12905_v11, %v2407_v56  ;;  %9291 = vmatprep.mubr.msk.f32.mxu1 %vm1325_vm0, %v2789_v37  ;;  %9364 = vmatprep.mubr.msk.f32.mxu0 %vm1325_vm0, %v2807_v50 }
 0x430   :  { %3712 = vmatmul.mubr.f32.gmra.mrb[186].mxu0 %v2806_v46  ;;  %v2808_v23 = vmax.f32 %v13414_v18, 0.0 }
 0x431   :  { %v2809_v2 = vmax.f32 %v13417_v14, 0.0  ;;  %v2411_v17 = vpop.f32.mrb[62].mxu1 }
 0x432   :  { %v2413_v54 = vpop.f32.mrb[63].mxu1  ;;  %3257 = vmatmul.mubr.f32.gmra.mrb[168].mxu1 %v2788_v57  ;;  %v13432_v38 = vadd.f32 %v12901_v28, %v2411_v17 }
 0x433   :  { %v13435_v37 = vadd.f32 %v12905_v11, %v2413_v54  ;;  %9292 = vmatprep.mubr.msk.f32.mxu1 %vm1325_vm0, %v2791_v41  ;;  %9365 = vmatprep.mubr.msk.f32.mxu0 %vm1325_vm0, %v2809_v2 }
 0x434   :  { %3717 = vmatmul.mubr.f32.gmra.mrb[188].mxu0 %v2808_v23  ;;  %v2810_v25 = vmax.f32 %v13432_v38, 0.0 }
 0x435   :  { %v2811_v36 = vmax.f32 %v13435_v37, 0.0  ;;  %v2417_v57 = vpop.f32.mrb[64].mxu1 }
 0x436   :  { %v13447_v33 = vadd.f32 %v12901_v28, %v2417_v57  ;;  %v2419_v26 = vpop.f32.mrb[65].mxu1  ;;  %3262 = vmatmul.mubr.f32.gmra.mrb[170].mxu1 %v2790_v63 }
 0x437   :  { %v13453_v41 = vadd.f32 %v12905_v11, %v2419_v26  ;;  %9293 = vmatprep.mubr.msk.f32.mxu1 %vm1325_vm0, %v2793_v48  ;;  %9366 = vmatprep.mubr.msk.f32.mxu0 %vm1325_vm0, %v2811_v36 }
 0x438   :  { %3722 = vmatmul.mubr.f32.gmra.mrb[190].mxu0 %v2810_v25  ;;  %v2812_v43 = vmax.f32 %v13447_v33, 0.0 }
 0x439   :  { %v2813_v20 = vmax.f32 %v13453_v41, 0.0  ;;  %v2423_v62 = vpop.f32.mrb[66].mxu1 }
 0x43a   :  { %v13465_v63 = vadd.f32 %v12901_v28, %v2423_v62  ;;  %v2425_v22 = vpop.f32.mrb[67].mxu1  ;;  %3267 = vmatmul.mubr.f32.gmra.mrb[172].mxu1 %v2792_v59 }
 0x43b   :  { %v13471_v48 = vadd.f32 %v12905_v11, %v2425_v22  ;;  %9294 = vmatprep.mubr.msk.f32.mxu1 %vm1325_vm0, %v2795_v30  ;;  %9367 = vmatprep.mubr.msk.f32.mxu0 %vm1325_vm0, %v2813_v20 }
 0x43c   :  { %3727 = vmatmul.mubr.f32.gmra.mrb[192].mxu0 %v2812_v43  ;;  %v2814_v4 = vmax.f32 %v13465_v63, 0.0 }
 0x43d   :  { %v2815_v21 = vmax.f32 %v13471_v48, 0.0  ;;  %v2429_v27 = vpop.f32.mrb[68].mxu1 }
 0x43e   :  { %v13483_v59 = vadd.f32 %v12901_v28, %v2429_v27  ;;  %v2431_v19 = vpop.f32.mrb[69].mxu1  ;;  %3272 = vmatmul.mubr.f32.gmra.mrb[174].mxu1 %v2794_v10 }
 0x43f   :  { %v13489_v30 = vadd.f32 %v12905_v11, %v2431_v19  ;;  %9295 = vmatprep.mubr.msk.f32.mxu1 %vm1325_vm0, %v2797_v32  ;;  %9368 = vmatprep.mubr.msk.f32.mxu0 %vm1325_vm0, %v2815_v21 }
 0x440   :  { %3732 = vmatmul.mubr.f32.gmra.mrb[194].mxu0 %v2814_v4  ;;  %v2816_v3 = vmax.f32 %v13483_v59, 0.0 }
 0x441   :  { %v2817_v61 = vmax.f32 %v13489_v30, 0.0  ;;  %v2435_v12 = vpop.f32.mrb[70].mxu1 }
 0x442   :  { %v13501_v10 = vadd.f32 %v12901_v28, %v2435_v12  ;;  %v2437_v52 = vpop.f32.mrb[71].mxu1  ;;  %3277 = vmatmul.mubr.f32.gmra.mrb[176].mxu1 %v2796_v24 }
 0x443   :  { %v13507_v32 = vadd.f32 %v12905_v11, %v2437_v52  ;;  %9296 = vmatprep.mubr.msk.f32.mxu1 %vm1325_vm0, %v2799_v35  ;;  %9369 = vmatprep.mubr.msk.f32.mxu0 %vm1325_vm0, %v2817_v61 }
 0x444   :  { %3737 = vmatmul.mubr.f32.gmra.mrb[196].mxu0 %v2816_v3  ;;  %v2818_v6 = vmax.f32 %v13501_v10, 0.0 }
 0x445   :  { %v2819_v45 = vmax.f32 %v13507_v32, 0.0  ;;  %v2441_v51 = vpop.f32.mrb[72].mxu1 }
 0x446   :  { %v13519_v24 = vadd.f32 %v12901_v28, %v2441_v51  ;;  %v2443_v47 = vpop.f32.mrb[73].mxu1  ;;  %3282 = vmatmul.mubr.f32.gmra.mrb[178].mxu1 %v2798_v29 }
 0x447   :  { %v13525_v35 = vadd.f32 %v12905_v11, %v2443_v47  ;;  %9297 = vmatprep.mubr.msk.f32.mxu1 %vm1325_vm0, %v2801_v34  ;;  %9370 = vmatprep.mubr.msk.f32.mxu0 %vm1325_vm0, %v2819_v45 }
 0x448   :  { %3742 = vmatmul.mubr.f32.gmra.mrb[198].mxu0 %v2818_v6  ;;  %v2820_v8 = vmax.f32 %v13519_v24, 0.0 }
 0x449   :  { %v2821_v53 = vmax.f32 %v13525_v35, 0.0  ;;  %v2447_v9 = vpop.f32.mrb[74].mxu1 }
 0x44a   :  { %v13537_v29 = vadd.f32 %v12901_v28, %v2447_v9  ;;  %v2449_v56 = vpop.f32.mrb[75].mxu1  ;;  %3287 = vmatmul.mubr.f32.gmra.mrb[180].mxu1 %v2800_v55 }
 0x44b   :  { %v13543_v34 = vadd.f32 %v12905_v11, %v2449_v56  ;;  %9298 = vmatprep.mubr.msk.f32.mxu1 %vm1325_vm0, %v2803_v49  ;;  %9371 = vmatprep.mubr.msk.f32.mxu0 %vm1325_vm0, %v2821_v53 }
 0x44c   :  { %3747 = vmatmul.mubr.f32.gmra.mrb[200].mxu0 %v2820_v8  ;;  %v2822_v39 = vmax.f32 %v13537_v29, 0.0 }
 0x44d   :  { %v2823_v17 = vmax.f32 %v13543_v34, 0.0  ;;  %v2453_v58 = vpop.f32.mrb[76].mxu1 }
 0x44e   :  { %v13555_v55 = vadd.f32 %v12901_v28, %v2453_v58  ;;  %v2455_v54 = vpop.f32.mrb[77].mxu1  ;;  %3292 = vmatmul.mubr.f32.gmra.mrb[182].mxu1 %v2802_v31 }
 0x44f   :  { %v13561_v49 = vadd.f32 %v12905_v11, %v2455_v54  ;;  %9299 = vmatprep.mubr.msk.f32.mxu1 %vm1325_vm0, %v2805_v42  ;;  %9372 = vmatprep.mubr.msk.f32.mxu0 %vm1325_vm0, %v2823_v17 }
 0x450   :  { %3752 = vmatmul.mubr.f32.gmra.mrb[202].mxu0 %v2822_v39  ;;  %v2824_v13 = vmax.f32 %v13555_v55, 0.0 }
 0x451   :  { %v2825_v57 = vmax.f32 %v13561_v49, 0.0  ;;  %v2459_v15 = vpop.f32.mrb[78].mxu1 }
 0x452   :  { %v13573_v31 = vadd.f32 %v12901_v28, %v2459_v15  ;;  %v2461_v26 = vpop.f32.mrb[79].mxu1  ;;  %3297 = vmatmul.mubr.f32.gmra.mrb[184].mxu1 %v2804_v40 }
 0x453   :  { %v13579_v42 = vadd.f32 %v12905_v11, %v2461_v26  ;;  %9300 = vmatprep.mubr.msk.f32.mxu1 %vm1325_vm0, %v2807_v50  ;;  %9373 = vmatprep.mubr.msk.f32.mxu0 %vm1325_vm0, %v2825_v57 }
 0x454   :  { %3757 = vmatmul.mubr.f32.gmra.mrb[204].mxu0 %v2824_v13  ;;  %v2826_v7 = vmax.f32 %v13573_v31, 0.0 }
 0x455   :  { %v2827_v62 = vmax.f32 %v13579_v42, 0.0  ;;  %v2465_v16 = vpop.f32.mrb[80].mxu1 }
 0x456   :  { %v13591_v40 = vadd.f32 %v12901_v28, %v2465_v16  ;;  %v2467_v22 = vpop.f32.mrb[81].mxu1  ;;  %3302 = vmatmul.mubr.f32.gmra.mrb[186].mxu1 %v2806_v46 }
 0x457   :  { %v13597_v50 = vadd.f32 %v12905_v11, %v2467_v22  ;;  %9301 = vmatprep.mubr.msk.f32.mxu1 %vm1325_vm0, %v2809_v2  ;;  %9374 = vmatprep.mubr.msk.f32.mxu0 %vm1325_vm0, %v2827_v62 }
 0x458   :  { %3762 = vmatmul.mubr.f32.gmra.mrb[206].mxu0 %v2826_v7  ;;  %v2828_v14 = vmax.f32 %v13591_v40, 0.0 }
 0x459   :  { %v2829_v27 = vmax.f32 %v13597_v50, 0.0  ;;  %v2471_v1 = vpop.f32.mrb[82].mxu1 }
 0x45a   :  { %v13609_v46 = vadd.f32 %v12901_v28, %v2471_v1  ;;  %v2473_v19 = vpop.f32.mrb[83].mxu1  ;;  %3307 = vmatmul.mubr.f32.gmra.mrb[188].mxu1 %v2808_v23 }
 0x45b   :  { %v13615_v2 = vadd.f32 %v12905_v11, %v2473_v19  ;;  %9302 = vmatprep.mubr.msk.f32.mxu1 %vm1325_vm0, %v2811_v36  ;;  %9375 = vmatprep.mubr.msk.f32.mxu0 %vm1325_vm0, %v2829_v27 }
 0x45c   :  { %3767 = vmatmul.mubr.f32.gmra.mrb[208].mxu0 %v2828_v14  ;;  %v2830_v37 = vmax.f32 %v13609_v46, 0.0 }
 0x45d   :  { %v2831_v12 = vmax.f32 %v13615_v2, 0.0  ;;  %v2477_v18 = vpop.f32.mrb[84].mxu1 }
 0x45e   :  { %v13627_v23 = vadd.f32 %v12901_v28, %v2477_v18  ;;  %v2479_v52 = vpop.f32.mrb[85].mxu1  ;;  %3312 = vmatmul.mubr.f32.gmra.mrb[190].mxu1 %v2810_v25 }
 0x45f   :  { %v13633_v36 = vadd.f32 %v12905_v11, %v2479_v52  ;;  %9303 = vmatprep.mubr.msk.f32.mxu1 %vm1325_vm0, %v2813_v20  ;;  %9376 = vmatprep.mubr.msk.f32.mxu0 %vm1325_vm0, %v2831_v12 }
 0x460   :  { %3772 = vmatmul.mubr.f32.gmra.mrb[210].mxu0 %v2830_v37  ;;  %v2832_v41 = vmax.f32 %v13627_v23, 0.0 }
 0x461   :  { %v2833_v51 = vmax.f32 %v13633_v36, 0.0  ;;  %v2483_v38 = vpop.f32.mrb[86].mxu1 }
 0x462   :  { %v13645_v25 = vadd.f32 %v12901_v28, %v2483_v38  ;;  %v2485_v47 = vpop.f32.mrb[87].mxu1  ;;  %3317 = vmatmul.mubr.f32.gmra.mrb[192].mxu1 %v2812_v43 }
 0x463   :  { %v13651_v20 = vadd.f32 %v12905_v11, %v2485_v47  ;;  %9304 = vmatprep.mubr.msk.f32.mxu1 %vm1325_vm0, %v2815_v21  ;;  %9377 = vmatprep.mubr.msk.f32.mxu0 %vm1325_vm0, %v2833_v51 }
 0x464   :  { %3777 = vmatmul.mubr.f32.gmra.mrb[212].mxu0 %v2832_v41  ;;  %v2834_v48 = vmax.f32 %v13645_v25, 0.0 }
 0x465   :  { %v2835_v9 = vmax.f32 %v13651_v20, 0.0  ;;  %v2489_v33 = vpop.f32.mrb[88].mxu1 }
 0x466   :  { %v13663_v43 = vadd.f32 %v12901_v28, %v2489_v33  ;;  %v2491_v56 = vpop.f32.mrb[89].mxu1  ;;  %3322 = vmatmul.mubr.f32.gmra.mrb[194].mxu1 %v2814_v4 }
 0x467   :  { %v13669_v21 = vadd.f32 %v12905_v11, %v2491_v56  ;;  %9305 = vmatprep.mubr.msk.f32.mxu1 %vm1325_vm0, %v2817_v61  ;;  %9378 = vmatprep.mubr.msk.f32.mxu0 %vm1325_vm0, %v2835_v9 }
 0x468   :  { %3782 = vmatmul.mubr.f32.gmra.mrb[214].mxu0 %v2834_v48  ;;  %v2836_v30 = vmax.f32 %v13663_v43, 0.0 }
 0x469   :  { %v2837_v58 = vmax.f32 %v13669_v21, 0.0  ;;  %v2495_v63 = vpop.f32.mrb[90].mxu1 }
 0x46a   :  { %v13681_v4 = vadd.f32 %v12901_v28, %v2495_v63  ;;  %v2497_v54 = vpop.f32.mrb[91].mxu1  ;;  %3327 = vmatmul.mubr.f32.gmra.mrb[196].mxu1 %v2816_v3 }
 0x46b   :  { %v13687_v61 = vadd.f32 %v12905_v11, %v2497_v54  ;;  %9306 = vmatprep.mubr.msk.f32.mxu1 %vm1325_vm0, %v2819_v45  ;;  %9379 = vmatprep.mubr.msk.f32.mxu0 %vm1325_vm0, %v2837_v58 }
 0x46c   :  { %3787 = vmatmul.mubr.f32.gmra.mrb[216].mxu0 %v2836_v30  ;;  %v2838_v32 = vmax.f32 %v13681_v4, 0.0 }
 0x46d   :  { %v2839_v15 = vmax.f32 %v13687_v61, 0.0  ;;  %v2501_v59 = vpop.f32.mrb[92].mxu1 }
 0x46e   :  { %v13699_v3 = vadd.f32 %v12901_v28, %v2501_v59  ;;  %v2503_v26 = vpop.f32.mrb[93].mxu1  ;;  %3332 = vmatmul.mubr.f32.gmra.mrb[198].mxu1 %v2818_v6 }
 0x46f   :  { %v13705_v45 = vadd.f32 %v12905_v11, %v2503_v26  ;;  %9307 = vmatprep.mubr.msk.f32.mxu1 %vm1325_vm0, %v2821_v53  ;;  %9380 = vmatprep.mubr.msk.f32.mxu0 %vm1325_vm0, %v2839_v15 }
 0x470   :  { %3792 = vmatmul.mubr.f32.gmra.mrb[218].mxu0 %v2838_v32  ;;  %v2840_v35 = vmax.f32 %v13699_v3, 0.0 }
 0x471   :  { %v2841_v16 = vmax.f32 %v13705_v45, 0.0  ;;  %v2507_v10 = vpop.f32.mrb[94].mxu1 }
 0x472   :  { %v13717_v6 = vadd.f32 %v12901_v28, %v2507_v10  ;;  %v2509_v22 = vpop.f32.mrb[95].mxu1  ;;  %3337 = vmatmul.mubr.f32.gmra.mrb[200].mxu1 %v2820_v8 }
 0x473   :  { %v13723_v53 = vadd.f32 %v12905_v11, %v2509_v22  ;;  %9308 = vmatprep.mubr.msk.f32.mxu1 %vm1325_vm0, %v2823_v17  ;;  %9381 = vmatprep.mubr.msk.f32.mxu0 %vm1325_vm0, %v2841_v16 }
 0x474   :  { %3797 = vmatmul.mubr.f32.gmra.mrb[220].mxu0 %v2840_v35  ;;  %v2842_v34 = vmax.f32 %v13717_v6, 0.0 }
 0x475   :  { %v2843_v1 = vmax.f32 %v13723_v53, 0.0  ;;  %v2513_v24 = vpop.f32.mrb[96].mxu1 }
 0x476   :  { %v13735_v8 = vadd.f32 %v12901_v28, %v2513_v24  ;;  %v2515_v19 = vpop.f32.mrb[97].mxu1  ;;  %3342 = vmatmul.mubr.f32.gmra.mrb[202].mxu1 %v2822_v39 }
 0x477   :  { %v13741_v17 = vadd.f32 %v12905_v11, %v2515_v19  ;;  %9309 = vmatprep.mubr.msk.f32.mxu1 %vm1325_vm0, %v2825_v57  ;;  %9382 = vmatprep.mubr.msk.f32.mxu0 %vm1325_vm0, %v2843_v1 }
 0x478   :  { %3802 = vmatmul.mubr.f32.gmra.mrb[222].mxu0 %v2842_v34  ;;  %v2844_v49 = vmax.f32 %v13735_v8, 0.0 }
 0x479   :  { %v2845_v18 = vmax.f32 %v13741_v17, 0.0  ;;  %v2519_v29 = vpop.f32.mrb[98].mxu1 }
 0x47a   :  { %v13753_v39 = vadd.f32 %v12901_v28, %v2519_v29  ;;  %v2521_v52 = vpop.f32.mrb[99].mxu1  ;;  %3347 = vmatmul.mubr.f32.gmra.mrb[204].mxu1 %v2824_v13 }
 0x47b   :  { %v13759_v57 = vadd.f32 %v12905_v11, %v2521_v52  ;;  %9310 = vmatprep.mubr.msk.f32.mxu1 %vm1325_vm0, %v2827_v62  ;;  %9383 = vmatprep.mubr.msk.f32.mxu0 %vm1325_vm0, %v2845_v18 }
 0x47c   :  { %3807 = vmatmul.mubr.f32.gmra.mrb[224].mxu0 %v2844_v49  ;;  %v2846_v42 = vmax.f32 %v13753_v39, 0.0 }
 0x47d   :  { %v2847_v38 = vmax.f32 %v13759_v57, 0.0  ;;  %v2525_v55 = vpop.f32.mrb[100].mxu1 }
 0x47e   :  { %v13771_v13 = vadd.f32 %v12901_v28, %v2525_v55  ;;  %v2527_v47 = vpop.f32.mrb[101].mxu1  ;;  %3352 = vmatmul.mubr.f32.gmra.mrb[206].mxu1 %v2826_v7 }
 0x47f   :  { %v13777_v62 = vadd.f32 %v12905_v11, %v2527_v47  ;;  %9311 = vmatprep.mubr.msk.f32.mxu1 %vm1325_vm0, %v2829_v27  ;;  %9384 = vmatprep.mubr.msk.f32.mxu0 %vm1325_vm0, %v2847_v38 }
 0x480   :  { %3812 = vmatmul.mubr.f32.gmra.mrb[226].mxu0 %v2846_v42  ;;  %v2848_v50 = vmax.f32 %v13771_v13, 0.0 }
 0x481   :  { %v2849_v33 = vmax.f32 %v13777_v62, 0.0  ;;  %v2531_v31 = vpop.f32.mrb[102].mxu1 }
 0x482   :  { %v13789_v7 = vadd.f32 %v12901_v28, %v2531_v31  ;;  %v2533_v56 = vpop.f32.mrb[103].mxu1  ;;  %3357 = vmatmul.mubr.f32.gmra.mrb[208].mxu1 %v2828_v14 }
 0x483   :  { %v13795_v27 = vadd.f32 %v12905_v11, %v2533_v56  ;;  %9312 = vmatprep.mubr.msk.f32.mxu1 %vm1325_vm0, %v2831_v12  ;;  %9385 = vmatprep.mubr.msk.f32.mxu0 %vm1325_vm0, %v2849_v33 }
 0x484   :  { %3817 = vmatmul.mubr.f32.gmra.mrb[228].mxu0 %v2848_v50  ;;  %v2850_v2 = vmax.f32 %v13789_v7, 0.0 }
 0x485   :  { %v2851_v63 = vmax.f32 %v13795_v27, 0.0  ;;  %v2537_v40 = vpop.f32.mrb[104].mxu1 }
 0x486   :  { %v13807_v14 = vadd.f32 %v12901_v28, %v2537_v40  ;;  %v2539_v54 = vpop.f32.mrb[105].mxu1  ;;  %3362 = vmatmul.mubr.f32.gmra.mrb[210].mxu1 %v2830_v37 }
 0x487   :  { %v13813_v12 = vadd.f32 %v12905_v11, %v2539_v54  ;;  %9313 = vmatprep.mubr.msk.f32.mxu1 %vm1325_vm0, %v2833_v51  ;;  %9386 = vmatprep.mubr.msk.f32.mxu0 %vm1325_vm0, %v2851_v63 }
 0x488   :  { %3822 = vmatmul.mubr.f32.gmra.mrb[230].mxu0 %v2850_v2  ;;  %v2852_v36 = vmax.f32 %v13807_v14, 0.0 }
 0x489   :  { %v2853_v59 = vmax.f32 %v13813_v12, 0.0  ;;  %v2543_v46 = vpop.f32.mrb[106].mxu1 }
 0x48a   :  { %v13825_v37 = vadd.f32 %v12901_v28, %v2543_v46  ;;  %v2545_v26 = vpop.f32.mrb[107].mxu1  ;;  %3367 = vmatmul.mubr.f32.gmra.mrb[212].mxu1 %v2832_v41 }
 0x48b   :  { %v13831_v51 = vadd.f32 %v12905_v11, %v2545_v26  ;;  %9314 = vmatprep.mubr.msk.f32.mxu1 %vm1325_vm0, %v2835_v9  ;;  %9387 = vmatprep.mubr.msk.f32.mxu0 %vm1325_vm0, %v2853_v59 }
 0x48c   :  { %3827 = vmatmul.mubr.f32.gmra.mrb[232].mxu0 %v2852_v36  ;;  %v2854_v20 = vmax.f32 %v13825_v37, 0.0 }
 0x48d   :  { %v2855_v10 = vmax.f32 %v13831_v51, 0.0  ;;  %v2549_v23 = vpop.f32.mrb[108].mxu1 }
 0x48e   :  { %v13843_v41 = vadd.f32 %v12901_v28, %v2549_v23  ;;  %v2551_v22 = vpop.f32.mrb[109].mxu1  ;;  %3372 = vmatmul.mubr.f32.gmra.mrb[214].mxu1 %v2834_v48 }
 0x48f   :  { %v13849_v9 = vadd.f32 %v12905_v11, %v2551_v22  ;;  %9315 = vmatprep.mubr.msk.f32.mxu1 %vm1325_vm0, %v2837_v58  ;;  %v13854_v24 = vpop.f32.mrb[128].mxu0  ;;  %9388 = vmatprep.mubr.msk.f32.mxu0 %vm1325_vm0, %v2855_v10 }
 0x490   :  { %v3570_v19 = vpop.f32.mrb[129].mxu0  ;;  %3832 = vmatmul.mubr.f32.gmra.mrb[234].mxu0 %v2854_v20  ;;  %v2856_v21 = vmax.f32 %v13843_v41, 0.0 }
 0x491   :  { %v2857_v25 = vmax.f32 %v13849_v9, 0.0  ;;  %v2555_v48 = vpop.f32.mrb[110].mxu1 }
 0x492   :  { %v13863_v29 = vadd.f32 %v12901_v28, %v2555_v48  ;;  %v2557_v52 = vpop.f32.mrb[111].mxu1  ;;  %3377 = vmatmul.mubr.f32.gmra.mrb[216].mxu1 %v2836_v30 }
 0x493   :  { %v13869_v58 = vadd.f32 %v12905_v11, %v2557_v52  ;;  %9316 = vmatprep.mubr.msk.f32.mxu1 %vm1325_vm0, %v2839_v15  ;;  %v13874_v55 = vpop.f32.mrb[130].mxu0  ;;  %9389 = vmatprep.mubr.msk.f32.mxu0 %vm1325_vm0, %v2857_v25 }
 0x494   :  { %v3575_v47 = vpop.f32.mrb[131].mxu0  ;;  %3837 = vmatmul.mubr.f32.gmra.mrb[236].mxu0 %v2856_v21  ;;  %v2858_v61 = vmax.f32 %v13863_v29, 0.0 }
 0x495   :  { %v2859_v43 = vmax.f32 %v13869_v58, 0.0  ;;  %v2561_v30 = vpop.f32.mrb[112].mxu1 }
 0x496   :  { %v13883_v31 = vadd.f32 %v12901_v28, %v2561_v30  ;;  %v2563_v56 = vpop.f32.mrb[113].mxu1  ;;  %3382 = vmatmul.mubr.f32.gmra.mrb[218].mxu1 %v2838_v32 }
 0x497   :  { %v13889_v15 = vadd.f32 %v12905_v11, %v2563_v56  ;;  %9317 = vmatprep.mubr.msk.f32.mxu1 %vm1325_vm0, %v2841_v16  ;;  %v13894_v40 = vpop.f32.mrb[132].mxu0  ;;  %9390 = vmatprep.mubr.msk.f32.mxu0 %vm1325_vm0, %v2859_v43 }
 0x498   :  { %v3580_v54 = vpop.f32.mrb[133].mxu0  ;;  %3842 = vmatmul.mubr.f32.gmra.mrb[238].mxu0 %v2858_v61  ;;  %v2860_v45 = vmax.f32 %v13883_v31, 0.0 }
 0x499   :  { %v2861_v4 = vmax.f32 %v13889_v15, 0.0  ;;  %v2567_v32 = vpop.f32.mrb[114].mxu1 }
 0x49a   :  { %v13903_v46 = vadd.f32 %v12901_v28, %v2567_v32  ;;  %v2569_v26 = vpop.f32.mrb[115].mxu1  ;;  %3387 = vmatmul.mubr.f32.gmra.mrb[220].mxu1 %v2840_v35 }
 0x49b   :  { %v13909_v16 = vadd.f32 %v12905_v11, %v2569_v26  ;;  %9318 = vmatprep.mubr.msk.f32.mxu1 %vm1325_vm0, %v2843_v1  ;;  %v13914_v23 = vpop.f32.mrb[134].mxu0  ;;  %9391 = vmatprep.mubr.msk.f32.mxu0 %vm1325_vm0, %v2861_v4 }
 0x49c   :  { %v3585_v22 = vpop.f32.mrb[135].mxu0  ;;  %3847 = vmatmul.mubr.f32.gmra.mrb[240].mxu0 %v2860_v45  ;;  %v2862_v53 = vmax.f32 %v13903_v46, 0.0 }
 0x49d   :  { %v2863_v3 = vmax.f32 %v13909_v16, 0.0  ;;  %v2573_v35 = vpop.f32.mrb[116].mxu1 }
 0x49e   :  { %v13923_v19 = vadd.f32 %v12901_v28, %v2573_v35  ;;  %v2575_v48 = vpop.f32.mrb[117].mxu1  ;;  %3392 = vmatmul.mubr.f32.gmra.mrb[222].mxu1 %v2842_v34 }
 0x49f   :  { %v13929_v1 = vadd.f32 %v12905_v11, %v2575_v48  ;;  %9319 = vmatprep.mubr.msk.f32.mxu1 %vm1325_vm0, %v2845_v18  ;;  %v13934_v52 = vpop.f32.mrb[136].mxu0  ;;  %9392 = vmatprep.mubr.msk.f32.mxu0 %vm1325_vm0, %v2863_v3 }
 0x4a0   :  { %v3590_v47 = vpop.f32.mrb[137].mxu0  ;;  %3852 = vmatmul.mubr.f32.gmra.mrb[242].mxu0 %v2862_v53  ;;  %v2864_v17 = vmax.f32 %v13923_v19, 0.0 }
 0x4a1   :  { %v2865_v6 = vmax.f32 %v13929_v1, 0.0  ;;  %v2579_v34 = vpop.f32.mrb[118].mxu1 }
 0x4a2   :  { %v13943_v30 = vadd.f32 %v12901_v28, %v2579_v34  ;;  %v2581_v56 = vpop.f32.mrb[119].mxu1  ;;  %3397 = vmatmul.mubr.f32.gmra.mrb[224].mxu1 %v2844_v49 }
 0x4a3   :  { %v13949_v18 = vadd.f32 %v12905_v11, %v2581_v56  ;;  %9320 = vmatprep.mubr.msk.f32.mxu1 %vm1325_vm0, %v2847_v38  ;;  %v13954_v54 = vpop.f32.mrb[138].mxu0  ;;  %9393 = vmatprep.mubr.msk.f32.mxu0 %vm1325_vm0, %v2865_v6 }
 0x4a4   :  { %v3595_v32 = vpop.f32.mrb[139].mxu0  ;;  %3857 = vmatmul.mubr.f32.gmra.mrb[244].mxu0 %v2864_v17  ;;  %v2866_v57 = vmax.f32 %v13943_v30, 0.0 }
 0x4a5   :  { %v2867_v8 = vmax.f32 %v13949_v18, 0.0  ;;  %v2585_v49 = vpop.f32.mrb[120].mxu1 }
 0x4a6   :  { %v13963_v26 = vadd.f32 %v12901_v28, %v2585_v49  ;;  %v2587_v22 = vpop.f32.mrb[121].mxu1  ;;  %3402 = vmatmul.mubr.f32.gmra.mrb[226].mxu1 %v2846_v42 }
 0x4a7   :  { %v13969_v38 = vadd.f32 %v12905_v11, %v2587_v22  ;;  %9321 = vmatprep.mubr.msk.f32.mxu1 %vm1325_vm0, %v2849_v33  ;;  %v13974_v35 = vpop.f32.mrb[140].mxu0  ;;  %9394 = vmatprep.mubr.msk.f32.mxu0 %vm1325_vm0, %v2867_v8 }
 0x4a8   :  { %v3600_v48 = vpop.f32.mrb[141].mxu0  ;;  %3862 = vmatmul.mubr.f32.gmra.mrb[246].mxu0 %v2866_v57  ;;  %v2868_v62 = vmax.f32 %v13963_v26, 0.0 }
 0x4a9   :  { %v2869_v39 = vmax.f32 %v13969_v38, 0.0  ;;  %v2591_v42 = vpop.f32.mrb[122].mxu1 }
 0x4aa   :  { %v13983_v47 = vadd.f32 %v12901_v28, %v2591_v42  ;;  %v2593_v34 = vpop.f32.mrb[123].mxu1  ;;  %3407 = vmatmul.mubr.f32.gmra.mrb[228].mxu1 %v2848_v50 }
 0x4ab   :  { %v13989_v33 = vadd.f32 %v12905_v11, %v2593_v34  ;;  %9322 = vmatprep.mubr.msk.f32.mxu1 %vm1325_vm0, %v2851_v63  ;;  %v13994_v56 = vpop.f32.mrb[142].mxu0  ;;  %9395 = vmatprep.mubr.msk.f32.mxu0 %vm1325_vm0, %v2869_v39 }
 0x4ac   :  { %v3605_v32 = vpop.f32.mrb[143].mxu0  ;;  %3867 = vmatmul.mubr.f32.gmra.mrb[248].mxu0 %v2868_v62  ;;  %v2870_v27 = vmax.f32 %v13983_v47, 0.0 }
 0x4ad   :  { %v2871_v13 = vmax.f32 %v13989_v33, 0.0  ;;  %v2597_v50 = vpop.f32.mrb[124].mxu1 }
 0x4ae   :  { %v14003_v49 = vadd.f32 %v12901_v28, %v2597_v50  ;;  %v2599_v22 = vpop.f32.mrb[125].mxu1  ;;  %3412 = vmatmul.mubr.f32.gmra.mrb[230].mxu1 %v2850_v2 }
 0x4af   :  { %v14009_v63 = vadd.f32 %v12905_v11, %v2599_v22  ;;  %9323 = vmatprep.mubr.msk.f32.mxu1 %vm1325_vm0, %v2853_v59  ;;  %v14014_v48 = vpop.f32.mrb[144].mxu0  ;;  %9396 = vmatprep.mubr.msk.f32.mxu0 %vm1325_vm0, %v2871_v13 }
 0x4b0   :  { %v3610_v42 = vpop.f32.mrb[145].mxu0  ;;  %3872 = vmatmul.mubr.f32.gmra.mrb[250].mxu0 %v2870_v27  ;;  %v2872_v12 = vmax.f32 %v14003_v49, 0.0 }
 0x4b1   :  { %v2873_v7 = vmax.f32 %v14009_v63, 0.0  ;;  %v2603_v2 = vpop.f32.mrb[126].mxu1 }
 0x4b2   :  { %v14023_v34 = vadd.f32 %v12901_v28, %v2603_v2  ;;  %v2605_v32 = vpop.f32.mrb[127].mxu1  ;;  %3417 = vmatmul.mubr.f32.gmra.mrb[232].mxu1 %v2852_v36 }
 0x4b3   :  { %v14029_v59 = vadd.f32 %v12905_v11, %v2605_v32  ;;  %9324 = vmatprep.mubr.msk.f32.mxu1 %vm1325_vm0, %v2855_v10  ;;  %v14034_v50 = vpop.f32.mrb[146].mxu0  ;;  %9397 = vmatprep.mubr.msk.f32.mxu0 %vm1325_vm0, %v2873_v7 }
 0x4b4   :  { %v3615_v28 = vpop.f32.mrb[147].mxu0  ;;  %3877 = vmatmul.mubr.f32.gmra.mrb[252].mxu0 %v2872_v12  ;;  %v2874_v51 = vmax.f32 %v14023_v34, 0.0 }
 0x4b5   :  { %v2875_v14 = vmax.f32 %v14029_v59, 0.0  ;;  %v3158_v36 = vpop.f32.mrb[128].mxu1 }
 0x4b6   :  { %v3887_v11 = vmax.f32 %v3158_v36, %v13854_v24  ;;  %v3160_v22 = vpop.f32.mrb[129].mxu1  ;;  %3422 = vmatmul.mubr.f32.gmra.mrb[234].mxu1 %v2854_v20  ;;  %v4531_v24 = vld [vmem:[#allocation7 + $0x408] sm:$0xff] }
 0x4b7   :  { %9325 = vmatprep.mubr.msk.f32.mxu1 %vm1325_vm0, %v2857_v25  ;;  %v14049_v10 = vpop.f32.mrb[148].mxu0  ;;  %9398 = vmatprep.mubr.msk.f32.mxu0 %vm1325_vm0, %v2875_v14 }
 0x4b8   :  { %v3620_v42 = vpop.f32.mrb[149].mxu0  ;;  %3882 = vmatmul.mubr.f32.gmra.mrb[254].mxu0 %v2874_v51 }
 0x4b9   :  { %v3163_v2 = vpop.f32.mrb[130].mxu1  ;;  %4722 = vmatprep.mubr.f32.mxu0 %v4531_v24 }
 0x4ba   :  { %v3888_v37 = vmax.f32 %v3163_v2, %v13874_v55  ;;  %v3165_v20 = vpop.f32.mrb[131].mxu1  ;;  %3427 = vmatmul.mubr.f32.gmra.mrb[236].mxu1 %v2856_v21 }
 0x4bb   :  { %9326 = vmatprep.mubr.msk.f32.mxu1 %vm1325_vm0, %v2859_v43  ;;  %v14062_v9 = vpop.f32.mrb[150].mxu0 }
 0x4bc   :  { %v10367_v25 = vpack.c.bf16 %v3888_v37, %v3887_v11  ;;  %v3625_v32 = vpop.f32.mrb[151].mxu0 }
 0x4bd   :  { %v3168_v28 = vpop.f32.mrb[132].mxu1 }
 0x4be   :  { %v3889_v36 = vmax.f32 %v3168_v28, %v13894_v40  ;;  %v3170_v22 = vpop.f32.mrb[133].mxu1  ;;  %3432 = vmatmul.mubr.f32.gmra.mrb[238].mxu1 %v2858_v61  ;;  %10464 = vmatpush1.bf16.msra.mxu0 %v10367_v25 }
 0x4bf   :  { %10368 = vmatpush1.bf16.msra.mxu1 %v10367_v25  ;;  %9327 = vmatprep.mubr.msk.f32.mxu1 %vm1325_vm0, %v2861_v4  ;;  %v14070_v41 = vpop.f32.mrb[152].mxu0 }
 0x4c0   :  { %v3630_v21 = vpop.f32.mrb[153].mxu0  ;;  %10369 = vmatprep.subr.bf16.mxu1 %v15968_v0  ;;  %10465 = vmatprep.subr.bf16.mxu0 %v15968_v0 }
 0x4c1   :  { %v3173_v58 = vpop.f32.mrb[134].mxu1 }
 0x4c2   :  { %v3890_v55 = vmax.f32 %v3173_v58, %v13914_v23  ;;  %v3175_v43 = vpop.f32.mrb[135].mxu1  ;;  %3437 = vmatmul.mubr.f32.gmra.mrb[240].mxu1 %v2860_v45 }
 0x4c3   :  { %9328 = vmatprep.mubr.msk.f32.mxu1 %vm1325_vm0, %v2863_v3  ;;  %v14080_v29 = vpop.f32.mrb[154].mxu0 }
 0x4c4   :  { %v10370_v61 = vpack.c.bf16 %v3890_v55, %v3889_v36  ;;  %v3635_v15 = vpop.f32.mrb[155].mxu0 }
 0x4c5   :  { %v3178_v40 = vpop.f32.mrb[136].mxu1 }
 0x4c6   :  { %v3891_v4 = vmax.f32 %v3178_v40, %v13934_v52  ;;  %v3180_v11 = vpop.f32.mrb[137].mxu1  ;;  %3442 = vmatmul.mubr.f32.gmra.mrb[242].mxu1 %v2862_v53  ;;  %10467 = vmatpush1.bf16.msra.mxu0 %v10370_v61 }
 0x4c7   :  { %10371 = vmatpush1.bf16.msra.mxu1 %v10370_v61  ;;  %9329 = vmatprep.mubr.msk.f32.mxu1 %vm1325_vm0, %v2865_v6  ;;  %v14088_v31 = vpop.f32.mrb[156].mxu0 }
 0x4c8   :  { %v3640_v45 = vpop.f32.mrb[157].mxu0  ;;  %10372 = vmatprep.subr.bf16.mxu1 %v15968_v0  ;;  %10468 = vmatprep.subr.bf16.mxu0 %v15968_v0 }
 0x4c9   :  { %v3183_v16 = vpop.f32.mrb[138].mxu1 }
 0x4ca   :  { %v3892_v23 = vmax.f32 %v3183_v16, %v13954_v54  ;;  %v3185_v3 = vpop.f32.mrb[139].mxu1  ;;  %3447 = vmatmul.mubr.f32.gmra.mrb[244].mxu1 %v2864_v17 }
 0x4cb   :  { %9330 = vmatprep.mubr.msk.f32.mxu1 %vm1325_vm0, %v2867_v8  ;;  %v14098_v46 = vpop.f32.mrb[158].mxu0 }
 0x4cc   :  { %v10373_v53 = vpack.c.bf16 %v3892_v23, %v3891_v4  ;;  %v3645_v1 = vpop.f32.mrb[159].mxu0 }
 0x4cd   :  { %v3188_v52 = vpop.f32.mrb[140].mxu1 }
 0x4ce   :  { %v3893_v6 = vmax.f32 %v3188_v52, %v13974_v35  ;;  %v3190_v42 = vpop.f32.mrb[141].mxu1  ;;  %3452 = vmatmul.mubr.f32.gmra.mrb[246].mxu1 %v2866_v57  ;;  %10470 = vmatpush1.bf16.msra.mxu0 %v10373_v53 }
 0x4cf   :  { %10374 = vmatpush1.bf16.msra.mxu1 %v10373_v53  ;;  %9331 = vmatprep.mubr.msk.f32.mxu1 %vm1325_vm0, %v2869_v39  ;;  %v14106_v19 = vpop.f32.mrb[160].mxu0 }
 0x4d0   :  { %v3650_v17 = vpop.f32.mrb[161].mxu0  ;;  %10375 = vmatprep.subr.bf16.mxu1 %v15968_v0  ;;  %10471 = vmatprep.subr.bf16.mxu0 %v15968_v0 }
 0x4d1   :  { %v3193_v18 = vpop.f32.mrb[142].mxu1 }
 0x4d2   :  { %v3894_v54 = vmax.f32 %v3193_v18, %v13994_v56  ;;  %v3195_v8 = vpop.f32.mrb[143].mxu1  ;;  %3457 = vmatmul.mubr.f32.gmra.mrb[248].mxu1 %v2868_v62 }
 0x4d3   :  { %9332 = vmatprep.mubr.msk.f32.mxu1 %vm1325_vm0, %v2871_v13  ;;  %v14116_v30 = vpop.f32.mrb[162].mxu0 }
 0x4d4   :  { %v10376_v57 = vpack.c.bf16 %v3894_v54, %v3893_v6  ;;  %v3655_v38 = vpop.f32.mrb[163].mxu0 }
 0x4d5   :  { %v3198_v35 = vpop.f32.mrb[144].mxu1 }
 0x4d6   :  { %v3895_v39 = vmax.f32 %v3198_v35, %v14014_v48  ;;  %v3200_v24 = vpop.f32.mrb[145].mxu1  ;;  %3462 = vmatmul.mubr.f32.gmra.mrb[250].mxu1 %v2870_v27  ;;  %10473 = vmatpush1.bf16.msra.mxu0 %v10376_v57 }
 0x4d7   :  { %10377 = vmatpush1.bf16.msra.mxu1 %v10376_v57  ;;  %9333 = vmatprep.mubr.msk.f32.mxu1 %vm1325_vm0, %v2873_v7  ;;  %v14124_v26 = vpop.f32.mrb[164].mxu0  ;;  %v3952_v7 = vld [vmem:[#allocation7 + $0x8] sm:$0xff] }
 0x4d8   :  { %v3660_v62 = vpop.f32.mrb[165].mxu0  ;;  %10378 = vmatprep.subr.bf16.mxu1 %v15968_v0  ;;  %10474 = vmatprep.subr.bf16.mxu0 %v15968_v0 }
 0x4d9   :  { %v3203_v33 = vpop.f32.mrb[146].mxu1 }
 0x4da   :  { %v3896_v56 = vmax.f32 %v3203_v33, %v14034_v50  ;;  %v3205_v13 = vpop.f32.mrb[147].mxu1  ;;  %3467 = vmatmul.mubr.f32.gmra.mrb[252].mxu1 %v2872_v12 }
 0x4db   :  { %9334 = vmatprep.mubr.msk.f32.mxu1 %vm1325_vm0, %v2875_v14  ;;  %v14134_v47 = vpop.f32.mrb[166].mxu0 }
 0x4dc   :  { %v10379_v27 = vpack.c.bf16 %v3896_v56, %v3895_v39  ;;  %v3665_v63 = vpop.f32.mrb[167].mxu0 }
 0x4dd   :  { %v3208_v48 = vpop.f32.mrb[148].mxu1 }
 0x4de   :  { %v3897_v2 = vmax.f32 %v3208_v48, %v14049_v10  ;;  %v3210_v37 = vpop.f32.mrb[149].mxu1  ;;  %3472 = vmatmul.mubr.f32.gmra.mrb[254].mxu1 %v2874_v51  ;;  %10476 = vmatpush1.bf16.msra.mxu0 %v10379_v27 }
 0x4df   :  { %10380 = vmatpush1.bf16.msra.mxu1 %v10379_v27  ;;  %v14139_v49 = vpop.f32.mrb[168].mxu0  ;;  %10477 = vmatprep.subr.bf16.mxu0 %v15968_v0 }
 0x4e0   :  { %v3670_v12 = vpop.f32.mrb[169].mxu0  ;;  %10381 = vmatprep.subr.bf16.mxu1 %v15968_v0  ;;  %4143 = vmatprep.mubr.f32.mxu1 %v3952_v7 }
 0x4e1   :  { %v3213_v59 = vpop.f32.mrb[150].mxu1 }
 0x4e2   :  { %v3898_v50 = vmax.f32 %v3213_v59, %v14062_v9  ;;  %v3215_v14 = vpop.f32.mrb[151].mxu1 }
 0x4e3   :  { %v14144_v20 = vpop.f32.mrb[170].mxu0 }
 0x4e4   :  { %v10382_v10 = vpack.c.bf16 %v3898_v50, %v3897_v2  ;;  %v3675_v25 = vpop.f32.mrb[171].mxu0 }
 0x4e5   :  { %v3218_v34 = vpop.f32.mrb[152].mxu1 }
 0x4e6   :  { %v3899_v51 = vmax.f32 %v3218_v34, %v14070_v41  ;;  %v3220_v32 = vpop.f32.mrb[153].mxu1  ;;  %10383 = vmatpush1.bf16.msra.mxu1 %v10382_v10  ;;  %10479 = vmatpush1.bf16.msra.mxu0 %v10382_v10 }
 0x4e7   :  { %v14147_v28 = vpop.f32.mrb[172].mxu0  ;;  %10384 = vmatprep.subr.bf16.mxu1 %v15968_v0  ;;  %10480 = vmatprep.subr.bf16.mxu0 %v15968_v0 }
 0x4e8   :  { %v3680_v36 = vpop.f32.mrb[173].mxu0 }
 0x4e9   :  { %v3223_v22 = vpop.f32.mrb[154].mxu1 }
 0x4ea   :  { %v3900_v9 = vmax.f32 %v3223_v22, %v14080_v29  ;;  %v3225_v21 = vpop.f32.mrb[155].mxu1 }
 0x4eb   :  { %v14152_v58 = vpop.f32.mrb[174].mxu0 }
 0x4ec   :  { %v10385_v55 = vpack.c.bf16 %v3900_v9, %v3899_v51  ;;  %v3685_v43 = vpop.f32.mrb[175].mxu0 }
 0x4ed   :  { %v3228_v61 = vpop.f32.mrb[156].mxu1 }
 0x4ee   :  { %v3901_v41 = vmax.f32 %v3228_v61, %v14088_v31  ;;  %v3230_v15 = vpop.f32.mrb[157].mxu1  ;;  %10386 = vmatpush1.bf16.msra.mxu1 %v10385_v55  ;;  %10482 = vmatpush1.bf16.msra.mxu0 %v10385_v55 }
 0x4ef   :  { %v14155_v40 = vpop.f32.mrb[176].mxu0  ;;  %10387 = vmatprep.subr.bf16.mxu1 %v15968_v0  ;;  %10483 = vmatprep.subr.bf16.mxu0 %v15968_v0 }
 0x4f0   :  { %v3690_v4 = vpop.f32.mrb[177].mxu0 }
 0x4f1   :  { %v3233_v11 = vpop.f32.mrb[158].mxu1 }
 0x4f2   :  { %v3902_v29 = vmax.f32 %v3233_v11, %v14098_v46  ;;  %v3235_v45 = vpop.f32.mrb[159].mxu1 }
 0x4f3   :  { %v14160_v16 = vpop.f32.mrb[178].mxu0 }
 0x4f4   :  { %v10388_v23 = vpack.c.bf16 %v3902_v29, %v3901_v41  ;;  %v3695_v3 = vpop.f32.mrb[179].mxu0 }
 0x4f5   :  { %v3238_v53 = vpop.f32.mrb[160].mxu1 }
 0x4f6   :  { %v3903_v31 = vmax.f32 %v3238_v53, %v14106_v19  ;;  %v3240_v1 = vpop.f32.mrb[161].mxu1  ;;  %10389 = vmatpush1.bf16.msra.mxu1 %v10388_v23  ;;  %10485 = vmatpush1.bf16.msra.mxu0 %v10388_v23 }
 0x4f7   :  { %v14163_v52 = vpop.f32.mrb[180].mxu0  ;;  %10390 = vmatprep.subr.bf16.mxu1 %v15968_v0  ;;  %10486 = vmatprep.subr.bf16.mxu0 %v15968_v0 }
 0x4f8   :  { %v3700_v6 = vpop.f32.mrb[181].mxu0 }
 0x4f9   :  { %v3243_v42 = vpop.f32.mrb[162].mxu1 }
 0x4fa   :  { %v3904_v46 = vmax.f32 %v3243_v42, %v14116_v30  ;;  %v3245_v17 = vpop.f32.mrb[163].mxu1 }
 0x4fb   :  { %v14168_v18 = vpop.f32.mrb[182].mxu0 }
 0x4fc   :  { %v10391_v54 = vpack.c.bf16 %v3904_v46, %v3903_v31  ;;  %v3705_v8 = vpop.f32.mrb[183].mxu0 }
 0x4fd   :  { %v3248_v57 = vpop.f32.mrb[164].mxu1 }
 0x4fe   :  { %v3905_v19 = vmax.f32 %v3248_v57, %v14124_v26  ;;  %v3250_v38 = vpop.f32.mrb[165].mxu1  ;;  %10392 = vmatpush1.bf16.msra.mxu1 %v10391_v54  ;;  %10488 = vmatpush1.bf16.msra.mxu0 %v10391_v54 }
 0x4ff   :  { %v14171_v35 = vpop.f32.mrb[184].mxu0  ;;  %10393 = vmatprep.subr.bf16.mxu1 %v15968_v0  ;;  %10489 = vmatprep.subr.bf16.mxu0 %v15968_v0 }
 0x500   :  { %v3710_v39 = vpop.f32.mrb[185].mxu0 }
 0x501   :  { %v3253_v24 = vpop.f32.mrb[166].mxu1 }
 0x502   :  { %v3906_v30 = vmax.f32 %v3253_v24, %v14134_v47  ;;  %v3255_v62 = vpop.f32.mrb[167].mxu1 }
 0x503   :  { %v14176_v33 = vpop.f32.mrb[186].mxu0 }
 0x504   :  { %v10394_v56 = vpack.c.bf16 %v3906_v30, %v3905_v19  ;;  %v3715_v13 = vpop.f32.mrb[187].mxu0 }
 0x505   :  { %v3258_v27 = vpop.f32.mrb[168].mxu1 }
 0x506   :  { %v3907_v26 = vmax.f32 %v3258_v27, %v14139_v49  ;;  %v3260_v63 = vpop.f32.mrb[169].mxu1  ;;  %10395 = vmatpush1.bf16.msra.mxu1 %v10394_v56  ;;  %10491 = vmatpush1.bf16.msra.mxu0 %v10394_v56 }
 0x507   :  { %v14179_v48 = vpop.f32.mrb[188].mxu0  ;;  %10396 = vmatprep.subr.bf16.mxu1 %v15968_v0  ;;  %10492 = vmatprep.subr.bf16.mxu0 %v15968_v0 }
 0x508   :  { %v3720_v7 = vpop.f32.mrb[189].mxu0 }
 0x509   :  { %v3263_v2 = vpop.f32.mrb[170].mxu1 }
 0x50a   :  { %v3908_v47 = vmax.f32 %v3263_v2, %v14144_v20  ;;  %v3265_v37 = vpop.f32.mrb[171].mxu1 }
 0x50b   :  { %v14184_v12 = vpop.f32.mrb[190].mxu0 }
 0x50c   :  { %v10397_v59 = vpack.c.bf16 %v3908_v47, %v3907_v26  ;;  %v3725_v50 = vpop.f32.mrb[191].mxu0 }
 0x50d   :  { %v3268_v14 = vpop.f32.mrb[172].mxu1  ;;  %v3951_v50 = vld [vmem:[#allocation7] sm:$0xff] }
 0x50e   :  { %v3909_v49 = vmax.f32 %v3268_v14, %v14147_v28  ;;  %v3270_v10 = vpop.f32.mrb[173].mxu1  ;;  %10398 = vmatpush1.bf16.msra.mxu1 %v10397_v59  ;;  %10494 = vmatpush1.bf16.msra.mxu0 %v10397_v59  ;;  %v4530_v14 = vld [vmem:[#allocation7 + $0x400] sm:$0xff] }
 0x50f   :  { %v14187_v25 = vpop.f32.mrb[192].mxu0  ;;  %10399 = vmatprep.subr.bf16.mxu1 %v15968_v0  ;;  %10495 = vmatprep.subr.bf16.mxu0 %v15968_v0  ;;  %v3956_v10 = vld [vmem:[#allocation7 + $0x28] sm:$0xff] }
 0x510   :  { %v3730_v34 = vpop.f32.mrb[193].mxu0 }
 0x511   :  { %v3273_v51 = vpop.f32.mrb[174].mxu1  ;;  %v4535_v34 = vld [vmem:[#allocation7 + $0x428] sm:$0xff] }
 0x512   :  { %v3910_v20 = vmax.f32 %v3273_v51, %v14152_v58  ;;  %v3275_v32 = vpop.f32.mrb[175].mxu1 }
 0x513   :  { %v14192_v36 = vpop.f32.mrb[194].mxu0  ;;  %v3955_v32 = vld [vmem:[#allocation7 + $0x20] sm:$0xff] }
 0x514   :  { %v10400_v22 = vpack.c.bf16 %v3910_v20, %v3909_v49  ;;  %v3735_v9 = vpop.f32.mrb[195].mxu0 }
 0x515   :  { %v3278_v21 = vpop.f32.mrb[176].mxu1 }
 0x516   :  { %v3911_v28 = vmax.f32 %v3278_v21, %v14155_v40  ;;  %v3280_v55 = vpop.f32.mrb[177].mxu1  ;;  %10401 = vmatpush1.bf16.msra.mxu1 %v10400_v22  ;;  %10497 = vmatpush1.bf16.msra.mxu0 %v10400_v22  ;;  %v4534_v22 = vld [vmem:[#allocation7 + $0x420] sm:$0xff] }
 0x517   :  { %v14195_v43 = vpop.f32.mrb[196].mxu0  ;;  %10402 = vmatprep.subr.bf16.mxu1 %v15968_v0  ;;  %10498 = vmatprep.subr.bf16.mxu0 %v15968_v0  ;;  %v3960_v55 = vld [vmem:[#allocation7 + $0x48] sm:$0xff] }
 0x518   :  { %v3740_v61 = vpop.f32.mrb[197].mxu0 }
 0x519   :  { %v3283_v41 = vpop.f32.mrb[178].mxu1  ;;  %v4539_v61 = vld [vmem:[#allocation7 + $0x448] sm:$0xff] }
 0x51a   :  { %v3912_v58 = vmax.f32 %v3283_v41, %v14160_v16  ;;  %v3285_v15 = vpop.f32.mrb[179].mxu1 }
 0x51b   :  { %v14200_v4 = vpop.f32.mrb[198].mxu0 }
 0x51c   :  { %v10403_v11 = vpack.c.bf16 %v3912_v58, %v3911_v28  ;;  %v3745_v29 = vpop.f32.mrb[199].mxu0 }
 0x51d   :  { %v3288_v45 = vpop.f32.mrb[180].mxu1 }
 0x51e   :  { %v3913_v40 = vmax.f32 %v3288_v45, %v14163_v52  ;;  %v3290_v23 = vpop.f32.mrb[181].mxu1  ;;  %10404 = vmatpush1.bf16.msra.mxu1 %v10403_v11  ;;  %10500 = vmatpush1.bf16.msra.mxu0 %v10403_v11  ;;  %v4538_v11 = vld [vmem:[#allocation7 + $0x440] sm:$0xff]  ;;  %v3964_v45 = vld [vmem:[#allocation7 + $0x68] sm:$0xff] }
 0x51f   :  { %v14203_v3 = vpop.f32.mrb[200].mxu0  ;;  %10405 = vmatprep.subr.bf16.mxu1 %v15968_v0  ;;  %10501 = vmatprep.subr.bf16.mxu0 %v15968_v0 }
 0x520   :  { %v3750_v53 = vpop.f32.mrb[201].mxu0 }
 0x521   :  { %v3293_v31 = vpop.f32.mrb[182].mxu1 }
 0x522   :  { %v3914_v16 = vmax.f32 %v3293_v31, %v14168_v18  ;;  %v3295_v1 = vpop.f32.mrb[183].mxu1 }
 0x523   :  { %v14208_v6 = vpop.f32.mrb[202].mxu0  ;;  %v4542_v1 = vld [vmem:[#allocation7 + $0x460] sm:$0xff] }
 0x524   :  { %v10406_v42 = vpack.c.bf16 %v3914_v16, %v3913_v40  ;;  %v3755_v46 = vpop.f32.mrb[203].mxu0  ;;  %v4543_v40 = vld [vmem:[#allocation7 + $0x468] sm:$0xff]  ;;  %v3963_v16 = vld [vmem:[#allocation7 + $0x60] sm:$0xff] }
 0x525   :  { %v3298_v17 = vpop.f32.mrb[184].mxu1 }
 0x526   :  { %v3915_v52 = vmax.f32 %v3298_v17, %v14171_v35  ;;  %v3300_v54 = vpop.f32.mrb[185].mxu1  ;;  %10407 = vmatpush1.bf16.msra.mxu1 %v10406_v42  ;;  %10503 = vmatpush1.bf16.msra.mxu0 %v10406_v42 }
 0x527   :  { %v14211_v8 = vpop.f32.mrb[204].mxu0  ;;  %10408 = vmatprep.subr.bf16.mxu1 %v15968_v0  ;;  %10504 = vmatprep.subr.bf16.mxu0 %v15968_v0  ;;  %v4547_v54 = vld [vmem:[#allocation7 + $0x488] sm:$0xff] }
 0x528   :  { %v3760_v57 = vpop.f32.mrb[205].mxu0 }
 0x529   :  { %v3303_v19 = vpop.f32.mrb[186].mxu1 }
 0x52a   :  { %v3916_v18 = vmax.f32 %v3303_v19, %v14176_v33  ;;  %v3305_v38 = vpop.f32.mrb[187].mxu1 }
 0x52b   :  { %v14216_v39 = vpop.f32.mrb[206].mxu0  ;;  %v4546_v38 = vld [vmem:[#allocation7 + $0x480] sm:$0xff] }
 0x52c   :  { %v10409_v24 = vpack.c.bf16 %v3916_v18, %v3915_v52  ;;  %v3765_v30 = vpop.f32.mrb[207].mxu0  ;;  %v3968_v52 = vld [vmem:[#allocation7 + $0x88] sm:$0xff] }
 0x52d   :  { %v3308_v62 = vpop.f32.mrb[188].mxu1  ;;  %v3972_v30 = vld [vmem:[#allocation7 + $0xa8] sm:$0xff] }
 0x52e   :  { %v3917_v35 = vmax.f32 %v3308_v62, %v14179_v48  ;;  %v3310_v56 = vpop.f32.mrb[189].mxu1  ;;  %10410 = vmatpush1.bf16.msra.mxu1 %v10409_v24  ;;  %10506 = vmatpush1.bf16.msra.mxu0 %v10409_v24  ;;  %v4551_v62 = vld [vmem:[#allocation7 + $0x4a8] sm:$0xff] }
 0x52f   :  { %v14219_v13 = vpop.f32.mrb[208].mxu0  ;;  %10411 = vmatprep.subr.bf16.mxu1 %v15968_v0  ;;  %10507 = vmatprep.subr.bf16.mxu0 %v15968_v0 }
 0x530   :  { %v3770_v27 = vpop.f32.mrb[209].mxu0 }
 0x531   :  { %v3313_v26 = vpop.f32.mrb[190].mxu1 }
 0x532   :  { %v3918_v33 = vmax.f32 %v3313_v26, %v14184_v12  ;;  %v3315_v63 = vpop.f32.mrb[191].mxu1  ;;  %v3971_v26 = vld [vmem:[#allocation7 + $0xa0] sm:$0xff] }
 0x533   :  { %v14224_v7 = vpop.f32.mrb[210].mxu0 }
 0x534   :  { %v10412_v2 = vpack.c.bf16 %v3918_v33, %v3917_v35  ;;  %v3775_v47 = vpop.f32.mrb[211].mxu0  ;;  %v4550_v33 = vld [vmem:[#allocation7 + $0x4a0] sm:$0xff] }
 0x535   :  { %v3318_v37 = vpop.f32.mrb[192].mxu1 }
 0x536   :  { %v3919_v48 = vmax.f32 %v3318_v37, %v14187_v25  ;;  %v3320_v59 = vpop.f32.mrb[193].mxu1  ;;  %10413 = vmatpush1.bf16.msra.mxu1 %v10412_v2  ;;  %10509 = vmatpush1.bf16.msra.mxu0 %v10412_v2  ;;  %v3976_v37 = vld [vmem:[#allocation7 + $0xc8] sm:$0xff] }
 0x537   :  { %v14227_v49 = vpop.f32.mrb[212].mxu0  ;;  %10414 = vmatprep.subr.bf16.mxu1 %v15968_v0  ;;  %10510 = vmatprep.subr.bf16.mxu0 %v15968_v0 }
 0x538   :  { %v3780_v12 = vpop.f32.mrb[213].mxu0 }
 0x539   :  { %v3323_v51 = vpop.f32.mrb[194].mxu1  ;;  %4144 = vmatmul.mubr.f32.vlgmr.msra.gmra.mrb[0].mxu1 %v3951_v50  ;;  %4723 = vmatmul.mubr.f32.vlgmr.msra.gmra.mrb[0].mxu0 %v4530_v14  ;;  %v3980_v12 = vld [vmem:[#allocation7 + $0xe8] sm:$0xff] }
 0x53a   :  { %v3920_v20 = vmax.f32 %v3323_v51, %v14192_v36  ;;  %v3325_v25 = vpop.f32.mrb[195].mxu1  ;;  %4148 = vmatprep.mubr.f32.mxu1 %v3956_v10  ;;  %4727 = vmatprep.mubr.f32.mxu0 %v4535_v34  ;;  %v3959_v36 = vld [vmem:[#allocation7 + $0x40] sm:$0xff]  ;;  %v4559_v51 = vld [vmem:[#allocation7 + $0x4e8] sm:$0xff] }
 0x53b   :  { %v14232_v9 = vpop.f32.mrb[214].mxu0  ;;  %v4554_v10 = vld [vmem:[#allocation7 + $0x4c0] sm:$0xff] }
 0x53c   :  { %v10415_v21 = vpack.c.bf16 %v3920_v20, %v3919_v48  ;;  %v3785_v28 = vpop.f32.mrb[215].mxu0  ;;  %v4555_v48 = vld [vmem:[#allocation7 + $0x4c8] sm:$0xff] }
 0x53d   :  { %v3328_v41 = vpop.f32.mrb[196].mxu1  ;;  %4149 = vmatmul.mubr.f32.gmra.mrb[2].mxu1 %v3955_v32  ;;  %4728 = vmatmul.mubr.f32.gmra.mrb[2].mxu0 %v4534_v22  ;;  %v3979_v22 = vld [vmem:[#allocation7 + $0xe0] sm:$0xff] }
 0x53e   :  { %v3921_v58 = vmax.f32 %v3328_v41, %v14195_v43  ;;  %v3330_v15 = vpop.f32.mrb[197].mxu1  ;;  %10416 = vmatpush1.bf16.msra.mxu1 %v10415_v21  ;;  %10512 = vmatpush1.bf16.msra.mxu0 %v10415_v21  ;;  %v4558_v21 = vld [vmem:[#allocation7 + $0x4e0] sm:$0xff]  ;;  %v3984_v41 = vld [vmem:[#allocation7 + $0x108] sm:$0xff] }
 0x53f   :  { %v14235_v29 = vpop.f32.mrb[216].mxu0  ;;  %4153 = vmatprep.mubr.f32.mxu1 %v3960_v55  ;;  %4732 = vmatprep.mubr.f32.mxu0 %v4539_v61 }
 0x540   :  { %v3790_v23 = vpop.f32.mrb[217].mxu0  ;;  %10417 = vmatprep.subr.bf16.mxu1 %v15968_v0  ;;  %10513 = vmatprep.subr.bf16.mxu0 %v15968_v0 }
 0x541   :  { %v3333_v53 = vpop.f32.mrb[198].mxu1  ;;  %4154 = vmatmul.mubr.f32.gmra.mrb[4].mxu1 %v3959_v36  ;;  %4733 = vmatmul.mubr.f32.gmra.mrb[4].mxu0 %v4538_v11  ;;  %v3988_v23 = vld [vmem:[#allocation7 + $0x128] sm:$0xff] }
 0x542   :  { %v3922_v43 = vmax.f32 %v3333_v53, %v14200_v4  ;;  %v3335_v31 = vpop.f32.mrb[199].mxu1  ;;  %4158 = vmatprep.mubr.f32.mxu1 %v3964_v45  ;;  %4737 = vmatprep.mubr.f32.mxu0 %v4543_v40  ;;  %v3967_v4 = vld [vmem:[#allocation7 + $0x80] sm:$0xff]  ;;  %v4567_v53 = vld [vmem:[#allocation7 + $0x528] sm:$0xff] }
 0x543   :  { %v14240_v42 = vpop.f32.mrb[218].mxu0  ;;  %v4562_v45 = vld [vmem:[#allocation7 + $0x500] sm:$0xff] }
 0x544   :  { %v10418_v46 = vpack.c.bf16 %v3922_v43, %v3921_v58  ;;  %v3795_v17 = vpop.f32.mrb[219].mxu0  ;;  %v4563_v58 = vld [vmem:[#allocation7 + $0x508] sm:$0xff] }
 0x545   :  { %v3338_v57 = vpop.f32.mrb[200].mxu1  ;;  %4159 = vmatmul.mubr.f32.gmra.mrb[6].mxu1 %v3963_v16  ;;  %4738 = vmatmul.mubr.f32.gmra.mrb[6].mxu0 %v4542_v1  ;;  %v3987_v1 = vld [vmem:[#allocation7 + $0x120] sm:$0xff] }
 0x546   :  { %v3923_v19 = vmax.f32 %v3338_v57, %v14203_v3  ;;  %v3340_v18 = vpop.f32.mrb[201].mxu1  ;;  %10419 = vmatpush1.bf16.msra.mxu1 %v10418_v46  ;;  %10515 = vmatpush1.bf16.msra.mxu0 %v10418_v46  ;;  %v4566_v46 = vld [vmem:[#allocation7 + $0x520] sm:$0xff]  ;;  %v3992_v57 = vld [vmem:[#allocation7 + $0x148] sm:$0xff] }
 0x547   :  { %v14243_v24 = vpop.f32.mrb[220].mxu0  ;;  %4163 = vmatprep.mubr.f32.mxu1 %v3968_v52  ;;  %4742 = vmatprep.mubr.f32.mxu0 %v4547_v54 }
 0x548   :  { %v3800_v35 = vpop.f32.mrb[221].mxu0  ;;  %10420 = vmatprep.subr.bf16.mxu1 %v15968_v0  ;;  %10516 = vmatprep.subr.bf16.mxu0 %v15968_v0 }
 0x549   :  { %v3343_v56 = vpop.f32.mrb[202].mxu1  ;;  %4164 = vmatmul.mubr.f32.gmra.mrb[8].mxu1 %v3967_v4  ;;  %4743 = vmatmul.mubr.f32.gmra.mrb[8].mxu0 %v4546_v38  ;;  %v3996_v35 = vld [vmem:[#allocation7 + $0x168] sm:$0xff] }
 0x54a   :  { %v3924_v3 = vmax.f32 %v3343_v56, %v14208_v6  ;;  %v3345_v27 = vpop.f32.mrb[203].mxu1  ;;  %4168 = vmatprep.mubr.f32.mxu1 %v3972_v30  ;;  %4747 = vmatprep.mubr.f32.mxu0 %v4551_v62  ;;  %v3975_v6 = vld [vmem:[#allocation7 + $0xc0] sm:$0xff]  ;;  %v4575_v56 = vld [vmem:[#allocation7 + $0x568] sm:$0xff] }
 0x54b   :  { %v14248_v63 = vpop.f32.mrb[222].mxu0  ;;  %v4570_v30 = vld [vmem:[#allocation7 + $0x540] sm:$0xff] }
 0x54c   :  { %v10421_v2 = vpack.c.bf16 %v3924_v3, %v3923_v19  ;;  %v3805_v47 = vpop.f32.mrb[223].mxu0  ;;  %v4571_v19 = vld [vmem:[#allocation7 + $0x548] sm:$0xff] }
 0x54d   :  { %v3348_v59 = vpop.f32.mrb[204].mxu1  ;;  %4169 = vmatmul.mubr.f32.gmra.mrb[10].mxu1 %v3971_v26  ;;  %4748 = vmatmul.mubr.f32.gmra.mrb[10].mxu0 %v4550_v33  ;;  %v3995_v33 = vld [vmem:[#allocation7 + $0x160] sm:$0xff] }
 0x54e   :  { %v3925_v50 = vmax.f32 %v3348_v59, %v14211_v8  ;;  %v3350_v14 = vpop.f32.mrb[205].mxu1  ;;  %10422 = vmatpush1.bf16.msra.mxu1 %v10421_v2  ;;  %10518 = vmatpush1.bf16.msra.mxu0 %v10421_v2  ;;  %v4574_v2 = vld [vmem:[#allocation7 + $0x560] sm:$0xff]  ;;  %v4000_v59 = vld [vmem:[#allocation7 + $0x188] sm:$0xff] }
 0x54f   :  { %v14251_v34 = vpop.f32.mrb[224].mxu0  ;;  %4173 = vmatprep.mubr.f32.mxu1 %v3976_v37  ;;  %4752 = vmatprep.mubr.f32.mxu0 %v4555_v48 }
 0x550   :  { %v3810_v20 = vpop.f32.mrb[225].mxu0  ;;  %10423 = vmatprep.subr.bf16.mxu1 %v15968_v0  ;;  %10519 = vmatprep.subr.bf16.mxu0 %v15968_v0 }
 0x551   :  { %v3353_v25 = vpop.f32.mrb[206].mxu1  ;;  %4174 = vmatmul.mubr.f32.gmra.mrb[12].mxu1 %v3975_v6  ;;  %4753 = vmatmul.mubr.f32.gmra.mrb[12].mxu0 %v4554_v10  ;;  %v4004_v20 = vld [vmem:[#allocation7 + $0x1a8] sm:$0xff] }
 0x552   :  { %v3926_v8 = vmax.f32 %v3353_v25, %v14216_v39  ;;  %v3355_v32 = vpop.f32.mrb[207].mxu1  ;;  %4178 = vmatprep.mubr.f32.mxu1 %v3980_v12  ;;  %4757 = vmatprep.mubr.f32.mxu0 %v4559_v51  ;;  %v3983_v39 = vld [vmem:[#allocation7 + $0x100] sm:$0xff]  ;;  %v4583_v25 = vld [vmem:[#allocation7 + $0x5a8] sm:$0xff] }
 0x553   :  { %v14256_v28 = vpop.f32.mrb[226].mxu0  ;;  %v4578_v12 = vld [vmem:[#allocation7 + $0x580] sm:$0xff] }
 0x554   :  { %v10424_v55 = vpack.c.bf16 %v3926_v8, %v3925_v50  ;;  %v3815_v61 = vpop.f32.mrb[227].mxu0  ;;  %v4579_v50 = vld [vmem:[#allocation7 + $0x588] sm:$0xff] }
 0x555   :  { %v3358_v15 = vpop.f32.mrb[208].mxu1  ;;  %4179 = vmatmul.mubr.f32.gmra.mrb[14].mxu1 %v3979_v22  ;;  %4758 = vmatmul.mubr.f32.gmra.mrb[14].mxu0 %v4558_v21  ;;  %v4003_v21 = vld [vmem:[#allocation7 + $0x1a0] sm:$0xff] }
 0x556   :  { %v3927_v36 = vmax.f32 %v3358_v15, %v14219_v13  ;;  %v3360_v11 = vpop.f32.mrb[209].mxu1  ;;  %10425 = vmatpush1.bf16.msra.mxu1 %v10424_v55  ;;  %10521 = vmatpush1.bf16.msra.mxu0 %v10424_v55  ;;  %v4582_v55 = vld [vmem:[#allocation7 + $0x5a0] sm:$0xff]  ;;  %v4008_v15 = vld [vmem:[#allocation7 + $0x1c8] sm:$0xff] }
 0x557   :  { %v14259_v40 = vpop.f32.mrb[228].mxu0  ;;  %4183 = vmatprep.mubr.f32.mxu1 %v3984_v41  ;;  %4762 = vmatprep.mubr.f32.mxu0 %v4563_v58 }
 0x558   :  { %v3820_v43 = vpop.f32.mrb[229].mxu0  ;;  %10426 = vmatprep.subr.bf16.mxu1 %v15968_v0  ;;  %10522 = vmatprep.subr.bf16.mxu0 %v15968_v0 }
 0x559   :  { %v3363_v31 = vpop.f32.mrb[210].mxu1  ;;  %4184 = vmatmul.mubr.f32.gmra.mrb[16].mxu1 %v3983_v39  ;;  %4763 = vmatmul.mubr.f32.gmra.mrb[16].mxu0 %v4562_v45  ;;  %v4012_v43 = vld [vmem:[#allocation7 + $0x1e8] sm:$0xff] }
 0x55a   :  { %v3928_v13 = vmax.f32 %v3363_v31, %v14224_v7  ;;  %v3365_v16 = vpop.f32.mrb[211].mxu1  ;;  %4188 = vmatprep.mubr.f32.mxu1 %v3988_v23  ;;  %4767 = vmatprep.mubr.f32.mxu0 %v4567_v53  ;;  %v3991_v7 = vld [vmem:[#allocation7 + $0x140] sm:$0xff]  ;;  %v4591_v31 = vld [vmem:[#allocation7 + $0x5e8] sm:$0xff] }
 0x55b   :  { %v14264_v17 = vpop.f32.mrb[230].mxu0  ;;  %v4586_v23 = vld [vmem:[#allocation7 + $0x5c0] sm:$0xff] }
 0x55c   :  { %v10427_v52 = vpack.c.bf16 %v3928_v13, %v3927_v36  ;;  %v3825_v54 = vpop.f32.mrb[231].mxu0  ;;  %v4587_v36 = vld [vmem:[#allocation7 + $0x5c8] sm:$0xff] }
 0x55d   :  { %v3368_v18 = vpop.f32.mrb[212].mxu1  ;;  %4189 = vmatmul.mubr.f32.gmra.mrb[18].mxu1 %v3987_v1  ;;  %4768 = vmatmul.mubr.f32.gmra.mrb[18].mxu0 %v4566_v46  ;;  %v4011_v46 = vld [vmem:[#allocation7 + $0x1e0] sm:$0xff] }
 0x55e   :  { %v3929_v4 = vmax.f32 %v3368_v18, %v14227_v49  ;;  %v3370_v38 = vpop.f32.mrb[213].mxu1  ;;  %10428 = vmatpush1.bf16.msra.mxu1 %v10427_v52  ;;  %10524 = vmatpush1.bf16.msra.mxu0 %v10427_v52  ;;  %v4590_v52 = vld [vmem:[#allocation7 + $0x5e0] sm:$0xff]  ;;  %v4016_v18 = vld [vmem:[#allocation7 + $0x208] sm:$0xff] }
 0x55f   :  { %v14267_v62 = vpop.f32.mrb[232].mxu0  ;;  %4193 = vmatprep.mubr.f32.mxu1 %v3992_v57  ;;  %4772 = vmatprep.mubr.f32.mxu0 %v4571_v19 }
 0x560   :  { %v3830_v3 = vpop.f32.mrb[233].mxu0  ;;  %10429 = vmatprep.subr.bf16.mxu1 %v15968_v0  ;;  %10525 = vmatprep.subr.bf16.mxu0 %v15968_v0 }
 0x561   :  { %v3373_v27 = vpop.f32.mrb[214].mxu1  ;;  %4194 = vmatmul.mubr.f32.gmra.mrb[20].mxu1 %v3991_v7  ;;  %4773 = vmatmul.mubr.f32.gmra.mrb[20].mxu0 %v4570_v30  ;;  %v4020_v3 = vld [vmem:[#allocation7 + $0x228] sm:$0xff] }
 0x562   :  { %v3930_v49 = vmax.f32 %v3373_v27, %v14232_v9  ;;  %v3375_v26 = vpop.f32.mrb[215].mxu1  ;;  %4198 = vmatprep.mubr.f32.mxu1 %v3996_v35  ;;  %4777 = vmatprep.mubr.f32.mxu0 %v4575_v56  ;;  %v3999_v9 = vld [vmem:[#allocation7 + $0x180] sm:$0xff]  ;;  %v4599_v27 = vld [vmem:[#allocation7 + $0x628] sm:$0xff] }
 0x563   :  { %v14272_v47 = vpop.f32.mrb[234].mxu0  ;;  %v4594_v35 = vld [vmem:[#allocation7 + $0x600] sm:$0xff] }
 0x564   :  { %v10430_v37 = vpack.c.bf16 %v3930_v49, %v3929_v4  ;;  %v3835_v48 = vpop.f32.mrb[235].mxu0  ;;  %v4595_v4 = vld [vmem:[#allocation7 + $0x608] sm:$0xff] }
 0x565   :  { %v3378_v14 = vpop.f32.mrb[216].mxu1  ;;  %4199 = vmatmul.mubr.f32.gmra.mrb[22].mxu1 %v3995_v33  ;;  %4778 = vmatmul.mubr.f32.gmra.mrb[22].mxu0 %v4574_v2  ;;  %v4019_v2 = vld [vmem:[#allocation7 + $0x220] sm:$0xff] }
 0x566   :  { %v3931_v6 = vmax.f32 %v3378_v14, %v14235_v29  ;;  %v3380_v10 = vpop.f32.mrb[217].mxu1  ;;  %10431 = vmatpush1.bf16.msra.mxu1 %v10430_v37  ;;  %10527 = vmatpush1.bf16.msra.mxu0 %v10430_v37  ;;  %v4598_v37 = vld [vmem:[#allocation7 + $0x620] sm:$0xff]  ;;  %v4024_v14 = vld [vmem:[#allocation7 + $0x248] sm:$0xff] }
 0x567   :  { %v14275_v51 = vpop.f32.mrb[236].mxu0  ;;  %4203 = vmatprep.mubr.f32.mxu1 %v4000_v59  ;;  %4782 = vmatprep.mubr.f32.mxu0 %v4579_v50 }
 0x568   :  { %v3840_v8 = vpop.f32.mrb[237].mxu0  ;;  %10432 = vmatprep.subr.bf16.mxu1 %v15968_v0  ;;  %10528 = vmatprep.subr.bf16.mxu0 %v15968_v0 }
 0x569   :  { %v3383_v32 = vpop.f32.mrb[218].mxu1  ;;  %4204 = vmatmul.mubr.f32.gmra.mrb[24].mxu1 %v3999_v9  ;;  %4783 = vmatmul.mubr.f32.gmra.mrb[24].mxu0 %v4578_v12  ;;  %v4028_v8 = vld [vmem:[#allocation7 + $0x268] sm:$0xff] }
 0x56a   :  { %v3932_v29 = vmax.f32 %v3383_v32, %v14240_v42  ;;  %v3385_v22 = vpop.f32.mrb[219].mxu1  ;;  %4208 = vmatprep.mubr.f32.mxu1 %v4004_v20  ;;  %4787 = vmatprep.mubr.f32.mxu0 %v4583_v25  ;;  %v4007_v42 = vld [vmem:[#allocation7 + $0x1c0] sm:$0xff]  ;;  %v4607_v32 = vld [vmem:[#allocation7 + $0x668] sm:$0xff] }
 0x56b   :  { %v14280_v61 = vpop.f32.mrb[238].mxu0  ;;  %v4602_v20 = vld [vmem:[#allocation7 + $0x640] sm:$0xff] }
 0x56c   :  { %v10433_v41 = vpack.c.bf16 %v3932_v29, %v3931_v6  ;;  %v3845_v58 = vpop.f32.mrb[239].mxu0  ;;  %v4603_v6 = vld [vmem:[#allocation7 + $0x648] sm:$0xff] }
 0x56d   :  { %v3388_v11 = vpop.f32.mrb[220].mxu1  ;;  %4209 = vmatmul.mubr.f32.gmra.mrb[26].mxu1 %v4003_v21  ;;  %4788 = vmatmul.mubr.f32.gmra.mrb[26].mxu0 %v4582_v55  ;;  %v4027_v55 = vld [vmem:[#allocation7 + $0x260] sm:$0xff] }
 0x56e   :  { %v3933_v39 = vmax.f32 %v3388_v11, %v14243_v24  ;;  %v3390_v45 = vpop.f32.mrb[221].mxu1  ;;  %10434 = vmatpush1.bf16.msra.mxu1 %v10433_v41  ;;  %10530 = vmatpush1.bf16.msra.mxu0 %v10433_v41  ;;  %v4606_v41 = vld [vmem:[#allocation7 + $0x660] sm:$0xff]  ;;  %v4032_v11 = vld [vmem:[#allocation7 + $0x288] sm:$0xff] }
 0x56f   :  { %v14283_v53 = vpop.f32.mrb[240].mxu0  ;;  %4213 = vmatprep.mubr.f32.mxu1 %v4008_v15  ;;  %4792 = vmatprep.mubr.f32.mxu0 %v4587_v36 }
 0x570   :  { %v3850_v13 = vpop.f32.mrb[241].mxu0  ;;  %10435 = vmatprep.subr.bf16.mxu1 %v15968_v0  ;;  %10531 = vmatprep.subr.bf16.mxu0 %v15968_v0 }
 0x571   :  { %v3393_v16 = vpop.f32.mrb[222].mxu1  ;;  %4214 = vmatmul.mubr.f32.gmra.mrb[28].mxu1 %v4007_v42  ;;  %4793 = vmatmul.mubr.f32.gmra.mrb[28].mxu0 %v4586_v23  ;;  %v4036_v13 = vld [vmem:[#allocation7 + $0x2a8] sm:$0xff] }
 0x572   :  { %v3934_v24 = vmax.f32 %v3393_v16, %v14248_v63  ;;  %v3395_v1 = vpop.f32.mrb[223].mxu1  ;;  %4218 = vmatprep.mubr.f32.mxu1 %v4012_v43  ;;  %4797 = vmatprep.mubr.f32.mxu0 %v4591_v31  ;;  %v4015_v63 = vld [vmem:[#allocation7 + $0x200] sm:$0xff]  ;;  %v4615_v16 = vld [vmem:[#allocation7 + $0x6a8] sm:$0xff] }
 0x573   :  { %v14288_v54 = vpop.f32.mrb[242].mxu0  ;;  %v4610_v43 = vld [vmem:[#allocation7 + $0x680] sm:$0xff] }
 0x574   :  { %v10436_v57 = vpack.c.bf16 %v3934_v24, %v3933_v39  ;;  %v3855_v19 = vpop.f32.mrb[243].mxu0  ;;  %v4611_v39 = vld [vmem:[#allocation7 + $0x688] sm:$0xff] }
 0x575   :  { %v3398_v38 = vpop.f32.mrb[224].mxu1  ;;  %4219 = vmatmul.mubr.f32.gmra.mrb[30].mxu1 %v4011_v46  ;;  %4798 = vmatmul.mubr.f32.gmra.mrb[30].mxu0 %v4590_v52  ;;  %v4035_v52 = vld [vmem:[#allocation7 + $0x2a0] sm:$0xff] }
 0x576   :  { %v3935_v7 = vmax.f32 %v3398_v38, %v14251_v34  ;;  %v3400_v30 = vpop.f32.mrb[225].mxu1  ;;  %10437 = vmatpush1.bf16.msra.mxu1 %v10436_v57  ;;  %10533 = vmatpush1.bf16.msra.mxu0 %v10436_v57  ;;  %v4614_v57 = vld [vmem:[#allocation7 + $0x6a0] sm:$0xff]  ;;  %v4040_v38 = vld [vmem:[#allocation7 + $0x2c8] sm:$0xff] }
 0x577   :  { %v14291_v56 = vpop.f32.mrb[244].mxu0  ;;  %4223 = vmatprep.mubr.f32.mxu1 %v4016_v18  ;;  %4802 = vmatprep.mubr.f32.mxu0 %v4595_v4 }
 0x578   :  { %v3860_v49 = vpop.f32.mrb[245].mxu0  ;;  %10438 = vmatprep.subr.bf16.mxu1 %v15968_v0  ;;  %10534 = vmatprep.subr.bf16.mxu0 %v15968_v0 }
 0x579   :  { %v3403_v26 = vpop.f32.mrb[226].mxu1  ;;  %4224 = vmatmul.mubr.f32.gmra.mrb[32].mxu1 %v4015_v63  ;;  %4803 = vmatmul.mubr.f32.gmra.mrb[32].mxu0 %v4594_v35  ;;  %v4623_v49 = vld [vmem:[#allocation7 + $0x6e8] sm:$0xff] }
 0x57a   :  { %v3936_v34 = vmax.f32 %v3403_v26, %v14256_v28  ;;  %v3405_v33 = vpop.f32.mrb[227].mxu1  ;;  %4228 = vmatprep.mubr.f32.mxu1 %v4020_v3  ;;  %4807 = vmatprep.mubr.f32.mxu0 %v4599_v27  ;;  %v4023_v28 = vld [vmem:[#allocation7 + $0x240] sm:$0xff]  ;;  %v4044_v27 = vld [vmem:[#allocation7 + $0x2e8] sm:$0xff] }
 0x57b   :  { %v14296_v48 = vpop.f32.mrb[246].mxu0  ;;  %v4618_v3 = vld [vmem:[#allocation7 + $0x6c0] sm:$0xff] }
 0x57c   :  { %v10439_v59 = vpack.c.bf16 %v3936_v34, %v3935_v7  ;;  %v3865_v50 = vpop.f32.mrb[247].mxu0  ;;  %v4619_v7 = vld [vmem:[#allocation7 + $0x6c8] sm:$0xff] }
 0x57d   :  { %v3408_v10 = vpop.f32.mrb[228].mxu1  ;;  %4229 = vmatmul.mubr.f32.gmra.mrb[34].mxu1 %v4019_v2  ;;  %4808 = vmatmul.mubr.f32.gmra.mrb[34].mxu0 %v4598_v37  ;;  %v4622_v2 = vld [vmem:[#allocation7 + $0x6e0] sm:$0xff]  ;;  %v4627_v50 = vld [vmem:[#allocation7 + $0x708] sm:$0xff] }
 0x57e   :  { %v3937_v9 = vmax.f32 %v3408_v10, %v14259_v40  ;;  %v3410_v12 = vpop.f32.mrb[229].mxu1  ;;  %10440 = vmatpush1.bf16.msra.mxu1 %v10439_v59  ;;  %10536 = vmatpush1.bf16.msra.mxu0 %v10439_v59  ;;  %v4048_v59 = vld [vmem:[#allocation7 + $0x308] sm:$0xff] }
 0x57f   :  { %v14299_v25 = vpop.f32.mrb[248].mxu0  ;;  %4233 = vmatprep.mubr.f32.mxu1 %v4024_v14  ;;  %4812 = vmatprep.mubr.f32.mxu0 %v4603_v6  ;;  %v4626_v12 = vld [vmem:[#allocation7 + $0x700] sm:$0xff] }
 0x580   :  { %v3870_v29 = vpop.f32.mrb[249].mxu0  ;;  %10441 = vmatprep.subr.bf16.mxu1 %v15968_v0  ;;  %10537 = vmatprep.subr.bf16.mxu0 %v15968_v0 }
 0x581   :  { %v3413_v22 = vpop.f32.mrb[230].mxu1  ;;  %4234 = vmatmul.mubr.f32.gmra.mrb[36].mxu1 %v4023_v28  ;;  %4813 = vmatmul.mubr.f32.gmra.mrb[36].mxu0 %v4602_v20  ;;  %v4631_v28 = vld [vmem:[#allocation7 + $0x728] sm:$0xff]  ;;  %v4630_v29 = vld [vmem:[#allocation7 + $0x720] sm:$0xff] }
 0x582   :  { %v3938_v40 = vmax.f32 %v3413_v22, %v14264_v17  ;;  %v3415_v21 = vpop.f32.mrb[231].mxu1  ;;  %4238 = vmatprep.mubr.f32.mxu1 %v4028_v8  ;;  %4817 = vmatprep.mubr.f32.mxu0 %v4607_v32  ;;  %v4031_v17 = vld [vmem:[#allocation7 + $0x280] sm:$0xff] }
 0x583   :  { %v14304_v58 = vpop.f32.mrb[250].mxu0  ;;  %v4635_v21 = vld [vmem:[#allocation7 + $0x748] sm:$0xff] }
 0x584   :  { %v10442_v15 = vpack.c.bf16 %v3938_v40, %v3937_v9  ;;  %v3875_v36 = vpop.f32.mrb[251].mxu0  ;;  %v4047_v9 = vld [vmem:[#allocation7 + $0x300] sm:$0xff]  ;;  %v4056_v40 = vld [vmem:[#allocation7 + $0x348] sm:$0xff] }
 0x585   :  { %v3418_v45 = vpop.f32.mrb[232].mxu1  ;;  %4239 = vmatmul.mubr.f32.gmra.mrb[38].mxu1 %v4027_v55  ;;  %4818 = vmatmul.mubr.f32.gmra.mrb[38].mxu0 %v4606_v41  ;;  %v4055_v36 = vld [vmem:[#allocation7 + $0x340] sm:$0xff] }
 0x586   :  { %v3939_v42 = vmax.f32 %v3418_v45, %v14267_v62  ;;  %v3420_v23 = vpop.f32.mrb[233].mxu1  ;;  %10443 = vmatpush1.bf16.msra.mxu1 %v10442_v15  ;;  %10539 = vmatpush1.bf16.msra.mxu0 %v10442_v15 }
 0x587   :  { %v14307_v31 = vpop.f32.mrb[252].mxu0  ;;  %4243 = vmatprep.mubr.f32.mxu1 %v4032_v11  ;;  %4822 = vmatprep.mubr.f32.mxu0 %v4611_v39  ;;  %v4634_v11 = vld [vmem:[#allocation7 + $0x740] sm:$0xff]  ;;  %v4639_v39 = vld [vmem:[#allocation7 + $0x768] sm:$0xff] }
 0x588   :  { %v3880_v24 = vpop.f32.mrb[253].mxu0  ;;  %10444 = vmatprep.subr.bf16.mxu1 %v15968_v0  ;;  %10540 = vmatprep.subr.bf16.mxu0 %v15968_v0 }
 0x589   :  { %v3423_v1 = vpop.f32.mrb[234].mxu1  ;;  %4244 = vmatmul.mubr.f32.gmra.mrb[40].mxu1 %v4031_v17  ;;  %4823 = vmatmul.mubr.f32.gmra.mrb[40].mxu0 %v4610_v43  ;;  %v4638_v17 = vld [vmem:[#allocation7 + $0x760] sm:$0xff] }
 0x58a   :  { %v3940_v62 = vmax.f32 %v3423_v1, %v14272_v47  ;;  %v3425_v46 = vpop.f32.mrb[235].mxu1  ;;  %4248 = vmatprep.mubr.f32.mxu1 %v4036_v13  ;;  %4827 = vmatprep.mubr.f32.mxu0 %v4615_v16  ;;  %v4039_v47 = vld [vmem:[#allocation7 + $0x2c0] sm:$0xff]  ;;  %v4064_v13 = vld [vmem:[#allocation7 + $0x388] sm:$0xff] }
 0x58b   :  { %v14312_v19 = vpop.f32.mrb[254].mxu0  ;;  %v4643_v16 = vld [vmem:[#allocation7 + $0x788] sm:$0xff]  ;;  %v4063_v46 = vld [vmem:[#allocation7 + $0x380] sm:$0xff] }
 0x58c   :  { %v10445_v18 = vpack.c.bf16 %v3940_v62, %v3939_v42  ;;  %v3885_v4 = vpop.f32.mrb[255].mxu0 }
 0x58d   :  { %v3428_v30 = vpop.f32.mrb[236].mxu1  ;;  %4249 = vmatmul.mubr.f32.gmra.mrb[42].mxu1 %v4035_v52  ;;  %4828 = vmatmul.mubr.f32.gmra.mrb[42].mxu0 %v4614_v57  ;;  %v4642_v52 = vld [vmem:[#allocation7 + $0x780] sm:$0xff]  ;;  %v4647_v57 = vld [vmem:[#allocation7 + $0x7a8] sm:$0xff] }
 0x58e   :  { %v3941_v63 = vmax.f32 %v3428_v30, %v14275_v51  ;;  %v3430_v35 = vpop.f32.mrb[237].mxu1  ;;  %10446 = vmatpush1.bf16.msra.mxu1 %v10445_v18  ;;  %10542 = vmatpush1.bf16.msra.mxu0 %v10445_v18  ;;  %v4043_v51 = vld [vmem:[#allocation7 + $0x2e0] sm:$0xff] }
 0x58f   :  { %4253 = vmatprep.mubr.f32.mxu1 %v4040_v38  ;;  %4832 = vmatprep.mubr.f32.mxu0 %v4619_v7  ;;  %v4646_v7 = vld [vmem:[#allocation7 + $0x7a0] sm:$0xff]  ;;  %v4651_v35 = vld [vmem:[#allocation7 + $0x7c8] sm:$0xff] }
 0x590   :  { %10447 = vmatprep.subr.bf16.mxu1 %v15968_v0  ;;  %10543 = vmatprep.subr.bf16.mxu0 %v15968_v0 }
 0x591   :  { %v3433_v26 = vpop.f32.mrb[238].mxu1  ;;  %4254 = vmatmul.mubr.f32.gmra.mrb[44].mxu1 %v4039_v47  ;;  %4833 = vmatmul.mubr.f32.gmra.mrb[44].mxu0 %v4618_v3 }
 0x592   :  { %v3942_v34 = vmax.f32 %v3433_v26, %v14280_v61  ;;  %v3435_v33 = vpop.f32.mrb[239].mxu1  ;;  %4258 = vmatprep.mubr.f32.mxu1 %v4044_v27  ;;  %4837 = vmatprep.mubr.f32.mxu0 %v4623_v49  ;;  %v4052_v61 = vld [vmem:[#allocation7 + $0x328] sm:$0xff]  ;;  %v4071_v49 = vld [vmem:[#allocation7 + $0x3c0] sm:$0xff] }
 0x593   :  { %v4650_v26 = vld [vmem:[#allocation7 + $0x7c0] sm:$0xff] }
 0x594   :  { %v10448_v37 = vpack.c.bf16 %v3942_v34, %v3941_v63  ;;  %v4072_v63 = vld [vmem:[#allocation7 + $0x3c8] sm:$0xff] }
 0x595   :  { %v3438_v14 = vpop.f32.mrb[240].mxu1  ;;  %4259 = vmatmul.mubr.f32.gmra.mrb[46].mxu1 %v4043_v51  ;;  %4838 = vmatmul.mubr.f32.gmra.mrb[46].mxu0 %v4622_v2  ;;  %v4655_v34 = vld [vmem:[#allocation7 + $0x7e8] sm:$0xff] }
 0x596   :  { %v3943_v6 = vmax.f32 %v3438_v14, %v14283_v53  ;;  %v3440_v10 = vpop.f32.mrb[241].mxu1  ;;  %10449 = vmatpush1.bf16.msra.mxu1 %v10448_v37  ;;  %10545 = vmatpush1.bf16.msra.mxu0 %v10448_v37  ;;  %v4051_v53 = vld [vmem:[#allocation7 + $0x320] sm:$0xff]  ;;  %v4533_v14 = vld [vmem:[#allocation7 + $0x418] sm:$0xff] }
 0x597   :  { %4263 = vmatprep.mubr.f32.mxu1 %v4048_v59  ;;  %4842 = vmatprep.mubr.f32.mxu0 %v4627_v50  ;;  %v4654_v37 = vld [vmem:[#allocation7 + $0x7e0] sm:$0xff]  ;;  %v3954_v50 = vld [vmem:[#allocation7 + $0x18] sm:$0xff]  ;;  %v4532_v10 = vld [vmem:[#allocation7 + $0x410] sm:$0xff] }
 0x598   :  { %10450 = vmatprep.subr.bf16.mxu1 %v15968_v0  ;;  %10546 = vmatprep.subr.bf16.mxu0 %v15968_v0 }
 0x599   :  { %v3443_v20 = vpop.f32.mrb[242].mxu1  ;;  %4264 = vmatmul.mubr.f32.gmra.mrb[48].mxu1 %v4047_v9  ;;  %4843 = vmatmul.mubr.f32.gmra.mrb[48].mxu0 %v4626_v12  ;;  %v5455_v9 = vld [vmem:[#allocation10 + $0xc8] sm:$0xff]  ;;  %v5457_v12 = vld [vmem:[#allocation10 + $0xd8] sm:$0xff] }
 0x59a   :  { %v3944_v8 = vmax.f32 %v3443_v20, %v14288_v54  ;;  %v3445_v32 = vpop.f32.mrb[243].mxu1  ;;  %4268 = vmatprep.mubr.f32.mxu1 %v4052_v61  ;;  %4847 = vmatprep.mubr.f32.mxu0 %v4631_v28  ;;  %v4060_v54 = vld [vmem:[#allocation7 + $0x368] sm:$0xff]  ;;  %v10606_v61 = vpack.c.bf16 %v5457_v12, %v5455_v9  ;;  %v5454_v28 = vld [vmem:[#allocation10 + $0xc0] sm:$0xff]  ;;  %v5456_v20 = vld [vmem:[#allocation10 + $0xd0] sm:$0xff] }
 0x59b   :  { %v4537_v32 = vld [vmem:[#allocation7 + $0x438] sm:$0xff]  ;;  %v4560_v9 = vld [vmem:[#allocation7 + $0x4f0] sm:$0xff] }
 0x59c   :  { %v10451_v22 = vpack.c.bf16 %v3944_v8, %v3943_v6  ;;  %v3953_v6 = vld [vmem:[#allocation7 + $0x10] sm:$0xff]  ;;  %v3958_v8 = vld [vmem:[#allocation7 + $0x38] sm:$0xff] }
 0x59d   :  { %v3448_v55 = vpop.f32.mrb[244].mxu1  ;;  %4269 = vmatmul.mubr.f32.gmra.mrb[50].mxu1 %v4051_v53  ;;  %4848 = vmatmul.mubr.f32.gmra.mrb[50].mxu0 %v4630_v29  ;;  %v10608_v53 = vpack.c.bf16 %v5456_v20, %v5454_v28  ;;  %v5461_v29 = vld [vmem:[#allocation10 + $0xf8] sm:$0xff]  ;;  %v3985_v28 = vld [vmem:[#allocation7 + $0x110] sm:$0xff] }
 0x59e   :  { %v3945_v41 = vmax.f32 %v3448_v55, %v14291_v56  ;;  %v3450_v15 = vpop.f32.mrb[245].mxu1  ;;  %10452 = vmatpush1.bf16.msra.mxu1 %v10451_v22  ;;  %10548 = vmatpush1.bf16.msra.mxu0 %v10451_v22  ;;  %v4059_v56 = vld [vmem:[#allocation7 + $0x360] sm:$0xff]  ;;  %v5463_v55 = vld [vmem:[#allocation10 + $0x108] sm:$0xff]  ;;  %v3986_v12 = vld [vmem:[#allocation7 + $0x118] sm:$0xff] }
 0x59f   :  { %4273 = vmatprep.mubr.f32.mxu1 %v4056_v40  ;;  %4852 = vmatprep.mubr.f32.mxu0 %v4635_v21  ;;  %v5458_v40 = vld [vmem:[#allocation10 + $0xe0] sm:$0xff]  ;;  %v5460_v21 = vld [vmem:[#allocation10 + $0xf0] sm:$0xff] }
 0x5a0   :  { %10453 = vmatprep.subr.bf16.mxu1 %v15968_v0  ;;  %10549 = vmatprep.subr.bf16.mxu0 %v15968_v0  ;;  %v3957_v15 = vld [vmem:[#allocation7 + $0x30] sm:$0xff] }
 0x5a1   :  { %v3453_v45 = vpop.f32.mrb[246].mxu1  ;;  %4274 = vmatmul.mubr.f32.gmra.mrb[52].mxu1 %v4055_v36  ;;  %4853 = vmatmul.mubr.f32.gmra.mrb[52].mxu0 %v4634_v11  ;;  %v4536_v36 = vld [vmem:[#allocation7 + $0x430] sm:$0xff]  ;;  %v3962_v11 = vld [vmem:[#allocation7 + $0x58] sm:$0xff] }
 0x5a2   :  { %v3946_v42 = vmax.f32 %v3453_v45, %v14296_v48  ;;  %v3455_v23 = vpop.f32.mrb[247].mxu1  ;;  %4278 = vmatprep.mubr.f32.mxu1 %v4060_v54  ;;  %4857 = vmatprep.mubr.f32.mxu0 %v4639_v39  ;;  %v4068_v48 = vld [vmem:[#allocation7 + $0x3a8] sm:$0xff]  ;;  %v4541_v54 = vld [vmem:[#allocation7 + $0x458] sm:$0xff]  ;;  %v10612_v39 = vpack.c.bf16 %v5460_v21, %v5458_v40  ;;  %v4564_v20 = vld [vmem:[#allocation7 + $0x510] sm:$0xff] }
 0x5a3   :  { %v5464_v23 = vld [vmem:[#allocation10 + $0x110] sm:$0xff] }
 0x5a4   :  { %v10454_v43 = vpack.c.bf16 %v3946_v42, %v3945_v41  ;;  %v5465_v41 = vld [vmem:[#allocation10 + $0x118] sm:$0xff]  ;;  %v5462_v42 = vld [vmem:[#allocation10 + $0x100] sm:$0xff]  ;;  %v3993_v40 = vld [vmem:[#allocation7 + $0x150] sm:$0xff] }
 0x5a5   :  { %v3458_v24 = vpop.f32.mrb[248].mxu1  ;;  %4279 = vmatmul.mubr.f32.gmra.mrb[54].mxu1 %v4059_v56  ;;  %4858 = vmatmul.mubr.f32.gmra.mrb[54].mxu0 %v4638_v17  ;;  %v10614_v45 = vpack.c.bf16 %v5465_v41, %v5463_v55  ;;  %v5467_v56 = vld [vmem:[#allocation10 + $0x128] sm:$0xff]  ;;  %v5469_v17 = vld [vmem:[#allocation10 + $0x138] sm:$0xff]  ;;  %v4572_v21 = vld [vmem:[#allocation7 + $0x550] sm:$0xff] }
 0x5a6   :  { %v3947_v1 = vmax.f32 %v3458_v24, %v14299_v25  ;;  %v3460_v62 = vpop.f32.mrb[249].mxu1  ;;  %10455 = vmatpush1.bf16.msra.mxu1 %v10454_v43  ;;  %10551 = vmatpush1.bf16.msra.mxu0 %v10454_v43  ;;  %v4067_v25 = vld [vmem:[#allocation7 + $0x3a0] sm:$0xff]  ;;  %v3961_v43 = vld [vmem:[#allocation7 + $0x50] sm:$0xff]  ;;  %v4545_v24 = vld [vmem:[#allocation7 + $0x478] sm:$0xff] }
 0x5a7   :  { %4283 = vmatprep.mubr.f32.mxu1 %v4064_v13  ;;  %4862 = vmatprep.mubr.f32.mxu0 %v4643_v16  ;;  %v4540_v13 = vld [vmem:[#allocation7 + $0x450] sm:$0xff]  ;;  %v3966_v16 = vld [vmem:[#allocation7 + $0x78] sm:$0xff]  ;;  %v10618_v62 = vpack.c.bf16 %v5469_v17, %v5467_v56 }
 0x5a8   :  { %10456 = vmatprep.subr.bf16.mxu1 %v15968_v0  ;;  %10552 = vmatprep.subr.bf16.mxu0 %v15968_v0  ;;  %v3998_v55 = vld [vmem:[#allocation7 + $0x178] sm:$0xff]  ;;  %v4005_v56 = vld [vmem:[#allocation7 + $0x1b0] sm:$0xff] }
 0x5a9   :  { %v3463_v18 = vpop.f32.mrb[250].mxu1  ;;  %4284 = vmatmul.mubr.f32.gmra.mrb[56].mxu1 %v4063_v46  ;;  %4863 = vmatmul.mubr.f32.gmra.mrb[56].mxu0 %v4642_v52  ;;  %v5466_v46 = vld [vmem:[#allocation10 + $0x120] sm:$0xff]  ;;  %v5468_v52 = vld [vmem:[#allocation10 + $0x130] sm:$0xff]  ;;  %v4577_v41 = vld [vmem:[#allocation7 + $0x578] sm:$0xff] }
 0x5aa   :  { %v3948_v4 = vmax.f32 %v3463_v18, %v14304_v58  ;;  %v3465_v38 = vpop.f32.mrb[251].mxu1  ;;  %4288 = vmatprep.mubr.f32.mxu1 %v4068_v48  ;;  %4867 = vmatprep.mubr.f32.mxu0 %v4647_v57  ;;  %v4076_v58 = vld [vmem:[#allocation7 + $0x3e8] sm:$0xff]  ;;  %v5473_v57 = vld [vmem:[#allocation10 + $0x158] sm:$0xff]  ;;  %v3965_v18 = vld [vmem:[#allocation7 + $0x70] sm:$0xff] }
 0x5ab   :  { %v5471_v48 = vld [vmem:[#allocation10 + $0x148] sm:$0xff]  ;;  %v3970_v38 = vld [vmem:[#allocation7 + $0x98] sm:$0xff]  ;;  %v4584_v17 = vld [vmem:[#allocation7 + $0x5b0] sm:$0xff] }
 0x5ac   :  { %v10457_v30 = vpack.c.bf16 %v3948_v4, %v3947_v1  ;;  %v10616_v1 = vpack.c.bf16 %v5464_v23, %v5462_v42  ;;  %v4544_v4 = vld [vmem:[#allocation7 + $0x470] sm:$0xff]  ;;  %v4006_v42 = vld [vmem:[#allocation7 + $0x1b8] sm:$0xff] }
 0x5ad   :  { %v3468_v47 = vpop.f32.mrb[252].mxu1  ;;  %4289 = vmatmul.mubr.f32.gmra.mrb[58].mxu1 %v4067_v25  ;;  %4868 = vmatmul.mubr.f32.gmra.mrb[58].mxu0 %v4646_v7  ;;  %v4549_v25 = vld [vmem:[#allocation7 + $0x498] sm:$0xff]  ;;  %v10620_v7 = vpack.c.bf16 %v5468_v52, %v5466_v46  ;;  %v4013_v46 = vld [vmem:[#allocation7 + $0x1f0] sm:$0xff] }
 0x5ae   :  { %v3949_v3 = vmax.f32 %v3468_v47, %v14307_v31  ;;  %v3470_v27 = vpop.f32.mrb[253].mxu1  ;;  %10458 = vmatpush1.bf16.msra.mxu1 %v10457_v30  ;;  %10554 = vmatpush1.bf16.msra.mxu0 %v10457_v30  ;;  %v4075_v31 = vld [vmem:[#allocation7 + $0x3e0] sm:$0xff]  ;;  %v10622_v30 = vpack.c.bf16 %v5473_v57, %v5471_v48  ;;  %v5475_v47 = vld [vmem:[#allocation10 + $0x168] sm:$0xff]  ;;  %v4585_v23 = vld [vmem:[#allocation7 + $0x5b8] sm:$0xff] }
 0x5af   :  { %4293 = vmatprep.mubr.f32.mxu1 %v4072_v63  ;;  %4872 = vmatprep.mubr.f32.mxu0 %v4651_v35  ;;  %v5470_v63 = vld [vmem:[#allocation10 + $0x140] sm:$0xff]  ;;  %v5472_v35 = vld [vmem:[#allocation10 + $0x150] sm:$0xff]  ;;  %v4018_v48 = vld [vmem:[#allocation7 + $0x218] sm:$0xff] }
 0x5b0   :  { %10459 = vmatprep.subr.bf16.mxu1 %v15968_v0  ;;  %10555 = vmatprep.subr.bf16.mxu0 %v15968_v0  ;;  %v3969_v27 = vld [vmem:[#allocation7 + $0x90] sm:$0xff]  ;;  %v4597_v57 = vld [vmem:[#allocation7 + $0x618] sm:$0xff] }
 0x5b1   :  { %v3473_v33 = vpop.f32.mrb[254].mxu1  ;;  %4294 = vmatmul.mubr.f32.gmra.mrb[60].mxu1 %v4071_v49  ;;  %4873 = vmatmul.mubr.f32.gmra.mrb[60].mxu0 %v4650_v26  ;;  %v4548_v49 = vld [vmem:[#allocation7 + $0x490] sm:$0xff]  ;;  %v3974_v26 = vld [vmem:[#allocation7 + $0xb8] sm:$0xff] }
 0x5b2   :  { %v3950_v51 = vmax.f32 %v3473_v33, %v14312_v19  ;;  %v3475_v2 = vpop.f32.mrb[255].mxu1  ;;  %4298 = vmatprep.mubr.f32.mxu1 %v4076_v58  ;;  %4877 = vmatprep.mubr.f32.mxu0 %v4655_v34  ;;  %v5459_v19 = vld [vmem:[#allocation10 + $0xe8] sm:$0xff]  ;;  %v4553_v58 = vld [vmem:[#allocation7 + $0x4b8] sm:$0xff]  ;;  %v10624_v34 = vpack.c.bf16 %v5472_v35, %v5470_v63  ;;  %v4592_v52 = vld [vmem:[#allocation7 + $0x5f0] sm:$0xff] }
 0x5b3   :  { %v10610_v22 = vpack.c.bf16 %v5461_v29, %v5459_v19  ;;  %v4552_v2 = vld [vmem:[#allocation7 + $0x4b0] sm:$0xff]  ;;  %v3990_v19 = vld [vmem:[#allocation7 + $0x138] sm:$0xff] }
 0x5b4   :  { %v10460_v59 = vpack.c.bf16 %v3950_v51, %v3949_v3  ;;  %v5477_v3 = vld [vmem:[#allocation10 + $0x178] sm:$0xff]  ;;  %v3973_v51 = vld [vmem:[#allocation7 + $0xb0] sm:$0xff] }
 0x5b5   :  { %4299 = vmatmul.mubr.f32.gmra.mrb[62].mxu1 %v4075_v31  ;;  %4878 = vmatmul.mubr.f32.gmra.mrb[62].mxu0 %v4654_v37  ;;  %v10626_v33 = vpack.c.bf16 %v5477_v3, %v5475_v47  ;;  %v3978_v31 = vld [vmem:[#allocation7 + $0xd8] sm:$0xff]  ;;  %v4025_v47 = vld [vmem:[#allocation7 + $0x250] sm:$0xff] }
 0x5b6   :  { %10461 = vmatpush1.bf16.msra.mxu1 %v10460_v59  ;;  %10557 = vmatpush1.bf16.msra.mxu0 %v10460_v59  ;;  %v4557_v37 = vld [vmem:[#allocation7 + $0x4d8] sm:$0xff]  ;;  %v3977_v59 = vld [vmem:[#allocation7 + $0xd0] sm:$0xff] }
 0x5b7   :  { %4368 = vmatprep.mubr.f32.mxu1 %v3954_v50  ;;  %4947 = vmatprep.mubr.f32.mxu0 %v4533_v14  ;;  %v4556_v50 = vld [vmem:[#allocation7 + $0x4d0] sm:$0xff]  ;;  %v3982_v14 = vld [vmem:[#allocation7 + $0xf8] sm:$0xff] }
 0x5b8   :  { %10607 = vmatprep.subr.bf16.mxu0 %v10606_v61  ;;  %10558 = vmatprep.subr.bf16.mxu1 %v15968_v0  ;;  %v4565_v61 = vld [vmem:[#allocation7 + $0x518] sm:$0xff]  ;;  %v4604_v3 = vld [vmem:[#allocation7 + $0x650] sm:$0xff] }
 0x5b9   :  { %4369 = vmatmul.mubr.f32.vlgmr.msra.gmra.mrb[0].mxu1 %v3953_v6  ;;  %4948 = vmatmul.mubr.f32.vlgmr.msra.gmra.mrb[0].mxu0 %v4532_v10  ;;  %v4561_v6 = vld [vmem:[#allocation7 + $0x4f8] sm:$0xff]  ;;  %v3981_v10 = vld [vmem:[#allocation7 + $0xf0] sm:$0xff] }
 0x5ba   :  { %4373 = vmatprep.mubr.f32.mxu1 %v3958_v8  ;;  %4952 = vmatprep.mubr.f32.mxu0 %v4537_v32  ;;  %v4569_v8 = vld [vmem:[#allocation7 + $0x538] sm:$0xff]  ;;  %v3989_v32 = vld [vmem:[#allocation7 + $0x130] sm:$0xff] }
 0x5bb   :  { %10609 = vmatpush1.bf16.msra.mxu0 %v10608_v53  ;;  %v4568_v53 = vld [vmem:[#allocation7 + $0x530] sm:$0xff]  ;;  %v3994_v29 = vld [vmem:[#allocation7 + $0x158] sm:$0xff] }
 0x5bc   :  { %10611 = vmatprep.subr.bf16.mxu0 %v10610_v22  ;;  %v4573_v22 = vld [vmem:[#allocation7 + $0x558] sm:$0xff] }
 0x5bd   :  { %4374 = vmatmul.mubr.f32.gmra.mrb[2].mxu1 %v3957_v15  ;;  %4953 = vmatmul.mubr.f32.gmra.mrb[2].mxu0 %v4536_v36  ;;  %v3997_v15 = vld [vmem:[#allocation7 + $0x170] sm:$0xff]  ;;  %v4026_v63 = vld [vmem:[#allocation7 + $0x258] sm:$0xff] }
 0x5be   :  { %4378 = vmatprep.mubr.f32.mxu1 %v3962_v11  ;;  %4957 = vmatprep.mubr.f32.mxu0 %v4541_v54  ;;  %v4576_v36 = vld [vmem:[#allocation7 + $0x570] sm:$0xff]  ;;  %v4002_v11 = vld [vmem:[#allocation7 + $0x198] sm:$0xff] }
 0x5bf   :  { %10613 = vmatpush1.bf16.msra.mxu0 %v10612_v39  ;;  %v4581_v54 = vld [vmem:[#allocation7 + $0x598] sm:$0xff]  ;;  %v4001_v39 = vld [vmem:[#allocation7 + $0x190] sm:$0xff] }
 0x5c0   :  { %10615 = vmatprep.subr.bf16.mxu0 %v10614_v45  ;;  %v4580_v45 = vld [vmem:[#allocation7 + $0x590] sm:$0xff]  ;;  %v4605_v35 = vld [vmem:[#allocation7 + $0x658] sm:$0xff] }
 0x5c1   :  { %4379 = vmatmul.mubr.f32.gmra.mrb[4].mxu1 %v3961_v43  ;;  %4958 = vmatmul.mubr.f32.gmra.mrb[4].mxu0 %v4540_v13  ;;  %v4010_v43 = vld [vmem:[#allocation7 + $0x1d8] sm:$0xff] }
 0x5c2   :  { %4383 = vmatprep.mubr.f32.mxu1 %v3966_v16  ;;  %4962 = vmatprep.mubr.f32.mxu0 %v4545_v24  ;;  %v4589_v13 = vld [vmem:[#allocation7 + $0x5d8] sm:$0xff]  ;;  %v4009_v16 = vld [vmem:[#allocation7 + $0x1d0] sm:$0xff] }
 0x5c3   :  { %10617 = vmatpush1.bf16.msra.mxu0 %v10616_v1  ;;  %v4588_v24 = vld [vmem:[#allocation7 + $0x5d0] sm:$0xff]  ;;  %v4014_v1 = vld [vmem:[#allocation7 + $0x1f8] sm:$0xff] }
 0x5c4   :  { %10619 = vmatprep.subr.bf16.mxu0 %v10618_v62  ;;  %v4593_v62 = vld [vmem:[#allocation7 + $0x5f8] sm:$0xff] }
 0x5c5   :  { %4384 = vmatmul.mubr.f32.gmra.mrb[6].mxu1 %v3965_v18  ;;  %4963 = vmatmul.mubr.f32.gmra.mrb[6].mxu0 %v4544_v4  ;;  %v4017_v18 = vld [vmem:[#allocation7 + $0x210] sm:$0xff] }
 0x5c6   :  { %4388 = vmatprep.mubr.f32.mxu1 %v3970_v38  ;;  %4967 = vmatprep.mubr.f32.mxu0 %v4549_v25  ;;  %v4596_v4 = vld [vmem:[#allocation7 + $0x610] sm:$0xff]  ;;  %v4022_v38 = vld [vmem:[#allocation7 + $0x238] sm:$0xff] }
 0x5c7   :  { %10621 = vmatpush1.bf16.msra.mxu0 %v10620_v7  ;;  %v4601_v25 = vld [vmem:[#allocation7 + $0x638] sm:$0xff]  ;;  %v4021_v7 = vld [vmem:[#allocation7 + $0x230] sm:$0xff] }
 0x5c8   :  { %10623 = vmatprep.subr.bf16.mxu0 %v10622_v30  ;;  %v4600_v30 = vld [vmem:[#allocation7 + $0x630] sm:$0xff] }
 0x5c9   :  { %4389 = vmatmul.mubr.f32.gmra.mrb[8].mxu1 %v3969_v27  ;;  %4968 = vmatmul.mubr.f32.gmra.mrb[8].mxu0 %v4548_v49  ;;  %v4030_v27 = vld [vmem:[#allocation7 + $0x278] sm:$0xff] }
 0x5ca   :  { %4393 = vmatprep.mubr.f32.mxu1 %v3974_v26  ;;  %4972 = vmatprep.mubr.f32.mxu0 %v4553_v58  ;;  %v4609_v49 = vld [vmem:[#allocation7 + $0x678] sm:$0xff]  ;;  %v4029_v26 = vld [vmem:[#allocation7 + $0x270] sm:$0xff] }
 0x5cb   :  { %10625 = vmatpush1.bf16.msra.mxu0 %v10624_v34  ;;  %v4608_v58 = vld [vmem:[#allocation7 + $0x670] sm:$0xff]  ;;  %v4034_v34 = vld [vmem:[#allocation7 + $0x298] sm:$0xff] }
 0x5cc   :  { %10627 = vmatprep.subr.bf16.mxu0 %v10626_v33  ;;  %v4613_v33 = vld [vmem:[#allocation7 + $0x698] sm:$0xff] }
 0x5cd   :  { %4394 = vmatmul.mubr.f32.gmra.mrb[10].mxu1 %v3973_v51  ;;  %4973 = vmatmul.mubr.f32.gmra.mrb[10].mxu0 %v4552_v2  ;;  %v4033_v51 = vld [vmem:[#allocation7 + $0x290] sm:$0xff] }
 0x5ce   :  { %4398 = vmatprep.mubr.f32.mxu1 %v3978_v31  ;;  %4977 = vmatprep.mubr.f32.mxu0 %v4557_v37  ;;  %v4612_v2 = vld [vmem:[#allocation7 + $0x690] sm:$0xff]  ;;  %v4038_v31 = vld [vmem:[#allocation7 + $0x2b8] sm:$0xff] }
 0x5cf   :  { %v4617_v37 = vld [vmem:[#allocation7 + $0x6b8] sm:$0xff] }
 0x5d1   :  { %4399 = vmatmul.mubr.f32.gmra.mrb[12].mxu1 %v3977_v59  ;;  %4978 = vmatmul.mubr.f32.gmra.mrb[12].mxu0 %v4556_v50  ;;  %v4037_v59 = vld [vmem:[#allocation7 + $0x2b0] sm:$0xff] }
 0x5d2   :  { %4403 = vmatprep.mubr.f32.mxu1 %v3982_v14  ;;  %4982 = vmatprep.mubr.f32.mxu0 %v4561_v6  ;;  %v4616_v50 = vld [vmem:[#allocation7 + $0x6b0] sm:$0xff]  ;;  %v5474_v14 = vld [vmem:[#allocation10 + $0x160] sm:$0xff] }
 0x5d3   :  { %v5476_v6 = vld [vmem:[#allocation10 + $0x170] sm:$0xff] }
 0x5d5   :  { %4404 = vmatmul.mubr.f32.gmra.mrb[14].mxu1 %v3981_v10  ;;  %4983 = vmatmul.mubr.f32.gmra.mrb[14].mxu0 %v4560_v9  ;;  %v4042_v10 = vld [vmem:[#allocation7 + $0x2d8] sm:$0xff] }
 0x5d6   :  { %4408 = vmatprep.mubr.f32.mxu1 %v3986_v12  ;;  %4987 = vmatprep.mubr.f32.mxu0 %v4565_v61  ;;  %v4621_v9 = vld [vmem:[#allocation7 + $0x6d8] sm:$0xff]  ;;  %v10628_v12 = vpack.c.bf16 %v5476_v6, %v5474_v14  ;;  %v4041_v61 = vld [vmem:[#allocation7 + $0x2d0] sm:$0xff] }
 0x5d8   :  { %10629 = vmatpush1.bf16.msra.mxu0 %v10628_v12 }
 0x5d9   :  { %4409 = vmatmul.mubr.f32.gmra.mrb[16].mxu1 %v3985_v28  ;;  %4988 = vmatmul.mubr.f32.gmra.mrb[16].mxu0 %v4564_v20  ;;  %v4620_v28 = vld [vmem:[#allocation7 + $0x6d0] sm:$0xff]  ;;  %v4046_v20 = vld [vmem:[#allocation7 + $0x2f8] sm:$0xff] }
 0x5da   :  { %4413 = vmatprep.mubr.f32.mxu1 %v3990_v19  ;;  %4992 = vmatprep.mubr.f32.mxu0 %v4569_v8  ;;  %v4625_v19 = vld [vmem:[#allocation7 + $0x6f8] sm:$0xff]  ;;  %v4045_v8 = vld [vmem:[#allocation7 + $0x2f0] sm:$0xff] }
 0x5dd   :  { %4414 = vmatmul.mubr.f32.gmra.mrb[18].mxu1 %v3989_v32  ;;  %4993 = vmatmul.mubr.f32.gmra.mrb[18].mxu0 %v4568_v53  ;;  %v4624_v32 = vld [vmem:[#allocation7 + $0x6f0] sm:$0xff]  ;;  %v4050_v53 = vld [vmem:[#allocation7 + $0x318] sm:$0xff] }
 0x5de   :  { %4418 = vmatprep.mubr.f32.mxu1 %v3994_v29  ;;  %4997 = vmatprep.mubr.f32.mxu0 %v4573_v22  ;;  %v4629_v29 = vld [vmem:[#allocation7 + $0x718] sm:$0xff]  ;;  %v4049_v22 = vld [vmem:[#allocation7 + $0x310] sm:$0xff] }
 0x5e1   :  { %4419 = vmatmul.mubr.f32.gmra.mrb[20].mxu1 %v3993_v40  ;;  %4998 = vmatmul.mubr.f32.gmra.mrb[20].mxu0 %v4572_v21  ;;  %v4628_v40 = vld [vmem:[#allocation7 + $0x710] sm:$0xff]  ;;  %v4054_v21 = vld [vmem:[#allocation7 + $0x338] sm:$0xff] }
 0x5e2   :  { %4423 = vmatprep.mubr.f32.mxu1 %v3998_v55  ;;  %5002 = vmatprep.mubr.f32.mxu0 %v4577_v41  ;;  %v4633_v55 = vld [vmem:[#allocation7 + $0x738] sm:$0xff]  ;;  %v4053_v41 = vld [vmem:[#allocation7 + $0x330] sm:$0xff] }
 0x5e5   :  { %4424 = vmatmul.mubr.f32.gmra.mrb[22].mxu1 %v3997_v15  ;;  %5003 = vmatmul.mubr.f32.gmra.mrb[22].mxu0 %v4576_v36  ;;  %v4632_v15 = vld [vmem:[#allocation7 + $0x730] sm:$0xff]  ;;  %v4058_v36 = vld [vmem:[#allocation7 + $0x358] sm:$0xff] }
 0x5e6   :  { %4428 = vmatprep.mubr.f32.mxu1 %v4002_v11  ;;  %5007 = vmatprep.mubr.f32.mxu0 %v4581_v54  ;;  %v4637_v11 = vld [vmem:[#allocation7 + $0x758] sm:$0xff]  ;;  %v4057_v54 = vld [vmem:[#allocation7 + $0x350] sm:$0xff] }
 0x5e9   :  { %4429 = vmatmul.mubr.f32.gmra.mrb[24].mxu1 %v4001_v39  ;;  %5008 = vmatmul.mubr.f32.gmra.mrb[24].mxu0 %v4580_v45  ;;  %v4636_v39 = vld [vmem:[#allocation7 + $0x750] sm:$0xff]  ;;  %v4062_v45 = vld [vmem:[#allocation7 + $0x378] sm:$0xff] }
 0x5ea   :  { %4433 = vmatprep.mubr.f32.mxu1 %v4006_v42  ;;  %5012 = vmatprep.mubr.f32.mxu0 %v4585_v23  ;;  %v4641_v42 = vld [vmem:[#allocation7 + $0x778] sm:$0xff]  ;;  %v4061_v23 = vld [vmem:[#allocation7 + $0x370] sm:$0xff] }
 0x5ed   :  { %4434 = vmatmul.mubr.f32.gmra.mrb[26].mxu1 %v4005_v56  ;;  %5013 = vmatmul.mubr.f32.gmra.mrb[26].mxu0 %v4584_v17  ;;  %v4640_v56 = vld [vmem:[#allocation7 + $0x770] sm:$0xff]  ;;  %v4066_v17 = vld [vmem:[#allocation7 + $0x398] sm:$0xff] }
 0x5ee   :  { %4438 = vmatprep.mubr.f32.mxu1 %v4010_v43  ;;  %5017 = vmatprep.mubr.f32.mxu0 %v4589_v13  ;;  %v4645_v43 = vld [vmem:[#allocation7 + $0x798] sm:$0xff]  ;;  %v4065_v13 = vld [vmem:[#allocation7 + $0x390] sm:$0xff] }
 0x5f1   :  { %4439 = vmatmul.mubr.f32.gmra.mrb[28].mxu1 %v4009_v16  ;;  %5018 = vmatmul.mubr.f32.gmra.mrb[28].mxu0 %v4588_v24  ;;  %v4644_v16 = vld [vmem:[#allocation7 + $0x790] sm:$0xff]  ;;  %v4070_v24 = vld [vmem:[#allocation7 + $0x3b8] sm:$0xff] }
 0x5f2   :  { %4443 = vmatprep.mubr.f32.mxu1 %v4014_v1  ;;  %5022 = vmatprep.mubr.f32.mxu0 %v4593_v62  ;;  %v4649_v1 = vld [vmem:[#allocation7 + $0x7b8] sm:$0xff]  ;;  %v4069_v62 = vld [vmem:[#allocation7 + $0x3b0] sm:$0xff] }
 0x5f5   :  { %4444 = vmatmul.mubr.f32.gmra.mrb[30].mxu1 %v4013_v46  ;;  %5023 = vmatmul.mubr.f32.gmra.mrb[30].mxu0 %v4592_v52  ;;  %v4648_v46 = vld [vmem:[#allocation7 + $0x7b0] sm:$0xff]  ;;  %v4074_v52 = vld [vmem:[#allocation7 + $0x3d8] sm:$0xff] }
 0x5f6   :  { %4448 = vmatprep.mubr.f32.mxu1 %v4018_v48  ;;  %5027 = vmatprep.mubr.f32.mxu0 %v4597_v57  ;;  %v4653_v48 = vld [vmem:[#allocation7 + $0x7d8] sm:$0xff]  ;;  %v4073_v57 = vld [vmem:[#allocation7 + $0x3d0] sm:$0xff] }
 0x5f9   :  { %4449 = vmatmul.mubr.f32.gmra.mrb[32].mxu1 %v4017_v18  ;;  %5028 = vmatmul.mubr.f32.gmra.mrb[32].mxu0 %v4596_v4  ;;  %v4652_v18 = vld [vmem:[#allocation7 + $0x7d0] sm:$0xff]  ;;  %v4078_v4 = vld [vmem:[#allocation7 + $0x3f8] sm:$0xff] }
 0x5fa   :  { %4453 = vmatprep.mubr.f32.mxu1 %v4022_v38  ;;  %5032 = vmatprep.mubr.f32.mxu0 %v4601_v25  ;;  %v4657_v38 = vld [vmem:[#allocation7 + $0x7f8] sm:$0xff]  ;;  %v4077_v25 = vld [vmem:[#allocation7 + $0x3f0] sm:$0xff] }
 0x5fd   :  { %4454 = vmatmul.mubr.f32.gmra.mrb[34].mxu1 %v4021_v7  ;;  %5033 = vmatmul.mubr.f32.gmra.mrb[34].mxu0 %v4600_v30  ;;  %v4656_v7 = vld [vmem:[#allocation7 + $0x7f0] sm:$0xff] }
 0x5fe   :  { %4458 = vmatprep.mubr.f32.mxu1 %v4026_v63  ;;  %5037 = vmatprep.mubr.f32.mxu0 %v4605_v35 }
 0x601   :  { %4459 = vmatmul.mubr.f32.gmra.mrb[36].mxu1 %v4025_v47  ;;  %5038 = vmatmul.mubr.f32.gmra.mrb[36].mxu0 %v4604_v3 }
 0x602   :  { %4463 = vmatprep.mubr.f32.mxu1 %v4030_v27  ;;  %5042 = vmatprep.mubr.f32.mxu0 %v4609_v49  ;;  %v5141_v27 = vld [vmem:[#allocation9 + $0x8] sm:$0xff] }
 0x605   :  { %4464 = vmatmul.mubr.f32.gmra.mrb[38].mxu1 %v4029_v26  ;;  %5043 = vmatmul.mubr.f32.gmra.mrb[38].mxu0 %v4608_v58 }
 0x606   :  { %4468 = vmatprep.mubr.f32.mxu1 %v4034_v34  ;;  %5047 = vmatprep.mubr.f32.mxu0 %v4613_v33 }
 0x609   :  { %4469 = vmatmul.mubr.f32.gmra.mrb[40].mxu1 %v4033_v51  ;;  %5048 = vmatmul.mubr.f32.gmra.mrb[40].mxu0 %v4612_v2 }
 0x60a   :  { %4473 = vmatprep.mubr.f32.mxu1 %v4038_v31  ;;  %5052 = vmatprep.mubr.f32.mxu0 %v4617_v37 }
 0x60d   :  { %4474 = vmatmul.mubr.f32.gmra.mrb[42].mxu1 %v4037_v59  ;;  %5053 = vmatmul.mubr.f32.gmra.mrb[42].mxu0 %v4616_v50 }
 0x60e   :  { %4478 = vmatprep.mubr.f32.mxu1 %v4042_v10  ;;  %5057 = vmatprep.mubr.f32.mxu0 %v4621_v9 }
 0x611   :  { %4479 = vmatmul.mubr.f32.gmra.mrb[44].mxu1 %v4041_v61  ;;  %5058 = vmatmul.mubr.f32.gmra.mrb[44].mxu0 %v4620_v28 }
 0x612   :  { %4483 = vmatprep.mubr.f32.mxu1 %v4046_v20  ;;  %5062 = vmatprep.mubr.f32.mxu0 %v4625_v19 }
 0x615   :  { %4484 = vmatmul.mubr.f32.gmra.mrb[46].mxu1 %v4045_v8  ;;  %5063 = vmatmul.mubr.f32.gmra.mrb[46].mxu0 %v4624_v32 }
 0x616   :  { %4488 = vmatprep.mubr.f32.mxu1 %v4050_v53  ;;  %5067 = vmatprep.mubr.f32.mxu0 %v4629_v29 }
 0x619   :  { %4489 = vmatmul.mubr.f32.gmra.mrb[48].mxu1 %v4049_v22  ;;  %5068 = vmatmul.mubr.f32.gmra.mrb[48].mxu0 %v4628_v40 }
 0x61a   :  { %4493 = vmatprep.mubr.f32.mxu1 %v4054_v21  ;;  %5072 = vmatprep.mubr.f32.mxu0 %v4633_v55 }
 0x61d   :  { %4494 = vmatmul.mubr.f32.gmra.mrb[50].mxu1 %v4053_v41  ;;  %5073 = vmatmul.mubr.f32.gmra.mrb[50].mxu0 %v4632_v15 }
 0x61e   :  { %4498 = vmatprep.mubr.f32.mxu1 %v4058_v36  ;;  %5077 = vmatprep.mubr.f32.mxu0 %v4637_v11 }
 0x621   :  { %4499 = vmatmul.mubr.f32.gmra.mrb[52].mxu1 %v4057_v54  ;;  %5078 = vmatmul.mubr.f32.gmra.mrb[52].mxu0 %v4636_v39 }
 0x622   :  { %4503 = vmatprep.mubr.f32.mxu1 %v4062_v45  ;;  %5082 = vmatprep.mubr.f32.mxu0 %v4641_v42 }
 0x625   :  { %4504 = vmatmul.mubr.f32.gmra.mrb[54].mxu1 %v4061_v23  ;;  %5083 = vmatmul.mubr.f32.gmra.mrb[54].mxu0 %v4640_v56 }
 0x626   :  { %4508 = vmatprep.mubr.f32.mxu1 %v4066_v17  ;;  %5087 = vmatprep.mubr.f32.mxu0 %v4645_v43 }
 0x629   :  { %4509 = vmatmul.mubr.f32.gmra.mrb[56].mxu1 %v4065_v13  ;;  %5088 = vmatmul.mubr.f32.gmra.mrb[56].mxu0 %v4644_v16 }
 0x62a   :  { %4513 = vmatprep.mubr.f32.mxu1 %v4070_v24  ;;  %5092 = vmatprep.mubr.f32.mxu0 %v4649_v1 }
 0x62d   :  { %4514 = vmatmul.mubr.f32.gmra.mrb[58].mxu1 %v4069_v62  ;;  %5093 = vmatmul.mubr.f32.gmra.mrb[58].mxu0 %v4648_v46 }
 0x62e   :  { %4518 = vmatprep.mubr.f32.mxu1 %v4074_v52  ;;  %5097 = vmatprep.mubr.f32.mxu0 %v4653_v48 }
 0x631   :  { %4519 = vmatmul.mubr.f32.gmra.mrb[60].mxu1 %v4073_v57  ;;  %5098 = vmatmul.mubr.f32.gmra.mrb[60].mxu0 %v4652_v18 }
 0x632   :  { %4523 = vmatprep.mubr.f32.mxu1 %v4078_v4  ;;  %5102 = vmatprep.mubr.f32.mxu0 %v4657_v38 }
 0x635   :  { %4524 = vmatmul.mubr.f32.gmra.mrb[62].mxu1 %v4077_v25  ;;  %5103 = vmatmul.mubr.f32.gmra.mrb[62].mxu0 %v4656_v7 }
 0x636   :  { %5639 = vmatprep.mubr.f32.mxu0 %v15970_v60  ;;  %5268 = vmatprep.mubr.f32.mxu1 %v5141_v27 }
 0x68c   :  { %v4370_v30 = vpop.f32.mrb[0].mxu1  ;;  %v4949_v63 = vpop.f32.mrb[0].mxu0 }
 0x68d   :  { %v5108_v35 = vmax.f32 %v4370_v30, %v4949_v63  ;;  %v4372_v47 = vpop.f32.mrb[1].mxu1  ;;  %v4951_v3 = vpop.f32.mrb[1].mxu0 }
 0x68f   :  { %9399 = vmatmul.mubr.msk.f32.vlgmr.msra.gmra.mrb[64].mxu0 %vm5478_vm1, %v5108_v35 }
 0x690   :  { %v4375_v49 = vpop.f32.mrb[2].mxu1  ;;  %v4954_v26 = vpop.f32.mrb[2].mxu0  ;;  %5645 = vmatprep.mubr.f32.mxu0 %v15970_v60 }
 0x691   :  { %v5109_v58 = vmax.f32 %v4375_v49, %v4954_v26  ;;  %v4377_v34 = vpop.f32.mrb[3].mxu1  ;;  %v4956_v33 = vpop.f32.mrb[3].mxu0 }
 0x693   :  { %v10559_v51 = vpack.c.bf16 %v5109_v58, %v5108_v35  ;;  %9400 = vmatmul.mubr.msk.f32.gmra.mrb[66].mxu0 %vm5478_vm1, %v5109_v58 }
 0x694   :  { %v4380_v2 = vpop.f32.mrb[4].mxu1  ;;  %v4959_v31 = vpop.f32.mrb[4].mxu0  ;;  %5651 = vmatprep.mubr.f32.mxu0 %v15970_v60 }
 0x695   :  { %v5110_v37 = vmax.f32 %v4380_v2, %v4959_v31  ;;  %v4382_v59 = vpop.f32.mrb[5].mxu1  ;;  %v4961_v50 = vpop.f32.mrb[5].mxu0  ;;  %10560 = vmatpush1.bf16.msra.mxu1 %v10559_v51 }
 0x696   :  { %10561 = vmatprep.subr.bf16.mxu1 %v15968_v0 }
 0x697   :  { %9401 = vmatmul.mubr.msk.f32.gmra.mrb[68].mxu0 %vm5478_vm1, %v5110_v37 }
 0x698   :  { %v4385_v14 = vpop.f32.mrb[6].mxu1  ;;  %v4964_v6 = vpop.f32.mrb[6].mxu0  ;;  %5657 = vmatprep.mubr.f32.mxu0 %v15970_v60 }
 0x699   :  { %v5111_v10 = vmax.f32 %v4385_v14, %v4964_v6  ;;  %v4387_v9 = vpop.f32.mrb[7].mxu1  ;;  %v4966_v12 = vpop.f32.mrb[7].mxu0 }
 0x69b   :  { %v10562_v61 = vpack.c.bf16 %v5111_v10, %v5110_v37  ;;  %9402 = vmatmul.mubr.msk.f32.gmra.mrb[70].mxu0 %vm5478_vm1, %v5111_v10 }
 0x69c   :  { %v4390_v28 = vpop.f32.mrb[8].mxu1  ;;  %v4969_v20 = vpop.f32.mrb[8].mxu0  ;;  %5663 = vmatprep.mubr.f32.mxu0 %v15970_v60 }
 0x69d   :  { %v5112_v19 = vmax.f32 %v4390_v28, %v4969_v20  ;;  %v4392_v8 = vpop.f32.mrb[9].mxu1  ;;  %v4971_v32 = vpop.f32.mrb[9].mxu0  ;;  %10563 = vmatpush1.bf16.msra.mxu1 %v10562_v61 }
 0x69e   :  { %10564 = vmatprep.subr.bf16.mxu1 %v15968_v0 }
 0x69f   :  { %9403 = vmatmul.mubr.msk.f32.gmra.mrb[72].mxu0 %vm5478_vm1, %v5112_v19 }
 0x6a0   :  { %v4395_v53 = vpop.f32.mrb[10].mxu1  ;;  %v4974_v29 = vpop.f32.mrb[10].mxu0  ;;  %5669 = vmatprep.mubr.f32.mxu0 %v15970_v60 }
 0x6a1   :  { %v5113_v22 = vmax.f32 %v4395_v53, %v4974_v29  ;;  %v4397_v40 = vpop.f32.mrb[11].mxu1  ;;  %v4976_v21 = vpop.f32.mrb[11].mxu0 }
 0x6a3   :  { %v10565_v55 = vpack.c.bf16 %v5113_v22, %v5112_v19  ;;  %9404 = vmatmul.mubr.msk.f32.gmra.mrb[74].mxu0 %vm5478_vm1, %v5113_v22 }
 0x6a4   :  { %v4400_v41 = vpop.f32.mrb[12].mxu1  ;;  %v4979_v15 = vpop.f32.mrb[12].mxu0  ;;  %5675 = vmatprep.mubr.f32.mxu0 %v15970_v60 }
 0x6a5   :  { %v5114_v36 = vmax.f32 %v4400_v41, %v4979_v15  ;;  %v4402_v11 = vpop.f32.mrb[13].mxu1  ;;  %v4981_v54 = vpop.f32.mrb[13].mxu0  ;;  %10566 = vmatpush1.bf16.msra.mxu1 %v10565_v55 }
 0x6a6   :  { %10567 = vmatprep.subr.bf16.mxu1 %v15968_v0 }
 0x6a7   :  { %9405 = vmatmul.mubr.msk.f32.gmra.mrb[76].mxu0 %vm5478_vm1, %v5114_v36 }
 0x6a8   :  { %v4405_v39 = vpop.f32.mrb[14].mxu1  ;;  %v4984_v45 = vpop.f32.mrb[14].mxu0  ;;  %5681 = vmatprep.mubr.f32.mxu0 %v15970_v60 }
 0x6a9   :  { %v5115_v42 = vmax.f32 %v4405_v39, %v4984_v45  ;;  %v4407_v23 = vpop.f32.mrb[15].mxu1  ;;  %v4986_v56 = vpop.f32.mrb[15].mxu0 }
 0x6ab   :  { %v10568_v17 = vpack.c.bf16 %v5115_v42, %v5114_v36  ;;  %9406 = vmatmul.mubr.msk.f32.gmra.mrb[78].mxu0 %vm5478_vm1, %v5115_v42 }
 0x6ac   :  { %v4410_v43 = vpop.f32.mrb[16].mxu1  ;;  %v4989_v13 = vpop.f32.mrb[16].mxu0  ;;  %5687 = vmatprep.mubr.f32.mxu0 %v15970_v60 }
 0x6ad   :  { %v5116_v16 = vmax.f32 %v4410_v43, %v4989_v13  ;;  %v4412_v24 = vpop.f32.mrb[17].mxu1  ;;  %v4991_v1 = vpop.f32.mrb[17].mxu0  ;;  %10569 = vmatpush1.bf16.msra.mxu1 %v10568_v17 }
 0x6ae   :  { %10570 = vmatprep.subr.bf16.mxu1 %v15968_v0 }
 0x6af   :  { %9407 = vmatmul.mubr.msk.f32.gmra.mrb[80].mxu0 %vm5478_vm1, %v5116_v16 }
 0x6b0   :  { %v4415_v62 = vpop.f32.mrb[18].mxu1  ;;  %v4994_v46 = vpop.f32.mrb[18].mxu0  ;;  %5693 = vmatprep.mubr.f32.mxu0 %v15970_v60 }
 0x6b1   :  { %v5117_v52 = vmax.f32 %v4415_v62, %v4994_v46  ;;  %v4417_v48 = vpop.f32.mrb[19].mxu1  ;;  %v4996_v57 = vpop.f32.mrb[19].mxu0 }
 0x6b3   :  { %v10571_v18 = vpack.c.bf16 %v5117_v52, %v5116_v16  ;;  %9408 = vmatmul.mubr.msk.f32.gmra.mrb[82].mxu0 %vm5478_vm1, %v5117_v52 }
 0x6b4   :  { %v4420_v4 = vpop.f32.mrb[20].mxu1  ;;  %v4999_v38 = vpop.f32.mrb[20].mxu0  ;;  %5699 = vmatprep.mubr.f32.mxu0 %v15970_v60 }
 0x6b5   :  { %v5118_v25 = vmax.f32 %v4420_v4, %v4999_v38  ;;  %v4422_v7 = vpop.f32.mrb[21].mxu1  ;;  %v5001_v30 = vpop.f32.mrb[21].mxu0  ;;  %10572 = vmatpush1.bf16.msra.mxu1 %v10571_v18 }
 0x6b6   :  { %10573 = vmatprep.subr.bf16.mxu1 %v15968_v0 }
 0x6b7   :  { %9409 = vmatmul.mubr.msk.f32.gmra.mrb[84].mxu0 %vm5478_vm1, %v5118_v25 }
 0x6b8   :  { %v4425_v63 = vpop.f32.mrb[22].mxu1  ;;  %v5004_v35 = vpop.f32.mrb[22].mxu0  ;;  %5705 = vmatprep.mubr.f32.mxu0 %v15970_v60 }
 0x6b9   :  { %v5119_v47 = vmax.f32 %v4425_v63, %v5004_v35  ;;  %v4427_v3 = vpop.f32.mrb[23].mxu1  ;;  %v5006_v27 = vpop.f32.mrb[23].mxu0 }
 0x6bb   :  { %v10574_v49 = vpack.c.bf16 %v5119_v47, %v5118_v25  ;;  %9410 = vmatmul.mubr.msk.f32.gmra.mrb[86].mxu0 %vm5478_vm1, %v5119_v47 }
 0x6bc   :  { %v4430_v26 = vpop.f32.mrb[24].mxu1  ;;  %v5009_v58 = vpop.f32.mrb[24].mxu0  ;;  %5711 = vmatprep.mubr.f32.mxu0 %v15970_v60 }
 0x6bd   :  { %v5120_v34 = vmax.f32 %v4430_v26, %v5009_v58  ;;  %v4432_v33 = vpop.f32.mrb[25].mxu1  ;;  %v5011_v51 = vpop.f32.mrb[25].mxu0  ;;  %10575 = vmatpush1.bf16.msra.mxu1 %v10574_v49 }
 0x6be   :  { %10576 = vmatprep.subr.bf16.mxu1 %v15968_v0 }
 0x6bf   :  { %9411 = vmatmul.mubr.msk.f32.gmra.mrb[88].mxu0 %vm5478_vm1, %v5120_v34 }
 0x6c0   :  { %v4435_v2 = vpop.f32.mrb[26].mxu1  ;;  %v5014_v31 = vpop.f32.mrb[26].mxu0  ;;  %5717 = vmatprep.mubr.f32.mxu0 %v15970_v60 }
 0x6c1   :  { %v5121_v37 = vmax.f32 %v4435_v2, %v5014_v31  ;;  %v4437_v59 = vpop.f32.mrb[27].mxu1  ;;  %v5016_v50 = vpop.f32.mrb[27].mxu0 }
 0x6c3   :  { %v10577_v14 = vpack.c.bf16 %v5121_v37, %v5120_v34  ;;  %9412 = vmatmul.mubr.msk.f32.gmra.mrb[90].mxu0 %vm5478_vm1, %v5121_v37 }
 0x6c4   :  { %v4440_v6 = vpop.f32.mrb[28].mxu1  ;;  %v5019_v10 = vpop.f32.mrb[28].mxu0  ;;  %5723 = vmatprep.mubr.f32.mxu0 %v15970_v60 }
 0x6c5   :  { %v5122_v9 = vmax.f32 %v4440_v6, %v5019_v10  ;;  %v4442_v12 = vpop.f32.mrb[29].mxu1  ;;  %v5021_v61 = vpop.f32.mrb[29].mxu0  ;;  %10578 = vmatpush1.bf16.msra.mxu1 %v10577_v14 }
 0x6c6   :  { %10579 = vmatprep.subr.bf16.mxu1 %v15968_v0 }
 0x6c7   :  { %9413 = vmatmul.mubr.msk.f32.gmra.mrb[92].mxu0 %vm5478_vm1, %v5122_v9 }
 0x6c8   :  { %v4445_v28 = vpop.f32.mrb[30].mxu1  ;;  %v5024_v20 = vpop.f32.mrb[30].mxu0  ;;  %5729 = vmatprep.mubr.f32.mxu0 %v15970_v60 }
 0x6c9   :  { %v5123_v19 = vmax.f32 %v4445_v28, %v5024_v20  ;;  %v4447_v8 = vpop.f32.mrb[31].mxu1  ;;  %v5026_v32 = vpop.f32.mrb[31].mxu0 }
 0x6cb   :  { %v10580_v53 = vpack.c.bf16 %v5123_v19, %v5122_v9  ;;  %9414 = vmatmul.mubr.msk.f32.gmra.mrb[94].mxu0 %vm5478_vm1, %v5123_v19 }
 0x6cc   :  { %v4450_v29 = vpop.f32.mrb[32].mxu1  ;;  %v5029_v22 = vpop.f32.mrb[32].mxu0  ;;  %5735 = vmatprep.mubr.f32.mxu0 %v15970_v60 }
 0x6cd   :  { %v5124_v40 = vmax.f32 %v4450_v29, %v5029_v22  ;;  %v4452_v21 = vpop.f32.mrb[33].mxu1  ;;  %v5031_v55 = vpop.f32.mrb[33].mxu0  ;;  %10581 = vmatpush1.bf16.msra.mxu1 %v10580_v53 }
 0x6ce   :  { %10582 = vmatprep.subr.bf16.mxu1 %v15968_v0 }
 0x6cf   :  { %9415 = vmatmul.mubr.msk.f32.gmra.mrb[96].mxu0 %vm5478_vm1, %v5124_v40 }
 0x6d0   :  { %v4455_v41 = vpop.f32.mrb[34].mxu1  ;;  %v5034_v15 = vpop.f32.mrb[34].mxu0  ;;  %5741 = vmatprep.mubr.f32.mxu0 %v15970_v60 }
 0x6d1   :  { %v5125_v36 = vmax.f32 %v4455_v41, %v5034_v15  ;;  %v4457_v11 = vpop.f32.mrb[35].mxu1  ;;  %v5036_v54 = vpop.f32.mrb[35].mxu0 }
 0x6d3   :  { %v10583_v39 = vpack.c.bf16 %v5125_v36, %v5124_v40  ;;  %9416 = vmatmul.mubr.msk.f32.gmra.mrb[98].mxu0 %vm5478_vm1, %v5125_v36 }
 0x6d4   :  { %v4460_v45 = vpop.f32.mrb[36].mxu1  ;;  %v5039_v42 = vpop.f32.mrb[36].mxu0  ;;  %5747 = vmatprep.mubr.f32.mxu0 %v15970_v60 }
 0x6d5   :  { %v5126_v23 = vmax.f32 %v4460_v45, %v5039_v42  ;;  %v4462_v56 = vpop.f32.mrb[37].mxu1  ;;  %v5041_v17 = vpop.f32.mrb[37].mxu0  ;;  %10584 = vmatpush1.bf16.msra.mxu1 %v10583_v39 }
 0x6d6   :  { %10585 = vmatprep.subr.bf16.mxu1 %v15968_v0 }
 0x6d7   :  { %9417 = vmatmul.mubr.msk.f32.gmra.mrb[100].mxu0 %vm5478_vm1, %v5126_v23 }
 0x6d8   :  { %v4465_v43 = vpop.f32.mrb[38].mxu1  ;;  %v5044_v13 = vpop.f32.mrb[38].mxu0  ;;  %5753 = vmatprep.mubr.f32.mxu0 %v15970_v60 }
 0x6d9   :  { %v5127_v16 = vmax.f32 %v4465_v43, %v5044_v13  ;;  %v4467_v24 = vpop.f32.mrb[39].mxu1  ;;  %v5046_v1 = vpop.f32.mrb[39].mxu0 }
 0x6db   :  { %v10586_v62 = vpack.c.bf16 %v5127_v16, %v5126_v23  ;;  %9418 = vmatmul.mubr.msk.f32.gmra.mrb[102].mxu0 %vm5478_vm1, %v5127_v16 }
 0x6dc   :  { %v4470_v46 = vpop.f32.mrb[40].mxu1  ;;  %v5049_v52 = vpop.f32.mrb[40].mxu0  ;;  %5759 = vmatprep.mubr.f32.mxu0 %v15970_v60 }
 0x6dd   :  { %v5128_v48 = vmax.f32 %v4470_v46, %v5049_v52  ;;  %v4472_v57 = vpop.f32.mrb[41].mxu1  ;;  %v5051_v18 = vpop.f32.mrb[41].mxu0  ;;  %10587 = vmatpush1.bf16.msra.mxu1 %v10586_v62 }
 0x6de   :  { %10588 = vmatprep.subr.bf16.mxu1 %v15968_v0 }
 0x6df   :  { %9419 = vmatmul.mubr.msk.f32.gmra.mrb[104].mxu0 %vm5478_vm1, %v5128_v48 }
 0x6e0   :  { %v4475_v4 = vpop.f32.mrb[42].mxu1  ;;  %v5054_v38 = vpop.f32.mrb[42].mxu0  ;;  %5765 = vmatprep.mubr.f32.mxu0 %v15970_v60 }
 0x6e1   :  { %v5129_v25 = vmax.f32 %v4475_v4, %v5054_v38  ;;  %v4477_v7 = vpop.f32.mrb[43].mxu1  ;;  %v5056_v30 = vpop.f32.mrb[43].mxu0  ;;  %v5140_v38 = vld [vmem:[#allocation9] sm:$0xff] }
 0x6e2   :  { %v5430_v7 = vld [vmem:[#allocation10 + $0x8] sm:$0xff]  ;;  %v5432_v30 = vld [vmem:[#allocation10 + $0x18] sm:$0xff] }
 0x6e3   :  { %v10589_v63 = vpack.c.bf16 %v5129_v25, %v5128_v48  ;;  %9420 = vmatmul.mubr.msk.f32.gmra.mrb[106].mxu0 %vm5478_vm1, %v5129_v25  ;;  %v5143_v25 = vld [vmem:[#allocation9 + $0x18] sm:$0xff] }
 0x6e4   :  { %v4480_v35 = vpop.f32.mrb[44].mxu1  ;;  %v5059_v47 = vpop.f32.mrb[44].mxu0  ;;  %5771 = vmatprep.mubr.f32.mxu0 %v15970_v60 }
 0x6e5   :  { %v5130_v3 = vmax.f32 %v4480_v35, %v5059_v47  ;;  %v4482_v27 = vpop.f32.mrb[45].mxu1  ;;  %v5061_v49 = vpop.f32.mrb[45].mxu0  ;;  %10590 = vmatpush1.bf16.msra.mxu1 %v10589_v63  ;;  %v5429_v63 = vld [vmem:[#allocation10] sm:$0xff]  ;;  %v10630_v35 = vpack.c.bf16 %v5432_v30, %v5430_v7  ;;  %v5431_v47 = vld [vmem:[#allocation10 + $0x10] sm:$0xff]  ;;  %v5169_v30 = vld [vmem:[#allocation9 + $0xe8] sm:$0xff] }
 0x6e6   :  { %10591 = vmatprep.subr.bf16.mxu1 %v15968_v0  ;;  %v5436_v27 = vld [vmem:[#allocation10 + $0x38] sm:$0xff]  ;;  %v10632_v49 = vpack.c.bf16 %v5431_v47, %v5429_v63  ;;  %v5166_v7 = vld [vmem:[#allocation9 + $0xd0] sm:$0xff]  ;;  %v5168_v63 = vld [vmem:[#allocation9 + $0xe0] sm:$0xff] }
 0x6e7   :  { %9421 = vmatmul.mubr.msk.f32.gmra.mrb[108].mxu0 %vm5478_vm1, %v5130_v3  ;;  %10631 = vmatprep.subr.bf16.mxu0 %v10630_v35  ;;  %v5171_v35 = vld [vmem:[#allocation9 + $0xf8] sm:$0xff]  ;;  %v5170_v47 = vld [vmem:[#allocation9 + $0xf0] sm:$0xff] }
 0x6e8   :  { %v4485_v26 = vpop.f32.mrb[46].mxu1  ;;  %v5064_v58 = vpop.f32.mrb[46].mxu0  ;;  %5777 = vmatprep.mubr.f32.mxu0 %v15970_v60  ;;  %10633 = vmatpush1.bf16.msra.mxu0 %v10632_v49  ;;  %v5175_v49 = vld [vmem:[#allocation9 + $0x118] sm:$0xff] }
 0x6e9   :  { %v5131_v34 = vmax.f32 %v4485_v26, %v5064_v58  ;;  %v4487_v33 = vpop.f32.mrb[47].mxu1  ;;  %v5066_v51 = vpop.f32.mrb[47].mxu0  ;;  %v5433_v58 = vld [vmem:[#allocation10 + $0x20] sm:$0xff] }
 0x6ea   :  { %v5438_v33 = vld [vmem:[#allocation10 + $0x48] sm:$0xff]  ;;  %v5440_v51 = vld [vmem:[#allocation10 + $0x58] sm:$0xff] }
 0x6eb   :  { %v10592_v2 = vpack.c.bf16 %v5131_v34, %v5130_v3  ;;  %9422 = vmatmul.mubr.msk.f32.gmra.mrb[110].mxu0 %vm5478_vm1, %v5131_v34  ;;  %v5434_v3 = vld [vmem:[#allocation10 + $0x28] sm:$0xff]  ;;  %v5435_v34 = vld [vmem:[#allocation10 + $0x30] sm:$0xff] }
 0x6ec   :  { %v4490_v31 = vpop.f32.mrb[48].mxu1  ;;  %v5069_v37 = vpop.f32.mrb[48].mxu0  ;;  %5783 = vmatprep.mubr.f32.mxu0 %v15970_v60  ;;  %v10634_v26 = vpack.c.bf16 %v5436_v27, %v5434_v3  ;;  %v5173_v3 = vld [vmem:[#allocation9 + $0x108] sm:$0xff]  ;;  %v5172_v27 = vld [vmem:[#allocation9 + $0x100] sm:$0xff] }
 0x6ed   :  { %v5132_v59 = vmax.f32 %v4490_v31, %v5069_v37  ;;  %v4492_v50 = vpop.f32.mrb[49].mxu1  ;;  %v5071_v14 = vpop.f32.mrb[49].mxu0  ;;  %10593 = vmatpush1.bf16.msra.mxu1 %v10592_v2  ;;  %v10636_v2 = vpack.c.bf16 %v5435_v34, %v5433_v58  ;;  %v5142_v31 = vld [vmem:[#allocation9 + $0x10] sm:$0xff]  ;;  %v10638_v37 = vpack.c.bf16 %v5440_v51, %v5438_v33  ;;  %v5177_v58 = vld [vmem:[#allocation9 + $0x128] sm:$0xff]  ;;  %v5176_v34 = vld [vmem:[#allocation9 + $0x120] sm:$0xff] }
 0x6ee   :  { %10594 = vmatprep.subr.bf16.mxu1 %v15968_v0  ;;  %10635 = vmatprep.subr.bf16.mxu0 %v10634_v26  ;;  %v5439_v50 = vld [vmem:[#allocation10 + $0x50] sm:$0xff]  ;;  %v5145_v14 = vld [vmem:[#allocation9 + $0x28] sm:$0xff]  ;;  %v5179_v33 = vld [vmem:[#allocation9 + $0x138] sm:$0xff] }
 0x6ef   :  { %9423 = vmatmul.mubr.msk.f32.gmra.mrb[112].mxu0 %vm5478_vm1, %v5132_v59  ;;  %v5174_v26 = vld [vmem:[#allocation9 + $0x110] sm:$0xff] }
 0x6f0   :  { %v4495_v6 = vpop.f32.mrb[50].mxu1  ;;  %v5074_v10 = vpop.f32.mrb[50].mxu0  ;;  %5789 = vmatprep.mubr.f32.mxu0 %v15970_v60  ;;  %10637 = vmatpush1.bf16.msra.mxu0 %v10636_v2  ;;  %v5178_v51 = vld [vmem:[#allocation9 + $0x130] sm:$0xff]  ;;  %v5181_v2 = vld [vmem:[#allocation9 + $0x148] sm:$0xff] }
 0x6f1   :  { %v5133_v9 = vmax.f32 %v4495_v6, %v5074_v10  ;;  %v4497_v12 = vpop.f32.mrb[51].mxu1  ;;  %v5076_v61 = vpop.f32.mrb[51].mxu0  ;;  %v5442_v6 = vld [vmem:[#allocation10 + $0x68] sm:$0xff]  ;;  %v5444_v10 = vld [vmem:[#allocation10 + $0x78] sm:$0xff]  ;;  %10639 = vmatprep.subr.bf16.mxu0 %v10638_v37 }
 0x6f2   :  { %v5144_v12 = vld [vmem:[#allocation9 + $0x20] sm:$0xff]  ;;  %v10642_v61 = vpack.c.bf16 %v5444_v10, %v5442_v6  ;;  %v5183_v37 = vld [vmem:[#allocation9 + $0x158] sm:$0xff]  ;;  %v5186_v10 = vld [vmem:[#allocation9 + $0x170] sm:$0xff] }
 0x6f3   :  { %v10595_v28 = vpack.c.bf16 %v5133_v9, %v5132_v59  ;;  %9424 = vmatmul.mubr.msk.f32.gmra.mrb[114].mxu0 %vm5478_vm1, %v5133_v9  ;;  %v5437_v59 = vld [vmem:[#allocation10 + $0x40] sm:$0xff]  ;;  %v5187_v6 = vld [vmem:[#allocation9 + $0x178] sm:$0xff] }
 0x6f4   :  { %v4500_v20 = vpop.f32.mrb[52].mxu1  ;;  %v5079_v19 = vpop.f32.mrb[52].mxu0  ;;  %5795 = vmatprep.mubr.f32.mxu0 %v15970_v60  ;;  %v10640_v9 = vpack.c.bf16 %v5439_v50, %v5437_v59  ;;  %v5182_v59 = vld [vmem:[#allocation9 + $0x150] sm:$0xff]  ;;  %v5185_v50 = vld [vmem:[#allocation9 + $0x168] sm:$0xff] }
 0x6f5   :  { %v5134_v8 = vmax.f32 %v4500_v20, %v5079_v19  ;;  %v4502_v32 = vpop.f32.mrb[53].mxu1  ;;  %v5081_v53 = vpop.f32.mrb[53].mxu0  ;;  %10596 = vmatpush1.bf16.msra.mxu1 %v10595_v28  ;;  %v5441_v28 = vld [vmem:[#allocation10 + $0x60] sm:$0xff]  ;;  %v5443_v20 = vld [vmem:[#allocation10 + $0x70] sm:$0xff]  ;;  %v5147_v19 = vld [vmem:[#allocation9 + $0x38] sm:$0xff] }
 0x6f6   :  { %10597 = vmatprep.subr.bf16.mxu1 %v15968_v0  ;;  %v5448_v32 = vld [vmem:[#allocation10 + $0x98] sm:$0xff]  ;;  %10641 = vmatpush1.bf16.msra.mxu0 %v10640_v9  ;;  %v10644_v53 = vpack.c.bf16 %v5443_v20, %v5441_v28  ;;  %v5189_v9 = vld [vmem:[#allocation9 + $0x188] sm:$0xff]  ;;  %v5190_v28 = vld [vmem:[#allocation9 + $0x190] sm:$0xff] }
 0x6f7   :  { %9425 = vmatmul.mubr.msk.f32.gmra.mrb[116].mxu0 %vm5478_vm1, %v5134_v8  ;;  %10643 = vmatprep.subr.bf16.mxu0 %v10642_v61  ;;  %v5191_v61 = vld [vmem:[#allocation9 + $0x198] sm:$0xff]  ;;  %v5193_v20 = vld [vmem:[#allocation9 + $0x1a8] sm:$0xff] }
 0x6f8   :  { %v4505_v29 = vpop.f32.mrb[54].mxu1  ;;  %v5084_v22 = vpop.f32.mrb[54].mxu0  ;;  %5801 = vmatprep.mubr.f32.mxu0 %v15970_v60 }
 0x6f9   :  { %v5135_v40 = vmax.f32 %v4505_v29, %v5084_v22  ;;  %v4507_v21 = vpop.f32.mrb[55].mxu1  ;;  %v5086_v55 = vpop.f32.mrb[55].mxu0  ;;  %v5146_v29 = vld [vmem:[#allocation9 + $0x30] sm:$0xff] }
 0x6fa   :  { %v5447_v21 = vld [vmem:[#allocation10 + $0x90] sm:$0xff]  ;;  %v5149_v55 = vld [vmem:[#allocation9 + $0x48] sm:$0xff]  ;;  %10645 = vmatpush1.bf16.msra.mxu0 %v10644_v53 }
 0x6fb   :  { %v10598_v41 = vpack.c.bf16 %v5135_v40, %v5134_v8  ;;  %9426 = vmatmul.mubr.msk.f32.gmra.mrb[118].mxu0 %vm5478_vm1, %v5135_v40  ;;  %v5446_v8 = vld [vmem:[#allocation10 + $0x88] sm:$0xff]  ;;  %v5445_v40 = vld [vmem:[#allocation10 + $0x80] sm:$0xff] }
 0x6fc   :  { %v4510_v15 = vpop.f32.mrb[56].mxu1  ;;  %v5089_v36 = vpop.f32.mrb[56].mxu0  ;;  %5807 = vmatprep.mubr.f32.mxu0 %v15970_v60  ;;  %v10646_v22 = vpack.c.bf16 %v5448_v32, %v5446_v8  ;;  %v5195_v8 = vld [vmem:[#allocation9 + $0x1b8] sm:$0xff]  ;;  %v5194_v32 = vld [vmem:[#allocation9 + $0x1b0] sm:$0xff]  ;;  %v5197_v53 = vld [vmem:[#allocation9 + $0x1c8] sm:$0xff] }
 0x6fd   :  { %v5136_v11 = vmax.f32 %v4510_v15, %v5089_v36  ;;  %v4512_v54 = vpop.f32.mrb[57].mxu1  ;;  %v5091_v39 = vpop.f32.mrb[57].mxu0  ;;  %10599 = vmatpush1.bf16.msra.mxu1 %v10598_v41  ;;  %v5450_v41 = vld [vmem:[#allocation10 + $0xa8] sm:$0xff]  ;;  %v5452_v15 = vld [vmem:[#allocation10 + $0xb8] sm:$0xff]  ;;  %v10648_v36 = vpack.c.bf16 %v5447_v21, %v5445_v40  ;;  %v5198_v40 = vld [vmem:[#allocation9 + $0x1d0] sm:$0xff] }
 0x6fe   :  { %10600 = vmatprep.subr.bf16.mxu1 %v15968_v0  ;;  %10647 = vmatprep.subr.bf16.mxu0 %v10646_v22  ;;  %v10650_v54 = vpack.c.bf16 %v5452_v15, %v5450_v41  ;;  %v5449_v39 = vld [vmem:[#allocation10 + $0xa0] sm:$0xff]  ;;  %v5199_v22 = vld [vmem:[#allocation9 + $0x1d8] sm:$0xff]  ;;  %v5201_v21 = vld [vmem:[#allocation9 + $0x1e8] sm:$0xff] }
 0x6ff   :  { %9427 = vmatmul.mubr.msk.f32.gmra.mrb[120].mxu0 %vm5478_vm1, %v5136_v11  ;;  %v5203_v41 = vld [vmem:[#allocation9 + $0x1f8] sm:$0xff]  ;;  %v5202_v15 = vld [vmem:[#allocation9 + $0x1f0] sm:$0xff] }
 0x700   :  { %v4515_v45 = vpop.f32.mrb[58].mxu1  ;;  %v5094_v42 = vpop.f32.mrb[58].mxu0  ;;  %5813 = vmatprep.mubr.f32.mxu0 %v15970_v60  ;;  %10649 = vmatpush1.bf16.msra.mxu0 %v10648_v36  ;;  %v6325_v36 = vld [vmem:[#allocation12] sm:$0xff] }
 0x701   :  { %v5137_v23 = vmax.f32 %v4515_v45, %v5094_v42  ;;  %v4517_v56 = vpop.f32.mrb[59].mxu1  ;;  %v5096_v17 = vpop.f32.mrb[59].mxu0  ;;  %v5451_v45 = vld [vmem:[#allocation10 + $0xb0] sm:$0xff]  ;;  %v5151_v42 = vld [vmem:[#allocation9 + $0x58] sm:$0xff]  ;;  %10651 = vmatprep.subr.bf16.mxu0 %v10650_v54 }
 0x702   :  { %v5150_v56 = vld [vmem:[#allocation9 + $0x50] sm:$0xff]  ;;  %v5153_v17 = vld [vmem:[#allocation9 + $0x68] sm:$0xff] }
 0x703   :  { %v10601_v43 = vpack.c.bf16 %v5137_v23, %v5136_v11  ;;  %9428 = vmatmul.mubr.msk.f32.gmra.mrb[122].mxu0 %vm5478_vm1, %v5137_v23  ;;  %v5148_v11 = vld [vmem:[#allocation9 + $0x40] sm:$0xff]  ;;  %v10652_v23 = vpack.c.bf16 %v5451_v45, %v5449_v39  ;;  %v6327_v54 = vld [vmem:[#allocation12 + $0x10] sm:$0xff]  ;;  %v6328_v45 = vld [vmem:[#allocation12 + $0x18] sm:$0xff] }
 0x704   :  { %v4520_v13 = vpop.f32.mrb[60].mxu1  ;;  %v5099_v16 = vpop.f32.mrb[60].mxu0  ;;  %5819 = vmatprep.mubr.f32.mxu0 %v15970_v60 }
 0x705   :  { %v5138_v24 = vmax.f32 %v4520_v13, %v5099_v16  ;;  %v4522_v1 = vpop.f32.mrb[61].mxu1  ;;  %v5101_v62 = vpop.f32.mrb[61].mxu0  ;;  %10602 = vmatpush1.bf16.msra.mxu1 %v10601_v43  ;;  %10653 = vmatpush1.bf16.msra.mxu0 %v10652_v23  ;;  %v5152_v43 = vld [vmem:[#allocation9 + $0x60] sm:$0xff]  ;;  %v5155_v13 = vld [vmem:[#allocation9 + $0x78] sm:$0xff]  ;;  %v5154_v16 = vld [vmem:[#allocation9 + $0x70] sm:$0xff]  ;;  %v10658_v23 = vpack.c.bf16 %v6328_v45, %v6327_v54 }
 0x706   :  { %10603 = vmatprep.subr.bf16.mxu1 %v15968_v0  ;;  %v5156_v1 = vld [vmem:[#allocation9 + $0x80] sm:$0xff]  ;;  %v5159_v62 = vld [vmem:[#allocation9 + $0x98] sm:$0xff] }
 0x707   :  { %9429 = vmatmul.mubr.msk.f32.gmra.mrb[124].mxu0 %vm5478_vm1, %v5138_v24 }
 0x708   :  { %v4525_v46 = vpop.f32.mrb[62].mxu1  ;;  %v5104_v52 = vpop.f32.mrb[62].mxu0  ;;  %5825 = vmatprep.mubr.f32.mxu0 %v15970_v60 }
 0x709   :  { %v5139_v48 = vmax.f32 %v4525_v46, %v5104_v52  ;;  %v4527_v57 = vpop.f32.mrb[63].mxu1  ;;  %v5106_v18 = vpop.f32.mrb[63].mxu0  ;;  %v5158_v46 = vld [vmem:[#allocation9 + $0x90] sm:$0xff]  ;;  %v5161_v52 = vld [vmem:[#allocation9 + $0xa8] sm:$0xff] }
 0x70a   :  { %v5163_v57 = vld [vmem:[#allocation9 + $0xb8] sm:$0xff]  ;;  %v5162_v18 = vld [vmem:[#allocation9 + $0xb0] sm:$0xff] }
 0x70b   :  { %v10604_v4 = vpack.c.bf16 %v5139_v48, %v5138_v24  ;;  %9430 = vmatmul.mubr.msk.f32.gmra.mrb[126].mxu0 %vm5478_vm1, %v5139_v48  ;;  %v5157_v24 = vld [vmem:[#allocation9 + $0x88] sm:$0xff]  ;;  %v5160_v48 = vld [vmem:[#allocation9 + $0xa0] sm:$0xff] }
 0x70c   :  { %5992 = vmatprep.mubr.f32.mxu0 %v15970_v60 }
 0x70d   :  { %10605 = vmatpush1.bf16.msra.mxu1 %v10604_v4  ;;  %v5165_v4 = vld [vmem:[#allocation9 + $0xc8] sm:$0xff] }
 0x70e   :  { %10654 = vmatprep.subr.bf16.mxu1 %v15968_v0 }
 0x710   :  { %5269 = vmatmul.mubr.f32.vlgmr.msra.gmra.mrb[64].mxu1 %v5140_v38  ;;  %v5164_v38 = vld [vmem:[#allocation9 + $0xc0] sm:$0xff] }
 0x711   :  { %5273 = vmatprep.mubr.f32.mxu1 %v5143_v25  ;;  %v5167_v25 = vld [vmem:[#allocation9 + $0xd8] sm:$0xff] }
 0x714   :  { %5274 = vmatmul.mubr.f32.gmra.mrb[66].mxu1 %v5142_v31  ;;  %v5180_v31 = vld [vmem:[#allocation9 + $0x140] sm:$0xff] }
 0x715   :  { %5278 = vmatprep.mubr.f32.mxu1 %v5145_v14  ;;  %v5184_v14 = vld [vmem:[#allocation9 + $0x160] sm:$0xff] }
 0x718   :  { %5279 = vmatmul.mubr.f32.gmra.mrb[68].mxu1 %v5144_v12  ;;  %v5188_v12 = vld [vmem:[#allocation9 + $0x180] sm:$0xff] }
 0x719   :  { %5283 = vmatprep.mubr.f32.mxu1 %v5147_v19  ;;  %v5192_v19 = vld [vmem:[#allocation9 + $0x1a0] sm:$0xff] }
 0x71c   :  { %5284 = vmatmul.mubr.f32.gmra.mrb[70].mxu1 %v5146_v29  ;;  %v5196_v29 = vld [vmem:[#allocation9 + $0x1c0] sm:$0xff] }
 0x71d   :  { %5288 = vmatprep.mubr.f32.mxu1 %v5149_v55  ;;  %v5200_v55 = vld [vmem:[#allocation9 + $0x1e0] sm:$0xff] }
 0x720   :  { %5289 = vmatmul.mubr.f32.gmra.mrb[72].mxu1 %v5148_v11  ;;  %v6326_v11 = vld [vmem:[#allocation12 + $0x8] sm:$0xff] }
 0x721   :  { %5293 = vmatprep.mubr.f32.mxu1 %v5151_v42  ;;  %v10655_v39 = vpack.c.bf16 %v6326_v11, %v6325_v36 }
 0x723   :  { %10656 = vmatpush1.bf16.msra.mxu1 %v10655_v39 }
 0x724   :  { %5294 = vmatmul.mubr.f32.gmra.mrb[74].mxu1 %v5150_v56  ;;  %10657 = vmatprep.subr.bf16.mxu1 %v15968_v0 }
 0x725   :  { %5298 = vmatprep.mubr.f32.mxu1 %v5153_v17  ;;  %v6329_v17 = vld [vmem:[#allocation12 + $0x20] sm:$0xff] }
 0x727   :  { %10659 = vmatpush1.bf16.msra.mxu1 %v10658_v23 }
 0x728   :  { %5299 = vmatmul.mubr.f32.gmra.mrb[76].mxu1 %v5152_v43  ;;  %v6330_v43 = vld [vmem:[#allocation12 + $0x28] sm:$0xff]  ;;  %10660 = vmatprep.subr.bf16.mxu1 %v15968_v0 }
 0x729   :  { %5303 = vmatprep.mubr.f32.mxu1 %v5155_v13 }
 0x72c   :  { %5304 = vmatmul.mubr.f32.gmra.mrb[78].mxu1 %v5154_v16  ;;  %v10661_v16 = vpack.c.bf16 %v6330_v43, %v6329_v17 }
 0x72d   :  { %5308 = vmatprep.mubr.f32.mxu1 %v5157_v24 }
 0x72e   :  { %10662 = vmatpush1.bf16.msra.mxu1 %v10661_v16 }
 0x72f   :  { %10663 = vmatprep.subr.bf16.mxu1 %v15968_v0 }
 0x730   :  { %5309 = vmatmul.mubr.f32.gmra.mrb[80].mxu1 %v5156_v1  ;;  %v6331_v1 = vld [vmem:[#allocation12 + $0x30] sm:$0xff] }
 0x731   :  { %5313 = vmatprep.mubr.f32.mxu1 %v5159_v62  ;;  %v6332_v62 = vld [vmem:[#allocation12 + $0x38] sm:$0xff] }
 0x734   :  { %5314 = vmatmul.mubr.f32.gmra.mrb[82].mxu1 %v5158_v46 }
 0x735   :  { %5318 = vmatprep.mubr.f32.mxu1 %v5161_v52  ;;  %v10664_v52 = vpack.c.bf16 %v6332_v62, %v6331_v1  ;;  %v6346_v1 = vld [vmem:[#allocation12 + $0xa8] sm:$0xff] }
 0x737   :  { %10665 = vmatpush1.bf16.msra.mxu1 %v10664_v52 }
 0x738   :  { %5319 = vmatmul.mubr.f32.gmra.mrb[84].mxu1 %v5160_v48  ;;  %10666 = vmatprep.subr.bf16.mxu1 %v15968_v0 }
 0x739   :  { %5323 = vmatprep.mubr.f32.mxu1 %v5163_v57  ;;  %v6333_v57 = vld [vmem:[#allocation12 + $0x40] sm:$0xff] }
 0x73c   :  { %5324 = vmatmul.mubr.f32.gmra.mrb[86].mxu1 %v5162_v18  ;;  %v6334_v18 = vld [vmem:[#allocation12 + $0x48] sm:$0xff] }
 0x73d   :  { %5328 = vmatprep.mubr.f32.mxu1 %v5165_v4 }
 0x740   :  { %5329 = vmatmul.mubr.f32.gmra.mrb[88].mxu1 %v5164_v38  ;;  %v10667_v38 = vpack.c.bf16 %v6334_v18, %v6333_v57  ;;  %v6348_v57 = vld [vmem:[#allocation12 + $0xb8] sm:$0xff] }
 0x741   :  { %5333 = vmatprep.mubr.f32.mxu1 %v5167_v25 }
 0x742   :  { %10668 = vmatpush1.bf16.msra.mxu1 %v10667_v38 }
 0x743   :  { %10669 = vmatprep.subr.bf16.mxu1 %v15968_v0 }
 0x744   :  { %5334 = vmatmul.mubr.f32.gmra.mrb[90].mxu1 %v5166_v7  ;;  %v6335_v7 = vld [vmem:[#allocation12 + $0x50] sm:$0xff] }
 0x745   :  { %5338 = vmatprep.mubr.f32.mxu1 %v5169_v30  ;;  %v6336_v30 = vld [vmem:[#allocation12 + $0x58] sm:$0xff] }
 0x748   :  { %5339 = vmatmul.mubr.f32.gmra.mrb[92].mxu1 %v5168_v63 }
 0x749   :  { %5343 = vmatprep.mubr.f32.mxu1 %v5171_v35  ;;  %v10670_v35 = vpack.c.bf16 %v6336_v30, %v6335_v7 }
 0x74b   :  { %10671 = vmatpush1.bf16.msra.mxu1 %v10670_v35 }
 0x74c   :  { %5344 = vmatmul.mubr.f32.gmra.mrb[94].mxu1 %v5170_v47  ;;  %10672 = vmatprep.subr.bf16.mxu1 %v15968_v0 }
 0x74d   :  { %5348 = vmatprep.mubr.f32.mxu1 %v5173_v3  ;;  %v6337_v3 = vld [vmem:[#allocation12 + $0x60] sm:$0xff] }
 0x750   :  { %5349 = vmatmul.mubr.f32.gmra.mrb[96].mxu1 %v5172_v27  ;;  %v6338_v27 = vld [vmem:[#allocation12 + $0x68] sm:$0xff] }
 0x751   :  { %5353 = vmatprep.mubr.f32.mxu1 %v5175_v49 }
 0x754   :  { %5354 = vmatmul.mubr.f32.gmra.mrb[98].mxu1 %v5174_v26  ;;  %v10673_v26 = vpack.c.bf16 %v6338_v27, %v6337_v3 }
 0x755   :  { %5358 = vmatprep.mubr.f32.mxu1 %v5177_v58 }
 0x756   :  { %10674 = vmatpush1.bf16.msra.mxu1 %v10673_v26 }
 0x757   :  { %10675 = vmatprep.subr.bf16.mxu1 %v15968_v0 }
 0x758   :  { %5359 = vmatmul.mubr.f32.gmra.mrb[100].mxu1 %v5176_v34  ;;  %v6339_v34 = vld [vmem:[#allocation12 + $0x70] sm:$0xff] }
 0x759   :  { %5363 = vmatprep.mubr.f32.mxu1 %v5179_v33  ;;  %v6340_v33 = vld [vmem:[#allocation12 + $0x78] sm:$0xff] }
 0x75c   :  { %5364 = vmatmul.mubr.f32.gmra.mrb[102].mxu1 %v5178_v51 }
 0x75d   :  { %5368 = vmatprep.mubr.f32.mxu1 %v5181_v2  ;;  %v10676_v2 = vpack.c.bf16 %v6340_v33, %v6339_v34 }
 0x75f   :  { %10677 = vmatpush1.bf16.msra.mxu1 %v10676_v2 }
 0x760   :  { %5369 = vmatmul.mubr.f32.gmra.mrb[104].mxu1 %v5180_v31  ;;  %10678 = vmatprep.subr.bf16.mxu1 %v15968_v0 }
 0x761   :  { %5373 = vmatprep.mubr.f32.mxu1 %v5183_v37  ;;  %v6341_v37 = vld [vmem:[#allocation12 + $0x80] sm:$0xff] }
 0x764   :  { %5374 = vmatmul.mubr.f32.gmra.mrb[106].mxu1 %v5182_v59  ;;  %v6342_v59 = vld [vmem:[#allocation12 + $0x88] sm:$0xff] }
 0x765   :  { %5378 = vmatprep.mubr.f32.mxu1 %v5185_v50 }
 0x768   :  { %5379 = vmatmul.mubr.f32.gmra.mrb[108].mxu1 %v5184_v14  ;;  %v10679_v14 = vpack.c.bf16 %v6342_v59, %v6341_v37 }
 0x769   :  { %5383 = vmatprep.mubr.f32.mxu1 %v5187_v6 }
 0x76a   :  { %10680 = vmatpush1.bf16.msra.mxu1 %v10679_v14 }
 0x76b   :  { %10681 = vmatprep.subr.bf16.mxu1 %v15968_v0 }
 0x76c   :  { %5384 = vmatmul.mubr.f32.gmra.mrb[110].mxu1 %v5186_v10  ;;  %v6343_v10 = vld [vmem:[#allocation12 + $0x90] sm:$0xff] }
 0x76d   :  { %5388 = vmatprep.mubr.f32.mxu1 %v5189_v9  ;;  %v6344_v9 = vld [vmem:[#allocation12 + $0x98] sm:$0xff] }
 0x770   :  { %5389 = vmatmul.mubr.f32.gmra.mrb[112].mxu1 %v5188_v12 }
 0x771   :  { %5393 = vmatprep.mubr.f32.mxu1 %v5191_v61  ;;  %v10682_v61 = vpack.c.bf16 %v6344_v9, %v6343_v10 }
 0x773   :  { %10683 = vmatpush1.bf16.msra.mxu1 %v10682_v61  ;;  %v6671_v61 = vld [vmem:[#allocation12 + $0xc0] sm:$0xff] }
 0x774   :  { %5394 = vmatmul.mubr.f32.gmra.mrb[114].mxu1 %v5190_v28  ;;  %10684 = vmatprep.subr.bf16.mxu1 %v15968_v0 }
 0x775   :  { %5398 = vmatprep.mubr.f32.mxu1 %v5193_v20 }
 0x778   :  { %5399 = vmatmul.mubr.f32.gmra.mrb[116].mxu1 %v5192_v19 }
 0x779   :  { %5403 = vmatprep.mubr.f32.mxu1 %v5195_v8 }
 0x77c   :  { %5404 = vmatmul.mubr.f32.gmra.mrb[118].mxu1 %v5194_v32 }
 0x77d   :  { %5408 = vmatprep.mubr.f32.mxu1 %v5197_v53 }
 0x780   :  { %5409 = vmatmul.mubr.f32.gmra.mrb[120].mxu1 %v5196_v29 }
 0x781   :  { %5413 = vmatprep.mubr.f32.mxu1 %v5199_v22 }
 0x784   :  { %5414 = vmatmul.mubr.f32.gmra.mrb[122].mxu1 %v5198_v40 }
 0x785   :  { %5418 = vmatprep.mubr.f32.mxu1 %v5201_v21 }
 0x788   :  { %5419 = vmatmul.mubr.f32.gmra.mrb[124].mxu1 %v5200_v55 }
 0x789   :  { %5423 = vmatprep.mubr.f32.mxu1 %v5203_v41 }
 0x78c   :  { %5424 = vmatmul.mubr.f32.gmra.mrb[126].mxu1 %v5202_v15 }
 0x7e3   :  { %v5270_v42 = vpop.f32.mrb[64].mxu1 }
 0x7e4   :  { %9431 = vmatmul.mubr.msk.f32.vlgmr.msra.gmra.mrb[64].mxu0 %vm5478_vm1, %v5270_v42  ;;  %v5272_v56 = vpop.f32.mrb[65].mxu1 }
 0x7e5   :  { %5998 = vmatprep.mubr.f32.mxu0 %v15970_v60 }
 0x7e7   :  { %v5275_v13 = vpop.f32.mrb[66].mxu1 }
 0x7e8   :  { %9432 = vmatmul.mubr.msk.f32.gmra.mrb[66].mxu0 %vm5478_vm1, %v5275_v13  ;;  %v5277_v24 = vpop.f32.mrb[67].mxu1 }
 0x7e9   :  { %6004 = vmatprep.mubr.f32.mxu0 %v15970_v60  ;;  %v6345_v24 = vld [vmem:[#allocation12 + $0xa0] sm:$0xff] }
 0x7ea   :  { %v10685_v62 = vpack.c.bf16 %v6346_v1, %v6345_v24  ;;  %v6677_v1 = vld [vmem:[#allocation12 + $0xf0] sm:$0xff] }
 0x7eb   :  { %v5280_v46 = vpop.f32.mrb[68].mxu1 }
 0x7ec   :  { %9433 = vmatmul.mubr.msk.f32.gmra.mrb[68].mxu0 %vm5478_vm1, %v5280_v46  ;;  %v5282_v48 = vpop.f32.mrb[69].mxu1  ;;  %10686 = vmatpush1.bf16.msra.mxu1 %v10685_v62  ;;  %v6678_v62 = vld [vmem:[#allocation12 + $0xf8] sm:$0xff] }
 0x7ed   :  { %6010 = vmatprep.mubr.f32.mxu0 %v15970_v60  ;;  %10687 = vmatprep.subr.bf16.mxu1 %v15968_v0  ;;  %v6347_v48 = vld [vmem:[#allocation12 + $0xb0] sm:$0xff] }
 0x7ee   :  { %v10688_v18 = vpack.c.bf16 %v6348_v57, %v6347_v48  ;;  %v10700_v57 = vpack.c.bf16 %v6678_v62, %v6677_v1  ;;  %v6687_v1 = vld [vmem:[#allocation12 + $0x140] sm:$0xff]  ;;  %v6688_v62 = vld [vmem:[#allocation12 + $0x148] sm:$0xff] }
 0x7ef   :  { %v5285_v4 = vpop.f32.mrb[70].mxu1 }
 0x7f0   :  { %9434 = vmatmul.mubr.msk.f32.gmra.mrb[70].mxu0 %vm5478_vm1, %v5285_v4  ;;  %v5287_v25 = vpop.f32.mrb[71].mxu1  ;;  %10689 = vmatpush1.bf16.msra.mxu1 %v10688_v18 }
 0x7f1   :  { %6016 = vmatprep.mubr.f32.mxu0 %v15970_v60  ;;  %10690 = vmatprep.subr.bf16.mxu1 %v15968_v0 }
 0x7f3   :  { %v5290_v63 = vpop.f32.mrb[72].mxu1 }
 0x7f4   :  { %9435 = vmatmul.mubr.msk.f32.gmra.mrb[72].mxu0 %vm5478_vm1, %v5290_v63  ;;  %v5292_v47 = vpop.f32.mrb[73].mxu1 }
 0x7f5   :  { %6022 = vmatprep.mubr.f32.mxu0 %v15970_v60 }
 0x7f7   :  { %v5295_v49 = vpop.f32.mrb[74].mxu1 }
 0x7f8   :  { %9436 = vmatmul.mubr.msk.f32.gmra.mrb[74].mxu0 %vm5478_vm1, %v5295_v49  ;;  %v5297_v58 = vpop.f32.mrb[75].mxu1 }
 0x7f9   :  { %6028 = vmatprep.mubr.f32.mxu0 %v15970_v60 }
 0x7fb   :  { %v5300_v51 = vpop.f32.mrb[76].mxu1 }
 0x7fc   :  { %9437 = vmatmul.mubr.msk.f32.gmra.mrb[76].mxu0 %vm5478_vm1, %v5300_v51  ;;  %v5302_v31 = vpop.f32.mrb[77].mxu1 }
 0x7fd   :  { %6034 = vmatprep.mubr.f32.mxu0 %v15970_v60 }
 0x7ff   :  { %v5305_v50 = vpop.f32.mrb[78].mxu1 }
 0x800   :  { %9438 = vmatmul.mubr.msk.f32.gmra.mrb[78].mxu0 %vm5478_vm1, %v5305_v50  ;;  %v5307_v6 = vpop.f32.mrb[79].mxu1  ;;  %v6185_v50 = vld [vmem:[%s15957_s8] sm:$0x3] }
 0x801   :  { %6040 = vmatprep.mubr.f32.mxu0 %v15970_v60  ;;  %v14495_v14 = vrot.slane %v6185_v50, %v12891_v5  ;;  %v14498_v6 = vrot.slane %v6185_v50, %v12897_v44  ;;  %v6683_v50 = vld [vmem:[#allocation12 + $0x120] sm:$0xff] }
 0x803   :  { %v5310_v12 = vpop.f32.mrb[80].mxu1 }
 0x804   :  { %9439 = vmatmul.mubr.msk.f32.gmra.mrb[80].mxu0 %vm5478_vm1, %v5310_v12  ;;  %v5312_v28 = vpop.f32.mrb[81].mxu1 }
 0x805   :  { %6046 = vmatprep.mubr.f32.mxu0 %v15970_v60  ;;  %v6672_v28 = vld [vmem:[#allocation12 + $0xc8] sm:$0xff] }
 0x807   :  { %v5315_v20 = vpop.f32.mrb[82].mxu1 }
 0x808   :  { %9440 = vmatmul.mubr.msk.f32.gmra.mrb[82].mxu0 %vm5478_vm1, %v5315_v20  ;;  %v5317_v19 = vpop.f32.mrb[83].mxu1 }
 0x809   :  { %6052 = vmatprep.mubr.f32.mxu0 %v15970_v60 }
 0x80b   :  { %v5320_v8 = vpop.f32.mrb[84].mxu1 }
 0x80c   :  { %9441 = vmatmul.mubr.msk.f32.gmra.mrb[84].mxu0 %vm5478_vm1, %v5320_v8  ;;  %v5322_v32 = vpop.f32.mrb[85].mxu1 }
 0x80d   :  { %6058 = vmatprep.mubr.f32.mxu0 %v15970_v60  ;;  %v10691_v32 = vpack.c.bf16 %v6672_v28, %v6671_v61 }
 0x80f   :  { %v5325_v53 = vpop.f32.mrb[86].mxu1 }
 0x810   :  { %9442 = vmatmul.mubr.msk.f32.gmra.mrb[86].mxu0 %vm5478_vm1, %v5325_v53  ;;  %v5327_v29 = vpop.f32.mrb[87].mxu1 }
 0x811   :  { %6064 = vmatprep.mubr.f32.mxu0 %v15970_v60 }
 0x813   :  { %v5330_v22 = vpop.f32.mrb[88].mxu1 }
 0x814   :  { %9443 = vmatmul.mubr.msk.f32.gmra.mrb[88].mxu0 %vm5478_vm1, %v5330_v22  ;;  %v5332_v40 = vpop.f32.mrb[89].mxu1 }
 0x815   :  { %6070 = vmatprep.mubr.f32.mxu0 %v15970_v60  ;;  %v6673_v40 = vld [vmem:[#allocation12 + $0xd0] sm:$0xff] }
 0x817   :  { %v5335_v21 = vpop.f32.mrb[90].mxu1 }
 0x818   :  { %9444 = vmatmul.mubr.msk.f32.gmra.mrb[90].mxu0 %vm5478_vm1, %v5335_v21  ;;  %v5337_v55 = vpop.f32.mrb[91].mxu1  ;;  %v6674_v21 = vld [vmem:[#allocation12 + $0xd8] sm:$0xff] }
 0x819   :  { %6076 = vmatprep.mubr.f32.mxu0 %v15970_v60 }
 0x81b   :  { %v5340_v41 = vpop.f32.mrb[92].mxu1 }
 0x81c   :  { %9445 = vmatmul.mubr.msk.f32.gmra.mrb[92].mxu0 %vm5478_vm1, %v5340_v41  ;;  %v5342_v15 = vpop.f32.mrb[93].mxu1 }
 0x81d   :  { %6082 = vmatprep.mubr.f32.mxu0 %v15970_v60 }
 0x81f   :  { %v5345_v36 = vpop.f32.mrb[94].mxu1 }
 0x820   :  { %9446 = vmatmul.mubr.msk.f32.gmra.mrb[94].mxu0 %vm5478_vm1, %v5345_v36  ;;  %v5347_v11 = vpop.f32.mrb[95].mxu1  ;;  %v10694_v36 = vpack.c.bf16 %v6674_v21, %v6673_v40  ;;  %v6685_v21 = vld [vmem:[#allocation12 + $0x130] sm:$0xff] }
 0x821   :  { %6088 = vmatprep.mubr.f32.mxu0 %v15970_v60 }
 0x823   :  { %v5350_v54 = vpop.f32.mrb[96].mxu1 }
 0x824   :  { %9447 = vmatmul.mubr.msk.f32.gmra.mrb[96].mxu0 %vm5478_vm1, %v5350_v54  ;;  %v5352_v39 = vpop.f32.mrb[97].mxu1 }
 0x825   :  { %6094 = vmatprep.mubr.f32.mxu0 %v15970_v60 }
 0x827   :  { %v5355_v45 = vpop.f32.mrb[98].mxu1 }
 0x828   :  { %9448 = vmatmul.mubr.msk.f32.gmra.mrb[98].mxu0 %vm5478_vm1, %v5355_v45  ;;  %v5357_v42 = vpop.f32.mrb[99].mxu1  ;;  %v6675_v45 = vld [vmem:[#allocation12 + $0xe0] sm:$0xff] }
 0x829   :  { %6100 = vmatprep.mubr.f32.mxu0 %v15970_v60  ;;  %v6676_v42 = vld [vmem:[#allocation12 + $0xe8] sm:$0xff] }
 0x82b   :  { %v5360_v23 = vpop.f32.mrb[100].mxu1 }
 0x82c   :  { %9449 = vmatmul.mubr.msk.f32.gmra.mrb[100].mxu0 %vm5478_vm1, %v5360_v23  ;;  %v5362_v56 = vpop.f32.mrb[101].mxu1 }
 0x82d   :  { %6106 = vmatprep.mubr.f32.mxu0 %v15970_v60 }
 0x82f   :  { %v5365_v17 = vpop.f32.mrb[102].mxu1 }
 0x830   :  { %9450 = vmatmul.mubr.msk.f32.gmra.mrb[102].mxu0 %vm5478_vm1, %v5365_v17  ;;  %v5367_v43 = vpop.f32.mrb[103].mxu1 }
 0x831   :  { %6112 = vmatprep.mubr.f32.mxu0 %v15970_v60  ;;  %v10697_v43 = vpack.c.bf16 %v6676_v42, %v6675_v45 }
 0x833   :  { %v5370_v13 = vpop.f32.mrb[104].mxu1 }
 0x834   :  { %9451 = vmatmul.mubr.msk.f32.gmra.mrb[104].mxu0 %vm5478_vm1, %v5370_v13  ;;  %v5372_v16 = vpop.f32.mrb[105].mxu1 }
 0x835   :  { %6118 = vmatprep.mubr.f32.mxu0 %v15970_v60 }
 0x837   :  { %v5375_v46 = vpop.f32.mrb[106].mxu1 }
 0x838   :  { %9452 = vmatmul.mubr.msk.f32.gmra.mrb[106].mxu0 %vm5478_vm1, %v5375_v46  ;;  %v5377_v52 = vpop.f32.mrb[107].mxu1 }
 0x839   :  { %6124 = vmatprep.mubr.f32.mxu0 %v15970_v60 }
 0x83b   :  { %v5380_v4 = vpop.f32.mrb[108].mxu1 }
 0x83c   :  { %9453 = vmatmul.mubr.msk.f32.gmra.mrb[108].mxu0 %vm5478_vm1, %v5380_v4  ;;  %v5382_v38 = vpop.f32.mrb[109].mxu1 }
 0x83d   :  { %6130 = vmatprep.mubr.f32.mxu0 %v15970_v60 }
 0x83f   :  { %v5385_v25 = vpop.f32.mrb[110].mxu1 }
 0x840   :  { %9454 = vmatmul.mubr.msk.f32.gmra.mrb[110].mxu0 %vm5478_vm1, %v5385_v25  ;;  %v5387_v7 = vpop.f32.mrb[111].mxu1  ;;  %v6679_v25 = vld [vmem:[#allocation12 + $0x100] sm:$0xff] }
 0x841   :  { %6136 = vmatprep.mubr.f32.mxu0 %v15970_v60  ;;  %v6680_v7 = vld [vmem:[#allocation12 + $0x108] sm:$0xff] }
 0x843   :  { %v5390_v30 = vpop.f32.mrb[112].mxu1 }
 0x844   :  { %9455 = vmatmul.mubr.msk.f32.gmra.mrb[112].mxu0 %vm5478_vm1, %v5390_v30  ;;  %v5392_v63 = vpop.f32.mrb[113].mxu1 }
 0x845   :  { %6142 = vmatprep.mubr.f32.mxu0 %v15970_v60 }
 0x847   :  { %v5395_v35 = vpop.f32.mrb[114].mxu1 }
 0x848   :  { %9456 = vmatmul.mubr.msk.f32.gmra.mrb[114].mxu0 %vm5478_vm1, %v5395_v35  ;;  %v5397_v47 = vpop.f32.mrb[115].mxu1 }
 0x849   :  { %6148 = vmatprep.mubr.f32.mxu0 %v15970_v60  ;;  %v10703_v47 = vpack.c.bf16 %v6680_v7, %v6679_v25  ;;  %v10715_v25 = vpack.c.bf16 %v6688_v62, %v6687_v1 }
 0x84b   :  { %v5400_v3 = vpop.f32.mrb[116].mxu1 }
 0x84c   :  { %9457 = vmatmul.mubr.msk.f32.gmra.mrb[116].mxu0 %vm5478_vm1, %v5400_v3  ;;  %v5402_v27 = vpop.f32.mrb[117].mxu1 }
 0x84d   :  { %6154 = vmatprep.mubr.f32.mxu0 %v15970_v60 }
 0x84f   :  { %v5405_v49 = vpop.f32.mrb[118].mxu1 }
 0x850   :  { %9458 = vmatmul.mubr.msk.f32.gmra.mrb[118].mxu0 %vm5478_vm1, %v5405_v49  ;;  %v5407_v26 = vpop.f32.mrb[119].mxu1 }
 0x851   :  { %6160 = vmatprep.mubr.f32.mxu0 %v15970_v60  ;;  %v6681_v26 = vld [vmem:[#allocation12 + $0x110] sm:$0xff] }
 0x853   :  { %v5410_v58 = vpop.f32.mrb[120].mxu1 }
 0x854   :  { %9459 = vmatmul.mubr.msk.f32.gmra.mrb[120].mxu0 %vm5478_vm1, %v5410_v58  ;;  %v5412_v34 = vpop.f32.mrb[121].mxu1  ;;  %v6682_v58 = vld [vmem:[#allocation12 + $0x118] sm:$0xff] }
 0x855   :  { %6166 = vmatprep.mubr.f32.mxu0 %v15970_v60 }
 0x857   :  { %v5415_v33 = vpop.f32.mrb[122].mxu1 }
 0x858   :  { %9460 = vmatmul.mubr.msk.f32.gmra.mrb[122].mxu0 %vm5478_vm1, %v5415_v33  ;;  %v5417_v51 = vpop.f32.mrb[123].mxu1 }
 0x859   :  { %6172 = vmatprep.mubr.f32.mxu0 %v15970_v60 }
 0x85b   :  { %v5420_v2 = vpop.f32.mrb[124].mxu1 }
 0x85c   :  { %9461 = vmatmul.mubr.msk.f32.gmra.mrb[124].mxu0 %vm5478_vm1, %v5420_v2  ;;  %v5422_v31 = vpop.f32.mrb[125].mxu1  ;;  %v10706_v2 = vpack.c.bf16 %v6682_v58, %v6681_v26  ;;  %v6690_v26 = vld [vmem:[#allocation12 + $0x158] sm:$0xff] }
 0x85d   :  { %6178 = vmatprep.mubr.f32.mxu0 %v15970_v60 }
 0x85f   :  { %v5425_v37 = vpop.f32.mrb[126].mxu1 }
 0x860   :  { %9462 = vmatmul.mubr.msk.f32.gmra.mrb[126].mxu0 %vm5478_vm1, %v5425_v37  ;;  %v5427_v59 = vpop.f32.mrb[127].mxu1 }
 0x8b7   :  { %v5994_v10 = vpop.f32.mrb[64].mxu0 }
 0x8b8   :  { %v14501_v9 = vadd.f32 %v14495_v14, %v5994_v10  ;;  %v5996_v12 = vpop.f32.mrb[65].mxu0  ;;  %v6684_v10 = vld [vmem:[#allocation12 + $0x128] sm:$0xff] }
 0x8b9   :  { %v14504_v20 = vadd.f32 %v14498_v6, %v5996_v12 }
 0x8ba   :  { %v16016_v53 = vmax.f32 %v14501_v9, 0.0 }
 0x8bb   :  { %v16019_v19 = vmax.f32 %v14504_v20, 0.0  ;;  %v6000_v8 = vpop.f32.mrb[66].mxu0 }
 0x8bc   :  { %v14509_v29 = vadd.f32 %v14495_v14, %v6000_v8  ;;  %v6002_v22 = vpop.f32.mrb[67].mxu0  ;;  %v10709_v8 = vpack.c.bf16 %v6684_v10, %v6683_v50 }
 0x8bd   :  { %v14512_v55 = vadd.f32 %v14498_v6, %v6002_v22  ;;  %9463 = vmatprep.mubr.msk.f32.mxu1 %vm1325_vm0, %v16019_v19 }
 0x8be   :  { %6510 = vmatmul.mubr.f32.vlgmr.msra.gmra.mrb[128].mxu1 %v16016_v53  ;;  %v16012_v11 = vmax.f32 %v14509_v29, 0.0 }
 0x8bf   :  { %v16015_v41 = vmax.f32 %v14512_v55, 0.0  ;;  %v6006_v15 = vpop.f32.mrb[68].mxu0  ;;  %10692 = vmatpush1.bf16.msra.mxu1 %v10691_v32 }
 0x8c0   :  { %v14522_v54 = vadd.f32 %v14495_v14, %v6006_v15  ;;  %v6008_v39 = vpop.f32.mrb[69].mxu0  ;;  %10693 = vmatprep.subr.bf16.mxu1 %v15968_v0  ;;  %v6686_v15 = vld [vmem:[#allocation12 + $0x138] sm:$0xff] }
 0x8c1   :  { %v14526_v23 = vadd.f32 %v14498_v6, %v6008_v39  ;;  %9464 = vmatprep.mubr.msk.f32.mxu1 %vm1325_vm0, %v16015_v41  ;;  %v10712_v42 = vpack.c.bf16 %v6686_v15, %v6685_v21 }
 0x8c2   :  { %6515 = vmatmul.mubr.f32.gmra.mrb[130].mxu1 %v16012_v11  ;;  %v16008_v13 = vmax.f32 %v14522_v54, 0.0 }
 0x8c3   :  { %v16011_v56 = vmax.f32 %v14526_v23, 0.0  ;;  %v6012_v17 = vpop.f32.mrb[70].mxu0  ;;  %10695 = vmatpush1.bf16.msra.mxu1 %v10694_v36 }
 0x8c4   :  { %v14536_v16 = vadd.f32 %v14495_v14, %v6012_v17  ;;  %v6014_v24 = vpop.f32.mrb[71].mxu0  ;;  %10696 = vmatprep.subr.bf16.mxu1 %v15968_v0 }
 0x8c5   :  { %v14540_v46 = vadd.f32 %v14498_v6, %v6014_v24  ;;  %9465 = vmatprep.mubr.msk.f32.mxu1 %vm1325_vm0, %v16011_v56 }
 0x8c6   :  { %6520 = vmatmul.mubr.f32.gmra.mrb[132].mxu1 %v16008_v13  ;;  %v16004_v18 = vmax.f32 %v14536_v16, 0.0 }
 0x8c7   :  { %v16007_v52 = vmax.f32 %v14540_v46, 0.0  ;;  %v6018_v48 = vpop.f32.mrb[72].mxu0  ;;  %10698 = vmatpush1.bf16.msra.mxu1 %v10697_v43 }
 0x8c8   :  { %v14550_v4 = vadd.f32 %v14495_v14, %v6018_v48  ;;  %v6020_v38 = vpop.f32.mrb[73].mxu0  ;;  %10699 = vmatprep.subr.bf16.mxu1 %v15968_v0 }
 0x8c9   :  { %v14554_v30 = vadd.f32 %v14498_v6, %v6020_v38  ;;  %9466 = vmatprep.mubr.msk.f32.mxu1 %vm1325_vm0, %v16007_v52 }
 0x8ca   :  { %6525 = vmatmul.mubr.f32.gmra.mrb[134].mxu1 %v16004_v18  ;;  %v16000_v3 = vmax.f32 %v14550_v4, 0.0 }
 0x8cb   :  { %v16003_v63 = vmax.f32 %v14554_v30, 0.0  ;;  %v6024_v35 = vpop.f32.mrb[74].mxu0  ;;  %10701 = vmatpush1.bf16.msra.mxu1 %v10700_v57 }
 0x8cc   :  { %v14564_v27 = vadd.f32 %v14495_v14, %v6024_v35  ;;  %v6026_v49 = vpop.f32.mrb[75].mxu0  ;;  %10702 = vmatprep.subr.bf16.mxu1 %v15968_v0 }
 0x8cd   :  { %v14568_v34 = vadd.f32 %v14498_v6, %v6026_v49  ;;  %9467 = vmatprep.mubr.msk.f32.mxu1 %vm1325_vm0, %v16003_v63  ;;  %v6689_v49 = vld [vmem:[#allocation12 + $0x150] sm:$0xff] }
 0x8ce   :  { %6530 = vmatmul.mubr.f32.gmra.mrb[136].mxu1 %v16000_v3  ;;  %v15996_v31 = vmax.f32 %v14564_v27, 0.0 }
 0x8cf   :  { %v15999_v33 = vmax.f32 %v14568_v34, 0.0  ;;  %v6030_v51 = vpop.f32.mrb[76].mxu0  ;;  %10704 = vmatpush1.bf16.msra.mxu1 %v10703_v47 }
 0x8d0   :  { %v14578_v37 = vadd.f32 %v14495_v14, %v6030_v51  ;;  %v6032_v59 = vpop.f32.mrb[77].mxu0  ;;  %10705 = vmatprep.subr.bf16.mxu1 %v15968_v0 }
 0x8d1   :  { %v14582_v12 = vadd.f32 %v14498_v6, %v6032_v59  ;;  %9468 = vmatprep.mubr.msk.f32.mxu1 %vm1325_vm0, %v15999_v33  ;;  %v10718_v59 = vpack.c.bf16 %v6690_v26, %v6689_v49 }
 0x8d2   :  { %6535 = vmatmul.mubr.f32.gmra.mrb[138].mxu1 %v15996_v31  ;;  %v15992_v32 = vmax.f32 %v14578_v37, 0.0 }
 0x8d3   :  { %v15995_v61 = vmax.f32 %v14582_v12, 0.0  ;;  %v6036_v28 = vpop.f32.mrb[78].mxu0  ;;  %10707 = vmatpush1.bf16.msra.mxu1 %v10706_v2 }
 0x8d4   :  { %v14592_v22 = vadd.f32 %v14495_v14, %v6036_v28  ;;  %v6038_v40 = vpop.f32.mrb[79].mxu0  ;;  %10708 = vmatprep.subr.bf16.mxu1 %v15968_v0 }
 0x8d5   :  { %v14596_v36 = vadd.f32 %v14498_v6, %v6038_v40  ;;  %9469 = vmatprep.mubr.msk.f32.mxu1 %vm1325_vm0, %v15995_v61  ;;  %v6692_v40 = vld [vmem:[#allocation12 + $0x168] sm:$0xff] }
 0x8d6   :  { %6540 = vmatmul.mubr.f32.gmra.mrb[140].mxu1 %v15992_v32  ;;  %v15988_v17 = vmax.f32 %v14592_v22, 0.0 }
 0x8d7   :  { %v15991_v39 = vmax.f32 %v14596_v36, 0.0  ;;  %v6042_v45 = vpop.f32.mrb[80].mxu0  ;;  %10710 = vmatpush1.bf16.msra.mxu1 %v10709_v8  ;;  %v6691_v8 = vld [vmem:[#allocation12 + $0x160] sm:$0xff] }
 0x8d8   :  { %v14606_v43 = vadd.f32 %v14495_v14, %v6042_v45  ;;  %v6044_v24 = vpop.f32.mrb[81].mxu0  ;;  %10711 = vmatprep.subr.bf16.mxu1 %v15968_v0 }
 0x8d9   :  { %v14610_v48 = vadd.f32 %v14498_v6, %v6044_v24  ;;  %9470 = vmatprep.mubr.msk.f32.mxu1 %vm1325_vm0, %v15991_v39 }
 0x8da   :  { %6545 = vmatmul.mubr.f32.gmra.mrb[142].mxu1 %v15988_v17  ;;  %v15984_v7 = vmax.f32 %v14606_v43, 0.0 }
 0x8db   :  { %v15987_v57 = vmax.f32 %v14610_v48, 0.0  ;;  %v6048_v38 = vpop.f32.mrb[82].mxu0  ;;  %10713 = vmatpush1.bf16.msra.mxu1 %v10712_v42  ;;  %v10721_v42 = vpack.c.bf16 %v6692_v40, %v6691_v8 }
 0x8dc   :  { %v14620_v35 = vadd.f32 %v14495_v14, %v6048_v38  ;;  %v6050_v47 = vpop.f32.mrb[83].mxu0  ;;  %10714 = vmatprep.subr.bf16.mxu1 %v15968_v0  ;;  %v6693_v38 = vld [vmem:[#allocation12 + $0x170] sm:$0xff] }
 0x8dd   :  { %v14624_v58 = vadd.f32 %v14498_v6, %v6050_v47  ;;  %9471 = vmatprep.mubr.msk.f32.mxu1 %vm1325_vm0, %v15987_v57 }
 0x8de   :  { %6550 = vmatmul.mubr.f32.gmra.mrb[144].mxu1 %v15984_v7  ;;  %v15980_v50 = vmax.f32 %v14620_v35, 0.0 }
 0x8df   :  { %v15983_v51 = vmax.f32 %v14624_v58, 0.0  ;;  %v6054_v2 = vpop.f32.mrb[84].mxu0  ;;  %10716 = vmatpush1.bf16.msra.mxu1 %v10715_v25  ;;  %v6694_v25 = vld [vmem:[#allocation12 + $0x178] sm:$0xff] }
 0x8e0   :  { %v14634_v10 = vadd.f32 %v14495_v14, %v6054_v2  ;;  %v6056_v28 = vpop.f32.mrb[85].mxu0  ;;  %10717 = vmatprep.subr.bf16.mxu1 %v15968_v0  ;;  %v10724_v2 = vpack.c.bf16 %v6694_v25, %v6693_v38 }
 0x8e1   :  { %v14638_v21 = vadd.f32 %v14498_v6, %v6056_v28  ;;  %9472 = vmatprep.mubr.msk.f32.mxu1 %vm1325_vm0, %v15983_v51 }
 0x8e2   :  { %6555 = vmatmul.mubr.f32.gmra.mrb[146].mxu1 %v15980_v50  ;;  %v15976_v24 = vmax.f32 %v14634_v10, 0.0 }
 0x8e3   :  { %v15979_v15 = vmax.f32 %v14638_v21, 0.0  ;;  %v6060_v45 = vpop.f32.mrb[86].mxu0  ;;  %10719 = vmatpush1.bf16.msra.mxu1 %v10718_v59 }
 0x8e4   :  { %v14648_v1 = vadd.f32 %v14495_v14, %v6060_v45  ;;  %v6062_v62 = vpop.f32.mrb[87].mxu0  ;;  %10720 = vmatprep.subr.bf16.mxu1 %v15968_v0 }
 0x8e5   :  { %v14652_v47 = vadd.f32 %v14498_v6, %v6062_v62  ;;  %9473 = vmatprep.mubr.msk.f32.mxu1 %vm1325_vm0, %v15979_v15 }
 0x8e6   :  { %6560 = vmatmul.mubr.f32.gmra.mrb[148].mxu1 %v15976_v24  ;;  %v15972_v59 = vmax.f32 %v14648_v1, 0.0 }
 0x8e7   :  { %v15975_v49 = vmax.f32 %v14652_v47, 0.0  ;;  %v6066_v26 = vpop.f32.mrb[88].mxu0  ;;  %10722 = vmatpush1.bf16.msra.mxu1 %v10721_v42 }
 0x8e8   :  { %v14662_v28 = vadd.f32 %v14495_v14, %v6066_v26  ;;  %v6068_v8 = vpop.f32.mrb[89].mxu0  ;;  %10723 = vmatprep.subr.bf16.mxu1 %v15968_v0 }
 0x8e9   :  { %v14666_v40 = vadd.f32 %v14498_v6, %v6068_v8  ;;  %9474 = vmatprep.mubr.msk.f32.mxu1 %vm1325_vm0, %v15975_v49 }
 0x8ea   :  { %6565 = vmatmul.mubr.f32.gmra.mrb[150].mxu1 %v15972_v59  ;;  %v15973_v62 = vmax.f32 %v14662_v28, 0.0 }
 0x8eb   :  { %v15974_v45 = vmax.f32 %v14666_v40, 0.0  ;;  %v6072_v42 = vpop.f32.mrb[90].mxu0  ;;  %10725 = vmatpush1.bf16.msra.mxu1 %v10724_v2 }
 0x8ec   :  { %v14676_v38 = vadd.f32 %v14495_v14, %v6072_v42  ;;  %v6074_v25 = vpop.f32.mrb[91].mxu0 }
 0x8ed   :  { %v14679_v26 = vadd.f32 %v14498_v6, %v6074_v25  ;;  %9475 = vmatprep.mubr.msk.f32.mxu1 %vm1325_vm0, %v15974_v45 }
 0x8ee   :  { %6570 = vmatmul.mubr.f32.gmra.mrb[152].mxu1 %v15973_v62  ;;  %v15977_v2 = vmax.f32 %v14676_v38, 0.0 }
 0x8ef   :  { %v15978_v8 = vmax.f32 %v14679_v26, 0.0  ;;  %v6078_v0 = vpop.f32.mrb[92].mxu0 }
 0x8f0   :  { %v14689_v60 = vadd.f32 %v14495_v14, %v6078_v0  ;;  %v6080_v42 = vpop.f32.mrb[93].mxu0 }
 0x8f1   :  { %v14692_v59 = vadd.f32 %v14498_v6, %v6080_v42  ;;  %9476 = vmatprep.mubr.msk.f32.mxu1 %vm1325_vm0, %v15978_v8 }
 0x8f2   :  { %6575 = vmatmul.mubr.f32.gmra.mrb[154].mxu1 %v15977_v2  ;;  %v15981_v45 = vmax.f32 %v14689_v60, 0.0 }
 0x8f3   :  { %v15982_v25 = vmax.f32 %v14692_v59, 0.0  ;;  %v6084_v62 = vpop.f32.mrb[94].mxu0 }
 0x8f4   :  { %v14702_v49 = vadd.f32 %v14495_v14, %v6084_v62  ;;  %v6086_v0 = vpop.f32.mrb[95].mxu0 }
 0x8f5   :  { %v14705_v24 = vadd.f32 %v14498_v6, %v6086_v0  ;;  %9477 = vmatprep.mubr.msk.f32.mxu1 %vm1325_vm0, %v15982_v25 }
 0x8f6   :  { %6580 = vmatmul.mubr.f32.gmra.mrb[156].mxu1 %v15981_v45  ;;  %v15985_v8 = vmax.f32 %v14702_v49, 0.0 }
 0x8f7   :  { %v15986_v42 = vmax.f32 %v14705_v24, 0.0  ;;  %v6090_v2 = vpop.f32.mrb[96].mxu0 }
 0x8f8   :  { %v14715_v15 = vadd.f32 %v14495_v14, %v6090_v2  ;;  %v6092_v62 = vpop.f32.mrb[97].mxu0 }
 0x8f9   :  { %v14718_v50 = vadd.f32 %v14498_v6, %v6092_v62  ;;  %9478 = vmatprep.mubr.msk.f32.mxu1 %vm1325_vm0, %v15986_v42 }
 0x8fa   :  { %6585 = vmatmul.mubr.f32.gmra.mrb[158].mxu1 %v15985_v8  ;;  %v15989_v25 = vmax.f32 %v14715_v15, 0.0 }
 0x8fb   :  { %v15990_v0 = vmax.f32 %v14718_v50, 0.0  ;;  %v6096_v45 = vpop.f32.mrb[98].mxu0 }
 0x8fc   :  { %v14728_v51 = vadd.f32 %v14495_v14, %v6096_v45  ;;  %v6098_v2 = vpop.f32.mrb[99].mxu0 }
 0x8fd   :  { %v14731_v7 = vadd.f32 %v14498_v6, %v6098_v2  ;;  %9479 = vmatprep.mubr.msk.f32.mxu1 %vm1325_vm0, %v15990_v0 }
 0x8fe   :  { %6590 = vmatmul.mubr.f32.gmra.mrb[160].mxu1 %v15989_v25  ;;  %v15993_v42 = vmax.f32 %v14728_v51, 0.0 }
 0x8ff   :  { %v15994_v62 = vmax.f32 %v14731_v7, 0.0  ;;  %v6102_v8 = vpop.f32.mrb[100].mxu0 }
 0x900   :  { %v14741_v57 = vadd.f32 %v14495_v14, %v6102_v8  ;;  %v6104_v45 = vpop.f32.mrb[101].mxu0 }
 0x901   :  { %v14744_v17 = vadd.f32 %v14498_v6, %v6104_v45  ;;  %9480 = vmatprep.mubr.msk.f32.mxu1 %vm1325_vm0, %v15994_v62 }
 0x902   :  { %6595 = vmatmul.mubr.f32.gmra.mrb[162].mxu1 %v15993_v42  ;;  %v15997_v0 = vmax.f32 %v14741_v57, 0.0 }
 0x903   :  { %v15998_v2 = vmax.f32 %v14744_v17, 0.0  ;;  %v6108_v25 = vpop.f32.mrb[102].mxu0 }
 0x904   :  { %v14754_v39 = vadd.f32 %v14495_v14, %v6108_v25  ;;  %v6110_v8 = vpop.f32.mrb[103].mxu0 }
 0x905   :  { %v14757_v32 = vadd.f32 %v14498_v6, %v6110_v8  ;;  %9481 = vmatprep.mubr.msk.f32.mxu1 %vm1325_vm0, %v15998_v2 }
 0x906   :  { %6600 = vmatmul.mubr.f32.gmra.mrb[164].mxu1 %v15997_v0  ;;  %v16001_v62 = vmax.f32 %v14754_v39, 0.0 }
 0x907   :  { %v16002_v45 = vmax.f32 %v14757_v32, 0.0  ;;  %v6114_v42 = vpop.f32.mrb[104].mxu0 }
 0x908   :  { %v14767_v61 = vadd.f32 %v14495_v14, %v6114_v42  ;;  %v6116_v25 = vpop.f32.mrb[105].mxu0 }
 0x909   :  { %v14770_v31 = vadd.f32 %v14498_v6, %v6116_v25  ;;  %9482 = vmatprep.mubr.msk.f32.mxu1 %vm1325_vm0, %v16002_v45 }
 0x90a   :  { %6605 = vmatmul.mubr.f32.gmra.mrb[166].mxu1 %v16001_v62  ;;  %v16005_v2 = vmax.f32 %v14767_v61, 0.0 }
 0x90b   :  { %v16006_v8 = vmax.f32 %v14770_v31, 0.0  ;;  %v6120_v0 = vpop.f32.mrb[106].mxu0 }
 0x90c   :  { %v14780_v33 = vadd.f32 %v14495_v14, %v6120_v0  ;;  %v6122_v42 = vpop.f32.mrb[107].mxu0 }
 0x90d   :  { %v14783_v3 = vadd.f32 %v14498_v6, %v6122_v42  ;;  %9483 = vmatprep.mubr.msk.f32.mxu1 %vm1325_vm0, %v16006_v8 }
 0x90e   :  { %6610 = vmatmul.mubr.f32.gmra.mrb[168].mxu1 %v16005_v2  ;;  %v16009_v45 = vmax.f32 %v14780_v33, 0.0 }
 0x90f   :  { %v16010_v25 = vmax.f32 %v14783_v3, 0.0  ;;  %v6126_v62 = vpop.f32.mrb[108].mxu0 }
 0x910   :  { %v14793_v63 = vadd.f32 %v14495_v14, %v6126_v62  ;;  %v6128_v0 = vpop.f32.mrb[109].mxu0 }
 0x911   :  { %v14796_v18 = vadd.f32 %v14498_v6, %v6128_v0  ;;  %9484 = vmatprep.mubr.msk.f32.mxu1 %vm1325_vm0, %v16010_v25 }
 0x912   :  { %6615 = vmatmul.mubr.f32.gmra.mrb[170].mxu1 %v16009_v45  ;;  %v16013_v8 = vmax.f32 %v14793_v63, 0.0 }
 0x913   :  { %v16014_v42 = vmax.f32 %v14796_v18, 0.0  ;;  %v6132_v2 = vpop.f32.mrb[110].mxu0 }
 0x914   :  { %v14806_v52 = vadd.f32 %v14495_v14, %v6132_v2  ;;  %v6134_v62 = vpop.f32.mrb[111].mxu0 }
 0x915   :  { %v14809_v13 = vadd.f32 %v14498_v6, %v6134_v62  ;;  %9485 = vmatprep.mubr.msk.f32.mxu1 %vm1325_vm0, %v16014_v42 }
 0x916   :  { %6620 = vmatmul.mubr.f32.gmra.mrb[172].mxu1 %v16013_v8  ;;  %v16017_v25 = vmax.f32 %v14806_v52, 0.0 }
 0x917   :  { %v16018_v0 = vmax.f32 %v14809_v13, 0.0  ;;  %v6138_v45 = vpop.f32.mrb[112].mxu0 }
 0x918   :  { %v14819_v56 = vadd.f32 %v14495_v14, %v6138_v45  ;;  %v6140_v2 = vpop.f32.mrb[113].mxu0 }
 0x919   :  { %v14822_v11 = vadd.f32 %v14498_v6, %v6140_v2  ;;  %9486 = vmatprep.mubr.msk.f32.mxu1 %vm1325_vm0, %v16018_v0 }
 0x91a   :  { %16049 = vst [vmem:[#allocation27_spill] sm:$0xff] %v14819_v56  ;;  %6625 = vmatmul.mubr.f32.gmra.mrb[174].mxu1 %v16017_v25  ;;  %v16021_v42 = vmax.f32 %v14819_v56, 0.0 }
 0x91b   :  { %v16022_v62 = vmax.f32 %v14822_v11, 0.0  ;;  %v6144_v8 = vpop.f32.mrb[114].mxu0 }
 0x91c   :  { %v14832_v41 = vadd.f32 %v14495_v14, %v6144_v8  ;;  %v6146_v45 = vpop.f32.mrb[115].mxu0 }
 0x91d   :  { %v14835_v53 = vadd.f32 %v14498_v6, %v6146_v45  ;;  %9487 = vmatprep.mubr.msk.f32.mxu1 %vm1325_vm0, %v16022_v62 }
 0x91e   :  { %16050 = vst [vmem:[#allocation28_spill] sm:$0xff] %v14832_v41  ;;  %6630 = vmatmul.mubr.f32.gmra.mrb[176].mxu1 %v16021_v42  ;;  %v16025_v0 = vmax.f32 %v14832_v41, 0.0 }
 0x91f   :  { %16051 = vst [vmem:[#allocation29_spill] sm:$0xff] %v14835_v53  ;;  %v16026_v2 = vmax.f32 %v14835_v53, 0.0  ;;  %v6150_v25 = vpop.f32.mrb[116].mxu0 }
 0x920   :  { %v14845_v19 = vadd.f32 %v14495_v14, %v6150_v25  ;;  %v6152_v8 = vpop.f32.mrb[117].mxu0 }
 0x921   :  { %v14848_v44 = vadd.f32 %v14498_v6, %v6152_v8  ;;  %9488 = vmatprep.mubr.msk.f32.mxu1 %vm1325_vm0, %v16026_v2 }
 0x922   :  { %16052 = vst [vmem:[#allocation30_spill] sm:$0xff] %v14845_v19  ;;  %6635 = vmatmul.mubr.f32.gmra.mrb[178].mxu1 %v16025_v0  ;;  %v16029_v62 = vmax.f32 %v14845_v19, 0.0 }
 0x923   :  { %16053 = vst [vmem:[#allocation31_spill] sm:$0xff] %v14848_v44  ;;  %v16030_v45 = vmax.f32 %v14848_v44, 0.0  ;;  %v6156_v42 = vpop.f32.mrb[118].mxu0 }
 0x924   :  { %v14858_v5 = vadd.f32 %v14495_v14, %v6156_v42  ;;  %v6158_v25 = vpop.f32.mrb[119].mxu0 }
 0x925   :  { %v14861_v56 = vadd.f32 %v14498_v6, %v6158_v25  ;;  %9489 = vmatprep.mubr.msk.f32.mxu1 %vm1325_vm0, %v16030_v45 }
 0x926   :  { %16054 = vst [vmem:[#allocation32_spill] sm:$0xff] %v14858_v5  ;;  %6640 = vmatmul.mubr.f32.gmra.mrb[180].mxu1 %v16029_v62  ;;  %v16033_v2 = vmax.f32 %v14858_v5, 0.0 }
 0x927   :  { %16055 = vst [vmem:[#allocation33_spill] sm:$0xff] %v14861_v56  ;;  %v16034_v8 = vmax.f32 %v14861_v56, 0.0  ;;  %v6162_v0 = vpop.f32.mrb[120].mxu0 }
 0x928   :  { %v14871_v41 = vadd.f32 %v14495_v14, %v6162_v0  ;;  %v6164_v42 = vpop.f32.mrb[121].mxu0 }
 0x929   :  { %v14874_v53 = vadd.f32 %v14498_v6, %v6164_v42  ;;  %9490 = vmatprep.mubr.msk.f32.mxu1 %vm1325_vm0, %v16034_v8 }
 0x92a   :  { %16056 = vst [vmem:[#allocation34_spill] sm:$0xff] %v14871_v41  ;;  %6645 = vmatmul.mubr.f32.gmra.mrb[182].mxu1 %v16033_v2  ;;  %v16037_v45 = vmax.f32 %v14871_v41, 0.0 }
 0x92b   :  { %16057 = vst [vmem:[#allocation35_spill] sm:$0xff] %v14874_v53  ;;  %v16038_v25 = vmax.f32 %v14874_v53, 0.0  ;;  %v6168_v62 = vpop.f32.mrb[122].mxu0 }
 0x92c   :  { %v14884_v19 = vadd.f32 %v14495_v14, %v6168_v62  ;;  %v6170_v0 = vpop.f32.mrb[123].mxu0 }
 0x92d   :  { %v14887_v44 = vadd.f32 %v14498_v6, %v6170_v0  ;;  %9491 = vmatprep.mubr.msk.f32.mxu1 %vm1325_vm0, %v16038_v25 }
 0x92e   :  { %6650 = vmatmul.mubr.f32.gmra.mrb[184].mxu1 %v16037_v45  ;;  %v16041_v8 = vmax.f32 %v14884_v19, 0.0 }
 0x92f   :  { %v6320_v42 = vmax.f32 %v14887_v44, 0.0  ;;  %v6174_v2 = vpop.f32.mrb[124].mxu0 }
 0x930   :  { %v14897_v5 = vadd.f32 %v14495_v14, %v6174_v2  ;;  %v6176_v62 = vpop.f32.mrb[125].mxu0 }
 0x931   :  { %v14900_v56 = vadd.f32 %v14498_v6, %v6176_v62  ;;  %9492 = vmatprep.mubr.msk.f32.mxu1 %vm1325_vm0, %v6320_v42 }
 0x932   :  { %6655 = vmatmul.mubr.f32.gmra.mrb[186].mxu1 %v16041_v8  ;;  %v16042_v25 = vmax.f32 %v14897_v5, 0.0 }
 0x933   :  { %v6322_v0 = vmax.f32 %v14900_v56, 0.0  ;;  %v6180_v45 = vpop.f32.mrb[126].mxu0 }
 0x934   :  { %v14910_v41 = vadd.f32 %v14495_v14, %v6180_v45  ;;  %v6182_v2 = vpop.f32.mrb[127].mxu0  ;;  %v16058_v14 = vmax.f32 %v14504_v20, 0.0  ;;  %v16060_v45 = vmax.f32 %v14512_v55, 0.0  ;;  %v16064_v20 = vmax.f32 %v14540_v46, 0.0 }
 0x935   :  { %v14913_v53 = vadd.f32 %v14498_v6, %v6182_v2  ;;  %9493 = vmatprep.mubr.msk.f32.mxu1 %vm1325_vm0, %v6322_v0  ;;  %v16059_v6 = vmax.f32 %v14501_v9, 0.0  ;;  %v16061_v2 = vmax.f32 %v14509_v29, 0.0  ;;  %v16065_v9 = vmax.f32 %v14536_v16, 0.0 }
 0x936   :  { %6660 = vmatmul.mubr.f32.gmra.mrb[188].mxu1 %v16042_v25  ;;  %v16043_v8 = vmax.f32 %v14910_v41, 0.0  ;;  %v16062_v25 = vmax.f32 %v14526_v23, 0.0  ;;  %v16066_v55 = vmax.f32 %v14554_v30, 0.0  ;;  %v16067_v29 = vmax.f32 %v14550_v4, 0.0 }
 0x937   :  { %v6324_v62 = vmax.f32 %v14913_v53, 0.0  ;;  %v16068_v23 = vmax.f32 %v14568_v34, 0.0  ;;  %v16070_v46 = vmax.f32 %v14582_v12, 0.0  ;;  %v16071_v16 = vmax.f32 %v14578_v37, 0.0 }
 0x938   :  { %v16072_v30 = vmax.f32 %v14596_v36, 0.0  ;;  %v16073_v4 = vmax.f32 %v14592_v22, 0.0  ;;  %v16074_v34 = vmax.f32 %v14610_v48, 0.0  ;;  %v16076_v12 = vmax.f32 %v14624_v58, 0.0 }
 0x939   :  { %9494 = vmatprep.mubr.msk.f32.mxu1 %vm1325_vm0, %v6324_v62  ;;  %v16077_v37 = vmax.f32 %v14620_v35, 0.0  ;;  %v16078_v36 = vmax.f32 %v14638_v21, 0.0  ;;  %v16079_v22 = vmax.f32 %v14634_v10, 0.0  ;;  %v16080_v48 = vmax.f32 %v14652_v47, 0.0 }
 0x93a   :  { %6665 = vmatmul.mubr.f32.gmra.mrb[190].mxu1 %v16043_v8  ;;  %v16063_v8 = vmax.f32 %v14522_v54, 0.0  ;;  %v16069_v54 = vmax.f32 %v14564_v27, 0.0  ;;  %v16075_v27 = vmax.f32 %v14606_v43, 0.0  ;;  %v16081_v43 = vmax.f32 %v14648_v1, 0.0 }
 0x93b   :  { %9495 = vmatprep.mubr.msk.f32.mxu1 %vm1325_vm0, %v16058_v14  ;;  %v16082_v58 = vmax.f32 %v14666_v40, 0.0  ;;  %v16083_v35 = vmax.f32 %v14662_v28, 0.0  ;;  %v16084_v21 = vmax.f32 %v14679_v26, 0.0  ;;  %v16085_v10 = vmax.f32 %v14676_v38, 0.0 }
 0x93c   :  { %v16086_v47 = vmax.f32 %v14692_v59, 0.0  ;;  %v16087_v1 = vmax.f32 %v14689_v60, 0.0  ;;  %v16088_v40 = vmax.f32 %v14705_v24, 0.0  ;;  %v16089_v28 = vmax.f32 %v14702_v49, 0.0 }
 0x93d   :  { %v16090_v26 = vmax.f32 %v14718_v50, 0.0  ;;  %v16091_v38 = vmax.f32 %v14715_v15, 0.0  ;;  %v16092_v59 = vmax.f32 %v14731_v7, 0.0  ;;  %v16093_v60 = vmax.f32 %v14728_v51, 0.0 }
 0x93e   :  { %6760 = vmatmul.mubr.f32.vlgmr.msra.gmra.mrb[192].mxu1 %v16059_v6  ;;  %v16094_v24 = vmax.f32 %v14744_v17, 0.0  ;;  %v16095_v49 = vmax.f32 %v14741_v57, 0.0  ;;  %v16096_v50 = vmax.f32 %v14757_v32, 0.0  ;;  %v16097_v15 = vmax.f32 %v14754_v39, 0.0 }
 0x93f   :  { %9496 = vmatprep.mubr.msk.f32.mxu1 %vm1325_vm0, %v16060_v45  ;;  %v16098_v7 = vmax.f32 %v14770_v31, 0.0  ;;  %v16099_v51 = vmax.f32 %v14767_v61, 0.0  ;;  %v16100_v17 = vmax.f32 %v14783_v3, 0.0  ;;  %v16101_v32 = vmax.f32 %v14780_v33, 0.0 }
 0x940   :  { %v16102_v39 = vmax.f32 %v14796_v18, 0.0  ;;  %v16103_v61 = vmax.f32 %v14793_v63, 0.0  ;;  %v16104_v3 = vmax.f32 %v14809_v13, 0.0  ;;  %v16105_v33 = vmax.f32 %v14806_v52, 0.0 }
 0x941   :  { %v16106_v18 = vmax.f32 %v14822_v11, 0.0 }
 0x942   :  { %6765 = vmatmul.mubr.f32.gmra.mrb[194].mxu1 %v16061_v2 }
 0x943   :  { %9497 = vmatprep.mubr.msk.f32.mxu1 %vm1325_vm0, %v16062_v25 }
 0x946   :  { %6770 = vmatmul.mubr.f32.gmra.mrb[196].mxu1 %v16063_v8 }
 0x947   :  { %9498 = vmatprep.mubr.msk.f32.mxu1 %vm1325_vm0, %v16064_v20  ;;  %v16107_v20 = vld [vmem:[#allocation27_spill] sm:$0xff] }
 0x948   :  { %v16108_v63 = vmax.f32 %v16107_v20, 0.0 }
 0x94a   :  { %6775 = vmatmul.mubr.f32.gmra.mrb[198].mxu1 %v16065_v9  ;;  %v16109_v9 = vld [vmem:[#allocation29_spill] sm:$0xff] }
 0x94b   :  { %9499 = vmatprep.mubr.msk.f32.mxu1 %vm1325_vm0, %v16066_v55  ;;  %v16110_v13 = vmax.f32 %v16109_v9, 0.0 }
 0x94e   :  { %6780 = vmatmul.mubr.f32.gmra.mrb[200].mxu1 %v16067_v29 }
 0x94f   :  { %9500 = vmatprep.mubr.msk.f32.mxu1 %vm1325_vm0, %v16068_v23  ;;  %v16111_v23 = vld [vmem:[#allocation28_spill] sm:$0xff] }
 0x950   :  { %v16112_v52 = vmax.f32 %v16111_v23, 0.0 }
 0x952   :  { %6785 = vmatmul.mubr.f32.gmra.mrb[202].mxu1 %v16069_v54  ;;  %v16113_v54 = vld [vmem:[#allocation31_spill] sm:$0xff] }
 0x953   :  { %9501 = vmatprep.mubr.msk.f32.mxu1 %vm1325_vm0, %v16070_v46  ;;  %v16114_v11 = vmax.f32 %v16113_v54, 0.0 }
 0x956   :  { %6790 = vmatmul.mubr.f32.gmra.mrb[204].mxu1 %v16071_v16 }
 0x957   :  { %9502 = vmatprep.mubr.msk.f32.mxu1 %vm1325_vm0, %v16072_v30  ;;  %v16115_v30 = vld [vmem:[#allocation30_spill] sm:$0xff] }
 0x95a   :  { %6795 = vmatmul.mubr.f32.gmra.mrb[206].mxu1 %v16073_v4  ;;  %v16116_v4 = vmax.f32 %v16115_v30, 0.0 }
 0x95b   :  { %9503 = vmatprep.mubr.msk.f32.mxu1 %vm1325_vm0, %v16074_v34  ;;  %v16117_v34 = vld [vmem:[#allocation33_spill] sm:$0xff] }
 0x95e   :  { %6800 = vmatmul.mubr.f32.gmra.mrb[208].mxu1 %v16075_v27  ;;  %v16118_v27 = vmax.f32 %v16117_v34, 0.0 }
 0x95f   :  { %9504 = vmatprep.mubr.msk.f32.mxu1 %vm1325_vm0, %v16076_v12 }
 0x962   :  { %6805 = vmatmul.mubr.f32.gmra.mrb[210].mxu1 %v16077_v37 }
 0x963   :  { %9505 = vmatprep.mubr.msk.f32.mxu1 %vm1325_vm0, %v16078_v36  ;;  %v16119_v36 = vld [vmem:[#allocation32_spill] sm:$0xff] }
 0x966   :  { %6810 = vmatmul.mubr.f32.gmra.mrb[212].mxu1 %v16079_v22  ;;  %v16120_v22 = vmax.f32 %v16119_v36, 0.0 }
 0x967   :  { %9506 = vmatprep.mubr.msk.f32.mxu1 %vm1325_vm0, %v16080_v48  ;;  %v16121_v48 = vld [vmem:[#allocation35_spill] sm:$0xff] }
 0x96a   :  { %6815 = vmatmul.mubr.f32.gmra.mrb[214].mxu1 %v16081_v43  ;;  %v16122_v43 = vmax.f32 %v16121_v48, 0.0 }
 0x96b   :  { %9507 = vmatprep.mubr.msk.f32.mxu1 %vm1325_vm0, %v16082_v58 }
 0x96e   :  { %6820 = vmatmul.mubr.f32.gmra.mrb[216].mxu1 %v16083_v35 }
 0x96f   :  { %9508 = vmatprep.mubr.msk.f32.mxu1 %vm1325_vm0, %v16084_v21  ;;  %v16123_v21 = vld [vmem:[#allocation34_spill] sm:$0xff] }
 0x972   :  { %6825 = vmatmul.mubr.f32.gmra.mrb[218].mxu1 %v16085_v10  ;;  %v16124_v10 = vmax.f32 %v16123_v21, 0.0  ;;  %v6953_v21 = vld [vmem:[#allocation13 + $0x8] sm:$0xff] }
 0x973   :  { %9509 = vmatprep.mubr.msk.f32.mxu1 %vm1325_vm0, %v16086_v47  ;;  %7048 = vmatprep.mubr.f32.mxu0 %v6953_v21 }
 0x976   :  { %6830 = vmatmul.mubr.f32.gmra.mrb[220].mxu1 %v16087_v1 }
 0x977   :  { %9510 = vmatprep.mubr.msk.f32.mxu1 %vm1325_vm0, %v16088_v40  ;;  %v16125_v40 = vmax.f32 %v14884_v19, 0.0  ;;  %v16127_v19 = vmax.f32 %v14910_v41, 0.0 }
 0x97a   :  { %6835 = vmatmul.mubr.f32.gmra.mrb[222].mxu1 %v16089_v28 }
 0x97b   :  { %9511 = vmatprep.mubr.msk.f32.mxu1 %vm1325_vm0, %v16090_v26 }
 0x97e   :  { %6840 = vmatmul.mubr.f32.gmra.mrb[224].mxu1 %v16091_v38  ;;  %v16126_v38 = vmax.f32 %v14897_v5, 0.0 }
 0x97f   :  { %9512 = vmatprep.mubr.msk.f32.mxu1 %vm1325_vm0, %v16092_v59 }
 0x982   :  { %6845 = vmatmul.mubr.f32.gmra.mrb[226].mxu1 %v16093_v60 }
 0x983   :  { %9513 = vmatprep.mubr.msk.f32.mxu1 %vm1325_vm0, %v16094_v24 }
 0x986   :  { %6850 = vmatmul.mubr.f32.gmra.mrb[228].mxu1 %v16095_v49 }
 0x987   :  { %9514 = vmatprep.mubr.msk.f32.mxu1 %vm1325_vm0, %v16096_v50 }
 0x98a   :  { %6855 = vmatmul.mubr.f32.gmra.mrb[230].mxu1 %v16097_v15 }
 0x98b   :  { %9515 = vmatprep.mubr.msk.f32.mxu1 %vm1325_vm0, %v16098_v7 }
 0x98e   :  { %6860 = vmatmul.mubr.f32.gmra.mrb[232].mxu1 %v16099_v51 }
 0x98f   :  { %9516 = vmatprep.mubr.msk.f32.mxu1 %vm1325_vm0, %v16100_v17 }
 0x991   :  { %v15035_v57 = vpop.f32.mrb[128].mxu1 }
 0x992   :  { %v6513_v8 = vpop.f32.mrb[129].mxu1  ;;  %6865 = vmatmul.mubr.f32.gmra.mrb[234].mxu1 %v16101_v32 }
 0x993   :  { %9517 = vmatprep.mubr.msk.f32.mxu1 %vm1325_vm0, %v16102_v39 }
 0x995   :  { %v15042_v31 = vpop.f32.mrb[130].mxu1 }
 0x996   :  { %v6518_v25 = vpop.f32.mrb[131].mxu1  ;;  %6870 = vmatmul.mubr.f32.gmra.mrb[236].mxu1 %v16103_v61 }
 0x997   :  { %9518 = vmatprep.mubr.msk.f32.mxu1 %vm1325_vm0, %v16104_v3 }
 0x999   :  { %v15049_v14 = vpop.f32.mrb[132].mxu1 }
 0x99a   :  { %v6523_v6 = vpop.f32.mrb[133].mxu1  ;;  %6875 = vmatmul.mubr.f32.gmra.mrb[238].mxu1 %v16105_v33 }
 0x99b   :  { %9519 = vmatprep.mubr.msk.f32.mxu1 %vm1325_vm0, %v16106_v18 }
 0x99d   :  { %v15056_v45 = vpop.f32.mrb[134].mxu1 }
 0x99e   :  { %v6528_v2 = vpop.f32.mrb[135].mxu1  ;;  %6880 = vmatmul.mubr.f32.gmra.mrb[240].mxu1 %v16108_v63 }
 0x99f   :  { %9520 = vmatprep.mubr.msk.f32.mxu1 %vm1325_vm0, %v16110_v13 }
 0x9a1   :  { %v15063_v55 = vpop.f32.mrb[136].mxu1 }
 0x9a2   :  { %v6533_v29 = vpop.f32.mrb[137].mxu1  ;;  %6885 = vmatmul.mubr.f32.gmra.mrb[242].mxu1 %v16112_v52 }
 0x9a3   :  { %9521 = vmatprep.mubr.msk.f32.mxu1 %vm1325_vm0, %v16114_v11 }
 0x9a5   :  { %v15070_v46 = vpop.f32.mrb[138].mxu1 }
 0x9a6   :  { %v6538_v16 = vpop.f32.mrb[139].mxu1  ;;  %6890 = vmatmul.mubr.f32.gmra.mrb[244].mxu1 %v16116_v4 }
 0x9a7   :  { %9522 = vmatprep.mubr.msk.f32.mxu1 %vm1325_vm0, %v16118_v27 }
 0x9a9   :  { %v15077_v12 = vpop.f32.mrb[140].mxu1 }
 0x9aa   :  { %v6543_v37 = vpop.f32.mrb[141].mxu1  ;;  %6895 = vmatmul.mubr.f32.gmra.mrb[246].mxu1 %v16120_v22 }
 0x9ab   :  { %9523 = vmatprep.mubr.msk.f32.mxu1 %vm1325_vm0, %v16122_v43 }
 0x9ad   :  { %v15084_v58 = vpop.f32.mrb[142].mxu1 }
 0x9ae   :  { %v6548_v35 = vpop.f32.mrb[143].mxu1  ;;  %6900 = vmatmul.mubr.f32.gmra.mrb[248].mxu1 %v16124_v10 }
 0x9af   :  { %9524 = vmatprep.mubr.msk.f32.mxu1 %vm1325_vm0, %v6320_v42 }
 0x9b1   :  { %v15091_v47 = vpop.f32.mrb[144].mxu1 }
 0x9b2   :  { %v6553_v1 = vpop.f32.mrb[145].mxu1  ;;  %6905 = vmatmul.mubr.f32.gmra.mrb[250].mxu1 %v16125_v40 }
 0x9b3   :  { %9525 = vmatprep.mubr.msk.f32.mxu1 %vm1325_vm0, %v6322_v0 }
 0x9b5   :  { %v15098_v28 = vpop.f32.mrb[146].mxu1 }
 0x9b6   :  { %v6558_v26 = vpop.f32.mrb[147].mxu1  ;;  %6910 = vmatmul.mubr.f32.gmra.mrb[252].mxu1 %v16126_v38 }
 0x9b7   :  { %9526 = vmatprep.mubr.msk.f32.mxu1 %vm1325_vm0, %v6324_v62 }
 0x9b9   :  { %v15105_v44 = vpop.f32.mrb[148].mxu1 }
 0x9ba   :  { %v6563_v42 = vpop.f32.mrb[149].mxu1  ;;  %6915 = vmatmul.mubr.f32.gmra.mrb[254].mxu1 %v16127_v19 }
 0x9bd   :  { %v15109_v59 = vpop.f32.mrb[150].mxu1 }
 0x9be   :  { %v6568_v56 = vpop.f32.mrb[151].mxu1 }
 0x9c1   :  { %v15111_v0 = vpop.f32.mrb[152].mxu1 }
 0x9c2   :  { %v6573_v60 = vpop.f32.mrb[153].mxu1 }
 0x9c5   :  { %v15113_v24 = vpop.f32.mrb[154].mxu1 }
 0x9c6   :  { %v6578_v5 = vpop.f32.mrb[155].mxu1 }
 0x9c9   :  { %v15115_v49 = vpop.f32.mrb[156].mxu1 }
 0x9ca   :  { %v6583_v53 = vpop.f32.mrb[157].mxu1 }
 0x9cd   :  { %v15117_v50 = vpop.f32.mrb[158].mxu1 }
 0x9ce   :  { %v6588_v62 = vpop.f32.mrb[159].mxu1 }
 0x9d1   :  { %v15119_v15 = vpop.f32.mrb[160].mxu1 }
 0x9d2   :  { %v6593_v7 = vpop.f32.mrb[161].mxu1 }
 0x9d5   :  { %v15121_v41 = vpop.f32.mrb[162].mxu1 }
 0x9d6   :  { %v6598_v51 = vpop.f32.mrb[163].mxu1 }
 0x9d9   :  { %v15123_v17 = vpop.f32.mrb[164].mxu1 }
 0x9da   :  { %v6603_v8 = vpop.f32.mrb[165].mxu1 }
 0x9dd   :  { %v15125_v32 = vpop.f32.mrb[166].mxu1 }
 0x9de   :  { %v6608_v39 = vpop.f32.mrb[167].mxu1 }
 0x9e1   :  { %v15127_v25 = vpop.f32.mrb[168].mxu1 }
 0x9e2   :  { %v6613_v61 = vpop.f32.mrb[169].mxu1 }
 0x9e5   :  { %v15129_v3 = vpop.f32.mrb[170].mxu1 }
 0x9e6   :  { %v6618_v6 = vpop.f32.mrb[171].mxu1 }
 0x9e9   :  { %v15131_v33 = vpop.f32.mrb[172].mxu1 }
 0x9ea   :  { %v6623_v18 = vpop.f32.mrb[173].mxu1 }
 0x9ed   :  { %v15133_v2 = vpop.f32.mrb[174].mxu1 }
 0x9ee   :  { %v6628_v20 = vpop.f32.mrb[175].mxu1 }
 0x9f1   :  { %v15135_v63 = vpop.f32.mrb[176].mxu1 }
 0x9f2   :  { %v6633_v9 = vpop.f32.mrb[177].mxu1 }
 0x9f5   :  { %v15137_v13 = vpop.f32.mrb[178].mxu1 }
 0x9f6   :  { %v6638_v29 = vpop.f32.mrb[179].mxu1 }
 0x9f9   :  { %v15139_v23 = vpop.f32.mrb[180].mxu1 }
 0x9fa   :  { %v6643_v52 = vpop.f32.mrb[181].mxu1 }
 0x9fd   :  { %v15141_v54 = vpop.f32.mrb[182].mxu1 }
 0x9fe   :  { %v6648_v11 = vpop.f32.mrb[183].mxu1 }
 0xa01   :  { %v15143_v16 = vpop.f32.mrb[184].mxu1 }
 0xa02   :  { %v6653_v30 = vpop.f32.mrb[185].mxu1 }
 0xa05   :  { %v15145_v4 = vpop.f32.mrb[186].mxu1 }
 0xa06   :  { %v6658_v34 = vpop.f32.mrb[187].mxu1 }
 0xa09   :  { %v15147_v27 = vpop.f32.mrb[188].mxu1 }
 0xa0a   :  { %v6663_v37 = vpop.f32.mrb[189].mxu1 }
 0xa0d   :  { %v15149_v36 = vpop.f32.mrb[190].mxu1 }
 0xa0e   :  { %v6668_v22 = vpop.f32.mrb[191].mxu1 }
 0xa11   :  { %v6761_v48 = vpop.f32.mrb[192].mxu1 }
 0xa12   :  { %v6920_v43 = vmax.f32 %v15035_v57, %v6761_v48  ;;  %v6763_v35 = vpop.f32.mrb[193].mxu1 }
 0xa15   :  { %v6766_v10 = vpop.f32.mrb[194].mxu1 }
 0xa16   :  { %v6921_v1 = vmax.f32 %v15042_v31, %v6766_v10  ;;  %v6768_v40 = vpop.f32.mrb[195].mxu1 }
 0xa18   :  { %v15153_v26 = vpack.c.bf16 %v6921_v1, %v6920_v43 }
 0xa19   :  { %v6771_v38 = vpop.f32.mrb[196].mxu1 }
 0xa1a   :  { %v6922_v42 = vmax.f32 %v15049_v14, %v6771_v38  ;;  %v6773_v19 = vpop.f32.mrb[197].mxu1 }
 0xa1d   :  { %v6776_v56 = vpop.f32.mrb[198].mxu1 }
 0xa1e   :  { %v6923_v60 = vmax.f32 %v15056_v45, %v6776_v56  ;;  %v6778_v5 = vpop.f32.mrb[199].mxu1 }
 0xa20   :  { %v15157_v53 = vpack.c.bf16 %v6923_v60, %v6922_v42 }
 0xa21   :  { %v6781_v57 = vpop.f32.mrb[200].mxu1 }
 0xa22   :  { %v6924_v62 = vmax.f32 %v15063_v55, %v6781_v57  ;;  %v6783_v7 = vpop.f32.mrb[201].mxu1 }
 0xa25   :  { %v6786_v51 = vpop.f32.mrb[202].mxu1 }
 0xa26   :  { %v6925_v31 = vmax.f32 %v15070_v46, %v6786_v51  ;;  %v6788_v8 = vpop.f32.mrb[203].mxu1 }
 0xa28   :  { %v15161_v39 = vpack.c.bf16 %v6925_v31, %v6924_v62 }
 0xa29   :  { %v6791_v61 = vpop.f32.mrb[204].mxu1 }
 0xa2a   :  { %v6926_v14 = vmax.f32 %v15077_v12, %v6791_v61  ;;  %v6793_v6 = vpop.f32.mrb[205].mxu1 }
 0xa2d   :  { %v6796_v18 = vpop.f32.mrb[206].mxu1 }
 0xa2e   :  { %v6927_v45 = vmax.f32 %v15084_v58, %v6796_v18  ;;  %v6798_v20 = vpop.f32.mrb[207].mxu1 }
 0xa30   :  { %v15165_v9 = vpack.c.bf16 %v6927_v45, %v6926_v14 }
 0xa31   :  { %v6801_v29 = vpop.f32.mrb[208].mxu1 }
 0xa32   :  { %v6928_v55 = vmax.f32 %v15091_v47, %v6801_v29  ;;  %v6803_v52 = vpop.f32.mrb[209].mxu1 }
 0xa35   :  { %v6806_v11 = vpop.f32.mrb[210].mxu1 }
 0xa36   :  { %v6929_v46 = vmax.f32 %v15098_v28, %v6806_v11  ;;  %v6808_v30 = vpop.f32.mrb[211].mxu1 }
 0xa38   :  { %v15169_v34 = vpack.c.bf16 %v6929_v46, %v6928_v55 }
 0xa39   :  { %v6811_v37 = vpop.f32.mrb[212].mxu1 }
 0xa3a   :  { %v6930_v12 = vmax.f32 %v15105_v44, %v6811_v37  ;;  %v6813_v22 = vpop.f32.mrb[213].mxu1 }
 0xa3d   :  { %v6816_v48 = vpop.f32.mrb[214].mxu1 }
 0xa3e   :  { %v6931_v58 = vmax.f32 %v15109_v59, %v6816_v48  ;;  %v6818_v43 = vpop.f32.mrb[215].mxu1 }
 0xa40   :  { %v15173_v35 = vpack.c.bf16 %v6931_v58, %v6930_v12 }
 0xa41   :  { %v6821_v21 = vpop.f32.mrb[216].mxu1 }
 0xa42   :  { %v6932_v47 = vmax.f32 %v15111_v0, %v6821_v21  ;;  %v6823_v10 = vpop.f32.mrb[217].mxu1 }
 0xa45   :  { %v6826_v1 = vpop.f32.mrb[218].mxu1 }
 0xa46   :  { %v6933_v28 = vmax.f32 %v15113_v24, %v6826_v1  ;;  %v6828_v40 = vpop.f32.mrb[219].mxu1 }
 0xa48   :  { %v15177_v38 = vpack.c.bf16 %v6933_v28, %v6932_v47 }
 0xa49   :  { %v6831_v42 = vpop.f32.mrb[220].mxu1 }
 0xa4a   :  { %v6934_v44 = vmax.f32 %v15115_v49, %v6831_v42  ;;  %v6833_v19 = vpop.f32.mrb[221].mxu1 }
 0xa4d   :  { %v6836_v56 = vpop.f32.mrb[222].mxu1 }
 0xa4e   :  { %v6935_v59 = vmax.f32 %v15117_v50, %v6836_v56  ;;  %v6838_v60 = vpop.f32.mrb[223].mxu1 }
 0xa50   :  { %v15181_v5 = vpack.c.bf16 %v6935_v59, %v6934_v44 }
 0xa51   :  { %v6841_v57 = vpop.f32.mrb[224].mxu1 }
 0xa52   :  { %v6936_v0 = vmax.f32 %v15119_v15, %v6841_v57  ;;  %v6843_v62 = vpop.f32.mrb[225].mxu1 }
 0xa55   :  { %v6846_v7 = vpop.f32.mrb[226].mxu1 }
 0xa56   :  { %v6937_v24 = vmax.f32 %v15121_v41, %v6846_v7  ;;  %v6848_v51 = vpop.f32.mrb[227].mxu1  ;;  %v6952_v7 = vld [vmem:[#allocation13] sm:$0xff] }
 0xa57   :  { %v6959_v51 = vld [vmem:[#allocation13 + $0x38] sm:$0xff] }
 0xa58   :  { %v15185_v31 = vpack.c.bf16 %v6937_v24, %v6936_v0  ;;  %v6957_v24 = vld [vmem:[#allocation13 + $0x28] sm:$0xff] }
 0xa59   :  { %v6851_v8 = vpop.f32.mrb[228].mxu1 }
 0xa5a   :  { %v6938_v49 = vmax.f32 %v15123_v17, %v6851_v8  ;;  %v6853_v61 = vpop.f32.mrb[229].mxu1  ;;  %10727 = vmatprep.subr.bf16.mxu0 %v15185_v31  ;;  %v6961_v8 = vld [vmem:[#allocation13 + $0x48] sm:$0xff] }
 0xa5b   :  { %10729 = vmatpush3.bf16.msra.mxu0 %v15153_v26  ;;  %v6965_v61 = vld [vmem:[#allocation13 + $0x68] sm:$0xff] }
 0xa5d   :  { %v6856_v50 = vpop.f32.mrb[230].mxu1 }
 0xa5e   :  { %v6939_v14 = vmax.f32 %v15125_v32, %v6856_v50  ;;  %v6858_v6 = vpop.f32.mrb[231].mxu1  ;;  %v6967_v50 = vld [vmem:[#allocation13 + $0x78] sm:$0xff] }
 0xa5f   :  { %v6971_v6 = vld [vmem:[#allocation13 + $0x98] sm:$0xff] }
 0xa60   :  { %v15191_v15 = vpack.c.bf16 %v6939_v14, %v6938_v49  ;;  %v6963_v49 = vld [vmem:[#allocation13 + $0x58] sm:$0xff]  ;;  %v6969_v14 = vld [vmem:[#allocation13 + $0x88] sm:$0xff] }
 0xa61   :  { %v6861_v18 = vpop.f32.mrb[232].mxu1 }
 0xa62   :  { %v6940_v41 = vmax.f32 %v15127_v25, %v6861_v18  ;;  %v6863_v45 = vpop.f32.mrb[233].mxu1  ;;  %10731 = vmatprep.subr.bf16.mxu0 %v15191_v15  ;;  %v6972_v18 = vld [vmem:[#allocation13 + $0xa0] sm:$0xff] }
 0xa63   :  { %10733 = vmatpush3.bf16.msra.mxu0 %v15157_v53  ;;  %v6977_v45 = vld [vmem:[#allocation13 + $0xc8] sm:$0xff] }
 0xa65   :  { %v6866_v17 = vpop.f32.mrb[234].mxu1 }
 0xa66   :  { %v6941_v20 = vmax.f32 %v15129_v3, %v6866_v17  ;;  %v6868_v29 = vpop.f32.mrb[235].mxu1  ;;  %v6976_v17 = vld [vmem:[#allocation13 + $0xc0] sm:$0xff] }
 0xa67   :  { %v6981_v29 = vld [vmem:[#allocation13 + $0xe8] sm:$0xff] }
 0xa68   :  { %v10734_v55 = vpack.c.bf16 %v6941_v20, %v6940_v41  ;;  %v6975_v41 = vld [vmem:[#allocation13 + $0xb8] sm:$0xff] }
 0xa69   :  { %v6871_v52 = vpop.f32.mrb[236].mxu1  ;;  %v6979_v20 = vld [vmem:[#allocation13 + $0xd8] sm:$0xff] }
 0xa6a   :  { %v6942_v11 = vmax.f32 %v15131_v33, %v6871_v52  ;;  %v6873_v32 = vpop.f32.mrb[237].mxu1  ;;  %10735 = vmatprep.subr.bf16.mxu0 %v10734_v55  ;;  %v6983_v52 = vld [vmem:[#allocation13 + $0xf8] sm:$0xff] }
 0xa6b   :  { %10737 = vmatpush3.bf16.msra.mxu0 %v15161_v39  ;;  %v7131_v32 = vld [vmem:[#allocation13 + $0x108] sm:$0xff] }
 0xa6d   :  { %v6876_v46 = vpop.f32.mrb[238].mxu1 }
 0xa6e   :  { %v6943_v25 = vmax.f32 %v15133_v2, %v6876_v46  ;;  %v6878_v30 = vpop.f32.mrb[239].mxu1  ;;  %v7130_v46 = vld [vmem:[#allocation13 + $0x100] sm:$0xff] }
 0xa6f   :  { %v7132_v30 = vld [vmem:[#allocation13 + $0x110] sm:$0xff] }
 0xa70   :  { %v10738_v37 = vpack.c.bf16 %v6943_v25, %v6942_v11  ;;  %v6982_v11 = vld [vmem:[#allocation13 + $0xf0] sm:$0xff]  ;;  %v7133_v25 = vld [vmem:[#allocation13 + $0x118] sm:$0xff] }
 0xa71   :  { %v6881_v12 = vpop.f32.mrb[240].mxu1 }
 0xa72   :  { %v6944_v22 = vmax.f32 %v15135_v63, %v6881_v12  ;;  %v6883_v48 = vpop.f32.mrb[241].mxu1  ;;  %10739 = vmatprep.subr.bf16.mxu0 %v10738_v37  ;;  %v7134_v12 = vld [vmem:[#allocation13 + $0x120] sm:$0xff] }
 0xa73   :  { %10741 = vmatpush3.bf16.msra.mxu0 %v15165_v9  ;;  %v7136_v48 = vld [vmem:[#allocation13 + $0x130] sm:$0xff] }
 0xa75   :  { %v6886_v3 = vpop.f32.mrb[242].mxu1 }
 0xa76   :  { %v6945_v58 = vmax.f32 %v15137_v13, %v6886_v3  ;;  %v6888_v33 = vpop.f32.mrb[243].mxu1  ;;  %v7139_v3 = vld [vmem:[#allocation13 + $0x148] sm:$0xff] }
 0xa77   :  { %v7141_v33 = vld [vmem:[#allocation13 + $0x158] sm:$0xff] }
 0xa78   :  { %v10742_v43 = vpack.c.bf16 %v6945_v58, %v6944_v22  ;;  %v7137_v22 = vld [vmem:[#allocation13 + $0x138] sm:$0xff]  ;;  %v7138_v58 = vld [vmem:[#allocation13 + $0x140] sm:$0xff] }
 0xa79   :  { %v6891_v21 = vpop.f32.mrb[244].mxu1 }
 0xa7a   :  { %v6946_v47 = vmax.f32 %v15139_v23, %v6891_v21  ;;  %v6893_v10 = vpop.f32.mrb[245].mxu1  ;;  %10743 = vmatprep.subr.bf16.mxu0 %v10742_v43  ;;  %v7143_v21 = vld [vmem:[#allocation13 + $0x168] sm:$0xff] }
 0xa7b   :  { %10745 = vmatpush3.bf16.msra.mxu0 %v15169_v34  ;;  %v7145_v10 = vld [vmem:[#allocation13 + $0x178] sm:$0xff] }
 0xa7d   :  { %v6896_v2 = vpop.f32.mrb[246].mxu1 }
 0xa7e   :  { %v6947_v1 = vmax.f32 %v15141_v54, %v6896_v2  ;;  %v6898_v63 = vpop.f32.mrb[247].mxu1  ;;  %v7144_v2 = vld [vmem:[#allocation13 + $0x170] sm:$0xff] }
 0xa7f   :  { %v7146_v63 = vld [vmem:[#allocation13 + $0x180] sm:$0xff] }
 0xa80   :  { %v10746_v28 = vpack.c.bf16 %v6947_v1, %v6946_v47  ;;  %v7142_v47 = vld [vmem:[#allocation13 + $0x160] sm:$0xff]  ;;  %v7147_v1 = vld [vmem:[#allocation13 + $0x188] sm:$0xff] }
 0xa81   :  { %v6901_v40 = vpop.f32.mrb[248].mxu1 }
 0xa82   :  { %v6948_v42 = vmax.f32 %v15143_v16, %v6901_v40  ;;  %v6903_v44 = vpop.f32.mrb[249].mxu1  ;;  %10747 = vmatprep.subr.bf16.mxu0 %v10746_v28  ;;  %v7148_v40 = vld [vmem:[#allocation13 + $0x190] sm:$0xff] }
 0xa83   :  { %10749 = vmatpush3.bf16.msra.mxu0 %v15173_v35  ;;  %v7150_v44 = vld [vmem:[#allocation13 + $0x1a0] sm:$0xff] }
 0xa85   :  { %v6906_v13 = vpop.f32.mrb[250].mxu1 }
 0xa86   :  { %v6949_v19 = vmax.f32 %v15145_v4, %v6906_v13  ;;  %v6908_v23 = vpop.f32.mrb[251].mxu1  ;;  %v6955_v4 = vld [vmem:[#allocation13 + $0x18] sm:$0xff] }
 0xa87   :  { %v7153_v13 = vld [vmem:[#allocation13 + $0x1b8] sm:$0xff]  ;;  %v7155_v23 = vld [vmem:[#allocation13 + $0x1c8] sm:$0xff] }
 0xa88   :  { %v10750_v56 = vpack.c.bf16 %v6949_v19, %v6948_v42  ;;  %v7151_v42 = vld [vmem:[#allocation13 + $0x1a8] sm:$0xff]  ;;  %v7152_v19 = vld [vmem:[#allocation13 + $0x1b0] sm:$0xff] }
 0xa89   :  { %v6911_v59 = vpop.f32.mrb[252].mxu1 }
 0xa8a   :  { %v6950_v60 = vmax.f32 %v15147_v27, %v6911_v59  ;;  %v6913_v57 = vpop.f32.mrb[253].mxu1  ;;  %10751 = vmatprep.subr.bf16.mxu0 %v10750_v56  ;;  %v6954_v27 = vld [vmem:[#allocation13 + $0x10] sm:$0xff]  ;;  %v7157_v59 = vld [vmem:[#allocation13 + $0x1d8] sm:$0xff] }
 0xa8b   :  { %10753 = vmatpush3.bf16.msra.mxu0 %v15177_v38  ;;  %v9530_v57 = vld [vmem:[%s15961_s12 + $0xd8] sm:$0xff] }
 0xa8d   :  { %v6916_v54 = vpop.f32.mrb[254].mxu1 }
 0xa8e   :  { %v6951_v0 = vmax.f32 %v15149_v36, %v6916_v54  ;;  %v6918_v16 = vpop.f32.mrb[255].mxu1  ;;  %v6956_v36 = vld [vmem:[#allocation13 + $0x20] sm:$0xff] }
 0xa8f   :  { %v9527_v16 = vld [vmem:[%s15961_s12 + $0xc0] sm:$0xff] }
 0xa90   :  { %v10754_v62 = vpack.c.bf16 %v6951_v0, %v6950_v60  ;;  %v9528_v60 = vld [vmem:[%s15961_s12 + $0xc8] sm:$0xff]  ;;  %v7156_v0 = vld [vmem:[#allocation13 + $0x1d0] sm:$0xff] }
 0xa91   :  { %v10854_v54 = vpack.c.bf16 %v9530_v57, %v9528_v60 }
 0xa92   :  { %10755 = vmatprep.subr.bf16.mxu0 %v10754_v62 }
 0xa93   :  { %10757 = vmatpush3.bf16.msra.mxu0 %v15181_v5 }
 0xa94   :  { %10759 = vmatprep.subr.bf16.mxu0 %v15185_v31  ;;  %v6958_v31 = vld [vmem:[#allocation13 + $0x30] sm:$0xff] }
 0xa96   :  { %7049 = vmatmul.mubr.f32.vlgmr.msra.gmra.mrb[128].mxu0 %v6952_v7  ;;  %v7159_v7 = vld [vmem:[#allocation13 + $0x1e8] sm:$0xff] }
 0xa97   :  { %10761 = vmatpush3.bf16.msra.mxu0 %v15153_v26  ;;  %7053 = vmatprep.mubr.f32.mxu0 %v6955_v4  ;;  %v6960_v26 = vld [vmem:[#allocation13 + $0x40] sm:$0xff] }
 0xa98   :  { %10763 = vmatprep.subr.bf16.mxu0 %v15191_v15  ;;  %v6973_v15 = vld [vmem:[#allocation13 + $0xa8] sm:$0xff] }
 0xa9a   :  { %7054 = vmatmul.mubr.f32.gmra.mrb[130].mxu0 %v6954_v27  ;;  %v7158_v27 = vld [vmem:[#allocation13 + $0x1e0] sm:$0xff] }
 0xa9b   :  { %10765 = vmatpush3.bf16.msra.mxu0 %v15157_v53  ;;  %7058 = vmatprep.mubr.f32.mxu0 %v6957_v24  ;;  %v6962_v53 = vld [vmem:[#allocation13 + $0x50] sm:$0xff]  ;;  %v7161_v24 = vld [vmem:[#allocation13 + $0x1f8] sm:$0xff] }
 0xa9c   :  { %10767 = vmatprep.subr.bf16.mxu0 %v10734_v55  ;;  %v6980_v55 = vld [vmem:[#allocation13 + $0xe0] sm:$0xff] }
 0xa9e   :  { %7059 = vmatmul.mubr.f32.gmra.mrb[132].mxu0 %v6956_v36  ;;  %v9532_v36 = vld [vmem:[%s15961_s12 + $0xe8] sm:$0xff] }
 0xa9f   :  { %10769 = vmatpush3.bf16.msra.mxu0 %v15161_v39  ;;  %7063 = vmatprep.mubr.f32.mxu0 %v6959_v51  ;;  %v6964_v39 = vld [vmem:[#allocation13 + $0x60] sm:$0xff]  ;;  %v9534_v51 = vld [vmem:[%s15961_s12 + $0xf8] sm:$0xff] }
 0xaa0   :  { %10771 = vmatprep.subr.bf16.mxu0 %v10738_v37  ;;  %v7135_v37 = vld [vmem:[#allocation13 + $0x128] sm:$0xff] }
 0xaa2   :  { %7064 = vmatmul.mubr.f32.gmra.mrb[134].mxu0 %v6958_v31  ;;  %v10858_v31 = vpack.c.bf16 %v9534_v51, %v9532_v36 }
 0xaa3   :  { %10773 = vmatpush3.bf16.msra.mxu0 %v15165_v9  ;;  %7068 = vmatprep.mubr.f32.mxu0 %v6961_v8  ;;  %v6966_v9 = vld [vmem:[#allocation13 + $0x70] sm:$0xff] }
 0xaa4   :  { %10775 = vmatprep.subr.bf16.mxu0 %v10742_v43  ;;  %v7140_v43 = vld [vmem:[#allocation13 + $0x150] sm:$0xff] }
 0xaa5   :  { %v7160_v8 = vld [vmem:[#allocation13 + $0x1f0] sm:$0xff] }
 0xaa6   :  { %7069 = vmatmul.mubr.f32.gmra.mrb[136].mxu0 %v6960_v26  ;;  %v9531_v26 = vld [vmem:[%s15961_s12 + $0xe0] sm:$0xff] }
 0xaa7   :  { %10777 = vmatpush3.bf16.msra.mxu0 %v15169_v34  ;;  %7073 = vmatprep.mubr.f32.mxu0 %v6963_v49  ;;  %v6968_v34 = vld [vmem:[#allocation13 + $0x80] sm:$0xff]  ;;  %v9533_v49 = vld [vmem:[%s15961_s12 + $0xf0] sm:$0xff] }
 0xaa8   :  { %10779 = vmatprep.subr.bf16.mxu0 %v10746_v28  ;;  %v7149_v28 = vld [vmem:[#allocation13 + $0x198] sm:$0xff] }
 0xaaa   :  { %7074 = vmatmul.mubr.f32.gmra.mrb[138].mxu0 %v6962_v53  ;;  %v10860_v53 = vpack.c.bf16 %v9533_v49, %v9531_v26 }
 0xaab   :  { %10781 = vmatpush3.bf16.msra.mxu0 %v15173_v35  ;;  %7078 = vmatprep.mubr.f32.mxu0 %v6965_v61  ;;  %v6970_v35 = vld [vmem:[#allocation13 + $0x90] sm:$0xff]  ;;  %v16128_v61 = vmov 0.0  }
 0xaac   :  { %10783 = vmatprep.subr.bf16.mxu0 %v10750_v56  ;;  %v7154_v56 = vld [vmem:[#allocation13 + $0x1c0] sm:$0xff] }
 0xaae   :  { %7079 = vmatmul.mubr.f32.gmra.mrb[140].mxu0 %v6964_v39  ;;  %v9536_v39 = vld [vmem:[%s15961_s12 + $0x108] sm:$0xff] }
 0xaaf   :  { %10785 = vmatpush3.bf16.msra.mxu0 %v15177_v38  ;;  %7083 = vmatprep.mubr.f32.mxu0 %v6967_v50  ;;  %v6974_v38 = vld [vmem:[#allocation13 + $0xb0] sm:$0xff]  ;;  %v9538_v50 = vld [vmem:[%s15961_s12 + $0x118] sm:$0xff] }
 0xab0   :  { %10787 = vmatprep.subr.bf16.mxu0 %v10754_v62  ;;  %v9529_v62 = vld [vmem:[%s15961_s12 + $0xd0] sm:$0xff] }
 0xab1   :  { %v10856_v4 = vpack.c.bf16 %v9529_v62, %v9527_v16 }
 0xab2   :  { %7084 = vmatmul.mubr.f32.gmra.mrb[142].mxu0 %v6966_v9  ;;  %v10862_v9 = vpack.c.bf16 %v9538_v50, %v9536_v39 }
 0xab3   :  { %10789 = vmatpush3.bf16.msra.mxu0 %v15181_v5  ;;  %7088 = vmatprep.mubr.f32.mxu0 %v6969_v14  ;;  %v6978_v5 = vld [vmem:[#allocation13 + $0xd0] sm:$0xff]  ;;  %v9535_v14 = vld [vmem:[%s15961_s12 + $0x100] sm:$0xff] }
 0xab4   :  { %10855 = vmatprep.subr.bf16.mxu0 %v10854_v54 }
 0xab6   :  { %7089 = vmatmul.mubr.f32.gmra.mrb[144].mxu0 %v6968_v34  ;;  %v9537_v34 = vld [vmem:[%s15961_s12 + $0x110] sm:$0xff] }
 0xab7   :  { %7093 = vmatprep.mubr.f32.mxu0 %v6971_v6  ;;  %v10864_v6 = vpack.c.bf16 %v9537_v34, %v9535_v14 }
 0xaba   :  { %7094 = vmatmul.mubr.f32.gmra.mrb[146].mxu0 %v6970_v35  ;;  %v9540_v35 = vld [vmem:[%s15961_s12 + $0x128] sm:$0xff] }
 0xabb   :  { %7098 = vmatprep.mubr.f32.mxu0 %v6973_v15  ;;  %v9542_v15 = vld [vmem:[%s15961_s12 + $0x138] sm:$0xff] }
 0xabe   :  { %7099 = vmatmul.mubr.f32.gmra.mrb[148].mxu0 %v6972_v18  ;;  %v10866_v18 = vpack.c.bf16 %v9542_v15, %v9540_v35 }
 0xabf   :  { %7103 = vmatprep.mubr.f32.mxu0 %v6975_v41  ;;  %v9539_v41 = vld [vmem:[%s15961_s12 + $0x120] sm:$0xff] }
 0xac2   :  { %7104 = vmatmul.mubr.f32.gmra.mrb[150].mxu0 %v6974_v38  ;;  %v9541_v38 = vld [vmem:[%s15961_s12 + $0x130] sm:$0xff] }
 0xac3   :  { %7108 = vmatprep.mubr.f32.mxu0 %v6977_v45  ;;  %v10868_v45 = vpack.c.bf16 %v9541_v38, %v9539_v41 }
 0xac6   :  { %7109 = vmatmul.mubr.f32.gmra.mrb[152].mxu0 %v6976_v17  ;;  %v9544_v17 = vld [vmem:[%s15961_s12 + $0x148] sm:$0xff] }
 0xac7   :  { %7113 = vmatprep.mubr.f32.mxu0 %v6979_v20  ;;  %v9546_v20 = vld [vmem:[%s15961_s12 + $0x158] sm:$0xff] }
 0xaca   :  { %7114 = vmatmul.mubr.f32.gmra.mrb[154].mxu0 %v6978_v5  ;;  %v10870_v5 = vpack.c.bf16 %v9546_v20, %v9544_v17 }
 0xacb   :  { %7118 = vmatprep.mubr.f32.mxu0 %v6981_v29  ;;  %v9543_v29 = vld [vmem:[%s15961_s12 + $0x140] sm:$0xff] }
 0xace   :  { %7119 = vmatmul.mubr.f32.gmra.mrb[156].mxu0 %v6980_v55  ;;  %v9545_v55 = vld [vmem:[%s15961_s12 + $0x150] sm:$0xff] }
 0xacf   :  { %7123 = vmatprep.mubr.f32.mxu0 %v6983_v52  ;;  %v10872_v52 = vpack.c.bf16 %v9545_v55, %v9543_v29  ;;  %v7647_v29 = vld [vmem:[%s15961_s12 + $0x8] sm:$0xff]  ;;  %v7649_v55 = vld [vmem:[%s15961_s12 + $0x18] sm:$0xff] }
 0xad2   :  { %7124 = vmatmul.mubr.f32.gmra.mrb[158].mxu0 %v6982_v11  ;;  %v9548_v11 = vld [vmem:[%s15961_s12 + $0x168] sm:$0xff] }
 0xad3   :  { %7226 = vmatprep.mubr.f32.mxu0 %v7131_v32  ;;  %v9550_v32 = vld [vmem:[%s15961_s12 + $0x178] sm:$0xff] }
 0xad6   :  { %7227 = vmatmul.mubr.f32.vlgmr.msra.gmra.mrb[160].mxu0 %v7130_v46  ;;  %v10874_v46 = vpack.c.bf16 %v9550_v32, %v9548_v11  ;;  %v10878_v32 = vpack.c.bf16 %v7649_v55, %v7647_v29  ;;  %v7666_v55 = vld [vmem:[%s15961_s12 + $0xa0] sm:$0xff] }
 0xad7   :  { %7231 = vmatprep.mubr.f32.mxu0 %v7133_v25  ;;  %10857 = vmatpush1.bf16.msra.mxu0 %v10856_v4  ;;  %v9547_v25 = vld [vmem:[%s15961_s12 + $0x160] sm:$0xff] }
 0xad8   :  { %10859 = vmatprep.subr.bf16.mxu0 %v10858_v31 }
 0xada   :  { %7232 = vmatmul.mubr.f32.gmra.mrb[162].mxu0 %v7132_v30  ;;  %v9549_v30 = vld [vmem:[%s15961_s12 + $0x170] sm:$0xff] }
 0xadb   :  { %7236 = vmatprep.mubr.f32.mxu0 %v7135_v37  ;;  %10861 = vmatpush1.bf16.msra.mxu0 %v10860_v53  ;;  %v10876_v37 = vpack.c.bf16 %v9549_v30, %v9547_v25  ;;  %v7651_v25 = vld [vmem:[%s15961_s12 + $0x28] sm:$0xff]  ;;  %v7653_v30 = vld [vmem:[%s15961_s12 + $0x38] sm:$0xff] }
 0xadc   :  { %10863 = vmatprep.subr.bf16.mxu0 %v10862_v9 }
 0xade   :  { %7237 = vmatmul.mubr.f32.gmra.mrb[164].mxu0 %v7134_v12 }
 0xadf   :  { %7241 = vmatprep.mubr.f32.mxu0 %v7137_v22  ;;  %10865 = vmatpush1.bf16.msra.mxu0 %v10864_v6 }
 0xae0   :  { %10867 = vmatprep.subr.bf16.mxu0 %v10866_v18 }
 0xae2   :  { %7242 = vmatmul.mubr.f32.gmra.mrb[166].mxu0 %v7136_v48 }
 0xae3   :  { %7246 = vmatprep.mubr.f32.mxu0 %v7139_v3  ;;  %10869 = vmatpush1.bf16.msra.mxu0 %v10868_v45 }
 0xae4   :  { %10871 = vmatprep.subr.bf16.mxu0 %v10870_v5 }
 0xae6   :  { %7247 = vmatmul.mubr.f32.gmra.mrb[168].mxu0 %v7138_v58 }
 0xae7   :  { %7251 = vmatprep.mubr.f32.mxu0 %v7141_v33  ;;  %10873 = vmatpush1.bf16.msra.mxu0 %v10872_v52  ;;  %v7646_v52 = vld [vmem:[%s15961_s12] sm:$0xff] }
 0xae8   :  { %10875 = vmatprep.subr.bf16.mxu0 %v10874_v46  ;;  %v7648_v46 = vld [vmem:[%s15961_s12 + $0x10] sm:$0xff] }
 0xaea   :  { %7252 = vmatmul.mubr.f32.gmra.mrb[170].mxu0 %v7140_v43  ;;  %v7323_v43 = vld [vmem:[#allocation15] sm:$0xff] }
 0xaeb   :  { %7256 = vmatprep.mubr.f32.mxu0 %v7143_v21  ;;  %10877 = vmatpush1.bf16.msra.mxu0 %v10876_v37 }
 0xaec   :  { %9998 = vmatprep.mubr.f32.mxu1 %v7323_v43  ;;  %10879 = vmatprep.subr.bf16.mxu0 %v10878_v32  ;;  %v7657_v43 = vld [vmem:[%s15961_s12 + $0x58] sm:$0xff] }
 0xaee   :  { %7257 = vmatmul.mubr.f32.gmra.mrb[172].mxu0 %v7142_v47 }
 0xaef   :  { %7261 = vmatprep.mubr.f32.mxu0 %v7145_v10 }
 0xaf2   :  { %7262 = vmatmul.mubr.f32.gmra.mrb[174].mxu0 %v7144_v2 }
 0xaf3   :  { %7266 = vmatprep.mubr.f32.mxu0 %v7147_v1 }
 0xaf6   :  { %7267 = vmatmul.mubr.f32.gmra.mrb[176].mxu0 %v7146_v63 }
 0xaf7   :  { %7271 = vmatprep.mubr.f32.mxu0 %v7149_v28 }
 0xafa   :  { %7272 = vmatmul.mubr.f32.gmra.mrb[178].mxu0 %v7148_v40 }
 0xafb   :  { %7276 = vmatprep.mubr.f32.mxu0 %v7151_v42 }
 0xafe   :  { %7277 = vmatmul.mubr.f32.gmra.mrb[180].mxu0 %v7150_v44 }
 0xaff   :  { %7281 = vmatprep.mubr.f32.mxu0 %v7153_v13 }
 0xb02   :  { %7282 = vmatmul.mubr.f32.gmra.mrb[182].mxu0 %v7152_v19 }
 0xb03   :  { %7286 = vmatprep.mubr.f32.mxu0 %v7155_v23 }
 0xb06   :  { %7287 = vmatmul.mubr.f32.gmra.mrb[184].mxu0 %v7154_v56 }
 0xb07   :  { %7291 = vmatprep.mubr.f32.mxu0 %v7157_v59 }
 0xb0a   :  { %7292 = vmatmul.mubr.f32.gmra.mrb[186].mxu0 %v7156_v0 }
 0xb0b   :  { %7296 = vmatprep.mubr.f32.mxu0 %v7159_v7 }
 0xb0e   :  { %7297 = vmatmul.mubr.f32.gmra.mrb[188].mxu0 %v7158_v27 }
 0xb0f   :  { %7301 = vmatprep.mubr.f32.mxu0 %v7161_v24 }
 0xb12   :  { %7302 = vmatmul.mubr.f32.gmra.mrb[190].mxu0 %v7160_v8 }
 0xb13   :  { %7807 = vmatprep.mubr.f32.mxu0 %v16128_v61 }
 0xb69   :  { %v9726_v12 = vpop.f32.mrb[128].mxu0 }
 0xb6a   :  { %v9727_v22 = vpop.f32.mrb[129].mxu0 }
 0xb6b   :  { %v9728_v48 = vadd.f32 %v9727_v22, %v9726_v12  ;;  %v10880_v12 = vpack.c.bf16 %v7648_v46, %v7646_v52  ;;  %v10882_v22 = vpack.c.bf16 %v7653_v30, %v7651_v25  ;;  %v7668_v52 = vld [vmem:[%s15961_s12 + $0xb0] sm:$0xff] }
 0xb6c   :  { %v10900_v46 = vpack.c.bf16 %v7668_v52, %v7666_v55  ;;  %v7336_v55 = vld [vmem:[#allocation15 + $0x68] sm:$0xff]  ;;  %v7337_v52 = vld [vmem:[#allocation15 + $0x70] sm:$0xff] }
 0xb6d   :  { %v9729_v3 = vpop.f32.mrb[130].mxu0 }
 0xb6e   :  { %v9730_v58 = vpop.f32.mrb[131].mxu0 }
 0xb6f   :  { %v15296_v33 = vadd.f32 %v9730_v58, %v9729_v3  ;;  %v7652_v3 = vld [vmem:[%s15961_s12 + $0x30] sm:$0xff]  ;;  %v7655_v58 = vld [vmem:[%s15961_s12 + $0x48] sm:$0xff] }
 0xb71   :  { %v9732_v21 = vpop.f32.mrb[132].mxu0 }
 0xb72   :  { %v9733_v47 = vpop.f32.mrb[133].mxu0 }
 0xb73   :  { %v15298_v10 = vadd.f32 %v9733_v47, %v9732_v21 }
 0xb75   :  { %v9735_v2 = vpop.f32.mrb[134].mxu0 }
 0xb76   :  { %v9736_v1 = vpop.f32.mrb[135].mxu0 }
 0xb77   :  { %v15300_v63 = vadd.f32 %v9736_v1, %v9735_v2 }
 0xb79   :  { %v9738_v28 = vpop.f32.mrb[136].mxu0 }
 0xb7a   :  { %v9739_v40 = vpop.f32.mrb[137].mxu0 }
 0xb7b   :  { %v15302_v42 = vadd.f32 %v9739_v40, %v9738_v28  ;;  %v10886_v28 = vpack.c.bf16 %v7657_v43, %v7655_v58  ;;  %v7654_v40 = vld [vmem:[%s15961_s12 + $0x40] sm:$0xff] }
 0xb7d   :  { %v9741_v44 = vpop.f32.mrb[138].mxu0 }
 0xb7e   :  { %v9742_v13 = vpop.f32.mrb[139].mxu0 }
 0xb7f   :  { %v15304_v19 = vadd.f32 %v9742_v13, %v9741_v44  ;;  %v7656_v44 = vld [vmem:[%s15961_s12 + $0x50] sm:$0xff] }
 0xb81   :  { %v9744_v23 = vpop.f32.mrb[140].mxu0 }
 0xb82   :  { %v9745_v56 = vpop.f32.mrb[141].mxu0 }
 0xb83   :  { %v15306_v59 = vadd.f32 %v9745_v56, %v9744_v23  ;;  %v7661_v56 = vld [vmem:[%s15961_s12 + $0x78] sm:$0xff] }
 0xb85   :  { %v9747_v60 = vpop.f32.mrb[142].mxu0 }
 0xb86   :  { %v9748_v57 = vpop.f32.mrb[143].mxu0 }
 0xb87   :  { %v15308_v54 = vadd.f32 %v9748_v57, %v9747_v60 }
 0xb89   :  { %v9750_v0 = vpop.f32.mrb[144].mxu0 }
 0xb8a   :  { %v9751_v16 = vpop.f32.mrb[145].mxu0 }
 0xb8b   :  { %v15310_v62 = vadd.f32 %v9751_v16, %v9750_v0  ;;  %v10888_v0 = vpack.c.bf16 %v7656_v44, %v7654_v40 }
 0xb8d   :  { %v9753_v7 = vpop.f32.mrb[146].mxu0 }
 0xb8e   :  { %v9754_v4 = vpop.f32.mrb[147].mxu0 }
 0xb8f   :  { %v15312_v27 = vadd.f32 %v9754_v4, %v9753_v7  ;;  %v7658_v4 = vld [vmem:[%s15961_s12 + $0x60] sm:$0xff] }
 0xb91   :  { %v9756_v24 = vpop.f32.mrb[148].mxu0 }
 0xb92   :  { %v9757_v36 = vpop.f32.mrb[149].mxu0 }
 0xb93   :  { %v15314_v51 = vadd.f32 %v9757_v36, %v9756_v24  ;;  %v7660_v24 = vld [vmem:[%s15961_s12 + $0x70] sm:$0xff] }
 0xb95   :  { %v9759_v31 = vpop.f32.mrb[150].mxu0 }
 0xb96   :  { %v9760_v8 = vpop.f32.mrb[151].mxu0 }
 0xb97   :  { %v15316_v26 = vadd.f32 %v9760_v8, %v9759_v31  ;;  %v7665_v31 = vld [vmem:[%s15961_s12 + $0x98] sm:$0xff] }
 0xb99   :  { %v9762_v49 = vpop.f32.mrb[152].mxu0 }
 0xb9a   :  { %v9763_v53 = vpop.f32.mrb[153].mxu0 }
 0xb9b   :  { %v15318_v39 = vadd.f32 %v9763_v53, %v9762_v49  ;;  %v10892_v53 = vpack.c.bf16 %v7660_v24, %v7658_v4 }
 0xb9d   :  { %v9765_v50 = vpop.f32.mrb[154].mxu0 }
 0xb9e   :  { %v9766_v9 = vpop.f32.mrb[155].mxu0 }
 0xb9f   :  { %v15320_v14 = vadd.f32 %v9766_v9, %v9765_v50 }
 0xba1   :  { %v9768_v34 = vpop.f32.mrb[156].mxu0 }
 0xba2   :  { %v9769_v6 = vpop.f32.mrb[157].mxu0 }
 0xba3   :  { %v15322_v35 = vadd.f32 %v9769_v6, %v9768_v34  ;;  %v7662_v34 = vld [vmem:[%s15961_s12 + $0x80] sm:$0xff]  ;;  %v7664_v6 = vld [vmem:[%s15961_s12 + $0x90] sm:$0xff] }
 0xba5   :  { %v9771_v15 = vpop.f32.mrb[158].mxu0 }
 0xba6   :  { %v9772_v18 = vpop.f32.mrb[159].mxu0 }
 0xba7   :  { %v15324_v41 = vadd.f32 %v9772_v18, %v9771_v15 }
 0xba9   :  { %v9806_v38 = vpop.f32.mrb[160].mxu0 }
 0xbaa   :  { %v9807_v45 = vpop.f32.mrb[161].mxu0 }
 0xbab   :  { %v9808_v17 = vadd.f32 %v9807_v45, %v9806_v38  ;;  %v7669_v38 = vld [vmem:[%s15961_s12 + $0xb8] sm:$0xff] }
 0xbad   :  { %v7307_v20 = vmax.f32 %v9728_v48, %v9808_v17  ;;  %v9809_v5 = vpop.f32.mrb[162].mxu0  ;;  %v7650_v48 = vld [vmem:[%s15961_s12 + $0x20] sm:$0xff] }
 0xbae   :  { %v9810_v11 = vpop.f32.mrb[163].mxu0  ;;  %v10884_v2 = vpack.c.bf16 %v7652_v3, %v7650_v48 }
 0xbaf   :  { %v9811_v37 = vadd.f32 %v9810_v11, %v9809_v5  ;;  %9551 = vmatmul.mubr.msk.f32.vlgmr.msra.gmra.mrb[192].mxu0 %vm5478_vm1, %v7307_v20 }
 0xbb0   :  { %7813 = vmatprep.mubr.f32.mxu0 %v16128_v61  ;;  %10881 = vmatpush1.bf16.msra.mxu0 %v10880_v12 }
 0xbb1   :  { %v7308_v21 = vmax.f32 %v15296_v33, %v9811_v37  ;;  %v9812_v47 = vpop.f32.mrb[164].mxu0  ;;  %10883 = vmatprep.subr.bf16.mxu0 %v10882_v22  ;;  %v7659_v33 = vld [vmem:[%s15961_s12 + $0x68] sm:$0xff] }
 0xbb2   :  { %v9813_v1 = vpop.f32.mrb[165].mxu0  ;;  %v10890_v7 = vpack.c.bf16 %v7661_v56, %v7659_v33 }
 0xbb3   :  { %v15365_v13 = vpack.c.bf16 %v7308_v21, %v7307_v20  ;;  %v9814_v23 = vadd.f32 %v9813_v1, %v9812_v47  ;;  %9552 = vmatmul.mubr.msk.f32.gmra.mrb[194].mxu0 %vm5478_vm1, %v7308_v21  ;;  %v10896_v20 = vpack.c.bf16 %v7664_v6, %v7662_v34 }
 0xbb4   :  { %7819 = vmatprep.mubr.f32.mxu0 %v16128_v61  ;;  %10885 = vmatpush1.bf16.msra.mxu0 %v10884_v2 }
 0xbb5   :  { %v7309_v60 = vmax.f32 %v15298_v10, %v9814_v23  ;;  %v9815_v57 = vpop.f32.mrb[166].mxu0  ;;  %10791 = vmatprep.subr.bf16.mxu1 %v15365_v13  ;;  %10887 = vmatprep.subr.bf16.mxu0 %v10886_v28  ;;  %v7663_v10 = vld [vmem:[%s15961_s12 + $0x88] sm:$0xff] }
 0xbb6   :  { %v9816_v16 = vpop.f32.mrb[167].mxu0  ;;  %10793 = vmatpush3.bf16.msra.mxu1 %v15365_v13  ;;  %v10894_v9 = vpack.c.bf16 %v7665_v31, %v7663_v10 }
 0xbb7   :  { %v9817_v36 = vadd.f32 %v9816_v16, %v9815_v57  ;;  %9553 = vmatmul.mubr.msk.f32.gmra.mrb[196].mxu0 %vm5478_vm1, %v7309_v60 }
 0xbb8   :  { %7825 = vmatprep.mubr.f32.mxu0 %v16128_v61  ;;  %10889 = vmatpush1.bf16.msra.mxu0 %v10888_v0 }
 0xbb9   :  { %v7310_v8 = vmax.f32 %v15300_v63, %v9817_v36  ;;  %v9818_v49 = vpop.f32.mrb[168].mxu0  ;;  %10891 = vmatprep.subr.bf16.mxu0 %v10890_v7  ;;  %v7667_v63 = vld [vmem:[%s15961_s12 + $0xa8] sm:$0xff] }
 0xbba   :  { %v9819_v50 = vpop.f32.mrb[169].mxu0  ;;  %v10898_v29 = vpack.c.bf16 %v7669_v38, %v7667_v63  ;;  %v7326_v63 = vld [vmem:[#allocation15 + $0x18] sm:$0xff]  ;;  %v7327_v38 = vld [vmem:[#allocation15 + $0x20] sm:$0xff] }
 0xbbb   :  { %v15399_v15 = vpack.c.bf16 %v7310_v8, %v7309_v60  ;;  %v9820_v18 = vadd.f32 %v9819_v50, %v9818_v49  ;;  %9554 = vmatmul.mubr.msk.f32.gmra.mrb[198].mxu0 %vm5478_vm1, %v7310_v8 }
 0xbbc   :  { %7831 = vmatprep.mubr.f32.mxu0 %v16128_v61  ;;  %10893 = vmatpush1.bf16.msra.mxu0 %v10892_v53 }
 0xbbd   :  { %v7311_v45 = vmax.f32 %v15302_v42, %v9820_v18  ;;  %v9821_v17 = vpop.f32.mrb[170].mxu0  ;;  %10795 = vmatprep.subr.bf16.mxu1 %v15399_v15  ;;  %10895 = vmatprep.subr.bf16.mxu0 %v10894_v9  ;;  %v7324_v18 = vld [vmem:[#allocation15 + $0x8] sm:$0xff] }
 0xbbe   :  { %v9822_v5 = vpop.f32.mrb[171].mxu0  ;;  %10797 = vmatpush3.bf16.msra.mxu1 %v15399_v15 }
 0xbbf   :  { %v9823_v11 = vadd.f32 %v9822_v5, %v9821_v17  ;;  %9555 = vmatmul.mubr.msk.f32.gmra.mrb[200].mxu0 %vm5478_vm1, %v7311_v45  ;;  %v7330_v17 = vld [vmem:[#allocation15 + $0x38] sm:$0xff] }
 0xbc0   :  { %7837 = vmatprep.mubr.f32.mxu0 %v16128_v61  ;;  %10897 = vmatpush1.bf16.msra.mxu0 %v10896_v20  ;;  %v7332_v20 = vld [vmem:[#allocation15 + $0x48] sm:$0xff]  ;;  %v7334_v5 = vld [vmem:[#allocation15 + $0x58] sm:$0xff] }
 0xbc1   :  { %v7312_v42 = vmax.f32 %v15304_v19, %v9823_v11  ;;  %v9824_v32 = vpop.f32.mrb[172].mxu0  ;;  %10899 = vmatprep.subr.bf16.mxu0 %v10898_v29  ;;  %v7335_v29 = vld [vmem:[#allocation15 + $0x60] sm:$0xff]  ;;  %v7338_v11 = vld [vmem:[#allocation15 + $0x78] sm:$0xff] }
 0xbc2   :  { %v9825_v25 = vpop.f32.mrb[173].mxu0 }
 0xbc3   :  { %v15421_v30 = vpack.c.bf16 %v7312_v42, %v7311_v45  ;;  %v9826_v37 = vadd.f32 %v9825_v25, %v9824_v32  ;;  %9556 = vmatmul.mubr.msk.f32.gmra.mrb[202].mxu0 %vm5478_vm1, %v7312_v42  ;;  %v7329_v45 = vld [vmem:[#allocation15 + $0x30] sm:$0xff]  ;;  %v7485_v42 = vld [vmem:[#allocation15 + $0x80] sm:$0xff]  ;;  %v7486_v32 = vld [vmem:[#allocation15 + $0x88] sm:$0xff]  ;;  %v16129_v25 = vmov 0.0|0.0  }
 0xbc4   :  { %7843 = vmatprep.mubr.f32.mxu0 %v16128_v61  ;;  %10901 = vmatpush1.bf16.msra.mxu0 %v10900_v46  ;;  %v7487_v46 = vld [vmem:[#allocation15 + $0x90] sm:$0xff] }
 0xbc5   :  { %v7313_v12 = vmax.f32 %v15306_v59, %v9826_v37  ;;  %v9827_v22 = vpop.f32.mrb[174].mxu0  ;;  %10799 = vmatprep.subr.bf16.mxu1 %v15421_v30  ;;  %v7489_v37 = vld [vmem:[#allocation15 + $0xa0] sm:$0xff] }
 0xbc6   :  { %v9828_v48 = vpop.f32.mrb[175].mxu0  ;;  %10801 = vmatpush3.bf16.msra.mxu1 %v15421_v30 }
 0xbc7   :  { %v9829_v19 = vadd.f32 %v9828_v48, %v9827_v22  ;;  %9557 = vmatmul.mubr.msk.f32.gmra.mrb[204].mxu0 %vm5478_vm1, %v7313_v12  ;;  %v7491_v22 = vld [vmem:[#allocation15 + $0xb0] sm:$0xff]  ;;  %v7492_v48 = vld [vmem:[#allocation15 + $0xb8] sm:$0xff] }
 0xbc8   :  { %7849 = vmatprep.mubr.f32.mxu0 %v16128_v61 }
 0xbc9   :  { %v7314_v3 = vmax.f32 %v15308_v54, %v9829_v19  ;;  %v9830_v58 = vpop.f32.mrb[176].mxu0  ;;  %v7493_v19 = vld [vmem:[#allocation15 + $0xc0] sm:$0xff] }
 0xbca   :  { %v9831_v43 = vpop.f32.mrb[177].mxu0 }
 0xbcb   :  { %v15431_v21 = vpack.c.bf16 %v7314_v3, %v7313_v12  ;;  %v9832_v47 = vadd.f32 %v9831_v43, %v9830_v58  ;;  %9558 = vmatmul.mubr.msk.f32.gmra.mrb[206].mxu0 %vm5478_vm1, %v7314_v3  ;;  %v7490_v12 = vld [vmem:[#allocation15 + $0xa8] sm:$0xff]  ;;  %v7495_v58 = vld [vmem:[#allocation15 + $0xd0] sm:$0xff]  ;;  %v7496_v43 = vld [vmem:[#allocation15 + $0xd8] sm:$0xff] }
 0xbcc   :  { %7855 = vmatprep.mubr.f32.mxu0 %v16128_v61  ;;  %v7494_v3 = vld [vmem:[#allocation15 + $0xc8] sm:$0xff] }
 0xbcd   :  { %v7315_v59 = vmax.f32 %v15310_v62, %v9832_v47  ;;  %v9833_v2 = vpop.f32.mrb[178].mxu0  ;;  %10803 = vmatprep.subr.bf16.mxu1 %v15431_v21  ;;  %v7498_v47 = vld [vmem:[#allocation15 + $0xe8] sm:$0xff] }
 0xbce   :  { %v9834_v1 = vpop.f32.mrb[179].mxu0  ;;  %10805 = vmatpush3.bf16.msra.mxu1 %v15431_v21 }
 0xbcf   :  { %v9835_v28 = vadd.f32 %v9834_v1, %v9833_v2  ;;  %9559 = vmatmul.mubr.msk.f32.gmra.mrb[208].mxu0 %vm5478_vm1, %v7315_v59  ;;  %v7500_v2 = vld [vmem:[#allocation15 + $0xf8] sm:$0xff]  ;;  %v9584_v1 = vld [vmem:[%s15961_s12 + $0x188] sm:$0xff] }
 0xbd0   :  { %7861 = vmatprep.mubr.f32.mxu0 %v16128_v61 }
 0xbd1   :  { %v7316_v54 = vmax.f32 %v15312_v27, %v9835_v28  ;;  %v9836_v40 = vpop.f32.mrb[180].mxu0  ;;  %v9586_v28 = vld [vmem:[%s15961_s12 + $0x198] sm:$0xff] }
 0xbd2   :  { %v9837_v44 = vpop.f32.mrb[181].mxu0 }
 0xbd3   :  { %v15441_v23 = vpack.c.bf16 %v7316_v54, %v7315_v59  ;;  %v9838_v33 = vadd.f32 %v9837_v44, %v9836_v40  ;;  %9560 = vmatmul.mubr.msk.f32.gmra.mrb[210].mxu0 %vm5478_vm1, %v7316_v54  ;;  %v7499_v59 = vld [vmem:[#allocation15 + $0xf0] sm:$0xff]  ;;  %v10902_v54 = vpack.c.bf16 %v9586_v28, %v9584_v1  ;;  %v9583_v40 = vld [vmem:[%s15961_s12 + $0x180] sm:$0xff] }
 0xbd4   :  { %7867 = vmatprep.mubr.f32.mxu0 %v16128_v61  ;;  %v9585_v44 = vld [vmem:[%s15961_s12 + $0x190] sm:$0xff]  ;;  %v8467_v28 = vld [vmem:[#allocation16 + $0x60] sm:$0xff] }
 0xbd5   :  { %v7317_v62 = vmax.f32 %v15314_v51, %v9838_v33  ;;  %v9839_v56 = vpop.f32.mrb[182].mxu0  ;;  %10807 = vmatprep.subr.bf16.mxu1 %v15441_v23  ;;  %10903 = vmatprep.subr.bf16.mxu0 %v10902_v54  ;;  %v9590_v33 = vld [vmem:[%s15961_s12 + $0x1b8] sm:$0xff]  ;;  %v8468_v54 = vld [vmem:[#allocation16 + $0x68] sm:$0xff] }
 0xbd6   :  { %v9840_v60 = vpop.f32.mrb[183].mxu0  ;;  %10809 = vmatpush3.bf16.msra.mxu1 %v15441_v23 }
 0xbd7   :  { %v9841_v57 = vadd.f32 %v9840_v60, %v9839_v56  ;;  %9561 = vmatmul.mubr.msk.f32.gmra.mrb[212].mxu0 %vm5478_vm1, %v7317_v62  ;;  %v8456_v56 = vld [vmem:[#allocation16 + $0x8] sm:$0xff]  ;;  %v8457_v60 = vld [vmem:[#allocation16 + $0x10] sm:$0xff] }
 0xbd8   :  { %7873 = vmatprep.mubr.f32.mxu0 %v16128_v61 }
 0xbd9   :  { %v7318_v27 = vmax.f32 %v15316_v26, %v9841_v57  ;;  %v9842_v0 = vpop.f32.mrb[184].mxu0  ;;  %v10904_v57 = vpack.c.bf16 %v9585_v44, %v9583_v40 }
 0xbda   :  { %v9843_v16 = vpop.f32.mrb[185].mxu0 }
 0xbdb   :  { %v15451_v7 = vpack.c.bf16 %v7318_v27, %v7317_v62  ;;  %v9844_v4 = vadd.f32 %v9843_v16, %v9842_v0  ;;  %9562 = vmatmul.mubr.msk.f32.gmra.mrb[214].mxu0 %vm5478_vm1, %v7318_v27  ;;  %v8455_v62 = vld [vmem:[#allocation16] sm:$0xff]  ;;  %v8458_v0 = vld [vmem:[#allocation16 + $0x18] sm:$0xff] }
 0xbdc   :  { %7879 = vmatprep.mubr.f32.mxu0 %v16128_v61  ;;  %v10927_v27 = vpack.c.bf16 %v8456_v56, %v8455_v62  ;;  %v8469_v62 = vld [vmem:[#allocation16 + $0x70] sm:$0xff]  ;;  %v8470_v56 = vld [vmem:[#allocation16 + $0x78] sm:$0xff] }
 0xbdd   :  { %v7319_v51 = vmax.f32 %v15318_v39, %v9844_v4  ;;  %v9845_v24 = vpop.f32.mrb[186].mxu0  ;;  %10811 = vmatprep.subr.bf16.mxu1 %v15451_v7  ;;  %v9587_v4 = vld [vmem:[%s15961_s12 + $0x1a0] sm:$0xff] }
 0xbde   :  { %v9846_v36 = vpop.f32.mrb[187].mxu0  ;;  %10813 = vmatpush3.bf16.msra.mxu1 %v15451_v7 }
 0xbdf   :  { %v9847_v10 = vadd.f32 %v9846_v36, %v9845_v24  ;;  %9563 = vmatmul.mubr.msk.f32.gmra.mrb[216].mxu0 %vm5478_vm1, %v7319_v51  ;;  %v9592_v36 = vld [vmem:[%s15961_s12 + $0x1c8] sm:$0xff] }
 0xbe0   :  { %7885 = vmatprep.mubr.f32.mxu0 %v16128_v61 }
 0xbe1   :  { %v7320_v26 = vmax.f32 %v15320_v14, %v9847_v10  ;;  %v9848_v31 = vpop.f32.mrb[188].mxu0  ;;  %v9594_v10 = vld [vmem:[%s15961_s12 + $0x1d8] sm:$0xff] }
 0xbe2   :  { %v9849_v8 = vpop.f32.mrb[189].mxu0 }
 0xbe3   :  { %v10814_v49 = vpack.c.bf16 %v7320_v26, %v7319_v51  ;;  %v9850_v53 = vadd.f32 %v9849_v8, %v9848_v31  ;;  %9564 = vmatmul.mubr.msk.f32.gmra.mrb[218].mxu0 %vm5478_vm1, %v7320_v26  ;;  %v9589_v51 = vld [vmem:[%s15961_s12 + $0x1b0] sm:$0xff]  ;;  %v10930_v26 = vpack.c.bf16 %v8458_v0, %v8457_v60  ;;  %v8459_v31 = vld [vmem:[#allocation16 + $0x20] sm:$0xff]  ;;  %v8460_v8 = vld [vmem:[#allocation16 + $0x28] sm:$0xff] }
 0xbe4   :  { %7891 = vmatprep.mubr.f32.mxu0 %v16128_v61  ;;  %v8471_v0 = vld [vmem:[#allocation16 + $0x80] sm:$0xff] }
 0xbe5   :  { %v7321_v39 = vmax.f32 %v15322_v35, %v9850_v53  ;;  %v9851_v50 = vpop.f32.mrb[190].mxu0  ;;  %10815 = vmatprep.subr.bf16.mxu1 %v10814_v49  ;;  %v7325_v35 = vld [vmem:[#allocation15 + $0x10] sm:$0xff] }
 0xbe6   :  { %v9852_v9 = vpop.f32.mrb[191].mxu0  ;;  %10817 = vmatpush3.bf16.msra.mxu1 %v10814_v49 }
 0xbe7   :  { %v9853_v34 = vadd.f32 %v9852_v9, %v9851_v50  ;;  %9565 = vmatmul.mubr.msk.f32.gmra.mrb[220].mxu0 %vm5478_vm1, %v7321_v39  ;;  %v9591_v50 = vld [vmem:[%s15961_s12 + $0x1c0] sm:$0xff]  ;;  %v9593_v9 = vld [vmem:[%s15961_s12 + $0x1d0] sm:$0xff] }
 0xbe8   :  { %7897 = vmatprep.mubr.f32.mxu0 %v16128_v61 }
 0xbe9   :  { %v7322_v14 = vmax.f32 %v15324_v41, %v9853_v34  ;;  %v7328_v41 = vld [vmem:[#allocation15 + $0x28] sm:$0xff] }
 0xbeb   :  { %v10818_v6 = vpack.c.bf16 %v7322_v14, %v7321_v39  ;;  %9566 = vmatmul.mubr.msk.f32.gmra.mrb[222].mxu0 %vm5478_vm1, %v7322_v14  ;;  %v10910_v39 = vpack.c.bf16 %v9594_v10, %v9592_v36  ;;  %v9596_v14 = vld [vmem:[%s15961_s12 + $0x1e8] sm:$0xff]  ;;  %v8474_v36 = vld [vmem:[#allocation16 + $0x98] sm:$0xff] }
 0xbec   :  { %8016 = vmatprep.mubr.f32.mxu0 %v16128_v61 }
 0xbed   :  { %10819 = vmatprep.subr.bf16.mxu1 %v10818_v6 }
 0xbee   :  { %10821 = vmatpush3.bf16.msra.mxu1 %v10818_v6 }
 0xbef   :  { %10823 = vmatprep.subr.bf16.mxu1 %v15365_v13 }
 0xbf1   :  { %9999 = vmatmul.mubr.f32.vlgmr.msra.gmra.mrb[0].mxu1 %v7324_v18  ;;  %v10933_v18 = vpack.c.bf16 %v8460_v8, %v8459_v31 }
 0xbf2   :  { %10825 = vmatpush3.bf16.msra.mxu1 %v15365_v13  ;;  %10001 = vmatprep.mubr.f32.mxu1 %v7325_v35  ;;  %v7331_v13 = vld [vmem:[#allocation15 + $0x40] sm:$0xff]  ;;  %v8461_v35 = vld [vmem:[#allocation16 + $0x30] sm:$0xff] }
 0xbf3   :  { %10827 = vmatprep.subr.bf16.mxu1 %v15399_v15 }
 0xbf5   :  { %10002 = vmatmul.mubr.f32.gmra.mrb[2].mxu1 %v7326_v63  ;;  %v8462_v63 = vld [vmem:[#allocation16 + $0x38] sm:$0xff] }
 0xbf6   :  { %10829 = vmatpush3.bf16.msra.mxu1 %v15399_v15  ;;  %10004 = vmatprep.mubr.f32.mxu1 %v7327_v38  ;;  %v7333_v15 = vld [vmem:[#allocation15 + $0x50] sm:$0xff]  ;;  %v10912_v38 = vpack.c.bf16 %v9593_v9, %v9591_v50 }
 0xbf7   :  { %10831 = vmatprep.subr.bf16.mxu1 %v15421_v30 }
 0xbf9   :  { %10005 = vmatmul.mubr.f32.gmra.mrb[4].mxu1 %v7328_v41 }
 0xbfa   :  { %10833 = vmatpush3.bf16.msra.mxu1 %v15421_v30  ;;  %10007 = vmatprep.mubr.f32.mxu1 %v7329_v45  ;;  %v7488_v30 = vld [vmem:[#allocation15 + $0x98] sm:$0xff] }
 0xbfb   :  { %10835 = vmatprep.subr.bf16.mxu1 %v15431_v21 }
 0xbfd   :  { %10008 = vmatmul.mubr.f32.gmra.mrb[6].mxu1 %v7330_v17  ;;  %v9595_v17 = vld [vmem:[%s15961_s12 + $0x1e0] sm:$0xff] }
 0xbfe   :  { %10837 = vmatpush3.bf16.msra.mxu1 %v15431_v21  ;;  %10010 = vmatprep.mubr.f32.mxu1 %v7331_v13  ;;  %v7497_v21 = vld [vmem:[#allocation15 + $0xe0] sm:$0xff]  ;;  %v9597_v13 = vld [vmem:[%s15961_s12 + $0x1f0] sm:$0xff] }
 0xbff   :  { %10839 = vmatprep.subr.bf16.mxu1 %v15441_v23 }
 0xc01   :  { %10011 = vmatmul.mubr.f32.gmra.mrb[8].mxu1 %v7332_v20 }
 0xc02   :  { %10841 = vmatpush3.bf16.msra.mxu1 %v15441_v23  ;;  %10013 = vmatprep.mubr.f32.mxu1 %v7333_v15  ;;  %v9588_v23 = vld [vmem:[%s15961_s12 + $0x1a8] sm:$0xff] }
 0xc03   :  { %10843 = vmatprep.subr.bf16.mxu1 %v15451_v7  ;;  %v9600_v15 = vld [vmem:[%s15961_s12 + $0x208] sm:$0xff] }
 0xc05   :  { %10014 = vmatmul.mubr.f32.gmra.mrb[10].mxu1 %v7334_v5  ;;  %v9602_v5 = vld [vmem:[%s15961_s12 + $0x218] sm:$0xff] }
 0xc06   :  { %10845 = vmatpush3.bf16.msra.mxu1 %v15451_v7  ;;  %10016 = vmatprep.mubr.f32.mxu1 %v7335_v29  ;;  %v10906_v7 = vpack.c.bf16 %v9590_v33, %v9588_v23  ;;  %v10936_v29 = vpack.c.bf16 %v8462_v63, %v8461_v35  ;;  %v10945_v33 = vpack.c.bf16 %v8468_v54, %v8467_v28 }
 0xc07   :  { %10847 = vmatprep.subr.bf16.mxu1 %v10814_v49 }
 0xc09   :  { %10017 = vmatmul.mubr.f32.gmra.mrb[12].mxu1 %v7336_v55  ;;  %v8463_v55 = vld [vmem:[#allocation16 + $0x40] sm:$0xff] }
 0xc0a   :  { %10849 = vmatpush3.bf16.msra.mxu1 %v10814_v49  ;;  %10019 = vmatprep.mubr.f32.mxu1 %v7337_v52  ;;  %v10908_v49 = vpack.c.bf16 %v9589_v51, %v9587_v4  ;;  %v8464_v52 = vld [vmem:[#allocation16 + $0x48] sm:$0xff] }
 0xc0b   :  { %10851 = vmatprep.subr.bf16.mxu1 %v10818_v6 }
 0xc0d   :  { %10020 = vmatmul.mubr.f32.gmra.mrb[14].mxu1 %v7338_v11  ;;  %v10916_v11 = vpack.c.bf16 %v9597_v13, %v9595_v17  ;;  %v8476_v17 = vld [vmem:[#allocation16 + $0xa8] sm:$0xff] }
 0xc0e   :  { %10853 = vmatpush3.bf16.msra.mxu1 %v10818_v6  ;;  %10054 = vmatprep.mubr.f32.mxu1 %v7485_v42  ;;  %v9598_v6 = vld [vmem:[%s15961_s12 + $0x1f8] sm:$0xff] }
 0xc0f   :  { %10926 = vmatprep.subr.bf16.mxu1 %v16129_v25  ;;  %v10914_v45 = vpack.c.bf16 %v9598_v6, %v9596_v14 }
 0xc11   :  { %10055 = vmatmul.mubr.f32.vlgmr.msra.gmra.mrb[16].mxu1 %v7486_v32  ;;  %v10918_v32 = vpack.c.bf16 %v9602_v5, %v9600_v15  ;;  %v8478_v15 = vld [vmem:[#allocation16 + $0xb8] sm:$0xff] }
 0xc12   :  { %10057 = vmatprep.mubr.f32.mxu1 %v7487_v46  ;;  %10928 = vmatpush1.bf16.msra.mxu1 %v10927_v27  ;;  %v9599_v46 = vld [vmem:[%s15961_s12 + $0x200] sm:$0xff]  ;;  %v10948_v27 = vpack.c.bf16 %v8470_v56, %v8469_v62 }
 0xc13   :  { %10929 = vmatprep.subr.bf16.mxu1 %v16129_v25 }
 0xc15   :  { %10058 = vmatmul.mubr.f32.gmra.mrb[18].mxu1 %v7488_v30  ;;  %v9601_v30 = vld [vmem:[%s15961_s12 + $0x210] sm:$0xff] }
 0xc16   :  { %10060 = vmatprep.mubr.f32.mxu1 %v7489_v37  ;;  %10931 = vmatpush1.bf16.msra.mxu1 %v10930_v26 }
 0xc17   :  { %10932 = vmatprep.subr.bf16.mxu1 %v16129_v25 }
 0xc19   :  { %10061 = vmatmul.mubr.f32.gmra.mrb[20].mxu1 %v7490_v12  ;;  %v9604_v12 = vld [vmem:[%s15961_s12 + $0x228] sm:$0xff] }
 0xc1a   :  { %10063 = vmatprep.mubr.f32.mxu1 %v7491_v22  ;;  %10934 = vmatpush1.bf16.msra.mxu1 %v10933_v18  ;;  %v9606_v22 = vld [vmem:[%s15961_s12 + $0x238] sm:$0xff] }
 0xc1b   :  { %10935 = vmatprep.subr.bf16.mxu1 %v16129_v25 }
 0xc1d   :  { %10064 = vmatmul.mubr.f32.gmra.mrb[22].mxu1 %v7492_v48  ;;  %v10939_v48 = vpack.c.bf16 %v8464_v52, %v8463_v55  ;;  %v16130_v55 = vld [vmem:[#allocation25_spill] sm:$0xff]  ;;  %v16131_v52 = vld [vmem:[#allocation26_spill] sm:$0xff] }
 0xc1e   :  { %10066 = vmatprep.mubr.f32.mxu1 %v7493_v19  ;;  %10937 = vmatpush1.bf16.msra.mxu1 %v10936_v29  ;;  %v8465_v19 = vld [vmem:[#allocation16 + $0x50] sm:$0xff]  ;;  %v8379_v29 = vld [vmem:[%s15962_s13] sm:$0x3] }
 0xc1f   :  { %10938 = vmatprep.subr.bf16.mxu1 %v16129_v25 }
 0xc21   :  { %10067 = vmatmul.mubr.f32.gmra.mrb[24].mxu1 %v7494_v3  ;;  %v8466_v3 = vld [vmem:[#allocation16 + $0x58] sm:$0xff] }
 0xc22   :  { %10069 = vmatprep.mubr.f32.mxu1 %v7495_v58  ;;  %v10920_v58 = vpack.c.bf16 %v9601_v30, %v9599_v46  ;;  %10940 = vmatpush1.bf16.msra.mxu1 %v10939_v48  ;;  %v10942_v1 = vpack.c.bf16 %v8466_v3, %v8465_v19  ;;  %v8673_v30 = vld [vmem:[#allocation16 + $0xc0] sm:$0xff] }
 0xc23   :  { %10941 = vmatprep.subr.bf16.mxu1 %v16129_v25 }
 0xc25   :  { %10070 = vmatmul.mubr.f32.gmra.mrb[26].mxu1 %v7496_v43 }
 0xc26   :  { %10072 = vmatprep.mubr.f32.mxu1 %v7497_v21  ;;  %v10922_v21 = vpack.c.bf16 %v9606_v22, %v9604_v12  ;;  %10943 = vmatpush1.bf16.msra.mxu1 %v10942_v1 }
 0xc27   :  { %10944 = vmatprep.subr.bf16.mxu1 %v16129_v25 }
 0xc29   :  { %10073 = vmatmul.mubr.f32.gmra.mrb[28].mxu1 %v7498_v47  ;;  %v9603_v47 = vld [vmem:[%s15961_s12 + $0x220] sm:$0xff] }
 0xc2a   :  { %10075 = vmatprep.mubr.f32.mxu1 %v7499_v59  ;;  %v9605_v59 = vld [vmem:[%s15961_s12 + $0x230] sm:$0xff]  ;;  %10946 = vmatpush1.bf16.msra.mxu1 %v10945_v33  ;;  %v8678_v33 = vld [vmem:[#allocation16 + $0xe8] sm:$0xff] }
 0xc2b   :  { %v10924_v40 = vpack.c.bf16 %v9605_v59, %v9603_v47  ;;  %10947 = vmatprep.subr.bf16.mxu1 %v16129_v25  ;;  %v8676_v47 = vld [vmem:[#allocation16 + $0xd8] sm:$0xff] }
 0xc2d   :  { %10076 = vmatmul.mubr.f32.gmra.mrb[30].mxu1 %v7500_v2 }
 0xc2e   :  { %10949 = vmatpush1.bf16.msra.mxu1 %v10948_v27 }
 0xc2f   :  { %10950 = vmatprep.subr.bf16.mxu1 %v16129_v25 }
 0xcc4   :  { %v10000_v16 = vpop.f32.mrb[0].mxu1 }
 0xcc5   :  { %v7405_v24 = vpop.f32.mrb[1].mxu1 }
 0xcc6   :  { %9567 = vmatmul.mubr.msk.f32.vlgmr.msra.gmra.mrb[192].mxu0 %vm5478_vm1, %v7405_v24  ;;  %v8473_v24 = vld [vmem:[#allocation16 + $0x90] sm:$0xff] }
 0xcc7   :  { %8022 = vmatprep.mubr.f32.mxu0 %v16128_v61  ;;  %10905 = vmatpush1.bf16.msra.mxu0 %v10904_v57  ;;  %v10954_v31 = vpack.c.bf16 %v8474_v36, %v8473_v24 }
 0xcc8   :  { %v10003_v53 = vpop.f32.mrb[2].mxu1  ;;  %10907 = vmatprep.subr.bf16.mxu0 %v10906_v7 }
 0xcc9   :  { %v7415_v34 = vpop.f32.mrb[3].mxu1 }
 0xcca   :  { %9568 = vmatmul.mubr.msk.f32.gmra.mrb[194].mxu0 %vm5478_vm1, %v10000_v16  ;;  %v8472_v16 = vld [vmem:[#allocation16 + $0x88] sm:$0xff] }
 0xccb   :  { %8028 = vmatprep.mubr.f32.mxu0 %v16128_v61  ;;  %10909 = vmatpush1.bf16.msra.mxu0 %v10908_v49  ;;  %v10951_v51 = vpack.c.bf16 %v8472_v16, %v8471_v0 }
 0xccc   :  { %v10006_v41 = vpop.f32.mrb[4].mxu1  ;;  %10911 = vmatprep.subr.bf16.mxu0 %v10910_v39 }
 0xccd   :  { %v7425_v20 = vpop.f32.mrb[5].mxu1  ;;  %10952 = vmatpush1.bf16.msra.mxu1 %v10951_v51 }
 0xcce   :  { %9569 = vmatmul.mubr.msk.f32.gmra.mrb[196].mxu0 %vm5478_vm1, %v7415_v34  ;;  %10953 = vmatprep.subr.bf16.mxu1 %v16129_v25 }
 0xccf   :  { %8034 = vmatprep.mubr.f32.mxu0 %v16128_v61  ;;  %10913 = vmatpush1.bf16.msra.mxu0 %v10912_v38 }
 0xcd0   :  { %v10009_v42 = vpop.f32.mrb[6].mxu1  ;;  %10915 = vmatprep.subr.bf16.mxu0 %v10914_v45  ;;  %v8475_v45 = vld [vmem:[#allocation16 + $0xa0] sm:$0xff] }
 0xcd1   :  { %v7435_v37 = vpop.f32.mrb[7].mxu1  ;;  %10955 = vmatpush1.bf16.msra.mxu1 %v10954_v31  ;;  %v10957_v13 = vpack.c.bf16 %v8476_v17, %v8475_v45 }
 0xcd2   :  { %9570 = vmatmul.mubr.msk.f32.gmra.mrb[198].mxu0 %vm5478_vm1, %v10003_v53  ;;  %10956 = vmatprep.subr.bf16.mxu1 %v16129_v25 }
 0xcd3   :  { %8040 = vmatprep.mubr.f32.mxu0 %v16128_v61  ;;  %10917 = vmatpush1.bf16.msra.mxu0 %v10916_v11  ;;  %v15636_v11 = vrot.slane %v8379_v29, %v16131_v52 }
 0xcd4   :  { %v10012_v43 = vpop.f32.mrb[8].mxu1  ;;  %10919 = vmatprep.subr.bf16.mxu0 %v10918_v32 }
 0xcd5   :  { %v7445_v2 = vpop.f32.mrb[9].mxu1  ;;  %10958 = vmatpush1.bf16.msra.mxu1 %v10957_v13 }
 0xcd6   :  { %9571 = vmatmul.mubr.msk.f32.gmra.mrb[200].mxu0 %vm5478_vm1, %v7425_v20  ;;  %10959 = vmatprep.subr.bf16.mxu1 %v16129_v25  ;;  %v8477_v20 = vld [vmem:[#allocation16 + $0xb0] sm:$0xff] }
 0xcd7   :  { %8046 = vmatprep.mubr.f32.mxu0 %v16128_v61  ;;  %10921 = vmatpush1.bf16.msra.mxu0 %v10920_v58  ;;  %v10960_v5 = vpack.c.bf16 %v8478_v15, %v8477_v20 }
 0xcd8   :  { %v10015_v44 = vpop.f32.mrb[10].mxu1  ;;  %10923 = vmatprep.subr.bf16.mxu0 %v10922_v21  ;;  %v8675_v21 = vld [vmem:[#allocation16 + $0xd0] sm:$0xff] }
 0xcd9   :  { %v7455_v23 = vpop.f32.mrb[11].mxu1  ;;  %10961 = vmatpush1.bf16.msra.mxu1 %v10960_v5  ;;  %v10966_v28 = vpack.c.bf16 %v8676_v47, %v8675_v21  ;;  %v8685_v5 = vld [vmem:[#allocation16 + $0x120] sm:$0xff] }
 0xcda   :  { %9572 = vmatmul.mubr.msk.f32.gmra.mrb[202].mxu0 %vm5478_vm1, %v10006_v41  ;;  %10962 = vmatprep.subr.bf16.mxu1 %v16129_v25 }
 0xcdb   :  { %8052 = vmatprep.mubr.f32.mxu0 %v16128_v61  ;;  %10925 = vmatpush1.bf16.msra.mxu0 %v10924_v40 }
 0xcdc   :  { %v10018_v60 = vpop.f32.mrb[12].mxu1 }
 0xcdd   :  { %v7465_v57 = vpop.f32.mrb[13].mxu1 }
 0xcde   :  { %9573 = vmatmul.mubr.msk.f32.gmra.mrb[204].mxu0 %vm5478_vm1, %v7435_v37  ;;  %v8674_v37 = vld [vmem:[#allocation16 + $0xc8] sm:$0xff] }
 0xcdf   :  { %8058 = vmatprep.mubr.f32.mxu0 %v16128_v61  ;;  %v10963_v19 = vpack.c.bf16 %v8674_v37, %v8673_v30 }
 0xce0   :  { %v10021_v7 = vpop.f32.mrb[14].mxu1 }
 0xce1   :  { %v7475_v4 = vpop.f32.mrb[15].mxu1 }
 0xce2   :  { %9574 = vmatmul.mubr.msk.f32.gmra.mrb[206].mxu0 %vm5478_vm1, %v10009_v42 }
 0xce3   :  { %8064 = vmatprep.mubr.f32.mxu0 %v16128_v61 }
 0xce4   :  { %v10056_v10 = vpop.f32.mrb[16].mxu1 }
 0xce5   :  { %v7567_v26 = vpop.f32.mrb[17].mxu1 }
 0xce6   :  { %9575 = vmatmul.mubr.msk.f32.gmra.mrb[208].mxu0 %vm5478_vm1, %v7445_v2 }
 0xce7   :  { %8070 = vmatprep.mubr.f32.mxu0 %v16128_v61 }
 0xce8   :  { %v10059_v8 = vpop.f32.mrb[18].mxu1 }
 0xce9   :  { %v7577_v49 = vpop.f32.mrb[19].mxu1 }
 0xcea   :  { %9576 = vmatmul.mubr.msk.f32.gmra.mrb[210].mxu0 %vm5478_vm1, %v10012_v43 }
 0xceb   :  { %8076 = vmatprep.mubr.f32.mxu0 %v16128_v61 }
 0xcec   :  { %v10062_v53 = vpop.f32.mrb[20].mxu1 }
 0xced   :  { %v7587_v39 = vpop.f32.mrb[21].mxu1 }
 0xcee   :  { %9577 = vmatmul.mubr.msk.f32.gmra.mrb[212].mxu0 %vm5478_vm1, %v7455_v23  ;;  %v8677_v23 = vld [vmem:[#allocation16 + $0xe0] sm:$0xff] }
 0xcef   :  { %8082 = vmatprep.mubr.f32.mxu0 %v16128_v61 }
 0xcf0   :  { %v10065_v50 = vpop.f32.mrb[22].mxu1 }
 0xcf1   :  { %v7597_v9 = vpop.f32.mrb[23].mxu1 }
 0xcf2   :  { %9578 = vmatmul.mubr.msk.f32.gmra.mrb[214].mxu0 %vm5478_vm1, %v10015_v44 }
 0xcf3   :  { %8088 = vmatprep.mubr.f32.mxu0 %v16128_v61 }
 0xcf4   :  { %v10068_v34 = vpop.f32.mrb[24].mxu1 }
 0xcf5   :  { %v7607_v14 = vpop.f32.mrb[25].mxu1 }
 0xcf6   :  { %9579 = vmatmul.mubr.msk.f32.gmra.mrb[216].mxu0 %vm5478_vm1, %v7465_v57  ;;  %v10969_v57 = vpack.c.bf16 %v8678_v33, %v8677_v23 }
 0xcf7   :  { %8094 = vmatprep.mubr.f32.mxu0 %v16128_v61 }
 0xcf8   :  { %v10071_v6 = vpop.f32.mrb[26].mxu1 }
 0xcf9   :  { %v7617_v18 = vpop.f32.mrb[27].mxu1 }
 0xcfa   :  { %9580 = vmatmul.mubr.msk.f32.gmra.mrb[218].mxu0 %vm5478_vm1, %v10018_v60 }
 0xcfb   :  { %8100 = vmatprep.mubr.f32.mxu0 %v16128_v61 }
 0xcfc   :  { %v10074_v35 = vpop.f32.mrb[28].mxu1 }
 0xcfd   :  { %v7627_v63 = vpop.f32.mrb[29].mxu1 }
 0xcfe   :  { %9581 = vmatmul.mubr.msk.f32.gmra.mrb[220].mxu0 %vm5478_vm1, %v7475_v4  ;;  %v8680_v4 = vld [vmem:[#allocation16 + $0xf8] sm:$0xff] }
 0xcff   :  { %8106 = vmatprep.mubr.f32.mxu0 %v16128_v61 }
 0xd00   :  { %v10077_v38 = vpop.f32.mrb[30].mxu1 }
 0xd01   :  { %v7637_v41 = vpop.f32.mrb[31].mxu1 }
 0xd02   :  { %9582 = vmatmul.mubr.msk.f32.gmra.mrb[222].mxu0 %vm5478_vm1, %v10021_v7  ;;  %v8679_v7 = vld [vmem:[#allocation16 + $0xf0] sm:$0xff] }
 0xd03   :  { %8250 = vmatprep.mubr.f32.mxu0 %v16128_v61 }
 0xd06   :  { %9607 = vmatmul.mubr.msk.f32.vlgmr.msra.gmra.mrb[192].mxu0 %vm5478_vm1, %v7567_v26 }
 0xd07   :  { %8256 = vmatprep.mubr.f32.mxu0 %v16128_v61 }
 0xd0a   :  { %9608 = vmatmul.mubr.msk.f32.gmra.mrb[194].mxu0 %vm5478_vm1, %v10056_v10  ;;  %v10972_v10 = vpack.c.bf16 %v8680_v4, %v8679_v7 }
 0xd0b   :  { %8262 = vmatprep.mubr.f32.mxu0 %v16128_v61 }
 0xd0e   :  { %9609 = vmatmul.mubr.msk.f32.gmra.mrb[196].mxu0 %vm5478_vm1, %v7577_v49  ;;  %v8681_v49 = vld [vmem:[#allocation16 + $0x100] sm:$0xff] }
 0xd0f   :  { %8268 = vmatprep.mubr.f32.mxu0 %v16128_v61 }
 0xd12   :  { %9610 = vmatmul.mubr.msk.f32.gmra.mrb[198].mxu0 %vm5478_vm1, %v10059_v8 }
 0xd13   :  { %8274 = vmatprep.mubr.f32.mxu0 %v16128_v61 }
 0xd16   :  { %9611 = vmatmul.mubr.msk.f32.gmra.mrb[200].mxu0 %vm5478_vm1, %v7587_v39 }
 0xd17   :  { %8280 = vmatprep.mubr.f32.mxu0 %v16128_v61 }
 0xd1a   :  { %9612 = vmatmul.mubr.msk.f32.gmra.mrb[202].mxu0 %vm5478_vm1, %v10062_v53  ;;  %v8682_v53 = vld [vmem:[#allocation16 + $0x108] sm:$0xff] }
 0xd1b   :  { %8286 = vmatprep.mubr.f32.mxu0 %v16128_v61 }
 0xd1e   :  { %9613 = vmatmul.mubr.msk.f32.gmra.mrb[204].mxu0 %vm5478_vm1, %v7597_v9 }
 0xd1f   :  { %8292 = vmatprep.mubr.f32.mxu0 %v16128_v61 }
 0xd22   :  { %9614 = vmatmul.mubr.msk.f32.gmra.mrb[206].mxu0 %vm5478_vm1, %v10065_v50 }
 0xd23   :  { %8298 = vmatprep.mubr.f32.mxu0 %v16128_v61 }
 0xd26   :  { %9615 = vmatmul.mubr.msk.f32.gmra.mrb[208].mxu0 %vm5478_vm1, %v7607_v14 }
 0xd27   :  { %8304 = vmatprep.mubr.f32.mxu0 %v16128_v61 }
 0xd2a   :  { %9616 = vmatmul.mubr.msk.f32.gmra.mrb[210].mxu0 %vm5478_vm1, %v10068_v34  ;;  %v10975_v34 = vpack.c.bf16 %v8682_v53, %v8681_v49  ;;  %v8691_v53 = vld [vmem:[#allocation16 + $0x150] sm:$0xff] }
 0xd2b   :  { %8310 = vmatprep.mubr.f32.mxu0 %v16128_v61 }
 0xd2e   :  { %9617 = vmatmul.mubr.msk.f32.gmra.mrb[212].mxu0 %vm5478_vm1, %v7617_v18 }
 0xd2f   :  { %8316 = vmatprep.mubr.f32.mxu0 %v16128_v61 }
 0xd32   :  { %9618 = vmatmul.mubr.msk.f32.gmra.mrb[214].mxu0 %vm5478_vm1, %v10071_v6 }
 0xd33   :  { %8322 = vmatprep.mubr.f32.mxu0 %v16128_v61 }
 0xd36   :  { %9619 = vmatmul.mubr.msk.f32.gmra.mrb[216].mxu0 %vm5478_vm1, %v7627_v63  ;;  %v8684_v63 = vld [vmem:[#allocation16 + $0x118] sm:$0xff] }
 0xd37   :  { %8328 = vmatprep.mubr.f32.mxu0 %v16128_v61 }
 0xd3a   :  { %9620 = vmatmul.mubr.msk.f32.gmra.mrb[218].mxu0 %vm5478_vm1, %v10074_v35  ;;  %v8683_v35 = vld [vmem:[#allocation16 + $0x110] sm:$0xff] }
 0xd3b   :  { %8334 = vmatprep.mubr.f32.mxu0 %v16128_v61  ;;  %v10978_v17 = vpack.c.bf16 %v8684_v63, %v8683_v35 }
 0xd3e   :  { %9621 = vmatmul.mubr.msk.f32.gmra.mrb[220].mxu0 %vm5478_vm1, %v7637_v41 }
 0xd3f   :  { %8340 = vmatprep.mubr.f32.mxu0 %v16128_v61  ;;  %v15633_v61 = vrot.slane %v8379_v29, %v16130_v55  ;;  %v8686_v29 = vld [vmem:[#allocation16 + $0x128] sm:$0xff] }
 0xd42   :  { %9622 = vmatmul.mubr.msk.f32.gmra.mrb[222].mxu0 %vm5478_vm1, %v10077_v38 }
 0xdd9   :  { %v8252_v42 = vpop.f32.mrb[192].mxu0 }
 0xdda   :  { %v15639_v32 = vadd.f32 %v15633_v61, %v8252_v42  ;;  %v8254_v46 = vpop.f32.mrb[193].mxu0 }
 0xddb   :  { %v15642_v12 = vadd.f32 %v15636_v11, %v8254_v46  ;;  %v10981_v46 = vpack.c.bf16 %v8686_v29, %v8685_v5  ;;  %v8693_v5 = vld [vmem:[#allocation16 + $0x160] sm:$0xff]  ;;  %v8694_v29 = vld [vmem:[#allocation16 + $0x168] sm:$0xff] }
 0xddc   :  { %v8423_v3 = vmax.f32 %v15639_v32, 0.0  ;;  %v8858_v32 = vld [vmem:[#allocation18] sm:$0xff] }
 0xddd   :  { %v8424_v22 = vmax.f32 %v15642_v12, 0.0  ;;  %v8258_v48 = vpop.f32.mrb[194].mxu0 }
 0xdde   :  { %v15647_v58 = vadd.f32 %v15633_v61, %v8258_v48  ;;  %v8260_v43 = vpop.f32.mrb[195].mxu0 }
 0xddf   :  { %v15650_v59 = vadd.f32 %v15636_v11, %v8260_v43  ;;  %9623 = vmatprep.mubr.msk.f32.mxu1 %vm1325_vm0, %v8424_v22  ;;  %v8688_v43 = vld [vmem:[#allocation16 + $0x138] sm:$0xff] }
 0xde0   :  { %8592 = vmatmul.mubr.f32.vlgmr.msra.gmra.mrb[32].mxu1 %v8423_v3  ;;  %v8425_v54 = vmax.f32 %v15647_v58, 0.0 }
 0xde1   :  { %v8426_v2 = vmax.f32 %v15650_v59, 0.0  ;;  %v8264_v1 = vpop.f32.mrb[196].mxu0  ;;  %10964 = vmatpush1.bf16.msra.mxu1 %v10963_v19  ;;  %v8687_v19 = vld [vmem:[#allocation16 + $0x130] sm:$0xff] }
 0xde2   :  { %v15660_v40 = vadd.f32 %v15633_v61, %v8264_v1  ;;  %v8266_v44 = vpop.f32.mrb[197].mxu0  ;;  %10965 = vmatprep.subr.bf16.mxu1 %v16129_v25 }
 0xde3   :  { %v15664_v62 = vadd.f32 %v15636_v11, %v8266_v44  ;;  %9624 = vmatprep.mubr.msk.f32.mxu1 %vm1325_vm0, %v8426_v2 }
 0xde4   :  { %8597 = vmatmul.mubr.f32.gmra.mrb[34].mxu1 %v8425_v54  ;;  %v8427_v27 = vmax.f32 %v15660_v40, 0.0 }
 0xde5   :  { %v8428_v56 = vmax.f32 %v15664_v62, 0.0  ;;  %v8270_v60 = vpop.f32.mrb[198].mxu0  ;;  %10967 = vmatpush1.bf16.msra.mxu1 %v10966_v28  ;;  %v10984_v28 = vpack.c.bf16 %v8688_v43, %v8687_v19  ;;  %v10993_v19 = vpack.c.bf16 %v8694_v29, %v8693_v5 }
 0xde6   :  { %v15674_v0 = vadd.f32 %v15633_v61, %v8270_v60  ;;  %v8272_v16 = vpop.f32.mrb[199].mxu0  ;;  %10968 = vmatprep.subr.bf16.mxu1 %v16129_v25  ;;  %v8689_v60 = vld [vmem:[#allocation16 + $0x140] sm:$0xff] }
 0xde7   :  { %v15678_v51 = vadd.f32 %v15636_v11, %v8272_v16  ;;  %9625 = vmatprep.mubr.msk.f32.mxu1 %vm1325_vm0, %v8428_v56 }
 0xde8   :  { %8602 = vmatmul.mubr.f32.gmra.mrb[36].mxu1 %v8427_v27  ;;  %v8429_v26 = vmax.f32 %v15674_v0, 0.0 }
 0xde9   :  { %v8430_v24 = vmax.f32 %v15678_v51, 0.0  ;;  %v8276_v36 = vpop.f32.mrb[200].mxu0  ;;  %10970 = vmatpush1.bf16.msra.mxu1 %v10969_v57  ;;  %v8690_v57 = vld [vmem:[#allocation16 + $0x148] sm:$0xff] }
 0xdea   :  { %v15688_v31 = vadd.f32 %v15633_v61, %v8276_v36  ;;  %v8278_v8 = vpop.f32.mrb[201].mxu0  ;;  %10971 = vmatprep.subr.bf16.mxu1 %v16129_v25  ;;  %v10987_v36 = vpack.c.bf16 %v8690_v57, %v8689_v60  ;;  %v8696_v60 = vld [vmem:[#allocation16 + $0x178] sm:$0xff] }
 0xdeb   :  { %v15692_v39 = vadd.f32 %v15636_v11, %v8278_v8  ;;  %9626 = vmatprep.mubr.msk.f32.mxu1 %vm1325_vm0, %v8430_v24 }
 0xdec   :  { %8607 = vmatmul.mubr.f32.gmra.mrb[38].mxu1 %v8429_v26  ;;  %v8431_v14 = vmax.f32 %v15688_v31, 0.0 }
 0xded   :  { %v8432_v50 = vmax.f32 %v15692_v39, 0.0  ;;  %v8282_v9 = vpop.f32.mrb[202].mxu0  ;;  %10973 = vmatpush1.bf16.msra.mxu1 %v10972_v10 }
 0xdee   :  { %v15702_v6 = vadd.f32 %v15633_v61, %v8282_v9  ;;  %v8284_v18 = vpop.f32.mrb[203].mxu0  ;;  %10974 = vmatprep.subr.bf16.mxu1 %v16129_v25  ;;  %v8692_v9 = vld [vmem:[#allocation16 + $0x158] sm:$0xff] }
 0xdef   :  { %v15706_v38 = vadd.f32 %v15636_v11, %v8284_v18  ;;  %9627 = vmatprep.mubr.msk.f32.mxu1 %vm1325_vm0, %v8432_v50  ;;  %v10990_v63 = vpack.c.bf16 %v8692_v9, %v8691_v53 }
 0xdf0   :  { %8612 = vmatmul.mubr.f32.gmra.mrb[40].mxu1 %v8431_v14  ;;  %v8433_v13 = vmax.f32 %v15702_v6, 0.0 }
 0xdf1   :  { %v8434_v41 = vmax.f32 %v15706_v38, 0.0  ;;  %v8288_v45 = vpop.f32.mrb[204].mxu0  ;;  %10976 = vmatpush1.bf16.msra.mxu1 %v10975_v34 }
 0xdf2   :  { %v15716_v20 = vadd.f32 %v15633_v61, %v8288_v45  ;;  %v8290_v15 = vpop.f32.mrb[205].mxu0  ;;  %10977 = vmatprep.subr.bf16.mxu1 %v16129_v25 }
 0xdf3   :  { %v15720_v55 = vadd.f32 %v15636_v11, %v8290_v15  ;;  %9628 = vmatprep.mubr.msk.f32.mxu1 %vm1325_vm0, %v8434_v41 }
 0xdf4   :  { %8617 = vmatmul.mubr.f32.gmra.mrb[42].mxu1 %v8433_v13  ;;  %v8435_v30 = vmax.f32 %v15716_v20, 0.0 }
 0xdf5   :  { %v8436_v52 = vmax.f32 %v15720_v55, 0.0  ;;  %v8294_v42 = vpop.f32.mrb[206].mxu0  ;;  %10979 = vmatpush1.bf16.msra.mxu1 %v10978_v17 }
 0xdf6   :  { %v15730_v37 = vadd.f32 %v15633_v61, %v8294_v42  ;;  %v8296_v48 = vpop.f32.mrb[207].mxu0  ;;  %10980 = vmatprep.subr.bf16.mxu1 %v16129_v25 }
 0xdf7   :  { %v15734_v21 = vadd.f32 %v15636_v11, %v8296_v48  ;;  %9629 = vmatprep.mubr.msk.f32.mxu1 %vm1325_vm0, %v8436_v52 }
 0xdf8   :  { %8622 = vmatmul.mubr.f32.gmra.mrb[44].mxu1 %v8435_v30  ;;  %v8437_v44 = vmax.f32 %v15730_v37, 0.0 }
 0xdf9   :  { %v8438_v47 = vmax.f32 %v15734_v21, 0.0  ;;  %v8300_v1 = vpop.f32.mrb[208].mxu0  ;;  %10982 = vmatpush1.bf16.msra.mxu1 %v10981_v46 }
 0xdfa   :  { %v15744_v23 = vadd.f32 %v15633_v61, %v8300_v1  ;;  %v8302_v33 = vpop.f32.mrb[209].mxu0  ;;  %10983 = vmatprep.subr.bf16.mxu1 %v16129_v25 }
 0xdfb   :  { %v15748_v16 = vadd.f32 %v15636_v11, %v8302_v33  ;;  %9630 = vmatprep.mubr.msk.f32.mxu1 %vm1325_vm0, %v8438_v47  ;;  %v8695_v33 = vld [vmem:[#allocation16 + $0x170] sm:$0xff] }
 0xdfc   :  { %8627 = vmatmul.mubr.f32.gmra.mrb[46].mxu1 %v8437_v44  ;;  %v8439_v10 = vmax.f32 %v15744_v23, 0.0 }
 0xdfd   :  { %v8440_v7 = vmax.f32 %v15748_v16, 0.0  ;;  %v8306_v4 = vpop.f32.mrb[210].mxu0  ;;  %10985 = vmatpush1.bf16.msra.mxu1 %v10984_v28 }
 0xdfe   :  { %v15758_v8 = vadd.f32 %v15633_v61, %v8306_v4  ;;  %v8308_v49 = vpop.f32.mrb[211].mxu0  ;;  %10986 = vmatprep.subr.bf16.mxu1 %v16129_v25 }
 0xdff   :  { %v15762_v34 = vadd.f32 %v15636_v11, %v8308_v49  ;;  %9631 = vmatprep.mubr.msk.f32.mxu1 %vm1325_vm0, %v8440_v7  ;;  %v10996_v49 = vpack.c.bf16 %v8696_v60, %v8695_v33 }
 0xe00   :  { %8632 = vmatmul.mubr.f32.gmra.mrb[48].mxu1 %v8439_v10  ;;  %v8441_v45 = vmax.f32 %v15758_v8, 0.0 }
 0xe01   :  { %v8442_v18 = vmax.f32 %v15762_v34, 0.0  ;;  %v8312_v35 = vpop.f32.mrb[212].mxu0  ;;  %10988 = vmatpush1.bf16.msra.mxu1 %v10987_v36 }
 0xe02   :  { %v15772_v17 = vadd.f32 %v15633_v61, %v8312_v35  ;;  %v8314_v15 = vpop.f32.mrb[213].mxu0  ;;  %10989 = vmatprep.subr.bf16.mxu1 %v16129_v25 }
 0xe03   :  { %v15776_v42 = vadd.f32 %v15636_v11, %v8314_v15  ;;  %9632 = vmatprep.mubr.msk.f32.mxu1 %vm1325_vm0, %v8442_v18 }
 0xe04   :  { %8637 = vmatmul.mubr.f32.gmra.mrb[50].mxu1 %v8441_v45  ;;  %v8443_v43 = vmax.f32 %v15772_v17, 0.0 }
 0xe05   :  { %v8444_v46 = vmax.f32 %v15776_v42, 0.0  ;;  %v8318_v48 = vpop.f32.mrb[214].mxu0  ;;  %10991 = vmatpush1.bf16.msra.mxu1 %v10990_v63 }
 0xe06   :  { %v15786_v1 = vadd.f32 %v15633_v61, %v8318_v48  ;;  %v8320_v28 = vpop.f32.mrb[215].mxu0  ;;  %10992 = vmatprep.subr.bf16.mxu1 %v16129_v25 }
 0xe07   :  { %v15790_v57 = vadd.f32 %v15636_v11, %v8320_v28  ;;  %9633 = vmatprep.mubr.msk.f32.mxu1 %vm1325_vm0, %v8444_v46 }
 0xe08   :  { %8642 = vmatmul.mubr.f32.gmra.mrb[52].mxu1 %v8443_v43  ;;  %v8445_v53 = vmax.f32 %v15786_v1, 0.0 }
 0xe09   :  { %v8446_v4 = vmax.f32 %v15790_v57, 0.0  ;;  %v8324_v36 = vpop.f32.mrb[216].mxu0  ;;  %10994 = vmatpush1.bf16.msra.mxu1 %v10993_v19 }
 0xe0a   :  { %v8415_v9 = vadd.f32 %v15633_v61, %v8324_v36  ;;  %v8326_v35 = vpop.f32.mrb[217].mxu0  ;;  %10995 = vmatprep.subr.bf16.mxu1 %v16129_v25 }
 0xe0b   :  { %v8416_v63 = vadd.f32 %v15636_v11, %v8326_v35  ;;  %9634 = vmatprep.mubr.msk.f32.mxu1 %vm1325_vm0, %v8446_v4 }
 0xe0c   :  { %8647 = vmatmul.mubr.f32.gmra.mrb[54].mxu1 %v8445_v53  ;;  %v8447_v29 = vmax.f32 %v8415_v9, 0.0 }
 0xe0d   :  { %v8448_v15 = vmax.f32 %v8416_v63, 0.0  ;;  %v8330_v5 = vpop.f32.mrb[218].mxu0  ;;  %10997 = vmatpush1.bf16.msra.mxu1 %v10996_v49 }
 0xe0e   :  { %v8417_v48 = vadd.f32 %v15633_v61, %v8330_v5  ;;  %v8332_v19 = vpop.f32.mrb[219].mxu0 }
 0xe0f   :  { %v8418_v28 = vadd.f32 %v15636_v11, %v8332_v19  ;;  %9635 = vmatprep.mubr.msk.f32.mxu1 %vm1325_vm0, %v8448_v15 }
 0xe10   :  { %8652 = vmatmul.mubr.f32.gmra.mrb[56].mxu1 %v8447_v29  ;;  %v8449_v25 = vmax.f32 %v8417_v48, 0.0 }
 0xe11   :  { %v8450_v1 = vmax.f32 %v8418_v28, 0.0  ;;  %v8336_v33 = vpop.f32.mrb[220].mxu0 }
 0xe12   :  { %v8419_v60 = vadd.f32 %v15633_v61, %v8336_v33  ;;  %v8338_v57 = vpop.f32.mrb[221].mxu0 }
 0xe13   :  { %v8420_v36 = vadd.f32 %v15636_v11, %v8338_v57  ;;  %9636 = vmatprep.mubr.msk.f32.mxu1 %vm1325_vm0, %v8450_v1 }
 0xe14   :  { %8657 = vmatmul.mubr.f32.gmra.mrb[58].mxu1 %v8449_v25  ;;  %v8451_v35 = vmax.f32 %v8419_v60, 0.0 }
 0xe15   :  { %v8452_v49 = vmax.f32 %v8420_v36, 0.0  ;;  %v8342_v9 = vpop.f32.mrb[222].mxu0 }
 0xe16   :  { %v8421_v63 = vadd.f32 %v15633_v61, %v8342_v9  ;;  %v8344_v5 = vpop.f32.mrb[223].mxu0 }
 0xe17   :  { %v8422_v19 = vadd.f32 %v15636_v11, %v8344_v5  ;;  %9637 = vmatprep.mubr.msk.f32.mxu1 %vm1325_vm0, %v8452_v49 }
 0xe18   :  { %8662 = vmatmul.mubr.f32.gmra.mrb[60].mxu1 %v8451_v35  ;;  %v8453_v28 = vmax.f32 %v8421_v63, 0.0 }
 0xe19   :  { %v8454_v48 = vmax.f32 %v8422_v19, 0.0 }
 0xe1b   :  { %9638 = vmatprep.mubr.msk.f32.mxu1 %vm1325_vm0, %v8454_v48 }
 0xe1c   :  { %8667 = vmatmul.mubr.f32.gmra.mrb[62].mxu1 %v8453_v28 }
 0xe1d   :  { %9639 = vmatprep.mubr.msk.f32.mxu1 %vm1325_vm0, %v8424_v22  ;;  %v8972_v22 = vld [vmem:[#allocation18 + $0x40] sm:$0xff] }
 0xe1e   :  { %10154 = vmatprep.mubr.f32.mxu0 %v8972_v22 }
 0xe20   :  { %8762 = vmatmul.mubr.f32.vlgmr.msra.gmra.mrb[64].mxu1 %v8423_v3 }
 0xe21   :  { %9640 = vmatprep.mubr.msk.f32.mxu1 %vm1325_vm0, %v8426_v2 }
 0xe24   :  { %8767 = vmatmul.mubr.f32.gmra.mrb[66].mxu1 %v8425_v54 }
 0xe25   :  { %9641 = vmatprep.mubr.msk.f32.mxu1 %vm1325_vm0, %v8428_v56 }
 0xe28   :  { %8772 = vmatmul.mubr.f32.gmra.mrb[68].mxu1 %v8427_v27 }
 0xe29   :  { %9642 = vmatprep.mubr.msk.f32.mxu1 %vm1325_vm0, %v8430_v24 }
 0xe2c   :  { %8777 = vmatmul.mubr.f32.gmra.mrb[70].mxu1 %v8429_v26 }
 0xe2d   :  { %9643 = vmatprep.mubr.msk.f32.mxu1 %vm1325_vm0, %v8432_v50 }
 0xe30   :  { %8782 = vmatmul.mubr.f32.gmra.mrb[72].mxu1 %v8431_v14 }
 0xe31   :  { %9644 = vmatprep.mubr.msk.f32.mxu1 %vm1325_vm0, %v8434_v41 }
 0xe34   :  { %8787 = vmatmul.mubr.f32.gmra.mrb[74].mxu1 %v8433_v13 }
 0xe35   :  { %9645 = vmatprep.mubr.msk.f32.mxu1 %vm1325_vm0, %v8436_v52 }
 0xe38   :  { %8792 = vmatmul.mubr.f32.gmra.mrb[76].mxu1 %v8435_v30 }
 0xe39   :  { %9646 = vmatprep.mubr.msk.f32.mxu1 %vm1325_vm0, %v8438_v47 }
 0xe3c   :  { %8797 = vmatmul.mubr.f32.gmra.mrb[78].mxu1 %v8437_v44 }
 0xe3d   :  { %9647 = vmatprep.mubr.msk.f32.mxu1 %vm1325_vm0, %v8440_v7 }
 0xe40   :  { %8802 = vmatmul.mubr.f32.gmra.mrb[80].mxu1 %v8439_v10 }
 0xe41   :  { %9648 = vmatprep.mubr.msk.f32.mxu1 %vm1325_vm0, %v8442_v18 }
 0xe44   :  { %8807 = vmatmul.mubr.f32.gmra.mrb[82].mxu1 %v8441_v45 }
 0xe45   :  { %9649 = vmatprep.mubr.msk.f32.mxu1 %vm1325_vm0, %v8444_v46 }
 0xe48   :  { %8812 = vmatmul.mubr.f32.gmra.mrb[84].mxu1 %v8443_v43 }
 0xe49   :  { %9650 = vmatprep.mubr.msk.f32.mxu1 %vm1325_vm0, %v8446_v4 }
 0xe4c   :  { %8817 = vmatmul.mubr.f32.gmra.mrb[86].mxu1 %v8445_v53 }
 0xe4d   :  { %9651 = vmatprep.mubr.msk.f32.mxu1 %vm1325_vm0, %v8448_v15 }
 0xe50   :  { %8822 = vmatmul.mubr.f32.gmra.mrb[88].mxu1 %v8447_v29 }
 0xe51   :  { %9652 = vmatprep.mubr.msk.f32.mxu1 %vm1325_vm0, %v8450_v1 }
 0xe54   :  { %8827 = vmatmul.mubr.f32.gmra.mrb[90].mxu1 %v8449_v25 }
 0xe55   :  { %9653 = vmatprep.mubr.msk.f32.mxu1 %vm1325_vm0, %v8452_v49 }
 0xe58   :  { %8832 = vmatmul.mubr.f32.gmra.mrb[92].mxu1 %v8451_v35 }
 0xe59   :  { %9654 = vmatprep.mubr.msk.f32.mxu1 %vm1325_vm0, %v8454_v48 }
 0xe5c   :  { %8837 = vmatmul.mubr.f32.gmra.mrb[94].mxu1 %v8453_v28 }
 0xe5d   :  { %10110 = vmatprep.mubr.f32.mxu1 %v8858_v32 }
 0xeb3   :  { %v8593_v61 = vpop.f32.mrb[32].mxu1 }
 0xeb4   :  { %v8595_v11 = vpop.f32.mrb[33].mxu1 }
 0xeb7   :  { %v8598_v12 = vpop.f32.mrb[34].mxu1 }
 0xeb8   :  { %v8600_v3 = vpop.f32.mrb[35].mxu1 }
 0xebb   :  { %v8603_v58 = vpop.f32.mrb[36].mxu1 }
 0xebc   :  { %v8605_v59 = vpop.f32.mrb[37].mxu1 }
 0xebf   :  { %v8608_v2 = vpop.f32.mrb[38].mxu1 }
 0xec0   :  { %v8610_v54 = vpop.f32.mrb[39].mxu1 }
 0xec3   :  { %v8613_v40 = vpop.f32.mrb[40].mxu1 }
 0xec4   :  { %v8615_v62 = vpop.f32.mrb[41].mxu1 }
 0xec7   :  { %v8618_v56 = vpop.f32.mrb[42].mxu1 }
 0xec8   :  { %v8620_v27 = vpop.f32.mrb[43].mxu1 }
 0xecb   :  { %v8623_v0 = vpop.f32.mrb[44].mxu1 }
 0xecc   :  { %v8625_v51 = vpop.f32.mrb[45].mxu1 }
 0xecf   :  { %v8628_v24 = vpop.f32.mrb[46].mxu1 }
 0xed0   :  { %v8630_v26 = vpop.f32.mrb[47].mxu1 }
 0xed3   :  { %v15873_v31 = vpop.f32.mrb[48].mxu1 }
 0xed4   :  { %v8635_v39 = vpop.f32.mrb[49].mxu1 }
 0xed7   :  { %v15875_v50 = vpop.f32.mrb[50].mxu1 }
 0xed8   :  { %v8640_v14 = vpop.f32.mrb[51].mxu1 }
 0xedb   :  { %v15877_v6 = vpop.f32.mrb[52].mxu1 }
 0xedc   :  { %v8645_v38 = vpop.f32.mrb[53].mxu1 }
 0xedf   :  { %v15879_v41 = vpop.f32.mrb[54].mxu1 }
 0xee0   :  { %v8650_v13 = vpop.f32.mrb[55].mxu1 }
 0xee3   :  { %v15881_v20 = vpop.f32.mrb[56].mxu1 }
 0xee4   :  { %v8655_v55 = vpop.f32.mrb[57].mxu1 }
 0xee5   :  { %v8973_v55 = vld [vmem:[#allocation18 + $0x48] sm:$0xff] }
 0xee7   :  { %v15883_v52 = vpop.f32.mrb[58].mxu1 }
 0xee8   :  { %v8660_v30 = vpop.f32.mrb[59].mxu1 }
 0xee9   :  { %v8974_v30 = vld [vmem:[#allocation18 + $0x50] sm:$0xff] }
 0xeeb   :  { %v15885_v37 = vpop.f32.mrb[60].mxu1 }
 0xeec   :  { %v8665_v21 = vpop.f32.mrb[61].mxu1 }
 0xeed   :  { %v8975_v21 = vld [vmem:[#allocation18 + $0x58] sm:$0xff] }
 0xeef   :  { %v15887_v47 = vpop.f32.mrb[62].mxu1 }
 0xef0   :  { %v8670_v44 = vpop.f32.mrb[63].mxu1 }
 0xef1   :  { %v8863_v44 = vld [vmem:[#allocation18 + $0x28] sm:$0xff] }
 0xef3   :  { %v8763_v23 = vpop.f32.mrb[64].mxu1 }
 0xef4   :  { %v8842_v16 = vmax.f32 %v8593_v61, %v8763_v23  ;;  %v8765_v7 = vpop.f32.mrb[65].mxu1  ;;  %v8864_v23 = vld [vmem:[#allocation18 + $0x30] sm:$0xff] }
 0xef5   :  { %v8976_v7 = vld [vmem:[#allocation18 + $0x60] sm:$0xff] }
 0xef7   :  { %v8768_v10 = vpop.f32.mrb[66].mxu1 }
 0xef8   :  { %v8843_v8 = vmax.f32 %v8598_v12, %v8768_v10  ;;  %v8770_v34 = vpop.f32.mrb[67].mxu1  ;;  %v8977_v10 = vld [vmem:[#allocation18 + $0x68] sm:$0xff] }
 0xef9   :  { %v8979_v34 = vld [vmem:[#allocation18 + $0x78] sm:$0xff] }
 0xefa   :  { %v15889_v18 = vpack.c.bf16 %v8843_v8, %v8842_v16  ;;  %v8865_v16 = vld [vmem:[#allocation18 + $0x38] sm:$0xff]  ;;  %v8978_v8 = vld [vmem:[#allocation18 + $0x70] sm:$0xff] }
 0xefb   :  { %v8773_v45 = vpop.f32.mrb[68].mxu1 }
 0xefc   :  { %v8844_v17 = vmax.f32 %v8603_v58, %v8773_v45  ;;  %v8775_v42 = vpop.f32.mrb[69].mxu1  ;;  %10999 = vmatprep.subr.bf16.mxu1 %v15889_v18  ;;  %11031 = vmatprep.subr.bf16.mxu0 %v15889_v18 }
 0xefd   :  { %11001 = vmatpush3.bf16.msra.mxu1 %v15889_v18  ;;  %11033 = vmatpush3.bf16.msra.mxu0 %v15889_v18 }
 0xeff   :  { %v8778_v46 = vpop.f32.mrb[70].mxu1 }
 0xf00   :  { %v8845_v43 = vmax.f32 %v8608_v2, %v8778_v46  ;;  %v8780_v4 = vpop.f32.mrb[71].mxu1 }
 0xf02   :  { %v15895_v53 = vpack.c.bf16 %v8845_v43, %v8844_v17 }
 0xf03   :  { %v8783_v15 = vpop.f32.mrb[72].mxu1 }
 0xf04   :  { %v8846_v29 = vmax.f32 %v8613_v40, %v8783_v15  ;;  %v8785_v1 = vpop.f32.mrb[73].mxu1  ;;  %11003 = vmatprep.subr.bf16.mxu1 %v15895_v53  ;;  %11035 = vmatprep.subr.bf16.mxu0 %v15895_v53 }
 0xf05   :  { %11005 = vmatpush3.bf16.msra.mxu1 %v15895_v53  ;;  %11037 = vmatpush3.bf16.msra.mxu0 %v15895_v53 }
 0xf07   :  { %v8788_v33 = vpop.f32.mrb[74].mxu1 }
 0xf08   :  { %v8847_v25 = vmax.f32 %v8618_v56, %v8788_v33  ;;  %v8790_v60 = vpop.f32.mrb[75].mxu1 }
 0xf0a   :  { %v15901_v57 = vpack.c.bf16 %v8847_v25, %v8846_v29 }
 0xf0b   :  { %v8793_v36 = vpop.f32.mrb[76].mxu1 }
 0xf0c   :  { %v8848_v49 = vmax.f32 %v8623_v0, %v8793_v36  ;;  %v8795_v9 = vpop.f32.mrb[77].mxu1  ;;  %11007 = vmatprep.subr.bf16.mxu1 %v15901_v57  ;;  %11039 = vmatprep.subr.bf16.mxu0 %v15901_v57 }
 0xf0d   :  { %11009 = vmatpush3.bf16.msra.mxu1 %v15901_v57  ;;  %11041 = vmatpush3.bf16.msra.mxu0 %v15901_v57 }
 0xf0f   :  { %v8798_v35 = vpop.f32.mrb[78].mxu1 }
 0xf10   :  { %v8849_v63 = vmax.f32 %v8628_v24, %v8798_v35  ;;  %v8800_v5 = vpop.f32.mrb[79].mxu1 }
 0xf12   :  { %v15907_v19 = vpack.c.bf16 %v8849_v63, %v8848_v49 }
 0xf13   :  { %v8803_v48 = vpop.f32.mrb[80].mxu1 }
 0xf14   :  { %v8850_v28 = vmax.f32 %v15873_v31, %v8803_v48  ;;  %v8805_v61 = vpop.f32.mrb[81].mxu1  ;;  %11011 = vmatprep.subr.bf16.mxu1 %v15907_v19  ;;  %11043 = vmatprep.subr.bf16.mxu0 %v15907_v19 }
 0xf15   :  { %11013 = vmatpush3.bf16.msra.mxu1 %v15907_v19  ;;  %11045 = vmatpush3.bf16.msra.mxu0 %v15907_v19 }
 0xf17   :  { %v8808_v11 = vpop.f32.mrb[82].mxu1 }
 0xf18   :  { %v8851_v32 = vmax.f32 %v15875_v50, %v8808_v11  ;;  %v8810_v12 = vpop.f32.mrb[83].mxu1 }
 0xf1a   :  { %v15915_v22 = vpack.c.bf16 %v8851_v32, %v8850_v28 }
 0xf1b   :  { %v8813_v3 = vpop.f32.mrb[84].mxu1 }
 0xf1c   :  { %v8852_v58 = vmax.f32 %v15877_v6, %v8813_v3  ;;  %v8815_v59 = vpop.f32.mrb[85].mxu1  ;;  %11015 = vmatprep.subr.bf16.mxu1 %v15915_v22  ;;  %11047 = vmatprep.subr.bf16.mxu0 %v15915_v22 }
 0xf1d   :  { %11017 = vmatpush3.bf16.msra.mxu1 %v15915_v22  ;;  %11049 = vmatpush3.bf16.msra.mxu0 %v15915_v22 }
 0xf1f   :  { %v8818_v2 = vpop.f32.mrb[86].mxu1 }
 0xf20   :  { %v8853_v54 = vmax.f32 %v15879_v41, %v8818_v2  ;;  %v8820_v40 = vpop.f32.mrb[87].mxu1 }
 0xf22   :  { %v11018_v62 = vpack.c.bf16 %v8853_v54, %v8852_v58 }
 0xf23   :  { %v8823_v56 = vpop.f32.mrb[88].mxu1 }
 0xf24   :  { %v8854_v27 = vmax.f32 %v15881_v20, %v8823_v56  ;;  %v8825_v0 = vpop.f32.mrb[89].mxu1  ;;  %11019 = vmatprep.subr.bf16.mxu1 %v11018_v62  ;;  %11051 = vmatprep.subr.bf16.mxu0 %v11018_v62  ;;  %v8859_v20 = vld [vmem:[#allocation18 + $0x8] sm:$0xff] }
 0xf25   :  { %11021 = vmatpush3.bf16.msra.mxu1 %v11018_v62  ;;  %11053 = vmatpush3.bf16.msra.mxu0 %v11018_v62 }
 0xf27   :  { %v8828_v51 = vpop.f32.mrb[90].mxu1 }
 0xf28   :  { %v8855_v24 = vmax.f32 %v15883_v52, %v8828_v51  ;;  %v8830_v26 = vpop.f32.mrb[91].mxu1  ;;  %v8860_v52 = vld [vmem:[#allocation18 + $0x10] sm:$0xff] }
 0xf2a   :  { %v11022_v31 = vpack.c.bf16 %v8855_v24, %v8854_v27 }
 0xf2b   :  { %v8833_v39 = vpop.f32.mrb[92].mxu1 }
 0xf2c   :  { %v8856_v50 = vmax.f32 %v15885_v37, %v8833_v39  ;;  %v8835_v14 = vpop.f32.mrb[93].mxu1  ;;  %11023 = vmatprep.subr.bf16.mxu1 %v11022_v31  ;;  %11055 = vmatprep.subr.bf16.mxu0 %v11022_v31  ;;  %v8861_v37 = vld [vmem:[#allocation18 + $0x18] sm:$0xff] }
 0xf2d   :  { %11025 = vmatpush3.bf16.msra.mxu1 %v11022_v31  ;;  %11057 = vmatpush3.bf16.msra.mxu0 %v11022_v31 }
 0xf2f   :  { %v8838_v6 = vpop.f32.mrb[94].mxu1 }
 0xf30   :  { %v8857_v38 = vmax.f32 %v15887_v47, %v8838_v6  ;;  %v8840_v41 = vpop.f32.mrb[95].mxu1  ;;  %v8862_v47 = vld [vmem:[#allocation18 + $0x20] sm:$0xff] }
 0xf32   :  { %v11026_v13 = vpack.c.bf16 %v8857_v38, %v8856_v50 }
 0xf34   :  { %11027 = vmatprep.subr.bf16.mxu1 %v11026_v13  ;;  %11059 = vmatprep.subr.bf16.mxu0 %v11026_v13 }
 0xf35   :  { %11029 = vmatpush3.bf16.msra.mxu1 %v11026_v13  ;;  %11061 = vmatpush3.bf16.msra.mxu0 %v11026_v13 }
 0xf36   :  { %11062 = vmatprep.subr.bf16.mxu1 %v15889_v18 }
 0xf38   :  { %10111 = vmatmul.mubr.f32.vlgmr.msra.gmra.mrb[96].mxu1 %v8859_v20  ;;  %10155 = vmatmul.mubr.f32.vlgmr.msra.gmra.mrb[224].mxu0 %v8973_v55 }
 0xf39   :  { %11070 = vmatpush3.bf16.msra.mxu1 %v15889_v18  ;;  %10113 = vmatprep.mubr.f32.mxu1 %v8860_v52 }
 0xf3a   :  { %11063 = vmatprep.subr.bf16.mxu1 %v15895_v53  ;;  %10157 = vmatprep.mubr.f32.mxu0 %v8974_v30 }
 0xf3c   :  { %10114 = vmatmul.mubr.f32.gmra.mrb[98].mxu1 %v8861_v37  ;;  %10158 = vmatmul.mubr.f32.gmra.mrb[226].mxu0 %v8975_v21 }
 0xf3d   :  { %11071 = vmatpush3.bf16.msra.mxu1 %v15895_v53  ;;  %10116 = vmatprep.mubr.f32.mxu1 %v8862_v47 }
 0xf3e   :  { %11064 = vmatprep.subr.bf16.mxu1 %v15901_v57 }
 0xf40   :  { %10117 = vmatmul.mubr.f32.gmra.mrb[100].mxu1 %v8863_v44 }
 0xf41   :  { %11072 = vmatpush3.bf16.msra.mxu1 %v15901_v57  ;;  %10119 = vmatprep.mubr.f32.mxu1 %v8864_v23 }
 0xf42   :  { %11065 = vmatprep.subr.bf16.mxu1 %v15907_v19 }
 0xf44   :  { %10120 = vmatmul.mubr.f32.gmra.mrb[102].mxu1 %v8865_v16 }
 0xf45   :  { %11073 = vmatpush3.bf16.msra.mxu1 %v15907_v19  ;;  %10160 = vmatprep.mubr.f32.mxu1 %v8976_v7 }
 0xf46   :  { %11066 = vmatprep.subr.bf16.mxu1 %v15915_v22 }
 0xf49   :  { %11074 = vmatpush3.bf16.msra.mxu1 %v15915_v22 }
 0xf4a   :  { %11067 = vmatprep.subr.bf16.mxu1 %v11018_v62 }
 0xf4d   :  { %11075 = vmatpush3.bf16.msra.mxu1 %v11018_v62 }
 0xf4e   :  { %11068 = vmatprep.subr.bf16.mxu1 %v11022_v31 }
 0xf51   :  { %11076 = vmatpush3.bf16.msra.mxu1 %v11022_v31 }
 0xf52   :  { %11069 = vmatprep.subr.bf16.mxu1 %v11026_v13 }
 0xf55   :  { %11077 = vmatpush3.bf16.msra.mxu1 %v11026_v13 }
 0xf58   :  { %10161 = vmatmul.mubr.f32.vlgmr.msra.gmra.mrb[104].mxu1 %v8977_v10 }
 0xf59   :  { %10163 = vmatprep.mubr.f32.mxu1 %v8978_v8 }
 0xf5c   :  { %10164 = vmatmul.mubr.f32.gmra.mrb[106].mxu1 %v8979_v34 }
0x100b   :  { %v10112_v18 = vpop.f32.mrb[96].mxu1  ;;  %v10156_v45 = vpop.f32.mrb[224].mxu0 }
0x100c   :  { %v9086_v17 = vmax.f32 %v10112_v18, %v10156_v45  ;;  %v8932_v42 = vpop.f32.mrb[97].mxu1  ;;  %v9046_v46 = vpop.f32.mrb[225].mxu0 }
0x100d   :  { %v9085_v43 = vmax.f32 %v8932_v42, %v9046_v46 }
0x100f   :  { %v9674_v4 = vpack.c.bf16 %v9086_v17, %v9085_v43  ;;  %v10115_v53 = vpop.f32.mrb[98].mxu1  ;;  %v10159_v15 = vpop.f32.mrb[226].mxu0 }
0x1010   :  { %v8942_v29 = vpop.f32.mrb[99].mxu1  ;;  %v9088_v1 = vmax.f32 %v10115_v53, %v10159_v15  ;;  %v9056_v33 = vpop.f32.mrb[227].mxu0 }
0x1011   :  { %9675 = vst [vmem:[%s16132_s0] sm:$0xff] %v9674_v4   ;;  %v9087_v25 = vmax.f32 %v8942_v29, %v9056_v33 }
0x1013   :  { %v10118_v60 = vpop.f32.mrb[100].mxu1  ;;  %v9679_v57 = vpack.c.bf16 %v9088_v1, %v9087_v25 }
0x1014   :  { %v8952_v36 = vpop.f32.mrb[101].mxu1 }
0x1015   :  { %9691 = vst [vmem:[%s16132_s0 + $0x8] sm:$0xff] %v9679_v57  }
0x1017   :  { %v10121_v49 = vpop.f32.mrb[102].mxu1 }
0x1018   :  { %v8962_v9 = vpop.f32.mrb[103].mxu1 }
0x102b   :  { %v10162_v35 = vpop.f32.mrb[104].mxu1 }
0x102c   :  { %v9090_v63 = vmax.f32 %v10118_v60, %v10162_v35  ;;  %v9066_v5 = vpop.f32.mrb[105].mxu1 }
0x102d   :  { %v9089_v19 = vmax.f32 %v8952_v36, %v9066_v5 }
0x102f   :  { %v9684_v48 = vpack.c.bf16 %v9090_v63, %v9089_v19  ;;  %v10165_v28 = vpop.f32.mrb[106].mxu1 }
0x1030   :  { %v9092_v61 = vmax.f32 %v10121_v49, %v10165_v28  ;;  %v9076_v11 = vpop.f32.mrb[107].mxu1 }
0x1031   :  { %9692 = vst [vmem:[%s16132_s0 + $0x10] sm:$0xff] %v9684_v48   ;;  %v9091_v32 = vmax.f32 %v8962_v9, %v9076_v11 }
0x1033   :  { %v9689_v12 = vpack.c.bf16 %v9092_v61, %v9091_v32 }
0x1035   :  { %9693 = vst [vmem:[%s16132_s0 + $0x18] sm:$0xff] %v9689_v12  }
0x1036   :  { %9137 = vsyncpa [#allocation3], 1 }
0x1037   :  { %9138 = vsyncpa [#allocation5], 1 }
0x1038   :  { %9139 = vsyncpa [#allocation8], 1 }
0x1039   :  { %9140 = vsyncpa [#allocation11], 1 }
0x103a   :  { %9141 = vsyncpa [#allocation14], 1 }
0x103b   :  { %9142 = vsyncpa [#allocation17], 1 }

</bundles_post_ra>
